<compile_context>
chip_gen: v7x
topology: tpu7x:2x2x1
jax: 0.10.0
libtpu: 0.0.40
codegen_flags: <defaults>
</compile_context>

<pallas_src>
import jax
import jax.numpy as jnp
import numpy as np
from jax import lax
from jax.experimental import pallas as pl
from jax.experimental.pallas import tpu as pltpu

jax.config.update("jax_default_matmul_precision", "highest")

KT, KD = 5, 3          # (time, delay) kernel of the scoring conv
PAD_T, PAD_D = 4, 1    # ZeroPad2d([1, 1, 4, 0]) -> delay: (1, 1), time: (4, 0)


def _align_block_kernel(xmic_ref, xref_ref, wq_ref, bq_ref, wkv_ref, bkv_ref,
                        rbig_ref, mbig_ref, out_ref):
    T = xmic_ref.shape[1]
    HF = wq_ref.shape[1]           # H * F
    DH = rbig_ref.shape[1]         # D * H
    D = mbig_ref.shape[1]          # delay
    f32 = jnp.float32

    xmic = xmic_ref[0]             # (T, C*F)
    xref = xref_ref[0]             # (T, C*F)

    # ---- 1x1 convs (pconv_mic / pconv_ref / pconv_val) as two MXU matmuls ----
    q = jnp.dot(xmic, wq_ref[...], preferred_element_type=f32) + bq_ref[...]
    kv = jnp.dot(xref, wkv_ref[...], preferred_element_type=f32) + bkv_ref[...]
    k, val = kv[:, :HF], kv[:, HF:]                       # (T, H*F) each

    # ---- causal unfold pad: delay-1 zero frames in front (post-conv) ----
    zpad = jnp.zeros((D - 1, HF), f32)
    kpad = jnp.concatenate([zpad, k], axis=0)             # (T+D-1, H*F)
    valpad = jnp.concatenate([zpad, val], axis=0)         # (T+D-1, H*F)

    # ---- correlation V[t, d*H+h] = sum_f q[t, h*F+f] * kpad[t+d, h*F+f] ----
    # One elementwise product per delay tap, then a single block-selector
    # matmul does all (d, h) reductions over F at once.
    pcat = jnp.concatenate([q * kpad[d:d + T, :] for d in range(D)], axis=1)
    v2 = jnp.dot(pcat, rbig_ref[...], preferred_element_type=f32)   # (T, D*H)

    # ---- ZeroPad2d([1,1,4,0]) + Conv2d(H->1,(5,3)) as one matmul ----
    # delay (+-1) taps are baked into mbig; the 5 causal time taps are 5
    # shifted row slices concatenated on the lane axis.
    v2p = jnp.concatenate([jnp.zeros((PAD_T, DH), f32), v2], axis=0)  # (T+4, D*H)
    vcat = jnp.concatenate([v2p[kt:kt + T, :] for kt in range(KT)], axis=1)
    s = jnp.dot(vcat, mbig_ref[...], preferred_element_type=f32)      # (T, D)
    # NOTE: conv bias is constant along the softmax axis -> cancels, omitted.

    # ---- softmax over the delay axis ----
    s = s - jnp.max(s, axis=-1, keepdims=True)
    e = jnp.exp(s)
    a = e / jnp.sum(e, axis=-1, keepdims=True)                        # (T, D)

    # ---- y[t, h*F+f] = sum_d a[t, d] * valpad[t+d, h*F+f] ----
    acc = jnp.zeros((T, HF), f32)
    for d in range(D):
        acc = acc + a[:, d:d + 1] * valpad[d:d + T, :]
    out_ref[0] = acc                                                  # lane-dense store


def align_block(x_mic, x_ref, params, delay):
    """x_mic, x_ref: (B, C, T, F) float32 -> (B, hidden, T, F) float32."""
    B, Cm, T, F = x_mic.shape
    Cr = x_ref.shape[1]
    D = delay

    wq = params["wq"][:, :, 0, 0]          # (H, Cm)
    wk = params["wk"][:, :, 0, 0]          # (H, Cr)
    wv = params["wv"][:, :, 0, 0]          # (H, Cr)
    H = wq.shape[0]
    eye_f = jnp.eye(F, dtype=jnp.float32)

    # kron-expanded 1x1-conv weights so the projections run directly in the
    # (T, channel*F) lane layout (no in-kernel transposes).
    wq_big = jnp.kron(wq.T, eye_f)                         # (Cm*F, H*F)
    wk_big = jnp.kron(wk.T, eye_f)                         # (Cr*F, H*F)
    wv_big = jnp.kron(wv.T, eye_f)                         # (Cr*F, H*F)
    wkv_big = jnp.concatenate([wk_big, wv_big], axis=1)    # (Cr*F, 2*H*F)
    bq_row = jnp.repeat(params["bq"], F)[None, :]          # (1, H*F)
    bkv_row = jnp.concatenate([jnp.repeat(params["bk"], F),
                               jnp.repeat(params["bv"], F)])[None, :]

    # Block selector: reduces F within each (delay, hidden) group in one matmul.
    r = jnp.kron(jnp.eye(H, dtype=jnp.float32),
                 jnp.ones((F, 1), jnp.float32))             # (H*F, H)
    rbig = jnp.kron(jnp.eye(D, dtype=jnp.float32), r)       # (D*H*F, D*H)

    # (5,3) conv folded to a (5*D*H, D) matrix; the +-1 delay pad is baked in.
    wc = params["wc"][0]                                    # (H, 5, 3)
    m_kt = []
    for kt in range(KT):
        m = jnp.zeros((D * H, D), jnp.float32)
        for kd in range(KD):
            shift = jnp.eye(D, k=1 - kd, dtype=jnp.float32)  # E[dp,d]=1 iff dp=d+kd-1
            m = m + jnp.kron(shift, wc[:, kt, kd][:, None])
        m_kt.append(m)
    mbig = jnp.concatenate(m_kt, axis=0)                    # (5*D*H, D)

    # NCHW -> (B, T, C*F) lane-dense slabs (wrapper glue).
    xmic_t = jnp.transpose(x_mic, (0, 2, 1, 3)).reshape(B, T, Cm * F)
    xref_t = jnp.transpose(x_ref, (0, 2, 1, 3)).reshape(B, T, Cr * F)

    args = (xmic_t, xref_t, wq_big, bq_row, wkv_big, bkv_row, rbig, mbig)

    def full_spec(a):
        nd = a.ndim
        return pl.BlockSpec(a.shape, lambda b, _nd=nd: (0,) * _nd)

    in_specs = [pl.BlockSpec((1, T, Cm * F), lambda b: (b, 0, 0)),
                pl.BlockSpec((1, T, Cr * F), lambda b: (b, 0, 0))]
    in_specs += [full_spec(a) for a in args[2:]]

    out = pl.pallas_call(
        _align_block_kernel,
        out_shape=jax.ShapeDtypeStruct((B, T, H * F), jnp.float32),
        grid=(B,),
        in_specs=in_specs,
        out_specs=pl.BlockSpec((1, T, H * F), lambda b: (b, 0, 0)),
        compiler_params=pltpu.CompilerParams(dimension_semantics=("parallel",)),
    )(*args)
    # (B, T, H*F) -> (B, H, T, F)
    return jnp.transpose(out.reshape(B, T, H, F), (0, 2, 1, 3))


def init_params(key, c_mic, c_ref, hidden):
    """Deterministic synthetic parameters in PyTorch (OIHW) layout."""
    ks = jax.random.split(key, 5)

    def conv1x1_init(k, cin, cout):
        k1, k2 = jax.random.split(k)
        w = jax.random.normal(k1, (cout, cin, 1, 1), jnp.float32) / np.sqrt(cin)
        b = 0.1 * jax.random.normal(k2, (cout,), jnp.float32)
        return w, b

    wq, bq = conv1x1_init(ks[0], c_mic, hidden)
    wk, bk = conv1x1_init(ks[1], c_ref, hidden)
    wv, bv = conv1x1_init(ks[2], c_ref, hidden)
    wc = jax.random.normal(ks[3], (1, hidden, KT, KD), jnp.float32) / np.sqrt(hidden * KT * KD)
    bc = 0.1 * jax.random.normal(ks[4], (1,), jnp.float32)
    return dict(wq=wq, bq=bq, wk=wk, bk=bk, wv=wv, bv=bv, wc=wc, bc=bc)


def reference_align_block(x_mic, x_ref, p, delay):
    """Pure-JAX mirror of the PyTorch AlignBlock.forward (NCHW)."""
    dn = ("NCHW", "OIHW", "NCHW")
    prec = lax.Precision.HIGHEST

    def conv1x1(x, w, b):
        y = lax.conv_general_dilated(x, w, (1, 1), "VALID",
                                     dimension_numbers=dn, precision=prec)
        return y + b[None, :, None, None]

    q = conv1x1(x_mic, p["wq"], p["bq"])        # (B,H,T,F)
    k = conv1x1(x_ref, p["wk"], p["bk"])
    val = conv1x1(x_ref, p["wv"], p["bv"])
    _, _, T, _ = q.shape
    D = delay

    def unfold_time(z):                         # -> (B,H,T,D,F), z_pad[t+d]
        zp = jnp.pad(z, ((0, 0), (0, 0), (D - 1, 0), (0, 0)))
        return jnp.stack([zp[:, :, d:d + T, :] for d in range(D)], axis=3)

    ku = unfold_time(k)
    v = jnp.sum(q[:, :, :, None, :] * ku, axis=-1)             # (B,H,T,D)
    vp = jnp.pad(v, ((0, 0), (0, 0), (PAD_T, 0), (PAD_D, PAD_D)))
    s = lax.conv_general_dilated(vp, p["wc"], (1, 1), "VALID",
                                 dimension_numbers=dn, precision=prec)
    s = s + p["bc"][None, :, None, None]                       # (B,1,T,D)
    a = jax.nn.softmax(s, axis=-1)[..., None]                  # (B,1,T,D,1)
    vu = unfold_time(val)                                      # (B,H,T,D,F)
    return jnp.sum(vu * a, axis=-2)                            # (B,H,T,F)


if __name__ == "__main__":
    B, C, T, F = 2, 4, 16, 16
    H, D = 8, 16                                 # hidden channels, delay
    key = jax.random.PRNGKey(0)
    k1, k2, k3 = jax.random.split(key, 3)
    x_mic = jax.random.normal(k1, (B, C, T, F), dtype=jnp.float32)
    x_ref = jax.random.normal(k2, (B, C, T, F), dtype=jnp.float32)
    params = init_params(k3, C, C, H)

    y = align_block(x_mic, x_ref, params, delay=D)
    y = jax.block_until_ready(y)

    y_ref = jax.block_until_ready(reference_align_block(x_mic, x_ref, params, D))
    np.testing.assert_allclose(np.asarray(y), np.asarray(y_ref),
                               rtol=2e-2, atol=2e-2)
    print("KERNEL_OK")
</pallas_src>

<mosaic_0001>
module attributes {stable_mosaic.version = 11 : i64} {
  func.func @_align_block_kernel(%arg0: i32, %arg1: memref<1x16x64xf32, #tpu.memory_space<vmem>>, %arg2: memref<1x16x64xf32, #tpu.memory_space<vmem>>, %arg3: memref<64x128xf32, #tpu.memory_space<vmem>>, %arg4: memref<1x128xf32, #tpu.memory_space<vmem>>, %arg5: memref<64x256xf32, #tpu.memory_space<vmem>>, %arg6: memref<1x256xf32, #tpu.memory_space<vmem>>, %arg7: memref<2048x128xf32, #tpu.memory_space<vmem>>, %arg8: memref<640x16xf32, #tpu.memory_space<vmem>>, %arg9: memref<1x16x128xf32, #tpu.memory_space<vmem>>) attributes {dimension_semantics = [#tpu.dimension_semantics<parallel>], iteration_bounds = array<i64: 2>, scalar_prefetch = 0 : i64, scratch_operands = 0 : i64, tpu.core_type = #tpu.core_type<tc>, window_params = [{transform_indices = @transform_0, window_bounds = array<i64: 1, 16, 64>}, {transform_indices = @transform_1, window_bounds = array<i64: 1, 16, 64>}, {pipeline_mode = #tpu.pipeline_mode<synchronous>, transform_indices = @transform_2, window_bounds = array<i64: 64, 128>}, {pipeline_mode = #tpu.pipeline_mode<synchronous>, transform_indices = @transform_3, window_bounds = array<i64: 1, 128>}, {pipeline_mode = #tpu.pipeline_mode<synchronous>, transform_indices = @transform_4, window_bounds = array<i64: 64, 256>}, {pipeline_mode = #tpu.pipeline_mode<synchronous>, transform_indices = @transform_5, window_bounds = array<i64: 1, 256>}, {pipeline_mode = #tpu.pipeline_mode<synchronous>, transform_indices = @transform_6, window_bounds = array<i64: 2048, 128>}, {pipeline_mode = #tpu.pipeline_mode<synchronous>, transform_indices = @transform_7, window_bounds = array<i64: 640, 16>}, {transform_indices = @transform_8, window_bounds = array<i64: 1, 16, 128>}]} {
    %c0 = arith.constant 0 : index
    %c0_0 = arith.constant 0 : index
    %c0_1 = arith.constant 0 : index
    %0 = vector.load %arg1[%c0, %c0_0, %c0_1] : memref<1x16x64xf32, #tpu.memory_space<vmem>>, vector<1x16x64xf32>
    %1 = vector.shape_cast %0 : vector<1x16x64xf32> to vector<16x64xf32>
    %c0_2 = arith.constant 0 : index
    %c0_3 = arith.constant 0 : index
    %c0_4 = arith.constant 0 : index
    %2 = vector.load %arg2[%c0_2, %c0_3, %c0_4] : memref<1x16x64xf32, #tpu.memory_space<vmem>>, vector<1x16x64xf32>
    %3 = vector.shape_cast %2 : vector<1x16x64xf32> to vector<16x64xf32>
    %c0_5 = arith.constant 0 : index
    %c0_6 = arith.constant 0 : index
    %4 = vector.load %arg3[%c0_5, %c0_6] : memref<64x128xf32, #tpu.memory_space<vmem>>, vector<64x128xf32>
    %cst = arith.constant dense<0.000000e+00> : vector<16x128xf32>
    %5 = tpu.matmul %1, %4, %cst {dimension_numbers = #tpu.dot_dimension_numbers<[1], [0], [0], [1], [0, 0, 1, 1], [], []>, precision = #tpu.contract_precision<fp32>} : vector<16x64xf32>, vector<64x128xf32>, vector<16x128xf32> -> vector<16x128xf32>
    %c0_7 = arith.constant 0 : index
    %c0_8 = arith.constant 0 : index
    %6 = vector.load %arg4[%c0_7, %c0_8] : memref<1x128xf32, #tpu.memory_space<vmem>>, vector<1x128xf32>
    %7 = vector.broadcast %6 : vector<1x128xf32> to vector<16x128xf32>
    %8 = arith.addf %5, %7 : vector<16x128xf32>
    %c0_9 = arith.constant 0 : index
    %c0_10 = arith.constant 0 : index
    %9 = vector.load %arg5[%c0_9, %c0_10] : memref<64x256xf32, #tpu.memory_space<vmem>>, vector<64x256xf32>
    %cst_11 = arith.constant dense<0.000000e+00> : vector<16x256xf32>
    %10 = tpu.matmul %3, %9, %cst_11 {dimension_numbers = #tpu.dot_dimension_numbers<[1], [0], [0], [1], [0, 0, 1, 1], [], []>, precision = #tpu.contract_precision<fp32>} : vector<16x64xf32>, vector<64x256xf32>, vector<16x256xf32> -> vector<16x256xf32>
    %c0_12 = arith.constant 0 : index
    %c0_13 = arith.constant 0 : index
    %11 = vector.load %arg6[%c0_12, %c0_13] : memref<1x256xf32, #tpu.memory_space<vmem>>, vector<1x256xf32>
    %12 = vector.broadcast %11 : vector<1x256xf32> to vector<16x256xf32>
    %13 = arith.addf %10, %12 : vector<16x256xf32>
    %14 = vector.extract_strided_slice %13 {offsets = [0, 0], sizes = [16, 128], strides = [1, 1]} : vector<16x256xf32> to vector<16x128xf32>
    %15 = vector.extract_strided_slice %13 {offsets = [0, 128], sizes = [16, 128], strides = [1, 1]} : vector<16x256xf32> to vector<16x128xf32>
    %cst_14 = arith.constant 0.000000e+00 : f32
    %16 = vector.broadcast %cst_14 : f32 to vector<15x128xf32>
    %17 = tpu.concatenate %16, %14 in 0 : vector<15x128xf32>, vector<16x128xf32> -> vector<31x128xf32>
    %18 = tpu.concatenate %16, %15 in 0 : vector<15x128xf32>, vector<16x128xf32> -> vector<31x128xf32>
    %19 = vector.extract_strided_slice %17 {offsets = [0, 0], sizes = [16, 128], strides = [1, 1]} : vector<31x128xf32> to vector<16x128xf32>
    %20 = arith.mulf %8, %19 : vector<16x128xf32>
    %21 = vector.extract_strided_slice %17 {offsets = [1, 0], sizes = [16, 128], strides = [1, 1]} : vector<31x128xf32> to vector<16x128xf32>
    %22 = arith.mulf %8, %21 : vector<16x128xf32>
    %23 = vector.extract_strided_slice %17 {offsets = [2, 0], sizes = [16, 128], strides = [1, 1]} : vector<31x128xf32> to vector<16x128xf32>
    %24 = arith.mulf %8, %23 : vector<16x128xf32>
    %25 = vector.extract_strided_slice %17 {offsets = [3, 0], sizes = [16, 128], strides = [1, 1]} : vector<31x128xf32> to vector<16x128xf32>
    %26 = arith.mulf %8, %25 : vector<16x128xf32>
    %27 = vector.extract_strided_slice %17 {offsets = [4, 0], sizes = [16, 128], strides = [1, 1]} : vector<31x128xf32> to vector<16x128xf32>
    %28 = arith.mulf %8, %27 : vector<16x128xf32>
    %29 = vector.extract_strided_slice %17 {offsets = [5, 0], sizes = [16, 128], strides = [1, 1]} : vector<31x128xf32> to vector<16x128xf32>
    %30 = arith.mulf %8, %29 : vector<16x128xf32>
    %31 = vector.extract_strided_slice %17 {offsets = [6, 0], sizes = [16, 128], strides = [1, 1]} : vector<31x128xf32> to vector<16x128xf32>
    %32 = arith.mulf %8, %31 : vector<16x128xf32>
    %33 = vector.extract_strided_slice %17 {offsets = [7, 0], sizes = [16, 128], strides = [1, 1]} : vector<31x128xf32> to vector<16x128xf32>
    %34 = arith.mulf %8, %33 : vector<16x128xf32>
    %35 = vector.extract_strided_slice %17 {offsets = [8, 0], sizes = [16, 128], strides = [1, 1]} : vector<31x128xf32> to vector<16x128xf32>
    %36 = arith.mulf %8, %35 : vector<16x128xf32>
    %37 = vector.extract_strided_slice %17 {offsets = [9, 0], sizes = [16, 128], strides = [1, 1]} : vector<31x128xf32> to vector<16x128xf32>
    %38 = arith.mulf %8, %37 : vector<16x128xf32>
    %39 = vector.extract_strided_slice %17 {offsets = [10, 0], sizes = [16, 128], strides = [1, 1]} : vector<31x128xf32> to vector<16x128xf32>
    %40 = arith.mulf %8, %39 : vector<16x128xf32>
    %41 = vector.extract_strided_slice %17 {offsets = [11, 0], sizes = [16, 128], strides = [1, 1]} : vector<31x128xf32> to vector<16x128xf32>
    %42 = arith.mulf %8, %41 : vector<16x128xf32>
    %43 = vector.extract_strided_slice %17 {offsets = [12, 0], sizes = [16, 128], strides = [1, 1]} : vector<31x128xf32> to vector<16x128xf32>
    %44 = arith.mulf %8, %43 : vector<16x128xf32>
    %45 = vector.extract_strided_slice %17 {offsets = [13, 0], sizes = [16, 128], strides = [1, 1]} : vector<31x128xf32> to vector<16x128xf32>
    %46 = arith.mulf %8, %45 : vector<16x128xf32>
    %47 = vector.extract_strided_slice %17 {offsets = [14, 0], sizes = [16, 128], strides = [1, 1]} : vector<31x128xf32> to vector<16x128xf32>
    %48 = arith.mulf %8, %47 : vector<16x128xf32>
    %49 = vector.extract_strided_slice %17 {offsets = [15, 0], sizes = [16, 128], strides = [1, 1]} : vector<31x128xf32> to vector<16x128xf32>
    %50 = arith.mulf %8, %49 : vector<16x128xf32>
    %51 = tpu.concatenate %20, %22, %24, %26, %28, %30, %32, %34, %36, %38, %40, %42, %44, %46, %48, %50 in 1 : vector<16x128xf32>, vector<16x128xf32>, vector<16x128xf32>, vector<16x128xf32>, vector<16x128xf32>, vector<16x128xf32>, vector<16x128xf32>, vector<16x128xf32>, vector<16x128xf32>, vector<16x128xf32>, vector<16x128xf32>, vector<16x128xf32>, vector<16x128xf32>, vector<16x128xf32>, vector<16x128xf32>, vector<16x128xf32> -> vector<16x2048xf32>
    %c0_15 = arith.constant 0 : index
    %c0_16 = arith.constant 0 : index
    %52 = vector.load %arg7[%c0_15, %c0_16] : memref<2048x128xf32, #tpu.memory_space<vmem>>, vector<2048x128xf32>
    %cst_17 = arith.constant dense<0.000000e+00> : vector<16x128xf32>
    %53 = tpu.matmul %51, %52, %cst_17 {dimension_numbers = #tpu.dot_dimension_numbers<[1], [0], [0], [1], [0, 0, 1, 1], [], []>, precision = #tpu.contract_precision<fp32>} : vector<16x2048xf32>, vector<2048x128xf32>, vector<16x128xf32> -> vector<16x128xf32>
    %cst_18 = arith.constant 0.000000e+00 : f32
    %54 = vector.broadcast %cst_18 : f32 to vector<4x128xf32>
    %55 = tpu.concatenate %54, %53 in 0 : vector<4x128xf32>, vector<16x128xf32> -> vector<20x128xf32>
    %56 = vector.extract_strided_slice %55 {offsets = [0, 0], sizes = [16, 128], strides = [1, 1]} : vector<20x128xf32> to vector<16x128xf32>
    %57 = vector.extract_strided_slice %55 {offsets = [1, 0], sizes = [16, 128], strides = [1, 1]} : vector<20x128xf32> to vector<16x128xf32>
    %58 = vector.extract_strided_slice %55 {offsets = [2, 0], sizes = [16, 128], strides = [1, 1]} : vector<20x128xf32> to vector<16x128xf32>
    %59 = vector.extract_strided_slice %55 {offsets = [3, 0], sizes = [16, 128], strides = [1, 1]} : vector<20x128xf32> to vector<16x128xf32>
    %60 = vector.extract_strided_slice %55 {offsets = [4, 0], sizes = [16, 128], strides = [1, 1]} : vector<20x128xf32> to vector<16x128xf32>
    %61 = tpu.concatenate %56, %57, %58, %59, %60 in 1 : vector<16x128xf32>, vector<16x128xf32>, vector<16x128xf32>, vector<16x128xf32>, vector<16x128xf32> -> vector<16x640xf32>
    %c0_19 = arith.constant 0 : index
    %c0_20 = arith.constant 0 : index
    %62 = vector.load %arg8[%c0_19, %c0_20] : memref<640x16xf32, #tpu.memory_space<vmem>>, vector<640x16xf32>
    %cst_21 = arith.constant dense<0.000000e+00> : vector<16x16xf32>
    %63 = tpu.matmul %61, %62, %cst_21 {dimension_numbers = #tpu.dot_dimension_numbers<[1], [0], [0], [1], [0, 0, 1, 1], [], []>, precision = #tpu.contract_precision<fp32>} : vector<16x640xf32>, vector<640x16xf32>, vector<16x16xf32> -> vector<16x16xf32>
    %cst_22 = arith.constant dense<0xFF800000> : vector<16xf32>
    %64 = vector.multi_reduction <maximumf>, %63, %cst_22 [1] : vector<16x16xf32> to vector<16xf32>
    %65 = vector.shape_cast %64 : vector<16xf32> to vector<16x1xf32>
    %66 = vector.broadcast %65 : vector<16x1xf32> to vector<16x16xf32>
    %67 = arith.subf %63, %66 : vector<16x16xf32>
    %68 = math.exp %67 : vector<16x16xf32>
    %cst_23 = arith.constant dense<0.000000e+00> : vector<16xf32>
    %69 = vector.multi_reduction <add>, %68, %cst_23 [1] : vector<16x16xf32> to vector<16xf32>
    %70 = vector.shape_cast %69 : vector<16xf32> to vector<16x1xf32>
    %71 = vector.broadcast %70 : vector<16x1xf32> to vector<16x16xf32>
    %72 = arith.divf %68, %71 : vector<16x16xf32>
    %cst_24 = arith.constant 0.000000e+00 : f32
    %73 = vector.broadcast %cst_24 : f32 to vector<16x128xf32>
    %74 = vector.extract_strided_slice %72 {offsets = [0, 0], sizes = [16, 1], strides = [1, 1]} : vector<16x16xf32> to vector<16x1xf32>
    %75 = vector.extract_strided_slice %18 {offsets = [0, 0], sizes = [16, 128], strides = [1, 1]} : vector<31x128xf32> to vector<16x128xf32>
    %76 = vector.broadcast %74 : vector<16x1xf32> to vector<16x128xf32>
    %77 = arith.mulf %76, %75 : vector<16x128xf32>
    %78 = arith.addf %73, %77 : vector<16x128xf32>
    %79 = vector.extract_strided_slice %72 {offsets = [0, 1], sizes = [16, 1], strides = [1, 1]} : vector<16x16xf32> to vector<16x1xf32>
    %80 = vector.extract_strided_slice %18 {offsets = [1, 0], sizes = [16, 128], strides = [1, 1]} : vector<31x128xf32> to vector<16x128xf32>
    %81 = vector.broadcast %79 : vector<16x1xf32> to vector<16x128xf32>
    %82 = arith.mulf %81, %80 : vector<16x128xf32>
    %83 = arith.addf %78, %82 : vector<16x128xf32>
    %84 = vector.extract_strided_slice %72 {offsets = [0, 2], sizes = [16, 1], strides = [1, 1]} : vector<16x16xf32> to vector<16x1xf32>
    %85 = vector.extract_strided_slice %18 {offsets = [2, 0], sizes = [16, 128], strides = [1, 1]} : vector<31x128xf32> to vector<16x128xf32>
    %86 = vector.broadcast %84 : vector<16x1xf32> to vector<16x128xf32>
    %87 = arith.mulf %86, %85 : vector<16x128xf32>
    %88 = arith.addf %83, %87 : vector<16x128xf32>
    %89 = vector.extract_strided_slice %72 {offsets = [0, 3], sizes = [16, 1], strides = [1, 1]} : vector<16x16xf32> to vector<16x1xf32>
    %90 = vector.extract_strided_slice %18 {offsets = [3, 0], sizes = [16, 128], strides = [1, 1]} : vector<31x128xf32> to vector<16x128xf32>
    %91 = vector.broadcast %89 : vector<16x1xf32> to vector<16x128xf32>
    %92 = arith.mulf %91, %90 : vector<16x128xf32>
    %93 = arith.addf %88, %92 : vector<16x128xf32>
    %94 = vector.extract_strided_slice %72 {offsets = [0, 4], sizes = [16, 1], strides = [1, 1]} : vector<16x16xf32> to vector<16x1xf32>
    %95 = vector.extract_strided_slice %18 {offsets = [4, 0], sizes = [16, 128], strides = [1, 1]} : vector<31x128xf32> to vector<16x128xf32>
    %96 = vector.broadcast %94 : vector<16x1xf32> to vector<16x128xf32>
    %97 = arith.mulf %96, %95 : vector<16x128xf32>
    %98 = arith.addf %93, %97 : vector<16x128xf32>
    %99 = vector.extract_strided_slice %72 {offsets = [0, 5], sizes = [16, 1], strides = [1, 1]} : vector<16x16xf32> to vector<16x1xf32>
    %100 = vector.extract_strided_slice %18 {offsets = [5, 0], sizes = [16, 128], strides = [1, 1]} : vector<31x128xf32> to vector<16x128xf32>
    %101 = vector.broadcast %99 : vector<16x1xf32> to vector<16x128xf32>
    %102 = arith.mulf %101, %100 : vector<16x128xf32>
    %103 = arith.addf %98, %102 : vector<16x128xf32>
    %104 = vector.extract_strided_slice %72 {offsets = [0, 6], sizes = [16, 1], strides = [1, 1]} : vector<16x16xf32> to vector<16x1xf32>
    %105 = vector.extract_strided_slice %18 {offsets = [6, 0], sizes = [16, 128], strides = [1, 1]} : vector<31x128xf32> to vector<16x128xf32>
    %106 = vector.broadcast %104 : vector<16x1xf32> to vector<16x128xf32>
    %107 = arith.mulf %106, %105 : vector<16x128xf32>
    %108 = arith.addf %103, %107 : vector<16x128xf32>
    %109 = vector.extract_strided_slice %72 {offsets = [0, 7], sizes = [16, 1], strides = [1, 1]} : vector<16x16xf32> to vector<16x1xf32>
    %110 = vector.extract_strided_slice %18 {offsets = [7, 0], sizes = [16, 128], strides = [1, 1]} : vector<31x128xf32> to vector<16x128xf32>
    %111 = vector.broadcast %109 : vector<16x1xf32> to vector<16x128xf32>
    %112 = arith.mulf %111, %110 : vector<16x128xf32>
    %113 = arith.addf %108, %112 : vector<16x128xf32>
    %114 = vector.extract_strided_slice %72 {offsets = [0, 8], sizes = [16, 1], strides = [1, 1]} : vector<16x16xf32> to vector<16x1xf32>
    %115 = vector.extract_strided_slice %18 {offsets = [8, 0], sizes = [16, 128], strides = [1, 1]} : vector<31x128xf32> to vector<16x128xf32>
    %116 = vector.broadcast %114 : vector<16x1xf32> to vector<16x128xf32>
    %117 = arith.mulf %116, %115 : vector<16x128xf32>
    %118 = arith.addf %113, %117 : vector<16x128xf32>
    %119 = vector.extract_strided_slice %72 {offsets = [0, 9], sizes = [16, 1], strides = [1, 1]} : vector<16x16xf32> to vector<16x1xf32>
    %120 = vector.extract_strided_slice %18 {offsets = [9, 0], sizes = [16, 128], strides = [1, 1]} : vector<31x128xf32> to vector<16x128xf32>
    %121 = vector.broadcast %119 : vector<16x1xf32> to vector<16x128xf32>
    %122 = arith.mulf %121, %120 : vector<16x128xf32>
    %123 = arith.addf %118, %122 : vector<16x128xf32>
    %124 = vector.extract_strided_slice %72 {offsets = [0, 10], sizes = [16, 1], strides = [1, 1]} : vector<16x16xf32> to vector<16x1xf32>
    %125 = vector.extract_strided_slice %18 {offsets = [10, 0], sizes = [16, 128], strides = [1, 1]} : vector<31x128xf32> to vector<16x128xf32>
    %126 = vector.broadcast %124 : vector<16x1xf32> to vector<16x128xf32>
    %127 = arith.mulf %126, %125 : vector<16x128xf32>
    %128 = arith.addf %123, %127 : vector<16x128xf32>
    %129 = vector.extract_strided_slice %72 {offsets = [0, 11], sizes = [16, 1], strides = [1, 1]} : vector<16x16xf32> to vector<16x1xf32>
    %130 = vector.extract_strided_slice %18 {offsets = [11, 0], sizes = [16, 128], strides = [1, 1]} : vector<31x128xf32> to vector<16x128xf32>
    %131 = vector.broadcast %129 : vector<16x1xf32> to vector<16x128xf32>
    %132 = arith.mulf %131, %130 : vector<16x128xf32>
    %133 = arith.addf %128, %132 : vector<16x128xf32>
    %134 = vector.extract_strided_slice %72 {offsets = [0, 12], sizes = [16, 1], strides = [1, 1]} : vector<16x16xf32> to vector<16x1xf32>
    %135 = vector.extract_strided_slice %18 {offsets = [12, 0], sizes = [16, 128], strides = [1, 1]} : vector<31x128xf32> to vector<16x128xf32>
    %136 = vector.broadcast %134 : vector<16x1xf32> to vector<16x128xf32>
    %137 = arith.mulf %136, %135 : vector<16x128xf32>
    %138 = arith.addf %133, %137 : vector<16x128xf32>
    %139 = vector.extract_strided_slice %72 {offsets = [0, 13], sizes = [16, 1], strides = [1, 1]} : vector<16x16xf32> to vector<16x1xf32>
    %140 = vector.extract_strided_slice %18 {offsets = [13, 0], sizes = [16, 128], strides = [1, 1]} : vector<31x128xf32> to vector<16x128xf32>
    %141 = vector.broadcast %139 : vector<16x1xf32> to vector<16x128xf32>
    %142 = arith.mulf %141, %140 : vector<16x128xf32>
    %143 = arith.addf %138, %142 : vector<16x128xf32>
    %144 = vector.extract_strided_slice %72 {offsets = [0, 14], sizes = [16, 1], strides = [1, 1]} : vector<16x16xf32> to vector<16x1xf32>
    %145 = vector.extract_strided_slice %18 {offsets = [14, 0], sizes = [16, 128], strides = [1, 1]} : vector<31x128xf32> to vector<16x128xf32>
    %146 = vector.broadcast %144 : vector<16x1xf32> to vector<16x128xf32>
    %147 = arith.mulf %146, %145 : vector<16x128xf32>
    %148 = arith.addf %143, %147 : vector<16x128xf32>
    %149 = vector.extract_strided_slice %72 {offsets = [0, 15], sizes = [16, 1], strides = [1, 1]} : vector<16x16xf32> to vector<16x1xf32>
    %150 = vector.extract_strided_slice %18 {offsets = [15, 0], sizes = [16, 128], strides = [1, 1]} : vector<31x128xf32> to vector<16x128xf32>
    %151 = vector.broadcast %149 : vector<16x1xf32> to vector<16x128xf32>
    %152 = arith.mulf %151, %150 : vector<16x128xf32>
    %153 = arith.addf %148, %152 : vector<16x128xf32>
    %c0_25 = arith.constant 0 : index
    %c0_26 = arith.constant 0 : index
    %c0_27 = arith.constant 0 : index
    %154 = vector.load %arg9[%c0_25, %c0_26, %c0_27] : memref<1x16x128xf32, #tpu.memory_space<vmem>>, vector<1x16x128xf32>
    %155 = vector.shape_cast %154 : vector<1x16x128xf32> to vector<16x128xf32>
    %156 = vector.shape_cast %153 : vector<16x128xf32> to vector<1x16x128xf32>
    tpu.vector_store %arg9[%c0_25, %c0_26, %c0_27], %156 {strides = array<i32>} : memref<1x16x128xf32, #tpu.memory_space<vmem>>, vector<1x16x128xf32>,
    return
  }
  func.func @transform_0(%arg0: i32) -> (i32, i32, i32) {
    %c0_i32 = arith.constant 0 : i32
    %c0_i32_0 = arith.constant 0 : i32
    %c0_i32_1 = arith.constant 0 : i32
    return %arg0, %c0_i32, %c0_i32_0 : i32, i32, i32
  }
  func.func @transform_1(%arg0: i32) -> (i32, i32, i32) {
    %c0_i32 = arith.constant 0 : i32
    %c0_i32_0 = arith.constant 0 : i32
    %c0_i32_1 = arith.constant 0 : i32
    return %arg0, %c0_i32, %c0_i32_0 : i32, i32, i32
  }
  func.func @transform_2(%arg0: i32) -> (i32, i32) {
    %c0_i32 = arith.constant 0 : i32
    %c0_i32_0 = arith.constant 0 : i32
    %c0_i32_1 = arith.constant 0 : i32
    return %c0_i32, %c0_i32_0 : i32, i32
  }
  func.func @transform_3(%arg0: i32) -> (i32, i32) {
    %c0_i32 = arith.constant 0 : i32
    %c0_i32_0 = arith.constant 0 : i32
    %c0_i32_1 = arith.constant 0 : i32
    return %c0_i32, %c0_i32_0 : i32, i32
  }
  func.func @transform_4(%arg0: i32) -> (i32, i32) {
    %c0_i32 = arith.constant 0 : i32
    %c0_i32_0 = arith.constant 0 : i32
    %c0_i32_1 = arith.constant 0 : i32
    return %c0_i32, %c0_i32_0 : i32, i32
  }
  func.func @transform_5(%arg0: i32) -> (i32, i32) {
    %c0_i32 = arith.constant 0 : i32
    %c0_i32_0 = arith.constant 0 : i32
    %c0_i32_1 = arith.constant 0 : i32
    return %c0_i32, %c0_i32_0 : i32, i32
  }
  func.func @transform_6(%arg0: i32) -> (i32, i32) {
    %c0_i32 = arith.constant 0 : i32
    %c0_i32_0 = arith.constant 0 : i32
    %c0_i32_1 = arith.constant 0 : i32
    return %c0_i32, %c0_i32_0 : i32, i32
  }
  func.func @transform_7(%arg0: i32) -> (i32, i32) {
    %c0_i32 = arith.constant 0 : i32
    %c0_i32_0 = arith.constant 0 : i32
    %c0_i32_1 = arith.constant 0 : i32
    return %c0_i32, %c0_i32_0 : i32, i32
  }
  func.func @transform_8(%arg0: i32) -> (i32, i32, i32) {
    %c0_i32 = arith.constant 0 : i32
    %c0_i32_0 = arith.constant 0 : i32
    %c0_i32_1 = arith.constant 0 : i32
    return %arg0, %c0_i32, %c0_i32_0 : i32, i32, i32
  }
}

</mosaic_0001>

<bundles_post_ra>
// kernel: tpu_custom_call.1
= control target key start
LH: loop header
LB: loop body
LE: loop exit
PB: predicated region body
PF: predicated region fallthrough
CT: control target
= control target key end

     0   :  { %13 = vsyncpa [#allocation3], 0  ;;  %s26319_s0 = inlined_call_operand.vmem [shape: f32[2,16,64], index: 0, kind: input, shape index: {}]   ;;  %s26320_s1 = inlined_call_operand.vmem [shape: f32[2,16,64], index: 1, kind: input, shape index: {}]   ;;  %s26321_s2 = inlined_call_operand.vmem [shape: f32[64,128], index: 2, kind: input, shape index: {}]   ;;  %s26322_s3 = inlined_call_operand.vmem [shape: f32[1,128], index: 3, kind: input, shape index: {}]   ;;  %s26323_s4 = inlined_call_operand.vmem [shape: f32[64,256], index: 4, kind: input, shape index: {}]   ;;  %s26324_s5 = inlined_call_operand.vmem [shape: f32[1,256], index: 5, kind: input, shape index: {}]   ;;  %s26325_s6 = inlined_call_operand.hbm [shape: f32[2048,128], index: 6, kind: input, shape index: {}]   ;;  %s26326_s7 = inlined_call_operand.vmem [shape: f32[640,16], index: 7, kind: input, shape index: {}]   ;;  %s26327_s8 = inlined_call_operand.hbm [shape: f32[2,16,128], index: 8, kind: output, shape index: {}]  }
   0x1   :  { %14 = vsyncpa [#allocation4], 0 }
   0x2   :  { %16 = vsyncpa [#allocation4 + $0x1], 0  ;;  %s17841_s27 = smov 0   ;;  %s17843_s28 = smov 0  }
   0x3   :  { %s17845_s29 = smov 0   ;;  %s17847_s30 = smov 0  }
   0x4 LB: > { %s17862_s9 = sadd.s32 4294967295, %s17771_s30   ;;  %s12422_s10 = sadd.s32 4294967294, %s17771_s30   ;;  %s17771_s30 = sphi %s17847_s30, %s29669_s30   ;;  %s17767_s29 = sphi %s17845_s29, %s29668_s29   ;;  %s17763_s28 = sphi %s17843_s28, %s29667_s28   ;;  %s17759_s27 = sphi %s17841_s27, %s29666_s27  }
   0x5   : > { %s17866_s11 = sadd.s32 1, %s17771_s30   ;;  %s207_s12 = sadd.s32 1, %s17767_s29 }
   0x6   : > { %s204_s13 = ssub.s32 %s17771_s30, %s17866_s11  ;;  %p217_p0 = scmp.ne.s32.totalorder %s17767_s29, %s17763_s28 }
   0x7   : > { %p205_p1 = scmp.eq.s32.totalorder %s204_s13, 0  ;;  %p218_p2 = scmp.eq.s32.totalorder %s17862_s9, 1 }
   0x8   : > { %p223_p3 = scmp.ne.s32.totalorder %s17763_s28, %s17759_s27  ;;  %p224_p4 = scmp.eq.s32.totalorder %s12422_s10, 1 }
   0x9   : > { %s17877_s14 = scalar_select %p205_p1, %s17767_s29, %s207_s12  }
   0xa   : > { %p17879_p5 = por %p218_p2, %p217_p0  ;;  %p17883_p6 = por %p224_p4, %p223_p3 }
   0xb   : > { %p12423_p7 = scmp.ge.s32.totalorder %s17771_s30, 1  ;;  %p231_p8 = scmp.lt.s32.totalorder %s17771_s30, 3 }
   0xc   : > { %s27477_s15 = scalar_select %p17879_p5, 1, 0 }
   0xd   : > { %s27478_s16 = scalar_select %p17883_p6, 1, 0 }
   0xe   : > { %p26328_p9 = scmp.eq.s32.totalorder %s17862_s9, 0  ;;  %p17890_p10 = pnand %p12423_p7, %p231_p8 }
   0xf   : > { %s17773_s18 = smov [#allocation2]   ;;  %s17677_s23 = scalar_lea.hbm %s26325_s6, 32768 }
  0x10   : > { %s27479_s17 = scalar_select %p17890_p10, 1, 0 }
  0x11   : > { %s255_s19 = sshll.u32 %s17773_s18, 4  ;;  %p17572_p11 = pneg %p17890_p10  ;;  %s256_s19 = int_to_ptr.vmem [resolvable:$true] %s255_s19 }
  0x12   : > { %p17678_p13 = scmp.ne.s32.totalorder %s26325_s6, %s17677_s23  ;;  %p17684_p3 = scmp.lt.u32.totalorder %s17677_s23, %s26325_s6 }
  0x13   : > { %p17898_p12 = pnand %p26328_p9, %p17572_p11 }
  0x15   : > { %p17679_p0 = pneg %p17898_p12 }
  0x17   : > { %p17680_p1 = pnand %p17679_p0, %p17678_p13 }
  0x19   : > { %p17681_p2 = pneg %p17680_p1 }
  0x1b   : > { %p17686_p4 = pnand %p17684_p3, %p17681_p2 }
  0x1d   : > { %17689 = shalt.err (!%p17686_p4)
}
  0x1e   : > { %s17690_s12 = scalar_lea.vmem %s256_s19, 32768  ;;  %p17698_p9 = scmp.lt.s32.totalorder %s256_s19, %s256_s19 }
  0x1f   : > { %p17691_p7 = scmp.ne.s32.totalorder %s256_s19, %s17690_s12  ;;  %p17699_p6 = scmp.lt.s32.totalorder %s17690_s12, %s17690_s12 }
  0x21   : > { %p17693_p8 = pnand %p17691_p7, %p17679_p0  ;;  %p17700_p5 = por %p17699_p6, %p17698_p9 }
  0x23   : > { %p17694_p11 = pneg %p17693_p8 }
  0x25   : > { %p17701_p10 = pnand %p17700_p5, %p17694_p11 }
  0x27   : > { %17704 = shalt.err (!%p17701_p10)
}
  0x28   : > { %s17774_s13 = smov 128   ;;  %s17775_s18 = smov 8  }
  0x29   : > { %17575 = dma.hbm_to_vmem [thread:$0]  (!%p17898_p12), %s26325_s6, 32768, %s256_s19, [#allocation3], %s17774_s13, %s17774_s13, %s17775_s18  }
  0x2a   : > { %p27481_p13 = scmp.ne.s32.totalorder %s27479_s17, 0 }
  0x2c   : > { %290 = sbr.rel (%p27481_p13) target bundleno = 2620 (0xa3c), region = 52 }
  0x33   : > { %p27482_p1 = scmp.eq.s32.totalorder %s17862_s9, 0 }
  0x35   : > { %17750 = dma.done.wait (%p27482_p1), [#allocation3], 32768   ;;  %p27483_p0 = pmov %p27482_p1 }
  0x36   : > { %v26375_v0 = vmov 0.0   ;;  %p329_p5 = scmp.lt.s32.totalorder %s17862_s9, 1  ;;  %v17929_v1 = vld [vmem:[%s26321_s2] sm:$0xff]  ;;  %v17934_v2 = vld [vmem:[%s26321_s2 + $0x8] sm:$0xff]  ;;  %v948_v6 = vld [vmem:[%s26323_s4 + $0x18] sm:$0xff]  ;;  %vm358_vm0 = vcmask 523264  }
  0x37   : > { %17752 = vsyncadd (%p27483_p0), [#allocation3], 4294934528  ;;  %1059 = vmatprep.mubr.f32.mxu1 %v26375_v0  ;;  %v946_v3 = vld [vmem:[%s26323_s4 + $0x8] sm:$0xff]  ;;  %v366_v4 = vand.u32 4294901760, %v17929_v1  ;;  %v369_v5 = vand.u32 4294901760, %v17934_v2  ;;  %v945_v8 = vld [vmem:[%s26323_s4] sm:$0xff] }
  0x38   : > { %s17940_s26 = scalar_select %p329_p5, %s17862_s9, 1  ;;  %v979_v7 = vand.u32 4294901760, %v946_v3  ;;  %v947_v9 = vld [vmem:[%s26323_s4 + $0x10] sm:$0xff]  ;;  %v983_v10 = vand.u32 4294901760, %v948_v6  ;;  %v981_v11 = vand.u32 4294901760, %v945_v8  ;;  %v17961_v14 = vld [vmem:[%s26321_s2 + $0x18] sm:$0xff] }
  0x39   : > { %v985_v12 = vand.u32 4294901760, %v947_v9  ;;  %v17956_v13 = vld [vmem:[%s26321_s2 + $0x10] sm:$0xff]  ;;  %v950_v15 = vld [vmem:[%s26323_s4 + $0x28] sm:$0xff]  ;;  %v17970_v16 = vpack.c.bf16 %v369_v5, %v366_v4  ;;  %v375_v19 = vand.u32 4294901760, %v17961_v14  ;;  %v952_v20 = vld [vmem:[%s26323_s4 + $0x38] sm:$0xff]  ;;  %vm1677_vm1 = vcmask 1046528  }
  0x3a   : > { %v17972_v17 = vsub.f32 %v946_v3, %v979_v7  ;;  %v372_v18 = vand.u32 4294901760, %v17956_v13  ;;  %v949_v21 = vld [vmem:[%s26323_s4 + $0x20] sm:$0xff]  ;;  %v951_v22 = vld [vmem:[%s26323_s4 + $0x30] sm:$0xff]  ;;  %v17985_v23 = vpack.c.bf16 %v983_v10, %v979_v7  ;;  %v17987_v24 = vsub.f32 %v948_v6, %v983_v10  ;;  %v18001_v28 = vld [vmem:[%s26321_s2 + $0x28] sm:$0xff]  ;;  %s12439_s21 = sshll.u32 %s17940_s26, 4  ;;  %s326_s17 = sand.u32 1, %s17763_s28  }
  0x3b   : > { %v17989_v25 = vpack.c.bf16 %v985_v12, %v981_v11  ;;  %v17991_v26 = vsub.f32 %v945_v8, %v981_v11  ;;  %v17996_v27 = vld [vmem:[%s26321_s2 + $0x20] sm:$0xff]  ;;  %v954_v29 = vld [vmem:[%s26323_s4 + $0x48] sm:$0xff]  ;;  %15215 = vmatprep.subr.bf16.mxu0 %v17970_v16  ;;  %v18007_v30 = vsub.f32 %v947_v9, %v985_v12  ;;  %v987_v32 = vand.u32 4294901760, %v950_v15  ;;  %v956_v34 = vld [vmem:[%s26323_s4 + $0x58] sm:$0xff]  ;;  %s333_s19 = scalar_lea.vmem %s26319_s0, %s12439_s21  ;;  %s18095_s12 = scalar_lea.vmem %s26320_s1, %s12439_s21 }
  0x3c   : > { %v18013_v31 = vpack.c.bf16 %v375_v19, %v372_v18  ;;  %v991_v33 = vand.u32 4294901760, %v952_v20  ;;  %v953_v35 = vld [vmem:[%s26323_s4 + $0x40] sm:$0xff]  ;;  %15311 = vmatprep.subr.bf16.mxu1 %v17985_v23  ;;  %15217 = vmatpush3.bf16.msra.mxu0 %v17970_v16  ;;  %v989_v36 = vand.u32 4294901760, %v949_v21  ;;  %v993_v37 = vand.u32 4294901760, %v951_v22  ;;  %v955_v40 = vld [vmem:[%s26323_s4 + $0x50] sm:$0xff]  ;;  %v18045_v46 = vld [vmem:[%s26321_s2 + $0x38] sm:$0xff] }
  0x3d   : > { %v378_v38 = vand.u32 4294901760, %v17996_v27  ;;  %v381_v39 = vand.u32 4294901760, %v18001_v28  ;;  %v18032_v41 = vld [vmem:[%s26321_s2 + $0x30] sm:$0xff]  ;;  %15313 = vmatpush1.bf16.msra.mxu1 %v17989_v25  ;;  %v18038_v43 = vsub.f32 %v950_v15, %v987_v32  ;;  %v995_v45 = vand.u32 4294901760, %v954_v29  ;;  %v958_v47 = vld [vmem:[%s26323_s4 + $0x68] sm:$0xff]  ;;  %v960_v48 = vld [vmem:[%s26323_s4 + $0x78] sm:$0xff] }
  0x3e   : > { %15219 = vmatprep.subr.bf16.mxu0 %v18013_v31  ;;  %v18036_v42 = vpack.c.bf16 %v991_v33, %v987_v32  ;;  %v18040_v44 = vsub.f32 %v952_v20, %v991_v33  ;;  %v18053_v49 = vpack.c.bf16 %v993_v37, %v989_v36  ;;  %v18055_v50 = vsub.f32 %v949_v21, %v989_v36  ;;  %v957_v53 = vld [vmem:[%s26323_s4 + $0x60] sm:$0xff]  ;;  %v959_v62 = vld [vmem:[%s26323_s4 + $0x70] sm:$0xff]  ;;  %s12428_s24 = sshll.u32 %s326_s17, 4  ;;  %s26278_s18 = scalar_lea.sflag [#allocation4], %s326_s17 }
  0x3f   : > { %v18057_v51 = vsub.f32 %v951_v22, %v993_v37  ;;  %v18063_v52 = vpack.c.bf16 %v381_v39, %v378_v38  ;;  %v999_v54 = vand.u32 4294901760, %v956_v34  ;;  %v18074_v55 = vsub.f32 %v954_v29, %v995_v45  ;;  %v339_v8 = vld [vmem:[%s333_s19] sm:$0xff]  ;;  %v340_v29 = vld [vmem:[%s333_s19 + $0x8] sm:$0xff]  ;;  %s328_s25 = scalar_lea.vmem [#allocation5], %s12428_s24  ;;  %p29664_p9 = scmp.ne.s32.totalorder %s27477_s15, 0 }
  0x40   : > { %15315 = vmatprep.subr.bf16.mxu1 %v18036_v42  ;;  %v997_v56 = vand.u32 4294901760, %v953_v35  ;;  %v1001_v57 = vand.u32 4294901760, %v955_v40  ;;  %15221 = vmatpush3.bf16.msra.mxu0 %v18013_v31  ;;  %v384_v58 = vand.u32 4294901760, %v18032_v41  ;;  %v387_v59 = vand.u32 4294901760, %v18045_v46  ;;  %v341_v36 = vld [vmem:[%s18095_s12] sm:$0xff]  ;;  %s12336_s10 = sshll.u32 %s328_s25, 4  ;;  %s26270_s10 = int_to_ptr.vmem [resolvable:$true] %s12336_s10 }
  0x41   : > { %v1003_v60 = vand.u32 4294901760, %v958_v47  ;;  %v1007_v61 = vand.u32 4294901760, %v960_v48  ;;  %15317 = vmatpush1.bf16.msra.mxu1 %v18053_v49  ;;  %15223 = vmatprep.subr.bf16.mxu0 %v18063_v52  ;;  %v18084_v63 = vpack.c.bf16 %v999_v54, %v995_v45  ;;  %v18086_v3 = vsub.f32 %v956_v34, %v999_v54  ;;  %s17705_s22 = scalar_lea.vmem %s26270_s10, 256 }
  0x42   : > { %v18088_v6 = vpack.c.bf16 %v1001_v57, %v997_v56  ;;  %v1005_v7 = vand.u32 4294901760, %v957_v53  ;;  %v18097_v9 = vsub.f32 %v953_v35, %v997_v56  ;;  %v18099_v10 = vsub.f32 %v955_v40, %v1001_v57  ;;  %p17706_p6 = scmp.ne.s32.totalorder %s26270_s10, %s17705_s22 }
  0x43   : > { %v18105_v11 = vpack.c.bf16 %v387_v59, %v384_v58  ;;  %v18107_v12 = vpack.c.bf16 %v1007_v61, %v1003_v60  ;;  %15319 = vmatprep.subr.bf16.mxu1 %v18084_v63  ;;  %v18110_v15 = vsub.f32 %v958_v47, %v1003_v60  ;;  %v18112_v20 = vsub.f32 %v960_v48, %v1007_v61 }
  0x44   : > { %v1009_v21 = vand.u32 4294901760, %v959_v62  ;;  %v18114_v22 = vsub.f32 %v957_v53, %v1005_v7  ;;  %15225 = vmatpush3.bf16.msra.mxu0 %v18063_v52  ;;  %v360_v32 = vsel %vm358_vm0, %v339_v8, 0  ;;  %v18121_v33 = vsub.f32 %v17929_v1, %v366_v4  ;;  %p17707_p10 = pnand %p17706_p6, %p29664_p9 }
  0x45   : > { %v18126_v34 = vsub.f32 %v17934_v2, %v369_v5  ;;  %v26334_v35 = vand.u32 4294901760, %v17972_v17  ;;  %15321 = vmatpush1.bf16.msra.mxu1 %v18088_v6  ;;  %15227 = vmatprep.subr.bf16.mxu0 %v18105_v11  ;;  %v18136_v45 = vand.u32 4294901760, %v360_v32  ;;  %v26333_v1 = vand.u32 4294901760, %v17987_v24 }
  0x46   : > { %v18132_v37 = vpack.c.bf16 %v1009_v21, %v1005_v7  ;;  %v18134_v40 = vsub.f32 %v959_v62, %v1009_v21  ;;  %15323 = vmatprep.subr.bf16.mxu1 %v18107_v12  ;;  %v26331_v2 = vand.u32 4294901760, %v18121_v33  ;;  %v363_v47 = vsel %vm358_vm0, %v340_v29, 0  ;;  %p17708_p12 = pneg %p17707_p10 }
  0x47   : > { %v26332_v4 = vand.u32 4294901760, %v18126_v34  ;;  %v1085_v5 = vsub.f32 %v17972_v17, %v26334_v35  ;;  %v18147_v48 = vsub.f32 %v360_v32, %v18136_v45  ;;  %v1097_v53 = vsub.f32 %v17987_v24, %v26333_v1 }
  0x48   : > { %v18152_v54 = vand.u32 4294901760, %v363_v47  ;;  %v974_v56 = vsel %vm358_vm0, %v341_v36, 0  ;;  %15229 = vmatpush3.bf16.msra.mxu0 %v18105_v11  ;;  %v462_v57 = vsub.f32 %v18121_v33, %v26331_v2  ;;  %v26337_v29 = vand.u32 4294901760, %v17991_v26 }
  0x49   : > { %v469_v60 = vsub.f32 %v18126_v34, %v26332_v4  ;;  %v1086_v61 = vand.u32 4294901760, %v1085_v5  ;;  %v18162_v62 = vand.u32 4294901760, %v974_v56  ;;  %15325 = vmatpush1.bf16.msra.mxu1 %v18132_v37  ;;  %v26335_v7 = vand.u32 4294901760, %v18147_v48 }
  0x4a   : > { %v1098_v8 = vand.u32 4294901760, %v1097_v53  ;;  %v18167_v21 = vsub.f32 %v363_v47, %v18152_v54  ;;  %v463_v32 = vand.u32 4294901760, %v462_v57  ;;  %v26336_v4 = vand.u32 4294901760, %v18007_v30 }
  0x4b   : > { %v470_v36 = vand.u32 4294901760, %v469_v60  ;;  %v18171_v2 = vsub.f32 %v974_v56, %v18162_v62  ;;  %v441_v5 = vsub.f32 %v18147_v48, %v26335_v7  ;;  %v1091_v47 = vsub.f32 %v17991_v26, %v26337_v29 }
  0x4c   : > { %v15326_v1 = vpack.c.bf16 %v1098_v8, %v1086_v61  ;;  %v26338_v35 = vand.u32 4294901760, %v18167_v21  ;;  %v1103_v56 = vsub.f32 %v18007_v30, %v26336_v4  ;;  %v18188_v60 = vsub.f32 %v17956_v13, %v372_v18 }
  0x4d   : > { %v15230_v53 = vpack.c.bf16 %v470_v36, %v463_v32  ;;  %v26339_v57 = vand.u32 4294901760, %v18171_v2  ;;  %v442_v7 = vand.u32 4294901760, %v441_v5  ;;  %v1092_v8 = vand.u32 4294901760, %v1091_v47 }
  0x4e   : > { %15327 = vmatprep.subr.bf16.mxu1 %v15326_v1  ;;  %v451_v61 = vsub.f32 %v18167_v21, %v26338_v35  ;;  %v18196_v32 = vsub.f32 %v17961_v14, %v375_v19  ;;  %v1104_v4 = vand.u32 4294901760, %v1103_v56  ;;  %v475_v13 = vand.u32 4294901760, %v18188_v60 }
  0x4f   : > { %15231 = vmatprep.subr.bf16.mxu0 %v15230_v53  ;;  %v1063_v36 = vsub.f32 %v18171_v2, %v26339_v57  ;;  %v26340_v18 = vand.u32 4294901760, %v18038_v43  ;;  %14906 = vmatprep.mubr.f32.mxu0 %v442_v7  ;;  %v26341_v47 = vand.u32 4294901760, %v18040_v44  ;;  %v26343_v29 = vand.u32 4294901760, %v18055_v50 }
  0x50   : > { %v452_v1 = vand.u32 4294901760, %v451_v61  ;;  %v26342_v5 = vand.u32 4294901760, %v18196_v32  ;;  %v15328_v19 = vpack.c.bf16 %v1104_v4, %v1092_v8  ;;  %v476_v35 = vsub.f32 %v18188_v60, %v475_v13 }
  0x51   : > { %v1064_v14 = vand.u32 4294901760, %v1063_v36  ;;  %v1109_v56 = vsub.f32 %v18038_v43, %v26340_v18  ;;  %v1121_v61 = vsub.f32 %v18040_v44, %v26341_v47  ;;  %v1115_v4 = vsub.f32 %v18055_v50, %v26343_v29 }
  0x52   : > { %14907 = vmatmul.mubr.f32.vlgmr.msra.gmra.mrb[0].mxu0 %v452_v1  ;;  %v483_v7 = vsub.f32 %v18196_v32, %v26342_v5  ;;  %v26345_v8 = vand.u32 4294901760, %v18057_v51  ;;  %v477_v36 = vand.u32 4294901760, %v476_v35  ;;  %v18225_v1 = vsub.f32 %v17996_v27, %v378_v38 }
  0x53   : > { %15233 = vmatpush3.bf16.msra.mxu0 %v15230_v53  ;;  %1065 = vmatmul.mubr.f32.vlgmr.msra.gmra.mrb[0].mxu1 %v1064_v14  ;;  %v1110_v57 = vand.u32 4294901760, %v1109_v56  ;;  %v18230_v18 = vsub.f32 %v18001_v28, %v381_v39  ;;  %v1122_v5 = vand.u32 4294901760, %v1121_v61  ;;  %v1116_v29 = vand.u32 4294901760, %v1115_v4 }
  0x54   : > { %15329 = vmatpush1.bf16.msra.mxu1 %v15328_v19  ;;  %v484_v47 = vand.u32 4294901760, %v483_v7  ;;  %v1127_v53 = vsub.f32 %v18057_v51, %v26345_v8  ;;  %1070 = vmatprep.mubr.f32.mxu1 %v26375_v0  ;;  %v26347_v35 = vand.u32 4294901760, %v18225_v1  ;;  %v26344_v38 = vand.u32 4294901760, %v18074_v55 }
  0x55   : > { %v26346_v27 = vand.u32 4294901760, %v18230_v18  ;;  %v26348_v14 = vand.u32 4294901760, %v18086_v3  ;;  %14925 = vmatprep.mubr.f32.mxu0 %v18136_v45  ;;  %v15330_v39 = vpack.c.bf16 %v1122_v5, %v1110_v57  ;;  %v26349_v56 = vand.u32 4294901760, %v18097_v9 }
  0x56   : > { %v15234_v28 = vpack.c.bf16 %v484_v47, %v477_v36  ;;  %v1128_v19 = vand.u32 4294901760, %v1127_v53  ;;  %v490_v7 = vsub.f32 %v18225_v1, %v26347_v35  ;;  %v1133_v4 = vsub.f32 %v18074_v55, %v26344_v38 }
  0x57   : > { %v497_v61 = vsub.f32 %v18230_v18, %v26346_v27  ;;  %v1145_v57 = vsub.f32 %v18086_v3, %v26348_v14  ;;  %15331 = vmatprep.subr.bf16.mxu1 %v15330_v39  ;;  %v1139_v47 = vsub.f32 %v18097_v9, %v26349_v56  ;;  %v26352_v36 = vand.u32 4294901760, %v18099_v10  ;;  %v342_v14 = vld [vmem:[%s18095_s12 + $0x8] sm:$0xff]  ;;  %s12441_s12 = sshll.u32 %s17862_s9, 8  ;;  %s17793_s9 = smov [#allocation5]  }
  0x58   : > { %15235 = vmatprep.subr.bf16.mxu0 %v15234_v28  ;;  %v15332_v5 = vpack.c.bf16 %v1128_v19, %v1116_v29  ;;  %v18261_v53 = vsub.f32 %v18032_v41, %v384_v58  ;;  %v491_v38 = vand.u32 4294901760, %v490_v7  ;;  %v1134_v27 = vand.u32 4294901760, %v1133_v4  ;;  %s26276_s13 = scalar_lea.hbm %s26327_s8, %s12441_s12  ;;  %s17709_s20 = sshll.u32 %s17793_s9, 4  ;;  %s17710_s20 = int_to_ptr.vmem [resolvable:$false] %s17709_s20 }
  0x59   : > { %15237 = vmatpush3.bf16.msra.mxu0 %v15234_v28  ;;  %v498_v8 = vand.u32 4294901760, %v497_v61  ;;  %v1146_v35 = vand.u32 4294901760, %v1145_v57  ;;  %v1140_v39 = vand.u32 4294901760, %v1139_v47  ;;  %v1151_v29 = vsub.f32 %v18099_v10, %v26352_v36  ;;  %s17711_s23 = scalar_lea.vmem %s17710_s20, 512  ;;  %p17712_p2 = scmp.lt.s32.totalorder %s26270_s10, %s17710_s20 }
  0x5a   : > { %15333 = vmatpush1.bf16.msra.mxu1 %v15332_v5  ;;  %v503_v19 = vand.u32 4294901760, %v18261_v53  ;;  %v18271_v56 = vsub.f32 %v18045_v46, %v387_v59  ;;  %v26350_v28 = vand.u32 4294901760, %v18110_v15  ;;  %v26351_v7 = vand.u32 4294901760, %v18112_v20  ;;  %p17713_p3 = scmp.lt.s32.totalorder %s17711_s23, %s17705_s22 }
  0x5b   : > { %v15238_v41 = vpack.c.bf16 %v498_v8, %v491_v38  ;;  %v15334_v58 = vpack.c.bf16 %v1146_v35, %v1134_v27  ;;  %v1152_v61 = vand.u32 4294901760, %v1151_v29  ;;  %v977_v5 = vsel %vm358_vm0, %v342_v14, 0 }
  0x5c   : > { %v504_v4 = vsub.f32 %v18261_v53, %v503_v19  ;;  %v26353_v57 = vand.u32 4294901760, %v18271_v56  ;;  %v1157_v46 = vsub.f32 %v18110_v15, %v26350_v28  ;;  %v1169_v59 = vsub.f32 %v18112_v20, %v26351_v7  ;;  %p17714_p4 = por %p17713_p3, %p17712_p2 }
  0x5d   : > { %15239 = vmatprep.subr.bf16.mxu0 %v15238_v41  ;;  %15335 = vmatprep.subr.bf16.mxu1 %v15334_v58  ;;  %v18286_v8 = vand.u32 4294901760, %v977_v5  ;;  %v1162_v35 = vand.u32 4294901760, %v18114_v22  ;;  %v15336_v27 = vpack.c.bf16 %v1152_v61, %v1140_v39  ;;  %v1174_v47 = vand.u32 4294901760, %v18134_v40 }
  0x5e   : > { %15241 = vmatpush3.bf16.msra.mxu0 %v15238_v41  ;;  %v505_v38 = vand.u32 4294901760, %v504_v4  ;;  %v511_v14 = vsub.f32 %v18271_v56, %v26353_v57  ;;  %v1158_v29 = vand.u32 4294901760, %v1157_v46  ;;  %v1170_v58 = vand.u32 4294901760, %v1169_v59  ;;  %p17715_p7 = pnand %p17714_p4, %p17708_p12 }
  0x5f   : > { %v18294_v28 = vsub.f32 %v977_v5, %v18286_v8  ;;  %v1163_v7 = vsub.f32 %v18114_v22, %v1162_v35  ;;  %15337 = vmatpush1.bf16.msra.mxu1 %v15336_v27  ;;  %v1175_v39 = vsub.f32 %v18134_v40, %v1174_v47  ;;  %v15246_v5 = vpack.c.bf16 %v18126_v34, %v18121_v33 }
  0x60   : > { %v512_v36 = vand.u32 4294901760, %v511_v14  ;;  %v15338_v41 = vpack.c.bf16 %v1170_v58, %v1158_v29  ;;  %v15342_v27 = vpack.c.bf16 %v17987_v24, %v17972_v17  ;;  %v27484_v58 = vand.u32 4294901760, %v17972_v17 }
  0x61   : > { %v1073_v61 = vand.u32 4294901760, %v18294_v28  ;;  %v1164_v4 = vand.u32 4294901760, %v1163_v7  ;;  %v1176_v46 = vand.u32 4294901760, %v1175_v39  ;;  %v15346_v17 = vpack.c.bf16 %v18040_v44, %v18038_v43 }
  0x62   : > { %v15242_v57 = vpack.c.bf16 %v512_v36, %v505_v38  ;;  %15339 = vmatprep.subr.bf16.mxu1 %v15338_v41  ;;  %v27485_v36 = vand.u32 4294901760, %v17987_v24  ;;  %v15250_v38 = vpack.c.bf16 %v18196_v32, %v18188_v60  ;;  %v15254_v24 = vpack.c.bf16 %v18230_v18, %v18225_v1 }
  0x63   : > { %v1074_v59 = vsub.f32 %v18294_v28, %v1073_v61  ;;  %v15340_v14 = vpack.c.bf16 %v1176_v46, %v1164_v4  ;;  %v15348_v39 = vpack.c.bf16 %v18057_v51, %v18055_v50  ;;  %v15350_v41 = vpack.c.bf16 %v18086_v3, %v18074_v55 }
  0x64   : > { %15243 = vmatprep.subr.bf16.mxu0 %v15242_v57  ;;  %v18314_v7 = vpack.c.bf16 %v27485_v36, %v27484_v58  ;;  %v15258_v4 = vpack.c.bf16 %v18271_v56, %v18261_v53  ;;  %v15352_v46 = vpack.c.bf16 %v18099_v10, %v18097_v9  ;;  %v27489_v58 = vand.u32 4294901760, %v18196_v32 }
  0x65   : > { %15245 = vmatpush3.bf16.msra.mxu0 %v15242_v57  ;;  %v1075_v29 = vand.u32 4294901760, %v1074_v59  ;;  %15341 = vmatpush1.bf16.msra.mxu1 %v15340_v14  ;;  %v15344_v57 = vpack.c.bf16 %v18007_v30, %v17991_v26  ;;  %v15356_v59 = vpack.c.bf16 %v18134_v40, %v18114_v22  ;;  %v27488_v14 = vand.u32 4294901760, %v18126_v34  ;;  %v18437_v40 = vld [vmem:[#allocation2 + $0x10] sm:$0xff] }
  0x66   : > { %15247 = vmatprep.subr.bf16.mxu0 %v15246_v5  ;;  %15343 = vmatprep.subr.bf16.mxu1 %v15342_v27  ;;  %v27486_v27 = vand.u32 4294901760, %v18147_v48  ;;  %v15282_v36 = vpack.c.bf16 %v27489_v58, %v475_v13  ;;  %v27492_v34 = vand.u32 4294901760, %v18007_v30  ;;  %v27494_v60 = vand.u32 4294901760, %v18040_v44 }
  0x67   : > { %1076 = vmatmul.mubr.f32.gmra.mrb[2].mxu1 %v1075_v29  ;;  %v27495_v32 = vand.u32 4294901760, %v18225_v1  ;;  %v27496_v13 = vand.u32 4294901760, %v18230_v18  ;;  %v27498_v30 = vand.u32 4294901760, %v18055_v50  ;;  %v27500_v44 = vand.u32 4294901760, %v18074_v55 }
  0x68   : > { %1226 = vmatprep.mubr.f32.mxu1 %v26375_v0  ;;  %14926 = vmatmul.mubr.f32.vlgmr.msra.gmra.mrb[0].mxu0 %v18152_v54  ;;  %v27501_v18 = vand.u32 4294901760, %v18086_v3  ;;  %v27503_v50 = vand.u32 4294901760, %v18097_v9  ;;  %v27505_v55 = vand.u32 4294901760, %v18110_v15  ;;  %v27506_v3 = vand.u32 4294901760, %v18112_v20 }
  0x69   : > { %15249 = vmatpush3.bf16.msra.mxu0 %v15246_v5  ;;  %14944 = vmatprep.mubr.f32.mxu0 %v18147_v48  ;;  %v15354_v5 = vpack.c.bf16 %v18112_v20, %v18110_v15  ;;  %v27487_v48 = vand.u32 4294901760, %v18121_v33  ;;  %v27491_v33 = vand.u32 4294901760, %v17991_v26  ;;  %v27497_v26 = vand.u32 4294901760, %v18171_v2 }
  0x6a   : > { %15251 = vmatprep.subr.bf16.mxu0 %v15250_v38  ;;  %v15382_v1 = vpack.c.bf16 %v27501_v18, %v27500_v44  ;;  %v15386_v53 = vpack.c.bf16 %v27506_v3, %v27505_v55  ;;  %v15388_v9 = vpack.c.bf16 %v1174_v47, %v1162_v35  ;;  %v18439_v35 = vld [vmem:[#allocation2 + $0x18] sm:$0xff]  ;;  %vm1715_vm2 = vcmask 1044480  }
  0x6b   : > { %1228 = vmatmul.mubr.f32.vlgmr.msra.gmra.mrb[0].mxu1 %v18162_v62  ;;  %v15278_v29 = vpack.c.bf16 %v27488_v14, %v27487_v48  ;;  %v2065_v48 = vand.u32 4294901760, %v18437_v40  ;;  %v2068_v14 = vand.u32 4294901760, %v18439_v35  ;;  %vm1705_vm3 = vcmask 1045504  }
  0x6c   : > { %15345 = vmatpush1.bf16.msra.mxu1 %v15344_v57  ;;  %1233 = vmatprep.mubr.f32.mxu1 %v26375_v0  ;;  %v15376_v57 = vpack.c.bf16 %v27492_v34, %v27491_v33  ;;  %v18491_v33 = vld [vmem:[#allocation2 + $0x20] sm:$0xff]  ;;  %vm1735_vm4 = vcmask 1042432   ;;  %vm1725_vm5 = vcmask 1043456   ;;  %vm1755_vm6 = vcmask 1040384  }
  0x6d   : > { %15347 = vmatprep.subr.bf16.mxu1 %v15346_v17  ;;  %15253 = vmatpush3.bf16.msra.mxu0 %v15250_v38  ;;  %v27490_v38 = vand.u32 4294901760, %v18167_v21  ;;  %v27493_v17 = vand.u32 4294901760, %v18038_v43  ;;  %vm1745_vm7 = vcmask 1041408   ;;  %vm12039_vm8 = vcmask 130048  }
  0x6e   : > { %15255 = vmatprep.subr.bf16.mxu0 %v15254_v24 }
  0x6f   : > { %1235 = vmatmul.mubr.f32.gmra.mrb[2].mxu1 %v18286_v8 }
  0x70   : > { %15349 = vmatpush1.bf16.msra.mxu1 %v15348_v39  ;;  %1337 = vmatprep.mubr.f32.mxu1 %v26375_v0 }
  0x71   : > { %15351 = vmatprep.subr.bf16.mxu1 %v15350_v41  ;;  %15257 = vmatpush3.bf16.msra.mxu0 %v15254_v24  ;;  %v15378_v24 = vpack.c.bf16 %v27494_v60, %v27493_v17  ;;  %v18507_v17 = vsub.f32 %v18439_v35, %v2068_v14  ;;  %v18509_v60 = vld [vmem:[#allocation2 + $0xb0] sm:$0xff] }
  0x72   : > { %15259 = vmatprep.subr.bf16.mxu0 %v15258_v4  ;;  %v2125_v18 = vand.u32 4294901760, %v18509_v60 }
  0x73   : > { %27514 = vst [vmem:[#allocation15_spill] sm:$0xff] %v18507_v17 }
  0x74   : > { %15353 = vmatpush1.bf16.msra.mxu1 %v15352_v46 }
  0x75   : > { %15355 = vmatprep.subr.bf16.mxu1 %v15354_v5  ;;  %15261 = vmatpush3.bf16.msra.mxu0 %v15258_v4  ;;  %v18433_v4 = vld [vmem:[#allocation2 + $0x98] sm:$0xff] }
  0x76   : > { %15263 = vmatprep.subr.bf16.mxu0 %v17970_v16  ;;  %v2116_v5 = vand.u32 4294901760, %v18433_v4 }
  0x78   : > { %15357 = vmatpush1.bf16.msra.mxu1 %v15356_v59  ;;  %14945 = vmatmul.mubr.f32.vlgmr.msra.gmra.mrb[0].mxu0 %v18167_v21  ;;  %v15286_v21 = vpack.c.bf16 %v27496_v13, %v27495_v32  ;;  %v18446_v59 = vld [vmem:[#allocation2 + $0xa0] sm:$0xff] }
  0x79   : > { %15359 = vmatprep.subr.bf16.mxu1 %v17985_v23  ;;  %15265 = vmatpush3.bf16.msra.mxu0 %v17970_v16 }
  0x7a   : > { %15267 = vmatprep.subr.bf16.mxu0 %v18013_v31  ;;  %14963 = vmatprep.mubr.f32.mxu0 %v27486_v27  ;;  %v18448_v27 = vld [vmem:[#allocation2 + $0xa8] sm:$0xff] }
  0x7b   : > { %1340 = vmatmul.mubr.f32.vlgmr.msra.gmra.mrb[0].mxu1 %v18171_v2  ;;  %v27502_v2 = vand.u32 4294901760, %v18271_v56  ;;  %v18416_v56 = vld [vmem:[#allocation2 + $0x80] sm:$0xff]  ;;  %v2122_v58 = vand.u32 4294901760, %v18448_v27 }
  0x7c   : > { %15361 = vmatpush1.bf16.msra.mxu1 %v17989_v25  ;;  %1345 = vmatprep.mubr.f32.mxu1 %v26375_v0  ;;  %v2107_v15 = vand.u32 4294901760, %v18416_v56 }
  0x7d   : > { %15363 = vmatprep.subr.bf16.mxu1 %v18036_v42  ;;  %15269 = vmatpush3.bf16.msra.mxu0 %v18013_v31  ;;  %v15290_v39 = vpack.c.bf16 %v27502_v2, %v503_v19  ;;  %v18418_v19 = vld [vmem:[#allocation2 + $0x88] sm:$0xff]  ;;  %v18523_v13 = vsub.f32 %v18448_v27, %v2122_v58 }
  0x7e   : > { %15271 = vmatprep.subr.bf16.mxu0 %v18063_v52  ;;  %v2110_v20 = vand.u32 4294901760, %v18418_v19 }
  0x7f   : > { %1348 = vmatmul.mubr.f32.gmra.mrb[2].mxu1 %v18294_v28  ;;  %v18429_v28 = vld [vmem:[#allocation2 + $0x8] sm:$0xff]  ;;  %27516 = vst [vmem:[#allocation17_spill] sm:$0xff] %v18523_v13  ;;  %v26361_v3 = vand.u32 4294901760, %v18523_v13 }
  0x80   : > { %15365 = vmatpush1.bf16.msra.mxu1 %v18053_v49  ;;  %1434 = vmatprep.mubr.f32.mxu1 %v26375_v0  ;;  %v2062_v47 = vand.u32 4294901760, %v18429_v28 }
  0x81   : > { %15367 = vmatprep.subr.bf16.mxu1 %v18084_v63  ;;  %15273 = vmatpush3.bf16.msra.mxu0 %v18063_v52 }
  0x82   : > { %15275 = vmatprep.subr.bf16.mxu0 %v18105_v11 }
  0x84   : > { %15369 = vmatpush1.bf16.msra.mxu1 %v18088_v6 }
  0x85   : > { %15371 = vmatprep.subr.bf16.mxu1 %v18107_v12  ;;  %15277 = vmatpush3.bf16.msra.mxu0 %v18105_v11 }
  0x86   : > { %15279 = vmatprep.subr.bf16.mxu0 %v15278_v29 }
  0x88   : > { %15373 = vmatpush1.bf16.msra.mxu1 %v18132_v37  ;;  %14964 = vmatmul.mubr.f32.vlgmr.msra.gmra.mrb[0].mxu0 %v27490_v38  ;;  %v18489_v38 = vsub.f32 %v18433_v4, %v2116_v5 }
  0x89   : > { %15375 = vmatprep.subr.bf16.mxu1 %v18314_v7  ;;  %15281 = vmatpush3.bf16.msra.mxu0 %v15278_v29  ;;  %v27499_v7 = vand.u32 4294901760, %v18057_v51  ;;  %v27504_v51 = vand.u32 4294901760, %v18099_v10  ;;  %v18424_v10 = vld [vmem:[#allocation2] sm:$0xff]  ;;  %v2119_v29 = vand.u32 4294901760, %v18446_v59 }
  0x8a   : > { %15283 = vmatprep.subr.bf16.mxu0 %v15282_v36  ;;  %14982 = vmatprep.mubr.f32.mxu0 %v18136_v45  ;;  %v2059_v22 = vand.u32 4294901760, %v18424_v10  ;;  %27512 = vst [vmem:[#allocation13_spill] sm:$0xff] %v18489_v38 }
  0x8b   : > { %1438 = vmatmul.mubr.f32.vlgmr.msra.gmra.mrb[0].mxu1 %v27497_v26  ;;  %v15380_v43 = vpack.c.bf16 %v27499_v7, %v27498_v30  ;;  %v15384_v41 = vpack.c.bf16 %v27504_v51, %v27503_v50  ;;  %v18518_v32 = vsub.f32 %v18446_v59, %v2119_v29  ;;  %v18550_v50 = vpack.c.bf16 %v2110_v20, %v2107_v15  ;;  %v18552_v51 = vld [vmem:[#allocation2 + $0xc0] sm:$0xff] }
  0x8c   : > { %15377 = vmatpush1.bf16.msra.mxu1 %v15376_v57  ;;  %1443 = vmatprep.mubr.f32.mxu1 %v26375_v0  ;;  %v18502_v57 = vsub.f32 %v18437_v40, %v2065_v48 }
  0x8d   : > { %15379 = vmatprep.subr.bf16.mxu1 %v15378_v24  ;;  %15285 = vmatpush3.bf16.msra.mxu0 %v15282_v36  ;;  %v18479_v36 = vsub.f32 %v18429_v28, %v2062_v47  ;;  %v18511_v24 = vld [vmem:[#allocation2 + $0xb8] sm:$0xff]  ;;  %27515 = vst [vmem:[#allocation16_spill] sm:$0xff] %v18518_v32  ;;  %27517 = vst [vmem:[#allocation18_spill] sm:$0xff] %v18550_v50  ;;  %v26372_v55 = vand.u32 4294901760, %v18518_v32 }
  0x8e   : > { %15287 = vmatprep.subr.bf16.mxu0 %v15286_v21  ;;  %27513 = vst [vmem:[#allocation14_spill] sm:$0xff] %v18502_v57  ;;  %v26374_v2 = vand.u32 4294901760, %v18502_v57 }
  0x8f   : > { %1447 = vmatmul.mubr.f32.gmra.mrb[2].mxu1 %v1073_v61  ;;  %v18431_v61 = vld [vmem:[#allocation2 + $0x90] sm:$0xff]  ;;  %27510 = vst [vmem:[#allocation11_spill] sm:$0xff] %v18479_v36  ;;  %v26354_v30 = vand.u32 4294901760, %v18479_v36 }
  0x90   : > { %15381 = vmatpush1.bf16.msra.mxu1 %v15380_v43  ;;  %1565 = vmatprep.mubr.f32.mxu1 %v26375_v0  ;;  %v2113_v46 = vand.u32 4294901760, %v18431_v61  ;;  %v26355_v43 = vand.u32 4294901760, %v18489_v38 }
  0x91   : > { %15383 = vmatprep.subr.bf16.mxu1 %v15382_v1  ;;  %15289 = vmatpush3.bf16.msra.mxu0 %v15286_v21  ;;  %v2071_v21 = vand.u32 4294901760, %v18491_v33  ;;  %v18542_v1 = vld [vmem:[#allocation2 + $0x38] sm:$0xff] }
  0x92   : > { %15291 = vmatprep.subr.bf16.mxu0 %v15290_v39 }
  0x94   : > { %15385 = vmatpush1.bf16.msra.mxu1 %v15384_v41  ;;  %v18554_v41 = vld [vmem:[#allocation2 + $0xc8] sm:$0xff] }
  0x95   : > { %15387 = vmatprep.subr.bf16.mxu1 %v15386_v53  ;;  %15293 = vmatpush3.bf16.msra.mxu0 %v15290_v39  ;;  %v26373_v39 = vand.u32 4294901760, %v18507_v17  ;;  %v18562_v53 = vsub.f32 %v18491_v33, %v2071_v21 }
  0x96   : > { %15295 = vmatprep.subr.bf16.mxu0 %v17970_v16 }
  0x97   : > { %27518 = vst [vmem:[#allocation19_spill] sm:$0xff] %v18562_v53 }
  0x98   : > { %15389 = vmatpush1.bf16.msra.mxu1 %v15388_v9  ;;  %14983 = vmatmul.mubr.f32.vlgmr.msra.gmra.mrb[0].mxu0 %v18152_v54 }
  0x99   : > { %15391 = vmatprep.subr.bf16.mxu1 %v17985_v23  ;;  %15297 = vmatpush3.bf16.msra.mxu0 %v17970_v16  ;;  %v18455_v23 = vsub.f32 %v18416_v56, %v2107_v15  ;;  %v18460_v16 = vsub.f32 %v18418_v19, %v2110_v20  ;;  %v2080_v15 = vand.u32 4294901760, %v18542_v1  ;;  %v2131_v20 = vand.u32 4294901760, %v18552_v51 }
  0x9a   : > { %15299 = vmatprep.subr.bf16.mxu0 %v18013_v31  ;;  %15001 = vmatprep.mubr.f32.mxu0 %v18136_v45  ;;  %v18470_v45 = vsub.f32 %v18424_v10, %v2059_v22  ;;  %v18619_v10 = vpack.c.bf16 %v2116_v5, %v2113_v46 }
  0x9b   : > { %27507 = vst [vmem:[#allocation8_spill] sm:$0xff] %v18455_v23  ;;  %27508 = vst [vmem:[#allocation9_spill] sm:$0xff] %v18460_v16  ;;  %1567 = vmatmul.mubr.f32.vlgmr.msra.gmra.mrb[0].mxu1 %v18162_v62  ;;  %v26358_v34 = vand.u32 4294901760, %v18460_v16 }
  0x9c   : > { %15393 = vmatpush1.bf16.msra.mxu1 %v17989_v25  ;;  %1572 = vmatprep.mubr.f32.mxu1 %v26375_v0  ;;  %27509 = vst [vmem:[#allocation10_spill] sm:$0xff] %v18470_v45  ;;  %v18484_v25 = vsub.f32 %v18431_v61, %v2113_v46  ;;  %27521 = vst [vmem:[#allocation22_spill] sm:$0xff] %v18619_v10 }
  0x9d   : > { %15395 = vmatprep.subr.bf16.mxu1 %v18036_v42  ;;  %15301 = vmatpush3.bf16.msra.mxu0 %v18013_v31  ;;  %v18493_v42 = vld [vmem:[#allocation2 + $0x28] sm:$0xff]  ;;  %v26359_v31 = vand.u32 4294901760, %v18455_v23 }
  0x9e   : > { %27511 = vst [vmem:[#allocation12_spill] sm:$0xff] %v18484_v25  ;;  %15303 = vmatprep.subr.bf16.mxu0 %v18063_v52  ;;  %v2074_v26 = vand.u32 4294901760, %v18493_v42  ;;  %v26356_v7 = vand.u32 4294901760, %v18484_v25 }
  0x9f   : > { %1574 = vmatmul.mubr.f32.gmra.mrb[2].mxu1 %v18286_v8  ;;  %v15534_v44 = vpack.c.bf16 %v26358_v34, %v26359_v31  ;;  %v15542_v34 = vpack.c.bf16 %v26361_v3, %v26372_v55  ;;  %v26371_v31 = vand.u32 4294901760, %v18562_v53 }
  0xa0   : > { %15397 = vmatpush1.bf16.msra.mxu1 %v18053_v49  ;;  %1660 = vmatprep.mubr.f32.mxu1 %v26375_v0  ;;  %v26357_v49 = vand.u32 4294901760, %v18470_v45  ;;  %v18567_v56 = vsub.f32 %v18493_v42, %v2074_v26  ;;  %v15538_v19 = vpack.c.bf16 %v26355_v43, %v26356_v7  ;;  %v18593_v43 = vld [vmem:[#allocation2 + $0x40] sm:$0xff]  ;;  %v18595_v7 = vld [vmem:[#allocation2 + $0x48] sm:$0xff] }
  0xa1   : > { %15399 = vmatprep.subr.bf16.mxu1 %v18084_v63  ;;  %15305 = vmatpush3.bf16.msra.mxu0 %v18063_v52  ;;  %v26360_v63 = vand.u32 4294901760, %v18511_v24  ;;  %v18540_v52 = vld [vmem:[#allocation2 + $0x30] sm:$0xff]  ;;  %v26381_v28 = vand.u32 4294901760, %v18593_v43  ;;  %v26380_v61 = vand.u32 4294901760, %v18595_v7 }
  0xa2   : > { %15307 = vmatprep.subr.bf16.mxu0 %v18105_v11  ;;  %27519 = vst [vmem:[#allocation20_spill] sm:$0xff] %v18567_v56  ;;  %v2077_v9 = vand.u32 4294901760, %v18540_v52 }
  0xa3   : > { %v18671_v40 = vsub.f32 %v18593_v43, %v26381_v28  ;;  %v18676_v35 = vsub.f32 %v18595_v7, %v26380_v61  ;;  %v1815_v61 = vld [vmem:[#allocation2 + $0x68] sm:$0xff] }
  0xa4   : > { %15401 = vmatpush1.bf16.msra.mxu1 %v18088_v6  ;;  %v15536_v6 = vpack.c.bf16 %v26354_v30, %v26357_v49  ;;  %v26384_v30 = vand.u32 4294901760, %v18554_v41  ;;  %v18605_v49 = vpack.c.bf16 %v2062_v47, %v2059_v22  ;;  %v18639_v47 = vsub.f32 %v18552_v51, %v2131_v20 }
  0xa5   : > { %15403 = vmatprep.subr.bf16.mxu1 %v18107_v12  ;;  %15309 = vmatpush3.bf16.msra.mxu0 %v18105_v11  ;;  %v18584_v12 = vsub.f32 %v18509_v60, %v2125_v18  ;;  %v18589_v11 = vsub.f32 %v18511_v24, %v26360_v63  ;;  %v26370_v63 = vand.u32 4294901760, %v18567_v56  ;;  %v18767_v60 = vpack.c.bf16 %v2080_v15, %v2077_v9 }
  0xa6   : > { %15535 = vmatprep.subr.bf16.mxu0 %v15534_v44  ;;  %v15540_v44 = vpack.c.bf16 %v26373_v39, %v26374_v2  ;;  %27520 = vst [vmem:[#allocation21_spill] sm:$0xff] %v18605_v49  ;;  %v18644_v46 = vsub.f32 %v18554_v41, %v26384_v30  ;;  %v26363_v27 = vand.u32 4294901760, %v18639_v47  ;;  %v27530_v2 = vand.u32 4294901760, %v18511_v24  ;;  %v1816_v30 = vld [vmem:[#allocation2 + $0x70] sm:$0xff] }
  0xa7   : > { %v26369_v4 = vand.u32 4294901760, %v18584_v12  ;;  %v26368_v22 = vand.u32 4294901760, %v18589_v11  ;;  %v15544_v5 = vpack.c.bf16 %v26370_v63, %v26371_v31  ;;  %27532 = vst [vmem:[#allocation32_spill] sm:$0xff] %v18767_v60 }
  0xa8   : > { %15405 = vmatpush1.bf16.msra.mxu1 %v18132_v37  ;;  %15002 = vmatmul.mubr.f32.vlgmr.msra.gmra.mrb[0].mxu0 %v18152_v54  ;;  %v18625_v37 = vsub.f32 %v18540_v52, %v2077_v9  ;;  %v18630_v54 = vsub.f32 %v18542_v1, %v2080_v15  ;;  %v1833_v52 = vld [vmem:[#allocation2 + $0xf8] sm:$0xff] }
  0xa9   : > { %15537 = vmatpush3.bf16.msra.mxu0 %v15536_v6  ;;  %15407 = vmatprep.subr.bf16.mxu1 %v18550_v50  ;;  %v18657_v6 = vpack.c.bf16 %v2068_v14, %v2065_v48  ;;  %v15546_v59 = vpack.c.bf16 %v26368_v22, %v26369_v4  ;;  %v26362_v48 = vand.u32 4294901760, %v18644_v46  ;;  %v18690_v14 = vpack.c.bf16 %v2074_v26, %v2071_v21  ;;  %v18710_v21 = vld [vmem:[#allocation2 + $0xd8] sm:$0xff]  ;;  %v1830_v22 = vld [vmem:[#allocation2 + $0xe0] sm:$0xff]  ;;  %v1831_v4 = vld [vmem:[#allocation2 + $0xe8] sm:$0xff] }
  0xaa   : > { %27522 = vst [vmem:[#allocation23_spill] sm:$0xff] %v18630_v54  ;;  %15539 = vmatprep.subr.bf16.mxu0 %v15538_v19  ;;  %v26367_v19 = vand.u32 4294901760, %v18625_v37  ;;  %v26366_v3 = vand.u32 4294901760, %v18630_v54  ;;  %v963_v26 = vlaneseq  ;;  %v2143_v39 = vand.u32 4294901760, %v1830_v22 }
  0xab   : > { %1662 = vmatmul.mubr.f32.vlgmr.msra.gmra.mrb[0].mxu1 %v18162_v62  ;;  %27523 = vst [vmem:[#allocation24_spill] sm:$0xff] %v18657_v6  ;;  %v18663_v62 = vpack.c.bf16 %v2122_v58, %v2119_v29  ;;  %27525 = vst [vmem:[#allocation26_spill] sm:$0xff] %v18690_v14  ;;  %v26365_v58 = vand.u32 4294901760, %v18671_v40  ;;  %v15550_v33 = vpack.c.bf16 %v26362_v48, %v26363_v27  ;;  %v18716_v48 = vld [vmem:[#allocation2 + $0x58] sm:$0xff]  ;;  %v2152_v15 = vand.u32 4294901760, %v1833_v52 }
  0xac   : > { %1667 = vmatprep.mubr.f32.mxu1 %v26375_v0  ;;  %15409 = vmatpush3.bf16.msra.mxu1 %v18605_v49  ;;  %v15548_v29 = vpack.c.bf16 %v26366_v3, %v26367_v19  ;;  %v26377_v27 = vand.u32 4294901760, %v18716_v48  ;;  %v18754_v0 = vpack.c.bf16 %v27530_v2, %v2125_v18  ;;  %v18773_v18 = vsub.f32 %v1830_v22, %v2143_v39  ;;  %v1851_v49 = vld [vmem:[#allocation2 + $0x188] sm:$0xff] }
  0xad   : > { %27524 = vst [vmem:[#allocation25_spill] sm:$0xff] %v18663_v62  ;;  %15541 = vmatpush3.bf16.msra.mxu0 %v15540_v44  ;;  %15411 = vmatprep.subr.bf16.mxu1 %v18619_v10  ;;  %v18793_v1 = vsub.f32 %v1833_v52, %v2152_v15  ;;  %v27577_v50 = vand.u32 4294901760, %v18484_v25 }
  0xae   : > { %15543 = vmatprep.subr.bf16.mxu0 %v15542_v34  ;;  %v18708_v34 = vld [vmem:[#allocation2 + $0xd0] sm:$0xff]  ;;  %v18738_v3 = vsub.f32 %v18716_v48, %v26377_v27  ;;  %27531 = vst [vmem:[#allocation31_spill] sm:$0xff] %v18754_v0  ;;  %27533 = vst [vmem:[#allocation33_spill] sm:$0xff] %v18773_v18 }
  0xaf   : > { %1669 = vmatmul.mubr.f32.gmra.mrb[2].mxu1 %v18286_v8  ;;  %v26364_v8 = vand.u32 4294901760, %v18676_v35  ;;  %v26379_v44 = vand.u32 4294901760, %v18708_v34  ;;  %27540 = vst [vmem:[#allocation39_spill] sm:$0xff] %v18793_v1 }
  0xb0   : > { %15413 = vmatpush3.bf16.msra.mxu1 %v18657_v6  ;;  %27529 = vst [vmem:[#allocation30_spill] sm:$0xff] %v18738_v3  ;;  %v26385_v55 = vand.u32 4294901760, %v18738_v3  ;;  %v27543_v6 = vand.u32 4294901760, %v18595_v7 }
  0xb1   : > { %15545 = vmatpush3.bf16.msra.mxu0 %v15544_v5  ;;  %15415 = vmatprep.subr.bf16.mxu1 %v18663_v62  ;;  %v15552_v42 = vpack.c.bf16 %v26364_v8, %v26365_v58  ;;  %v2140_v5 = vand.u32 4294901760, %v18710_v21  ;;  %v18720_v8 = vshrl.u32 %v963_v26, 7  ;;  %v27541_v62 = vand.u32 4294901760, %v18773_v18 }
  0xb2   : > { %15547 = vmatprep.subr.bf16.mxu0 %v15546_v59  ;;  %v18714_v59 = vld [vmem:[#allocation2 + $0x50] sm:$0xff] }
  0xb3   : > { %v969_v63 = vsub.s32 1, %v18720_v8 }
  0xb4   : > { %15417 = vmatpush3.bf16.msra.mxu1 %v18690_v14 }
  0xb5   : > { %15549 = vmatpush3.bf16.msra.mxu0 %v15548_v29  ;;  %v26378_v29 = vand.u32 4294901760, %v18714_v59  ;;  %15419 = vmatprep.subr.bf16.mxu1 %v18754_v0  ;;  %v27537_v0 = vand.u32 4294901760, %v18554_v41 }
  0xb6   : > { %15551 = vmatprep.subr.bf16.mxu0 %v15550_v33  ;;  %v18725_v33 = vsub.f32 %v18708_v34, %v26379_v44  ;;  %v1814_v44 = vld [vmem:[#allocation2 + $0x60] sm:$0xff] }
  0xb7   : > { %v18733_v58 = vsub.f32 %v18714_v59, %v26378_v29  ;;  %v2146_v29 = vand.u32 4294901760, %v1831_v4  ;;  %v18789_v14 = vpack.c.bf16 %v27537_v0, %v2131_v20  ;;  %v2405_v20 = vand.u32 4294901760, %v18793_v1 }
  0xb8   : > { %27526 = vst [vmem:[#allocation27_spill] sm:$0xff] %v18725_v33  ;;  %v26383_v26 = vand.u32 4294901760, %v18725_v33  ;;  %15421 = vmatpush3.bf16.msra.mxu1 %v18767_v60 }
  0xb9   : > { %15553 = vmatpush3.bf16.msra.mxu0 %v15552_v42  ;;  %v18728_v42 = vsub.f32 %v18710_v21, %v2140_v5  ;;  %27528 = vst [vmem:[#allocation29_spill] sm:$0xff] %v18733_v58  ;;  %v18745_v21 = vld [vmem:[%s26324_s5] sm:$0x3]  ;;  %v26386_v31 = vand.u32 4294901760, %v18733_v58  ;;  %v18776_v2 = vsub.f32 %v1831_v4, %v2146_v29  ;;  %v2101_v4 = vand.u32 4294901760, %v1816_v30  ;;  %27538 = vst [vmem:[#allocation37_spill] sm:$0xff] %v18789_v14 }
  0xba   : > { %v18761_v28 = vrot.slane %v18745_v21, %v969_v63  ;;  %v2095_v63 = vand.u32 4294901760, %v1814_v44  ;;  %15423 = vmatprep.subr.bf16.mxu1 %v18789_v14  ;;  %v27549_v14 = vand.u32 4294901760, %v18714_v59 }
  0xbb   : > { %27527 = vst [vmem:[#allocation28_spill] sm:$0xff] %v18728_v42  ;;  %v26382_v19 = vand.u32 4294901760, %v18728_v42  ;;  %v15556_v24 = vpack.c.bf16 %v26385_v55, %v26386_v31  ;;  %27534 = vst [vmem:[#allocation34_spill] sm:$0xff] %v18776_v2  ;;  %v1817_v55 = vld [vmem:[#allocation2 + $0x78] sm:$0xff]  ;;  %v26399_v22 = vand.u32 4294901760, %v18776_v2 }
  0xbc   : > { %v18781_v31 = vsub.f32 %v1814_v44, %v2095_v63  ;;  %v2104_v60 = vand.u32 4294901760, %v1817_v55 }
  0xbd   : > { %v15554_v27 = vpack.c.bf16 %v26382_v19, %v26383_v26  ;;  %v2098_v19 = vand.u32 4294901760, %v1815_v61  ;;  %v1832_v26 = vld [vmem:[#allocation2 + $0xf0] sm:$0xff]  ;;  %v15558_v44 = vpack.c.bf16 %v26399_v22, %v27541_v62 }
  0xbe   : > { %v2149_v9 = vand.u32 4294901760, %v1832_v26  ;;  %27535 = vst [vmem:[#allocation35_spill] sm:$0xff] %v18781_v31  ;;  %v2272_v51 = vand.u32 4294901760, %v18781_v31  ;;  %v18812_v52 = vsub.f32 %v1817_v55, %v2104_v60 }
  0xbf   : > { %15555 = vmatprep.subr.bf16.mxu0 %v15554_v27  ;;  %v18783_v27 = vsub.f32 %v1815_v61, %v2098_v19  ;;  %v27542_v61 = vand.u32 4294901760, %v18593_v43  ;;  %v27547_v43 = vand.u32 4294901760, %v18708_v34 }
  0xc0   : > { %15557 = vmatpush3.bf16.msra.mxu0 %v15556_v24  ;;  %v18791_v24 = vsub.f32 %v1832_v26, %v2149_v9  ;;  %v18810_v26 = vsub.f32 %v1816_v30, %v2101_v4  ;;  %27546 = vst [vmem:[#allocation42_spill] sm:$0xff] %v18812_v52  ;;  %v2293_v22 = vand.u32 4294901760, %v18812_v52  ;;  %v27550_v30 = vand.u32 4294901760, %v18716_v48 }
  0xc1   : > { %27536 = vst [vmem:[#allocation36_spill] sm:$0xff] %v18783_v27  ;;  %v18803_v10 = vpack.c.bf16 %v27543_v6, %v27542_v61  ;;  %v2279_v0 = vand.u32 4294901760, %v18783_v27  ;;  %15559 = vmatprep.subr.bf16.mxu0 %v15558_v44  ;;  %v18817_v6 = vpack.c.bf16 %v2140_v5, %v27547_v43  ;;  %v18827_v44 = vpack.c.bf16 %v2146_v29, %v2143_v39 }
  0xc2   : > { %27539 = vst [vmem:[#allocation38_spill] sm:$0xff] %v18791_v24  ;;  %v2398_v41 = vand.u32 4294901760, %v18791_v24  ;;  %27545 = vst [vmem:[#allocation41_spill] sm:$0xff] %v18810_v26  ;;  %v2286_v61 = vand.u32 4294901760, %v18810_v26  ;;  %v18825_v55 = vpack.c.bf16 %v27550_v30, %v27549_v14  ;;  %v3028_v43 = vand.u32 4294901760, %v1851_v49 }
  0xc3   : > { %27544 = vst [vmem:[#allocation40_spill] sm:$0xff] %v18803_v10  ;;  %15425 = vmatpush3.bf16.msra.mxu1 %v18803_v10  ;;  %v15560_v7 = vpack.c.bf16 %v2279_v0, %v2272_v51  ;;  %27548 = vst [vmem:[#allocation43_spill] sm:$0xff] %v18817_v6  ;;  %v1850_v10 = vld [vmem:[#allocation2 + $0x180] sm:$0xff]  ;;  %v18834_v48 = vpack.c.bf16 %v2098_v19, %v2095_v63  ;;  %v18842_v59 = vpack.c.bf16 %v2152_v15, %v2149_v9 }
  0xc4   : > { %v15562_v62 = vpack.c.bf16 %v2405_v20, %v2398_v41  ;;  %27551 = vst [vmem:[#allocation44_spill] sm:$0xff] %v18825_v55  ;;  %27552 = vst [vmem:[#allocation45_spill] sm:$0xff] %v18827_v44  ;;  %15427 = vmatprep.subr.bf16.mxu1 %v18817_v6  ;;  %v15564_v34 = vpack.c.bf16 %v2293_v22, %v2286_v61  ;;  %v3025_v5 = vand.u32 4294901760, %v1850_v10  ;;  %v27560_v19 = vand.u32 4294901760, %v18460_v16  ;;  %v18935_v6 = vld [vmem:[#allocation2 + $0x128] sm:$0xff] }
  0xc5   : > { %15561 = vmatpush3.bf16.msra.mxu0 %v15560_v7  ;;  %27554 = vst [vmem:[#allocation47_spill] sm:$0xff] %v18834_v48  ;;  %v18839_v14 = vsub.f32 %v1851_v49, %v3028_v43  ;;  %27557 = vst [vmem:[#allocation50_spill] sm:$0xff] %v18842_v59  ;;  %v18844_v29 = vpack.c.bf16 %v2104_v60, %v2101_v4  ;;  %v27561_v9 = vand.u32 4294901760, %v18725_v33  ;;  %v27562_v15 = vand.u32 4294901760, %v18728_v42 }
  0xc6   : > { %15563 = vmatprep.subr.bf16.mxu0 %v15562_v62  ;;  %v18832_v7 = vpack.c.bf16 %v3028_v43, %v3025_v5  ;;  %v18837_v39 = vsub.f32 %v1850_v10, %v3025_v5  ;;  %v27559_v62 = vand.u32 4294901760, %v18455_v23  ;;  %v2308_v63 = vsub.f32 %v18460_v16, %v27560_v19  ;;  %27576 = vst [vmem:[#allocation58_spill] sm:$0xff] %v18935_v6 }
  0xc7   : > { %15429 = vmatpush3.bf16.msra.mxu1 %v18825_v55  ;;  %27556 = vst [vmem:[#allocation49_spill] sm:$0xff] %v18839_v14  ;;  %27558 = vst [vmem:[#allocation51_spill] sm:$0xff] %v18844_v29  ;;  %v2371_v60 = vsub.f32 %v18725_v33, %v27561_v9  ;;  %v2378_v4 = vsub.f32 %v18728_v42, %v27562_v15  ;;  %v27566_v15 = vand.u32 4294901760, %v18776_v2 }
  0xc8   : > { %15431 = vmatprep.subr.bf16.mxu1 %v18827_v44  ;;  %27553 = vst [vmem:[#allocation46_spill] sm:$0xff] %v18832_v7  ;;  %27555 = vst [vmem:[#allocation48_spill] sm:$0xff] %v18837_v39  ;;  %v2301_v30 = vsub.f32 %v18455_v23, %v27559_v62  ;;  %v2309_v10 = vand.u32 4294901760, %v2308_v63  ;;  %v27563_v62 = vand.u32 4294901760, %v18733_v58 }
  0xc9   : > { %15565 = vmatpush3.bf16.msra.mxu0 %v15564_v34  ;;  %v2372_v5 = vand.u32 4294901760, %v2371_v60  ;;  %v2379_v43 = vand.u32 4294901760, %v2378_v4  ;;  %v2392_v60 = vsub.f32 %v18776_v2, %v27566_v15  ;;  %v2273_v4 = vsub.f32 %v18781_v31, %v2272_v51 }
  0xca   : > { %15599 = vmatprep.subr.bf16.mxu0 %v18832_v7  ;;  %v2302_v49 = vand.u32 4294901760, %v2301_v30  ;;  %v2259_v19 = vsub.f32 %v18733_v58, %v27563_v62  ;;  %v27564_v7 = vand.u32 4294901760, %v18738_v3  ;;  %v2280_v62 = vsub.f32 %v18783_v27, %v2279_v0 }
  0xcb   : > { %15433 = vmatpush3.bf16.msra.mxu1 %v18834_v48  ;;  %v18866_v63 = vpack.c.bf16 %v2379_v43, %v2372_v5  ;;  %v2393_v43 = vand.u32 4294901760, %v2392_v60  ;;  %v2294_v51 = vsub.f32 %v18812_v52, %v2293_v22  ;;  %v965_v60 = vsub.s32 0, %v18720_v8  ;;  %v18901_v22 = vld [vmem:[#allocation2 + $0x118] sm:$0xff] }
  0xcc   : > { %15435 = vmatprep.subr.bf16.mxu1 %v18842_v59  ;;  %v15438_v34 = vpack.c.bf16 %v2309_v10, %v2302_v49  ;;  %v2266_v30 = vsub.f32 %v18738_v3, %v27564_v7  ;;  %v2260_v49 = vand.u32 4294901760, %v2259_v19  ;;  %v2399_v7 = vsub.f32 %v18791_v24, %v2398_v41  ;;  %v18952_v3 = vld [vmem:[#allocation2 + $0x1b8] sm:$0xff] }
  0xcd   : > { %v2274_v19 = vand.u32 4294901760, %v2273_v4  ;;  %v2281_v59 = vand.u32 4294901760, %v2280_v62  ;;  %v2295_v41 = vand.u32 4294901760, %v2294_v51  ;;  %v18893_v4 = vld [vmem:[#allocation2 + $0x108] sm:$0xff]  ;;  %v18897_v62 = vld [vmem:[#allocation2 + $0x198] sm:$0xff]  ;;  %v2315_v52 = vsub.f32 %v18484_v25, %v27577_v50  ;;  %27583 = vst [vmem:[#allocation61_spill] sm:$0xff] %v18952_v3 }
  0xce   : > { %v2267_v10 = vand.u32 4294901760, %v2266_v30  ;;  %v2406_v30 = vsub.f32 %v18793_v1, %v2405_v20  ;;  %v2400_v48 = vand.u32 4294901760, %v2399_v7  ;;  %v18891_v20 = vld [vmem:[#allocation2 + $0x100] sm:$0xff]  ;;  %v18899_v7 = vld [vmem:[#allocation2 + $0x110] sm:$0xff]  ;;  %v27580_v31 = vand.u32 4294901760, %v18893_v4 }
  0xcf   : > { %15437 = vmatpush3.bf16.msra.mxu1 %v18844_v29  ;;  %v27579_v27 = vand.u32 4294901760, %v18891_v20  ;;  %v27589_v33 = vand.u32 4294901760, %v18899_v7 }
  0xd0   : > { %15439 = vmatprep.subr.bf16.mxu1 %v15438_v34  ;;  %v27565_v34 = vand.u32 4294901760, %v18773_v18  ;;  %v18875_v29 = vpack.c.bf16 %v2267_v10, %v2260_v49  ;;  %v2407_v15 = vand.u32 4294901760, %v2406_v30  ;;  %v18884_v49 = vpack.c.bf16 %v2281_v59, %v2274_v19  ;;  %v18903_v59 = vld [vmem:[#allocation2 + $0x1a0] sm:$0xff] }
  0xd1   : > { %v12433_v30 = vld [vmem:[%s26322_s3] ss:$0 sm:$0xff]  ;;  %v18948_v2 = vpack.c.bf16 %v27580_v31, %v27579_v27  ;;  %v27590_v31 = vand.u32 4294901760, %v18901_v22 }
  0xd2   : > { %v2385_v9 = vsub.f32 %v18773_v18, %v27565_v34  ;;  %v2287_v34 = vsub.f32 %v18810_v26, %v2286_v61  ;;  %27567 = vst [vmem:[#allocation52_spill] sm:$0xff] %v18884_v49  ;;  %v18886_v0 = vpack.c.bf16 %v2407_v15, %v2400_v48  ;;  %v18895_v61 = vld [vmem:[#allocation2 + $0x190] sm:$0xff]  ;;  %v18905_v48 = vld [vmem:[#allocation2 + $0x1a8] sm:$0xff] }
  0xd3   : > { %27581 = vst [vmem:[#allocation59_spill] sm:$0xff] %v18948_v2  ;;  %v18950_v18 = vld [vmem:[#allocation2 + $0x1b0] sm:$0xff]  ;;  %v18970_v27 = vpack.c.bf16 %v27590_v31, %v27589_v33  ;;  %v2316_v33 = vand.u32 4294901760, %v2315_v52  ;;  %v27601_v52 = vand.u32 4294901760, %v18507_v17 }
  0xd4   : > { %v2386_v5 = vand.u32 4294901760, %v2385_v9  ;;  %v2288_v10 = vand.u32 4294901760, %v2287_v34  ;;  %27568 = vst [vmem:[#allocation53_spill] sm:$0xff] %v18886_v0  ;;  %v966_v34 = vrot.slane %v18745_v21, %v965_v60  ;;  %v27573_v60 = vmov 0.0   ;;  %27582 = vst [vmem:[#allocation60_spill] sm:$0xff] %v18950_v18  ;;  %v19055_v0 = vld [vmem:[#allocation2 + $0x1c8] sm:$0xff] }
  0xd5   : > { %v18928_v26 = vrot.slane %v27573_v60, 1  ;;  %v18955_v50 = vrot.slane %v27573_v60, 2  ;;  %27591 = vst [vmem:[#allocation65_spill] sm:$0xff] %v18970_v27 }
  0xd6   : > { %v18881_v44 = vpack.c.bf16 %v2393_v43, %v2386_v5  ;;  %v18888_v9 = vpack.c.bf16 %v2295_v41, %v2288_v10  ;;  %v27570_v5 = vand.u32 4294901760, %v18470_v45  ;;  %v27571_v43 = vand.u32 4294901760, %v18479_v36  ;;  %v18933_v41 = vld [vmem:[#allocation2 + $0x120] sm:$0xff] }
  0xd7   : > { %27574 = vst [vmem:[#allocation56_spill] sm:$0xff] %v18928_v26  ;;  %27584 = vst [vmem:[#allocation62_spill] sm:$0xff] %v18955_v50 }
  0xd8   : > { %27569 = vst [vmem:[#allocation54_spill] sm:$0xff] %v18888_v9  ;;  %v2189_v8 = vsub.f32 %v18470_v45, %v27570_v5  ;;  %v2196_v19 = vsub.f32 %v18479_v36, %v27571_v43  ;;  %v18931_v5 = vrot.slane %v27573_v60, 3  ;;  %v27593_v60 = vand.u32 4294901760, %v18905_v48  ;;  %v18984_v45 = vld [vmem:[#allocation2 + $0x138] sm:$0xff] }
  0xd9   : > { %27596 = vst [vmem:[#allocation68_spill] sm:$0xff] %v18984_v45 }
  0xda   : > { %v2190_v51 = vand.u32 4294901760, %v2189_v8  ;;  %v2197_v10 = vand.u32 4294901760, %v2196_v19  ;;  %27575 = vst [vmem:[#allocation57_spill] sm:$0xff] %v18931_v5 }
 0x17b   : > { %v15003_v15 = vpop.f32.mrb[0].mxu0 }
 0x17c   : > { %v935_v55 = vpop.f32.mrb[1].mxu0 }
 0x17d   : > { %v18925_v21 = vadd.f32 %v12433_v30, %v935_v55  ;;  %v27578_v55 = vand.u32 4294901760, %v18489_v38 }
 0x17e   : > { %v1663_v1 = vpop.f32.mrb[0].mxu1 }
 0x17f   : > { %27572 = vst [vmem:[#allocation55_spill] sm:$0xff] %v18925_v21  ;;  %v2322_v43 = vsub.f32 %v18489_v38, %v27578_v55  ;;  %v17520_v24 = vadd.f32 %v1663_v1, %v966_v34  ;;  %v1665_v8 = vpop.f32.mrb[1].mxu1  ;;  %v1692_v19 = vmul.f32 0.0, %v18925_v21  ;;  %v27586_v1 = vand.u32 4294901760, %v18895_v61 }
 0x180   : > { %v18958_v58 = vadd.f32 %v1665_v8, %v18761_v28  ;;  %v27587_v55 = vand.u32 4294901760, %v18897_v62  ;;  %v27592_v38 = vand.u32 4294901760, %v18903_v59 }
 0x181   : > { %v1678_v8 = vrot.slane %v17520_v24, 1  ;;  %v2323_v31 = vand.u32 4294901760, %v2322_v43  ;;  %v2210_v43 = vsub.f32 %v18507_v17, %v27601_v52  ;;  %v27605_v52 = vand.u32 4294901760, %v18935_v6  ;;  %v19097_v6 = vld [vmem:[#allocation2 + $0x148] sm:$0xff] }
 0x182   : > { %27585 = vst [vmem:[#allocation63_spill] sm:$0xff] %v18958_v58  ;;  %v18964_v42 = vpack.c.bf16 %v27587_v55, %v27586_v1  ;;  %v18976_v25 = vpack.c.bf16 %v27593_v60, %v27592_v38  ;;  %v18978_v58 = vpack.c.bf16 %v2197_v10, %v2190_v51  ;;  %v18982_v55 = vld [vmem:[#allocation2 + $0x130] sm:$0xff]  ;;  %v1670_v9 = vpop.f32.mrb[2].mxu1  ;;  %v18988_v38 = vadd.f32 %v15003_v15, %v12433_v30 }
 0x183   : > { %27595 = vst [vmem:[#allocation67_spill] sm:$0xff] %v18982_v55  ;;  %v18991_v24 = vsel %vm1677_vm1, 0.0, %v1678_v8  ;;  %v17522_v51 = vadd.f32 %v1670_v9, %v966_v34  ;;  %v1672_v10 = vpop.f32.mrb[3].mxu1  ;;  %v18993_v60 = vand.u32 4294901760, %v1692_v19  ;;  %v27600_v1 = vand.u32 4294901760, %v18502_v57 }
 0x184   : > { %27588 = vst [vmem:[#allocation64_spill] sm:$0xff] %v18964_v42  ;;  %27594 = vst [vmem:[#allocation66_spill] sm:$0xff] %v18976_v25  ;;  %v19006_v23 = vadd.f32 %v1672_v10, %v18761_v28  ;;  %v1697_v9 = vrot.slane %v18991_v24, 1  ;;  %v1693_v34 = vmul.f32 %v18988_v38, %v18991_v24  ;;  %v19018_v16 = vpack.c.bf16 %v2323_v31, %v2316_v33  ;;  %v19053_v31 = vld [vmem:[#allocation2 + $0x1c0] sm:$0xff] }
 0x185   : > { %27597 = vst [vmem:[#allocation69_spill] sm:$0xff] %v18988_v38  ;;  %27598 = vst [vmem:[#allocation70_spill] sm:$0xff] %v18991_v24  ;;  %v2203_v36 = vsub.f32 %v18502_v57, %v27600_v1  ;;  %v19003_v15 = vrot.slane %v17522_v51, 1  ;;  %v27604_v57 = vand.u32 4294901760, %v18933_v41  ;;  %v27607_v51 = vand.u32 4294901760, %v18950_v18 }
 0x186   : > { %27599 = vst [vmem:[#allocation71_spill] sm:$0xff] %v18993_v60  ;;  %27603 = vst [vmem:[#allocation73_spill] sm:$0xff] %v19006_v23  ;;  %v27608_v28 = vand.u32 4294901760, %v18952_v3  ;;  %v1698_v30 = vsel %vm1677_vm1, %v18928_v26, %v1697_v9  ;;  %v19029_v23 = vsub.f32 %v1692_v19, %v18993_v60  ;;  %v2211_v19 = vand.u32 4294901760, %v2210_v43 }
 0x187   : > { %27602 = vst [vmem:[#allocation72_spill] sm:$0xff] %v19003_v15  ;;  %v19016_v17 = vpack.c.bf16 %v27605_v52, %v27604_v57  ;;  %v19033_v1 = vsel %vm1677_vm1, %v1678_v8, %v19003_v15  ;;  %v19035_v57 = vand.u32 4294901760, %v1693_v34  ;;  %v1703_v33 = vmul.f32 %v18925_v21, %v1698_v30 }
 0x188   : > { %v19024_v10 = vpack.c.bf16 %v27608_v28, %v27607_v51  ;;  %27610 = vst [vmem:[#allocation76_spill] sm:$0xff] %v19029_v23  ;;  %27611 = vst [vmem:[#allocation77_spill] sm:$0xff] %v19033_v1  ;;  %v27613_v52 = vrot.slane %v18991_v24, 3  ;;  %v2204_v28 = vand.u32 4294901760, %v2203_v36  ;;  %v27614_v3 = vand.u32 4294901760, %v18982_v55 }
 0x189   : > { %27606 = vst [vmem:[#allocation74_spill] sm:$0xff] %v19016_v17  ;;  %27612 = vst [vmem:[#allocation78_spill] sm:$0xff] %v19035_v57  ;;  %v27615_v8 = vand.u32 4294901760, %v18984_v45  ;;  %v27617_v18 = vand.u32 4294901760, %v18518_v32  ;;  %v27619_v36 = vrot.slane %v19033_v1, 1 }
 0x18a   : > { %27609 = vst [vmem:[#allocation75_spill] sm:$0xff] %v19024_v10  ;;  %v1718_v51 = vsel %vm1715_vm2, %v18931_v5, %v27613_v52  ;;  %v19057_v52 = vand.u32 4294901760, %v1703_v33  ;;  %v19070_v5 = vld [vmem:[#allocation2 + $0x140] sm:$0xff]  ;;  %v19095_v55 = vpack.c.bf16 %v2211_v19, %v2204_v28  ;;  %v27629_v28 = vand.u32 4294901760, %v19029_v23 }
 0x18b   : > { %v1723_v26 = vmul.f32 %v18925_v21, %v1718_v51  ;;  %v19048_v15 = vpack.c.bf16 %v27615_v8, %v27614_v3  ;;  %v2329_v30 = vsub.f32 %v18518_v32, %v27617_v18  ;;  %v19062_v43 = vsel %vm1677_vm1, %v1697_v9, %v27619_v36 }
 0x18c   : > { %27618 = vst [vmem:[#allocation80_spill] sm:$0xff] %v19057_v52  ;;  %27620 = vst [vmem:[#allocation81_spill] sm:$0xff] %v19062_v43  ;;  %v27621_v51 = vand.u32 4294901760, %v18523_v13  ;;  %v27622_v8 = vand.u32 4294901760, %v18562_v53  ;;  %v1704_v32 = vmul.f32 %v18988_v38, %v19062_v43  ;;  %v19078_v9 = vsub.f32 %v1693_v34, %v19035_v57  ;;  %2851 = vmatprep.mubr.f32.mxu0 %v19057_v52 }
 0x18d   : > { %27616 = vst [vmem:[#allocation79_spill] sm:$0xff] %v19048_v15  ;;  %v19074_v45 = vand.u32 4294901760, %v1723_v26  ;;  %v19082_v36 = vsub.f32 %v1703_v33, %v19057_v52  ;;  %2853 = vmatmul.mubr.f32.vlgmr.msra.gmra.mrb[2].mxu0 %v18993_v60  ;;  %v2163_v19 = vsub.f32 %v19029_v23, %v27629_v28  ;;  %v27633_v33 = vand.u32 4294901760, %v19055_v0 }
 0x18e   : > { %v2336_v3 = vsub.f32 %v18523_v13, %v27621_v51  ;;  %v2217_v18 = vsub.f32 %v18562_v53, %v27622_v8  ;;  %27624 = vst [vmem:[#allocation83_spill] sm:$0xff] %v19078_v9  ;;  %v27626_v53 = vand.u32 4294901760, %v18567_v56  ;;  %v19090_v13 = vand.u32 4294901760, %v1704_v32  ;;  %15601 = vmatpush3.bf16.msra.mxu0 %v18948_v2 }
 0x18f   : > { %27623 = vst [vmem:[#allocation82_spill] sm:$0xff] %v19074_v45  ;;  %27625 = vst [vmem:[#allocation84_spill] sm:$0xff] %v19082_v36  ;;  %v19093_v34 = vsub.f32 %v1723_v26, %v19074_v45  ;;  %v2330_v51 = vand.u32 4294901760, %v2329_v30  ;;  %15603 = vmatprep.subr.bf16.mxu0 %v18964_v42  ;;  %v1707_v8 = vrot.slane %v18991_v24, 2  ;;  %v27631_v30 = vand.u32 4294901760, %v19082_v36 }
 0x190   : > { %v2224_v43 = vsub.f32 %v18567_v56, %v27626_v53  ;;  %27627 = vst [vmem:[#allocation85_spill] sm:$0xff] %v19090_v13  ;;  %v2337_v49 = vand.u32 4294901760, %v2336_v3  ;;  %v2218_v53 = vand.u32 4294901760, %v2217_v18  ;;  %2858 = vmatprep.mubr.f32.mxu0 %v19090_v13  ;;  %v19109_v45 = vsub.f32 %v1704_v32, %v19090_v13 }
 0x191   : > { %27628 = vst [vmem:[#allocation86_spill] sm:$0xff] %v19093_v34  ;;  %v26473_v26 = vand.u32 4294901760, %v19093_v34  ;;  %v2157_v3 = vsub.f32 %v19082_v36, %v27631_v30  ;;  %2860 = vmatmul.mubr.f32.gmra.mrb[4].mxu0 %v19035_v57  ;;  %v27632_v2 = vand.u32 4294901760, %v19053_v31  ;;  %v27635_v42 = vand.u32 4294901760, %v18584_v12 }
 0x192   : > { %27630 = vst [vmem:[#allocation87_spill] sm:$0xff] %v19109_v45  ;;  %v2225_v18 = vand.u32 4294901760, %v2224_v43  ;;  %15605 = vmatpush3.bf16.msra.mxu0 %v18970_v27  ;;  %v15446_v30 = vpack.c.bf16 %v2337_v49, %v2330_v51  ;;  %v2164_v13 = vand.u32 4294901760, %v2163_v19  ;;  %v27638_v56 = vand.u32 4294901760, %v19078_v9  ;;  %v19143_v51 = vld [vmem:[#allocation2 + $0x1d0] sm:$0xff] }
 0x193   : > { %v3075_v28 = vsub.f32 %v19093_v34, %v26473_v26  ;;  %v19126_v23 = vpack.c.bf16 %v27633_v33, %v27632_v2  ;;  %v2158_v43 = vand.u32 4294901760, %v2157_v3  ;;  %v2343_v36 = vsub.f32 %v18584_v12, %v27635_v42  ;;  %15607 = vmatprep.subr.bf16.mxu0 %v18976_v25 }
 0x194   : > { %v27636_v26 = vand.u32 4294901760, %v18589_v11  ;;  %v27637_v2 = vand.u32 4294901760, %v19109_v45  ;;  %v2178_v49 = vsub.f32 %v19078_v9, %v27638_v56  ;;  %v15448_v42 = vpack.c.bf16 %v2225_v18, %v2218_v53 }
 0x195   : > { %27634 = vst [vmem:[#allocation88_spill] sm:$0xff] %v19126_v23  ;;  %v3076_v57 = vand.u32 4294901760, %v3075_v28  ;;  %2159 = vmatprep.mubr.f32.mxu1 %v2158_v43  ;;  %v27639_v3 = vand.u32 4294901760, %v19070_v5  ;;  %v19151_v28 = vld [vmem:[#allocation2 + $0x1d8] sm:$0xff]  ;;  %v1708_v19 = vsel %vm1705_vm3, %v18955_v50, %v1707_v8  ;;  %v27642_v25 = vand.u32 4294901760, %v18625_v37 }
 0x196   : > { %v2350_v32 = vsub.f32 %v18589_v11, %v27636_v26  ;;  %v2172_v33 = vsub.f32 %v19109_v45, %v27637_v2  ;;  %v27640_v26 = vand.u32 4294901760, %v19097_v6  ;;  %2165 = vmatmul.mubr.f32.vlgmr.msra.gmra.mrb[4].mxu1 %v2164_v13  ;;  %v27643_v18 = vand.u32 4294901760, %v18630_v54  ;;  %15609 = vmatpush3.bf16.msra.mxu0 %v19016_v17 }
 0x197   : > { %3077 = vmatprep.mubr.f32.mxu0 %v3076_v57  ;;  %v2231_v53 = vsub.f32 %v18625_v37, %v27642_v25  ;;  %v27644_v9 = vrot.slane %v19033_v1, 3  ;;  %v27645_v50 = vrot.slane %v18991_v24, 3  ;;  %15441 = vmatpush3.bf16.msra.mxu1 %v18978_v58  ;;  %v2344_v25 = vand.u32 4294901760, %v2343_v36  ;;  %v19184_v24 = vld [vmem:[#allocation2 + $0x1e8] sm:$0xff] }
 0x198   : > { %v19149_v27 = vpack.c.bf16 %v27640_v26, %v27639_v3  ;;  %v2173_v56 = vand.u32 4294901760, %v2172_v33  ;;  %v2238_v43 = vsub.f32 %v18630_v54, %v27643_v18  ;;  %v19162_v3 = vld [vmem:[#allocation2 + $0x150] sm:$0xff]  ;;  %v19164_v26 = vld [vmem:[#allocation2 + $0x158] sm:$0xff]  ;;  %v27647_v33 = vand.u32 4294901760, %v18639_v47  ;;  %v19182_v54 = vld [vmem:[#allocation2 + $0x1e0] sm:$0xff]  ;;  %15443 = vmatprep.subr.bf16.mxu1 %v19018_v16  ;;  %15611 = vmatprep.subr.bf16.mxu0 %v19024_v10 }
 0x199   : > { %v19171_v57 = vsel %vm1715_vm2, %v27645_v50, %v27644_v9  ;;  %v27648_v2 = vand.u32 4294901760, %v18644_v46  ;;  %v2179_v58 = vand.u32 4294901760, %v2178_v49  ;;  %v2351_v50 = vand.u32 4294901760, %v2350_v32  ;;  %v19227_v49 = vld [vmem:[#allocation2 + $0x1f8] sm:$0xff] }
 0x19a   : > { %27641 = vst [vmem:[#allocation89_spill] sm:$0xff] %v19149_v27  ;;  %27646 = vst [vmem:[#allocation90_spill] sm:$0xff] %v19171_v57  ;;  %v2357_v18 = vsub.f32 %v18639_v47, %v27647_v33  ;;  %2174 = vmatprep.mubr.f32.mxu1 %v2173_v56  ;;  %v1713_v36 = vmul.f32 %v18925_v21, %v1708_v19  ;;  %v27649_v17 = vrot.slane %v19033_v1, 2  ;;  %v2232_v16 = vand.u32 4294901760, %v2231_v53  ;;  %v19209_v53 = vld [vmem:[#allocation2 + $0x160] sm:$0xff]  ;;  %v19249_v1 = vld [vmem:[#allocation2 + $0x170] sm:$0xff] }
 0x19b   : > { %v2364_v45 = vsub.f32 %v18644_v46, %v27648_v2  ;;  %v1724_v2 = vmul.f32 %v18988_v38, %v19171_v57  ;;  %2180 = vmatmul.mubr.f32.gmra.mrb[6].mxu1 %v2179_v58  ;;  %v2239_v32 = vand.u32 4294901760, %v2238_v43  ;;  %15613 = vmatpush3.bf16.msra.mxu0 %v19048_v15  ;;  %v27651_v9 = vand.u32 4294901760, %v18671_v40 }
 0x19c   : > { %v19197_v56 = vsel %vm1705_vm3, %v1707_v8, %v27649_v17  ;;  %15445 = vmatpush3.bf16.msra.mxu1 %v19095_v55  ;;  %v2358_v13 = vand.u32 4294901760, %v2357_v18  ;;  %v27652_v17 = vand.u32 4294901760, %v18676_v35  ;;  %2410 = vmatprep.mubr.f32.mxu1 %v19057_v52  ;;  %v15450_v43 = vpack.c.bf16 %v2351_v50, %v2344_v25 }
 0x19d   : > { %27650 = vst [vmem:[#allocation91_spill] sm:$0xff] %v19197_v56  ;;  %v2365_v33 = vand.u32 4294901760, %v2364_v45  ;;  %v2245_v57 = vsub.f32 %v18671_v40, %v27651_v9  ;;  %15447 = vmatprep.subr.bf16.mxu1 %v15446_v30  ;;  %v27653_v55 = vand.u32 4294901760, %v19143_v51  ;;  %v27654_v58 = vand.u32 4294901760, %v19151_v28  ;;  %v19218_v45 = vld [vmem:[#allocation2 + $0x168] sm:$0xff]  ;;  %15615 = vmatprep.subr.bf16.mxu0 %v19126_v23 }
 0x19e   : > { %v2252_v8 = vsub.f32 %v18676_v35, %v27652_v17  ;;  %v19220_v19 = vand.u32 4294901760, %v1713_v36  ;;  %v1714_v9 = vmul.f32 %v18988_v38, %v19197_v56  ;;  %v19225_v17 = vld [vmem:[#allocation2 + $0x1f0] sm:$0xff]  ;;  %v19229_v30 = vand.u32 4294901760, %v1724_v2 }
 0x19f   : > { %v19216_v18 = vpack.c.bf16 %v27654_v58, %v27653_v55  ;;  %v15452_v25 = vpack.c.bf16 %v2239_v32, %v2232_v16  ;;  %v27658_v50 = vand.u32 4294901760, %v19162_v3  ;;  %v27659_v55 = vand.u32 4294901760, %v19164_v26  ;;  %15617 = vmatpush3.bf16.msra.mxu0 %v19149_v27 }
 0x1a0   : > { %27656 = vst [vmem:[#allocation93_spill] sm:$0xff] %v19220_v19  ;;  %27657 = vst [vmem:[#allocation94_spill] sm:$0xff] %v19229_v30  ;;  %v27661_v15 = vand.u32 4294901760, %v19182_v54  ;;  %v27662_v10 = vand.u32 4294901760, %v19184_v24  ;;  %v26513_v23 = vand.u32 4294901760, %v19209_v53  ;;  %15449 = vmatpush3.bf16.msra.mxu1 %v15448_v42  ;;  %v15454_v52 = vpack.c.bf16 %v2365_v33, %v2358_v13 }
 0x1a1   : > { %27655 = vst [vmem:[#allocation92_spill] sm:$0xff] %v19216_v18  ;;  %v19235_v58 = vpack.c.bf16 %v27659_v55, %v27658_v50  ;;  %v2246_v38 = vand.u32 4294901760, %v2245_v57  ;;  %v2253_v16 = vand.u32 4294901760, %v2252_v8  ;;  %v26505_v32 = vand.u32 4294901760, %v19218_v45  ;;  %15451 = vmatprep.subr.bf16.mxu1 %v15450_v43  ;;  %15619 = vmatprep.subr.bf16.mxu0 %v19216_v18  ;;  %v27725_v18 = vld [vmem:[#allocation17_spill] sm:$0xff] }
 0x1a2   : > { %v19241_v56 = vpack.c.bf16 %v27662_v10, %v27661_v15  ;;  %v26510_v50 = vand.u32 4294901760, %v19225_v17  ;;  %v26506_v55 = vand.u32 4294901760, %v19227_v49  ;;  %v19251_v15 = vld [vmem:[#allocation2 + $0x178] sm:$0xff]  ;;  %v19254_v10 = vsub.f32 %v1713_v36, %v19220_v19 }
 0x1a3   : > { %27660 = vst [vmem:[#allocation95_spill] sm:$0xff] %v19235_v58  ;;  %v19256_v42 = vand.u32 4294901760, %v1714_v9  ;;  %v19259_v57 = vsub.f32 %v1724_v2, %v19229_v30  ;;  %15621 = vmatpush3.bf16.msra.mxu0 %v19235_v58  ;;  %v15456_v13 = vpack.c.bf16 %v2253_v16, %v2246_v38  ;;  %v19266_v33 = vpack.c.bf16 %v26505_v32, %v26513_v23 }
 0x1a4   : > { %27663 = vst [vmem:[#allocation96_spill] sm:$0xff] %v19241_v56  ;;  %27664 = vst [vmem:[#allocation97_spill] sm:$0xff] %v19254_v10  ;;  %15453 = vmatpush3.bf16.msra.mxu1 %v15452_v25  ;;  %v26508_v8 = vand.u32 4294901760, %v19249_v1  ;;  %v26507_v36 = vand.u32 4294901760, %v19251_v15  ;;  %15623 = vmatprep.subr.bf16.mxu0 %v19241_v56  ;;  %v19275_v2 = vpack.c.bf16 %v26506_v55, %v26510_v50  ;;  %v26509_v38 = vand.u32 4294901760, %v19254_v10  ;;  %v27708_v56 = vld [vmem:[#allocation68_spill] sm:$0xff] }
 0x1a5   : > { %27665 = vst [vmem:[#allocation98_spill] sm:$0xff] %v19256_v42  ;;  %27666 = vst [vmem:[#allocation99_spill] sm:$0xff] %v19259_v57  ;;  %15455 = vmatprep.subr.bf16.mxu1 %v15454_v52  ;;  %v19279_v43 = vsub.f32 %v1714_v9, %v19256_v42  ;;  %v26511_v25 = vand.u32 4294901760, %v19259_v57  ;;  %v27670_v16 = vand.u32 4294901760, %v18891_v20  ;;  %v27673_v55 = vand.u32 4294901760, %v18893_v4 }
 0x1a6   : > { %27667 = vst [vmem:[#allocation100_spill] sm:$0xff] %v19266_v33  ;;  %27668 = vst [vmem:[#allocation101_spill] sm:$0xff] %v19275_v2  ;;  %v19292_v52 = vpack.c.bf16 %v26507_v36, %v26508_v8  ;;  %v27675_v36 = vand.u32 4294901760, %v18895_v61 }
 0x1a7   : > { %27669 = vst [vmem:[#allocation102_spill] sm:$0xff] %v19279_v43  ;;  %v19285_v32 = vsub.f32 %v18891_v20, %v27670_v16  ;;  %15625 = vmatpush3.bf16.msra.mxu0 %v19266_v33  ;;  %v19297_v9 = vsub.f32 %v18893_v4, %v27673_v55  ;;  %v3081_v20 = vsub.f32 %v19254_v10, %v26509_v38  ;;  %v26512_v16 = vand.u32 4294901760, %v19279_v43 }
 0x1a8   : > { %15457 = vmatpush3.bf16.msra.mxu1 %v15456_v13  ;;  %27672 = vst [vmem:[#allocation104_spill] sm:$0xff] %v19292_v52  ;;  %15627 = vmatprep.subr.bf16.mxu0 %v19275_v2  ;;  %v15662_v13 = vpack.c.bf16 %v18839_v14, %v18837_v39  ;;  %v19310_v8 = vsub.f32 %v18895_v61, %v27675_v36  ;;  %v27677_v4 = vand.u32 4294901760, %v18897_v62  ;;  %v27679_v38 = vand.u32 4294901760, %v18899_v7 }
 0x1a9   : > { %27671 = vst [vmem:[#allocation103_spill] sm:$0xff] %v19285_v32  ;;  %27674 = vst [vmem:[#allocation105_spill] sm:$0xff] %v19297_v9  ;;  %15459 = vmatprep.subr.bf16.mxu1 %v18866_v63  ;;  %v3090_v55 = vsub.f32 %v19259_v57, %v26511_v25  ;;  %v27681_v61 = vand.u32 4294901760, %v18901_v22  ;;  %v27685_v25 = vand.u32 4294901760, %v18905_v48 }
 0x1aa   : > { %27676 = vst [vmem:[#allocation106_spill] sm:$0xff] %v19310_v8  ;;  %v19315_v63 = vsub.f32 %v18897_v62, %v27677_v4  ;;  %v19323_v50 = vsub.f32 %v18899_v7, %v27679_v38  ;;  %v3082_v62 = vand.u32 4294901760, %v3081_v20  ;;  %v15664_v4 = vpack.c.bf16 %v19297_v9, %v19285_v32 }
 0x1ab   : > { %15629 = vmatpush3.bf16.msra.mxu0 %v19292_v52  ;;  %v19330_v36 = vsub.f32 %v18901_v22, %v27681_v61  ;;  %v3096_v7 = vsub.f32 %v19279_v43, %v26512_v16  ;;  %v19346_v22 = vsub.f32 %v18905_v48, %v27685_v25  ;;  %v27689_v16 = vld [vmem:[#allocation52_spill] sm:$0xff]  ;;  %v27693_v48 = vld [vmem:[#allocation53_spill] sm:$0xff] }
 0x1ac   : > { %27678 = vst [vmem:[#allocation107_spill] sm:$0xff] %v19315_v63  ;;  %27680 = vst [vmem:[#allocation108_spill] sm:$0xff] %v19323_v50  ;;  %15461 = vmatpush3.bf16.msra.mxu1 %v18875_v29  ;;  %15663 = vmatprep.subr.bf16.mxu0 %v15662_v13  ;;  %v27683_v29 = vand.u32 4294901760, %v18903_v59  ;;  %v15666_v20 = vpack.c.bf16 %v19315_v63, %v19310_v8  ;;  %v27687_v13 = vand.u32 4294901760, %v18933_v41  ;;  %v27695_v52 = vld [vmem:[#allocation9_spill] sm:$0xff] }
 0x1ad   : > { %27682 = vst [vmem:[#allocation109_spill] sm:$0xff] %v19330_v36  ;;  %15463 = vmatprep.subr.bf16.mxu1 %v18881_v44  ;;  %27686 = vst [vmem:[#allocation111_spill] sm:$0xff] %v19346_v22  ;;  %v3091_v44 = vand.u32 4294901760, %v3090_v55  ;;  %v3097_v25 = vand.u32 4294901760, %v3096_v7  ;;  %v15668_v55 = vpack.c.bf16 %v19330_v36, %v19323_v50  ;;  %v27702_v7 = vld [vmem:[#allocation67_spill] sm:$0xff] }
 0x1ae   : > { %v19341_v38 = vsub.f32 %v18903_v59, %v27683_v29  ;;  %3083 = vmatmul.mubr.f32.vlgmr.msra.gmra.mrb[6].mxu0 %v3082_v62  ;;  %v19353_v61 = vsub.f32 %v18933_v41, %v27687_v13  ;;  %v27690_v59 = vld [vmem:[#allocation58_spill] sm:$0xff]  ;;  %v27694_v62 = vld [vmem:[#allocation8_spill] sm:$0xff] }
 0x1af   : > { %3092 = vmatprep.mubr.f32.mxu0 %v3091_v44  ;;  %v27691_v29 = vand.u32 4294901760, %v27690_v59  ;;  %15665 = vmatpush3.bf16.msra.mxu0 %v15664_v4  ;;  %v15470_v2 = vpack.c.bf16 %v27695_v52, %v27694_v62  ;;  %v27696_v41 = vld [vmem:[#allocation60_spill] sm:$0xff]  ;;  %v27699_v44 = vld [vmem:[#allocation61_spill] sm:$0xff]  ;;  %v27705_v52 = vld [vmem:[#allocation54_spill] sm:$0xff] }
 0x1b0   : > { %27684 = vst [vmem:[#allocation110_spill] sm:$0xff] %v19341_v38  ;;  %27688 = vst [vmem:[#allocation112_spill] sm:$0xff] %v19353_v61  ;;  %15465 = vmatpush3.bf16.msra.mxu1 %v27689_v16  ;;  %v27697_v13 = vand.u32 4294901760, %v27696_v41  ;;  %v27700_v33 = vand.u32 4294901760, %v27699_v44  ;;  %15667 = vmatprep.subr.bf16.mxu0 %v15666_v20  ;;  %v15670_v4 = vpack.c.bf16 %v19346_v22, %v19341_v38  ;;  %v27706_v62 = vld [vmem:[#allocation10_spill] sm:$0xff] }
 0x1b1   : > { %v19359_v23 = vsub.f32 %v27690_v59, %v27691_v29  ;;  %15467 = vmatprep.subr.bf16.mxu1 %v27693_v48  ;;  %v27703_v29 = vand.u32 4294901760, %v27702_v7 }
 0x1b2   : > { %v19369_v16 = vsub.f32 %v27696_v41, %v27697_v13  ;;  %v19374_v59 = vsub.f32 %v27699_v44, %v27700_v33  ;;  %3098 = vmatmul.mubr.f32.gmra.mrb[8].mxu0 %v3097_v25  ;;  %v27707_v41 = vld [vmem:[#allocation11_spill] sm:$0xff]  ;;  %v27709_v33 = vand.u32 4294901760, %v27708_v56  ;;  %v27711_v44 = vld [vmem:[#allocation12_spill] sm:$0xff] }
 0x1b3   : > { %27692 = vst [vmem:[#allocation52_spill] sm:$0xff] %v19359_v23  ;;  %v19381_v48 = vsub.f32 %v27702_v7, %v27703_v29  ;;  %3472 = vmatprep.mubr.f32.mxu0 %v19093_v34  ;;  %v15472_v13 = vpack.c.bf16 %v27707_v41, %v27706_v62  ;;  %15669 = vmatpush3.bf16.msra.mxu0 %v15668_v55  ;;  %v27712_v7 = vld [vmem:[#allocation13_spill] sm:$0xff]  ;;  %v27715_v62 = vand.u32 4294901760, %v19055_v0 }
 0x1b4   : > { %27698 = vst [vmem:[#allocation58_spill] sm:$0xff] %v19369_v16  ;;  %27701 = vst [vmem:[#allocation53_spill] sm:$0xff] %v19374_v59  ;;  %15469 = vmatpush3.bf16.msra.mxu1 %v27705_v52  ;;  %v19390_v20 = vsub.f32 %v27708_v56, %v27709_v33  ;;  %v15672_v25 = vpack.c.bf16 %v19359_v23, %v19353_v61  ;;  %v15474_v29 = vpack.c.bf16 %v27712_v7, %v27711_v44  ;;  %v27719_v33 = vld [vmem:[#allocation85_spill] sm:$0xff]  ;;  %v27721_v44 = vld [vmem:[#allocation15_spill] sm:$0xff] }
 0x1b5   : > { %27704 = vst [vmem:[#allocation8_spill] sm:$0xff] %v19381_v48  ;;  %15471 = vmatprep.subr.bf16.mxu1 %v15470_v2  ;;  %v27713_v52 = vand.u32 4294901760, %v19053_v31  ;;  %v19404_v41 = vsub.f32 %v19055_v0, %v27715_v62  ;;  %15671 = vmatprep.subr.bf16.mxu0 %v15670_v4  ;;  %v15674_v56 = vpack.c.bf16 %v19374_v59, %v19369_v16  ;;  %v27717_v2 = vand.u32 4294901760, %v19070_v5  ;;  %v27724_v62 = vld [vmem:[#allocation16_spill] sm:$0xff]  ;;  %v1867_v34 = vld [vmem:[#allocation2 + $0x208] sm:$0xff] }
 0x1b6   : > { %27710 = vst [vmem:[#allocation9_spill] sm:$0xff] %v19390_v20  ;;  %v27722_v0 = vand.u32 4294901760, %v19097_v6 }
 0x1b7   : > { %v19399_v58 = vsub.f32 %v19053_v31, %v27713_v52  ;;  %27716 = vst [vmem:[#allocation61_spill] sm:$0xff] %v19404_v41  ;;  %2412 = vmatmul.mubr.f32.vlgmr.msra.gmra.mrb[8].mxu1 %v18993_v60  ;;  %v19412_v55 = vsub.f32 %v19070_v5, %v27717_v2  ;;  %v27720_v31 = vld [vmem:[#allocation14_spill] sm:$0xff]  ;;  %15673 = vmatpush3.bf16.msra.mxu0 %v15672_v25  ;;  %v27726_v2 = vand.u32 4294901760, %v19143_v51 }
 0x1b8   : > { %2417 = vmatprep.mubr.f32.mxu1 %v27719_v33  ;;  %15473 = vmatpush3.bf16.msra.mxu1 %v15472_v13  ;;  %v15476_v7 = vpack.c.bf16 %v27721_v44, %v27720_v31  ;;  %v19420_v4 = vsub.f32 %v19097_v6, %v27722_v0  ;;  %v15676_v52 = vpack.c.bf16 %v19390_v20, %v19381_v48  ;;  %v27728_v31 = vand.u32 4294901760, %v19151_v28  ;;  %v27730_v25 = vld [vmem:[#allocation78_spill] sm:$0xff]  ;;  %v27733_v0 = vld [vmem:[#allocation84_spill] sm:$0xff] }
 0x1b9   : > { %27714 = vst [vmem:[#allocation60_spill] sm:$0xff] %v19399_v58  ;;  %27718 = vst [vmem:[#allocation67_spill] sm:$0xff] %v19412_v55  ;;  %15475 = vmatprep.subr.bf16.mxu1 %v15474_v29  ;;  %v15478_v5 = vpack.c.bf16 %v27725_v18, %v27724_v62  ;;  %v19429_v13 = vsub.f32 %v19143_v51, %v27726_v2  ;;  %15675 = vmatprep.subr.bf16.mxu0 %v15674_v56  ;;  %v27731_v29 = vand.u32 4294901760, %v19162_v3  ;;  %v27734_v51 = vld [vmem:[#allocation19_spill] sm:$0xff]  ;;  %v27735_v62 = vld [vmem:[#allocation20_spill] sm:$0xff] }
 0x1ba   : > { %27723 = vst [vmem:[#allocation54_spill] sm:$0xff] %v19420_v4  ;;  %v19434_v44 = vsub.f32 %v19151_v28, %v27728_v31  ;;  %v15678_v6 = vpack.c.bf16 %v19404_v41, %v19399_v58  ;;  %v15480_v2 = vpack.c.bf16 %v27735_v62, %v27734_v51  ;;  %v27736_v28 = vand.u32 4294901760, %v19164_v26 }
 0x1bb   : > { %27727 = vst [vmem:[#allocation10_spill] sm:$0xff] %v19429_v13  ;;  %2419 = vmatmul.mubr.f32.gmra.mrb[10].mxu1 %v27730_v25  ;;  %v19442_v18 = vsub.f32 %v19162_v3, %v27731_v29  ;;  %15677 = vmatpush3.bf16.msra.mxu0 %v15676_v52  ;;  %v15680_v31 = vpack.c.bf16 %v19420_v4, %v19412_v55  ;;  %v27740_v51 = vand.u32 4294901760, %v19184_v24  ;;  %v27742_v52 = vand.u32 4294901760, %v19209_v53 }
 0x1bc   : > { %27729 = vst [vmem:[#allocation11_spill] sm:$0xff] %v19434_v44  ;;  %15477 = vmatpush3.bf16.msra.mxu1 %v15476_v7  ;;  %2554 = vmatprep.mubr.f32.mxu1 %v27733_v0  ;;  %v19450_v56 = vsub.f32 %v19164_v26, %v27736_v28  ;;  %v15482_v3 = vpack.c.bf16 %v18589_v11, %v18584_v12  ;;  %v27738_v7 = vand.u32 4294901760, %v19182_v54  ;;  %v27744_v12 = vld [vmem:[#allocation23_spill] sm:$0xff]  ;;  %v27783_v25 = vand.u32 4294901760, %v19429_v13 }
 0x1bd   : > { %27732 = vst [vmem:[#allocation68_spill] sm:$0xff] %v19442_v18  ;;  %15479 = vmatprep.subr.bf16.mxu1 %v15478_v5  ;;  %v19464_v62 = vsub.f32 %v19184_v24, %v27740_v51  ;;  %15679 = vmatprep.subr.bf16.mxu0 %v15678_v6  ;;  %v15682_v26 = vpack.c.bf16 %v19434_v44, %v19429_v13  ;;  %v27755_v51 = vld [vmem:[#allocation27_spill] sm:$0xff] }
 0x1be   : > { %27737 = vst [vmem:[#allocation12_spill] sm:$0xff] %v19450_v56  ;;  %v19459_v29 = vsub.f32 %v19182_v54, %v27738_v7  ;;  %v19471_v5 = vsub.f32 %v19209_v53, %v27742_v52  ;;  %v15484_v11 = vpack.c.bf16 %v27744_v12, %v18625_v37  ;;  %v27745_v54 = vand.u32 4294901760, %v19218_v45 }
 0x1bf   : > { %27741 = vst [vmem:[#allocation14_spill] sm:$0xff] %v19464_v62  ;;  %15681 = vmatpush3.bf16.msra.mxu0 %v15680_v31  ;;  %v15684_v24 = vpack.c.bf16 %v19450_v56, %v19442_v18  ;;  %v15486_v6 = vpack.c.bf16 %v18644_v46, %v18639_v47  ;;  %v27747_v53 = vand.u32 4294901760, %v19225_v17  ;;  %v27749_v37 = vand.u32 4294901760, %v19227_v49 }
 0x1c0   : > { %27739 = vst [vmem:[#allocation13_spill] sm:$0xff] %v19459_v29  ;;  %27743 = vst [vmem:[#allocation15_spill] sm:$0xff] %v19471_v5  ;;  %15481 = vmatpush3.bf16.msra.mxu1 %v15480_v2  ;;  %v19478_v28 = vsub.f32 %v19218_v45, %v27745_v54  ;;  %15683 = vmatprep.subr.bf16.mxu0 %v15682_v26  ;;  %v15686_v45 = vpack.c.bf16 %v19464_v62, %v19459_v29  ;;  %v27751_v31 = vand.u32 4294901760, %v19249_v1  ;;  %v27756_v26 = vld [vmem:[#allocation28_spill] sm:$0xff] }
 0x1c1   : > { %15483 = vmatprep.subr.bf16.mxu1 %v15482_v3  ;;  %v19487_v2 = vsub.f32 %v19225_v17, %v27747_v53  ;;  %v19492_v7 = vsub.f32 %v19227_v49, %v27749_v37  ;;  %v15488_v47 = vpack.c.bf16 %v18676_v35, %v18671_v40  ;;  %v27753_v46 = vand.u32 4294901760, %v19251_v15  ;;  %v27757_v35 = vld [vmem:[#allocation29_spill] sm:$0xff] }
 0x1c2   : > { %27746 = vst [vmem:[#allocation16_spill] sm:$0xff] %v19478_v28  ;;  %v19499_v3 = vsub.f32 %v19249_v1, %v27751_v31  ;;  %v15688_v49 = vpack.c.bf16 %v19478_v28, %v19471_v5  ;;  %v15490_v52 = vpack.c.bf16 %v27756_v26, %v27755_v51  ;;  %v26537_v12 = vand.u32 4294901760, %v18837_v39  ;;  %v27762_v51 = vld [vmem:[#allocation36_spill] sm:$0xff]  ;;  %v1875_v39 = vld [vmem:[#allocation2 + $0x248] sm:$0xff] }
 0x1c3   : > { %27748 = vst [vmem:[#allocation17_spill] sm:$0xff] %v19487_v2  ;;  %27750 = vst [vmem:[#allocation84_spill] sm:$0xff] %v19492_v7  ;;  %v19506_v17 = vsub.f32 %v19251_v15, %v27753_v46  ;;  %15685 = vmatpush3.bf16.msra.mxu0 %v15684_v24  ;;  %v15690_v1 = vpack.c.bf16 %v19492_v7, %v19487_v2  ;;  %v26536_v40 = vand.u32 4294901760, %v18839_v14  ;;  %v27758_v15 = vld [vmem:[#allocation30_spill] sm:$0xff]  ;;  %v27759_v24 = vld [vmem:[#allocation33_spill] sm:$0xff]  ;;  %v26535_v37 = vand.u32 4294901760, %v19285_v32 }
 0x1c4   : > { %27752 = vst [vmem:[#allocation19_spill] sm:$0xff] %v19499_v3  ;;  %15485 = vmatpush3.bf16.msra.mxu1 %v15484_v11  ;;  %15687 = vmatprep.subr.bf16.mxu0 %v15686_v45  ;;  %v15492_v11 = vpack.c.bf16 %v27758_v15, %v27757_v35  ;;  %v26526_v45 = vand.u32 4294901760, %v19297_v9  ;;  %v26533_v46 = vand.u32 4294901760, %v19315_v63  ;;  %v26527_v35 = vand.u32 4294901760, %v19330_v36  ;;  %v27763_v15 = vld [vmem:[#allocation38_spill] sm:$0xff]  ;;  %v27801_v36 = vld [vmem:[#allocation37_spill] sm:$0xff] }
 0x1c5   : > { %27754 = vst [vmem:[#allocation20_spill] sm:$0xff] %v19506_v17  ;;  %15487 = vmatprep.subr.bf16.mxu1 %v15486_v6  ;;  %v15692_v54 = vpack.c.bf16 %v19506_v17, %v19499_v3  ;;  %v27760_v6 = vld [vmem:[#allocation34_spill] sm:$0xff]  ;;  %v15726_v31 = vpack.c.bf16 %v26536_v40, %v26537_v12  ;;  %v1882_v12 = vld [vmem:[#allocation2 + $0x280] sm:$0xff]  ;;  %v27787_v33 = vand.u32 4294901760, %v19450_v56  ;;  %v27788_v13 = vand.u32 4294901760, %v19459_v29 }
 0x1c6   : > { %v15494_v53 = vpack.c.bf16 %v27760_v6, %v27759_v24  ;;  %v27764_v24 = vld [vmem:[#allocation39_spill] sm:$0xff]  ;;  %v27774_v40 = vld [vmem:[#allocation70_spill] sm:$0xff]  ;;  %v27794_v56 = vand.u32 4294901760, %v19492_v7  ;;  %v1874_v14 = vld [vmem:[#allocation2 + $0x240] sm:$0xff] }
 0x1c7   : > { %15689 = vmatpush3.bf16.msra.mxu0 %v15688_v49  ;;  %v27761_v49 = vld [vmem:[#allocation35_spill] sm:$0xff]  ;;  %v15498_v6 = vpack.c.bf16 %v27764_v24, %v27763_v15  ;;  %v26532_v15 = vand.u32 4294901760, %v19353_v61  ;;  %v26531_v24 = vand.u32 4294901760, %v19359_v23 }
 0x1c8   : > { %15489 = vmatpush3.bf16.msra.mxu1 %v15488_v47  ;;  %15691 = vmatprep.subr.bf16.mxu0 %v15690_v1  ;;  %v26534_v47 = vand.u32 4294901760, %v19310_v8  ;;  %v15496_v26 = vpack.c.bf16 %v27762_v51, %v27761_v49  ;;  %v26530_v1 = vand.u32 4294901760, %v19323_v50  ;;  %v27765_v49 = vld [vmem:[#allocation41_spill] sm:$0xff]  ;;  %v27766_v51 = vld [vmem:[#allocation42_spill] sm:$0xff]  ;;  %v1890_v8 = vld [vmem:[#allocation2 + $0x2c0] sm:$0xff] }
 0x1c9   : > { %15491 = vmatprep.subr.bf16.mxu1 %v15490_v52  ;;  %v15728_v52 = vpack.c.bf16 %v26526_v45, %v26535_v37  ;;  %v15500_v45 = vpack.c.bf16 %v27766_v51, %v27765_v49  ;;  %v26539_v49 = vand.u32 4294901760, %v19369_v16  ;;  %v27767_v51 = vld [vmem:[#allocation82_spill] sm:$0xff]  ;;  %v1886_v16 = vld [vmem:[#allocation2 + $0x2a0] sm:$0xff] }
 0x1cb   : > { %15693 = vmatpush3.bf16.msra.mxu0 %v15692_v54  ;;  %v26529_v54 = vand.u32 4294901760, %v19341_v38 }
 0x1cc   : > { %15493 = vmatpush3.bf16.msra.mxu1 %v15492_v11  ;;  %15727 = vmatprep.subr.bf16.mxu0 %v15726_v31  ;;  %v15730_v11 = vpack.c.bf16 %v26533_v46, %v26534_v47  ;;  %v15732_v31 = vpack.c.bf16 %v26527_v35, %v26530_v1  ;;  %v26543_v35 = vand.u32 4294901760, %v19390_v20  ;;  %v27769_v1 = vld [vmem:[#allocation76_spill] sm:$0xff]  ;;  %v27770_v46 = vld [vmem:[#allocation87_spill] sm:$0xff]  ;;  %v27771_v47 = vld [vmem:[#allocation21_spill] sm:$0xff]  ;;  %v27791_v20 = vand.u32 4294901760, %v19478_v28 }
 0x1cd   : > { %15495 = vmatprep.subr.bf16.mxu1 %v15494_v53  ;;  %v26528_v53 = vand.u32 4294901760, %v19346_v22  ;;  %v27795_v28 = vand.u32 4294901760, %v19499_v3  ;;  %v1889_v3 = vld [vmem:[#allocation2 + $0x2b8] sm:$0xff]  ;;  %v27800_v22 = vld [vmem:[#allocation32_spill] sm:$0xff] }
 0x1ce   : > { %3475 = vmatmul.mubr.f32.vlgmr.msra.gmra.mrb[10].mxu0 %v19254_v10  ;;  %v27777_v10 = vand.u32 4294901760, %v19412_v55  ;;  %v3964_v63 = vand.u32 4294901760, %v1889_v3 }
 0x1cf   : > { %3481 = vmatprep.mubr.f32.mxu0 %v19259_v57  ;;  %15729 = vmatpush3.bf16.msra.mxu0 %v15728_v52  ;;  %v26538_v52 = vand.u32 4294901760, %v19374_v59  ;;  %v27776_v57 = vld [vmem:[#allocation83_spill] sm:$0xff] }
 0x1d0   : > { %15497 = vmatpush3.bf16.msra.mxu1 %v15496_v26  ;;  %15731 = vmatprep.subr.bf16.mxu0 %v15730_v11  ;;  %v15734_v26 = vpack.c.bf16 %v26528_v53, %v26529_v54  ;;  %v26544_v11 = vand.u32 4294901760, %v19381_v48  ;;  %v27768_v53 = vld [vmem:[#allocation18_spill] sm:$0xff]  ;;  %v26547_v54 = vand.u32 4294901760, %v19404_v41  ;;  %v1869_v41 = vld [vmem:[#allocation2 + $0x218] sm:$0xff] }
 0x1d1   : > { %15499 = vmatprep.subr.bf16.mxu1 %v15498_v6  ;;  %v15736_v6 = vpack.c.bf16 %v26531_v24, %v26532_v15  ;;  %v1866_v24 = vld [vmem:[#allocation2 + $0x200] sm:$0xff]  ;;  %v3904_v23 = vand.u32 4294901760, %v1869_v41 }
 0x1d2   : > { %3484 = vmatmul.mubr.f32.gmra.mrb[12].mxu0 %v19279_v43  ;;  %v27779_v43 = vld [vmem:[#allocation24_spill] sm:$0xff]  ;;  %v3895_v55 = vand.u32 4294901760, %v1866_v24 }
 0x1d3   : > { %15733 = vmatpush3.bf16.msra.mxu0 %v15732_v31  ;;  %3769 = vmatprep.mubr.f32.mxu0 %v27767_v51  ;;  %v26548_v31 = vand.u32 4294901760, %v19399_v58  ;;  %v1884_v51 = vld [vmem:[#allocation2 + $0x290] sm:$0xff]  ;;  %v19678_v9 = vsub.f32 %v1869_v41, %v3904_v23 }
 0x1d4   : > { %15501 = vmatpush3.bf16.msra.mxu1 %v15500_v45  ;;  %15735 = vmatprep.subr.bf16.mxu0 %v15734_v26  ;;  %v15738_v45 = vpack.c.bf16 %v26538_v52, %v26539_v49  ;;  %v27772_v26 = vmov 0.0   ;;  %v27775_v52 = vld [vmem:[#allocation22_spill] sm:$0xff]  ;;  %v15740_v49 = vpack.c.bf16 %v26543_v35, %v26544_v11  ;;  %v27778_v35 = vand.u32 4294901760, %v19420_v4 }
 0x1d5   : > { %15503 = vmatprep.subr.bf16.mxu1 %v27768_v53  ;;  %v19583_v37 = vrot.slane %v27772_v26, 5  ;;  %v15742_v15 = vpack.c.bf16 %v26547_v54, %v26548_v31  ;;  %v1883_v31 = vld [vmem:[#allocation2 + $0x288] sm:$0xff]  ;;  %v27785_v58 = vld [vmem:[#allocation26_spill] sm:$0xff]  ;;  %v3949_v59 = vand.u32 4294901760, %v1884_v51 }
 0x1d6   : > { %v15744_v11 = vpack.c.bf16 %v27778_v35, %v27777_v10  ;;  %v27781_v35 = vrot.slane %v27774_v40, 5  ;;  %v27782_v54 = vld [vmem:[#allocation25_spill] sm:$0xff]  ;;  %v27784_v10 = vand.u32 4294901760, %v19434_v44  ;;  %v3946_v4 = vand.u32 4294901760, %v1883_v31 }
 0x1d7   : > { %2557 = vmatmul.mubr.f32.vlgmr.msra.gmra.mrb[12].mxu1 %v27769_v1  ;;  %27773 = vst [vmem:[#allocation23_spill] sm:$0xff] %v19583_v37  ;;  %15737 = vmatpush3.bf16.msra.mxu0 %v15736_v6  ;;  %v27780_v6 = vand.u32 4294901760, %v27733_v0  ;;  %v27786_v0 = vand.u32 4294901760, %v19442_v18  ;;  %v27789_v44 = vand.u32 4294901760, %v19464_v62  ;;  %v27793_v18 = vand.u32 4294901760, %v19487_v2  ;;  %v1887_v62 = vld [vmem:[#allocation2 + $0x2a8] sm:$0xff] }
 0x1d8   : > { %2563 = vmatprep.mubr.f32.mxu1 %v27770_v46  ;;  %15505 = vmatpush3.bf16.msra.mxu1 %v27771_v47  ;;  %v1738_v27 = vsel %vm1735_vm4, %v19583_v37, %v27781_v35  ;;  %v15746_v60 = vpack.c.bf16 %v27784_v10, %v27783_v25  ;;  %v3898_v35 = vand.u32 4294901760, %v1867_v34  ;;  %v1868_v37 = vld [vmem:[#allocation2 + $0x210] sm:$0xff]  ;;  %v27790_v10 = vand.u32 4294901760, %v19471_v5 }
 0x1d9   : > { %15507 = vmatprep.subr.bf16.mxu1 %v27775_v52  ;;  %15739 = vmatprep.subr.bf16.mxu0 %v15738_v45  ;;  %v1743_v45 = vmul.f32 %v18925_v21, %v1738_v27  ;;  %v15750_v25 = vpack.c.bf16 %v27789_v44, %v27788_v13  ;;  %v27792_v27 = vld [vmem:[#allocation31_spill] sm:$0xff]  ;;  %v3901_v29 = vand.u32 4294901760, %v1868_v37  ;;  %v1870_v13 = vld [vmem:[#allocation2 + $0x220] sm:$0xff]  ;;  %v1871_v44 = vld [vmem:[#allocation2 + $0x228] sm:$0xff] }
 0x1da   : > { %v15752_v48 = vpack.c.bf16 %v27791_v20, %v27790_v10  ;;  %v27796_v20 = vand.u32 4294901760, %v19506_v17  ;;  %v19653_v2 = vpack.c.bf16 %v3898_v35, %v3895_v55  ;;  %v19659_v7 = vsub.f32 %v1867_v34, %v3898_v35 }
 0x1db   : > { %2566 = vmatmul.mubr.f32.gmra.mrb[14].mxu1 %v27776_v57  ;;  %15741 = vmatpush3.bf16.msra.mxu0 %v15740_v49  ;;  %v1885_v49 = vld [vmem:[#allocation2 + $0x298] sm:$0xff]  ;;  %v19661_v61 = vand.u32 4294901760, %v1743_v45  ;;  %v3907_v17 = vand.u32 4294901760, %v1870_v13  ;;  %v3910_v38 = vand.u32 4294901760, %v1871_v44  ;;  %v19669_v34 = vpack.c.bf16 %v3904_v23, %v3901_v29 }
 0x1dc   : > { %15509 = vmatpush3.bf16.msra.mxu1 %v27779_v43  ;;  %2670 = vmatprep.mubr.f32.mxu1 %v27780_v6  ;;  %v3943_v6 = vand.u32 4294901760, %v1882_v12  ;;  %v19647_v10 = vpack.c.bf16 %v27796_v20, %v27795_v28  ;;  %27798 = vst [vmem:[#allocation28_spill] sm:$0xff] %v19653_v2  ;;  %v3955_v28 = vand.u32 4294901760, %v1886_v16  ;;  %v3958_v20 = vand.u32 4294901760, %v1887_v62  ;;  %v27809_v23 = vld [vmem:[#allocation43_spill] sm:$0xff] }
 0x1dd   : > { %15511 = vmatprep.subr.bf16.mxu1 %v27782_v54  ;;  %15743 = vmatprep.subr.bf16.mxu0 %v15742_v15  ;;  %v15748_v15 = vpack.c.bf16 %v27787_v33, %v27786_v0  ;;  %v15754_v33 = vpack.c.bf16 %v27794_v56, %v27793_v18  ;;  %v3952_v0 = vand.u32 4294901760, %v1885_v49  ;;  %v19655_v18 = vsub.f32 %v1883_v31, %v3946_v4 }
 0x1de   : > { %v19651_v5 = vsub.f32 %v1882_v12, %v3943_v6  ;;  %v19657_v56 = vsub.f32 %v1866_v24, %v3895_v55  ;;  %27799 = vst [vmem:[#allocation29_spill] sm:$0xff] %v19661_v61  ;;  %v1872_v12 = vld [vmem:[#allocation2 + $0x230] sm:$0xff]  ;;  %v19667_v55 = vsub.f32 %v1884_v51, %v3949_v59  ;;  %27803 = vst [vmem:[#allocation33_spill] sm:$0xff] %v19669_v34  ;;  %v19672_v24 = vrot.slane %v27772_v26, 4  ;;  %v27806_v26 = vld [vmem:[#allocation40_spill] sm:$0xff] }
 0x1df   : > { %15745 = vmatpush3.bf16.msra.mxu0 %v15744_v11  ;;  %v19649_v11 = vpack.c.bf16 %v3946_v4, %v3943_v6  ;;  %v1873_v6 = vld [vmem:[#allocation2 + $0x238] sm:$0xff]  ;;  %v19665_v4 = vpack.c.bf16 %v3952_v0, %v3949_v59  ;;  %v19674_v31 = vsub.f32 %v1885_v49, %v3952_v0  ;;  %v19676_v35 = vsub.f32 %v1868_v37, %v3901_v29 }
 0x1e0   : > { %15513 = vmatpush3.bf16.msra.mxu1 %v27785_v58  ;;  %15747 = vmatprep.subr.bf16.mxu0 %v15746_v60  ;;  %v1888_v60 = vld [vmem:[#allocation2 + $0x2b0] sm:$0xff]  ;;  %27804 = vst [vmem:[#allocation34_spill] sm:$0xff] %v19672_v24  ;;  %v19681_v32 = vsub.f32 %v1743_v45, %v19661_v61  ;;  %v3913_v59 = vand.u32 4294901760, %v1872_v12  ;;  %v3916_v51 = vand.u32 4294901760, %v1873_v6  ;;  %v19686_v49 = vsub.f32 %v1886_v16, %v3955_v28  ;;  %v1895_v58 = vld [vmem:[#allocation2 + $0x2e8] sm:$0xff] }
 0x1e1   : > { %15515 = vmatprep.subr.bf16.mxu1 %v27792_v27  ;;  %27797 = vst [vmem:[#allocation27_spill] sm:$0xff] %v19649_v11  ;;  %27802 = vst [vmem:[#allocation30_spill] sm:$0xff] %v19665_v4  ;;  %v3961_v50 = vand.u32 4294901760, %v1888_v60  ;;  %v19688_v29 = vsub.f32 %v1887_v62, %v3958_v20  ;;  %v19690_v37 = vpack.c.bf16 %v3910_v38, %v3907_v17  ;;  %v3967_v0 = vand.u32 4294901760, %v1890_v8  ;;  %v27816_v27 = vld [vmem:[#allocation44_spill] sm:$0xff] }
 0x1e2   : > { %27805 = vst [vmem:[#allocation35_spill] sm:$0xff] %v19681_v32  ;;  %v19693_v41 = vsub.f32 %v1870_v13, %v3907_v17  ;;  %v19695_v45 = vsub.f32 %v1871_v44, %v3910_v38  ;;  %v3919_v62 = vand.u32 4294901760, %v1874_v14  ;;  %v19706_v17 = vsub.f32 %v1872_v12, %v3913_v59  ;;  %v1876_v38 = vld [vmem:[#allocation2 + $0x250] sm:$0xff]  ;;  %v1877_v13 = vld [vmem:[#allocation2 + $0x258] sm:$0xff] }
 0x1e3   : > { %15749 = vmatpush3.bf16.msra.mxu0 %v15748_v15  ;;  %v1891_v15 = vld [vmem:[#allocation2 + $0x2c8] sm:$0xff]  ;;  %27808 = vst [vmem:[#allocation38_spill] sm:$0xff] %v19690_v37  ;;  %v19699_v16 = vsub.f32 %v1888_v60, %v3961_v50  ;;  %v1727_v44 = vrot.slane %v27774_v40, 4  ;;  %v19716_v12 = vsub.f32 %v1890_v8, %v3967_v0  ;;  %v3982_v8 = vand.u32 4294901760, %v1895_v58 }
 0x1e4   : > { %15517 = vmatpush3.bf16.msra.mxu1 %v27800_v22  ;;  %15751 = vmatprep.subr.bf16.mxu0 %v15750_v25  ;;  %v19684_v25 = vpack.c.bf16 %v3958_v20, %v3955_v28  ;;  %27810 = vst [vmem:[#allocation39_spill] sm:$0xff] %v19695_v45  ;;  %v3970_v61 = vand.u32 4294901760, %v1891_v15  ;;  %v1893_v22 = vld [vmem:[#allocation2 + $0x2d8] sm:$0xff]  ;;  %v3922_v28 = vand.u32 4294901760, %v1875_v39  ;;  %27815 = vst [vmem:[#allocation87_spill] sm:$0xff] %v19706_v17  ;;  %v27829_v17 = vld [vmem:[#allocation77_spill] sm:$0xff] }
 0x1e5   : > { %15519 = vmatprep.subr.bf16.mxu1 %v27801_v36  ;;  %v1892_v36 = vld [vmem:[#allocation2 + $0x2d0] sm:$0xff]  ;;  %27812 = vst [vmem:[#allocation42_spill] sm:$0xff] %v19699_v16  ;;  %v3976_v60 = vand.u32 4294901760, %v1893_v22  ;;  %v1894_v16 = vld [vmem:[#allocation2 + $0x2e0] sm:$0xff]  ;;  %27820 = vst [vmem:[#allocation83_spill] sm:$0xff] %v19716_v12 }
 0x1e6   : > { %27807 = vst [vmem:[#allocation36_spill] sm:$0xff] %v19684_v25  ;;  %v19721_v20 = vpack.c.bf16 %v3922_v28, %v3919_v62 }
 0x1e7   : > { %15753 = vmatpush3.bf16.msra.mxu0 %v15752_v48  ;;  %v19702_v48 = vsub.f32 %v1889_v3, %v3964_v63  ;;  %v19714_v3 = vpack.c.bf16 %v3970_v61, %v3967_v0  ;;  %v1878_v0 = vld [vmem:[#allocation2 + $0x260] sm:$0xff] }
 0x1e8   : > { %15521 = vmatpush3.bf16.msra.mxu1 %v27806_v26  ;;  %15755 = vmatprep.subr.bf16.mxu0 %v15754_v33  ;;  %v19697_v26 = vpack.c.bf16 %v3964_v63, %v3961_v50  ;;  %v19710_v33 = vsub.f32 %v1873_v6, %v3916_v51  ;;  %v3973_v50 = vand.u32 4294901760, %v1892_v36  ;;  %v27818_v63 = vld [vmem:[#allocation45_spill] sm:$0xff]  ;;  %27822 = vst [vmem:[#allocation25_spill] sm:$0xff] %v19721_v20 }
 0x1e9   : > { %15523 = vmatprep.subr.bf16.mxu1 %v27809_v23  ;;  %27813 = vst [vmem:[#allocation18_spill] sm:$0xff] %v19702_v48  ;;  %v19704_v23 = vpack.c.bf16 %v3916_v51, %v3913_v59  ;;  %27819 = vst [vmem:[#allocation22_spill] sm:$0xff] %v19714_v3  ;;  %v19718_v59 = vsub.f32 %v1891_v15, %v3970_v61  ;;  %v19723_v6 = vsub.f32 %v1874_v14, %v3919_v62  ;;  %v19729_v61 = vld [vmem:[#allocation2 + $0x268] sm:$0xff]  ;;  %v27826_v15 = vld [vmem:[#allocation47_spill] sm:$0xff] }
 0x1ea   : > { %27811 = vst [vmem:[#allocation41_spill] sm:$0xff] %v19697_v26  ;;  %27817 = vst [vmem:[#allocation21_spill] sm:$0xff] %v19710_v33  ;;  %v3925_v51 = vand.u32 4294901760, %v1876_v38  ;;  %v27824_v33 = vld [vmem:[#allocation63_spill] sm:$0xff]  ;;  %v3979_v48 = vand.u32 4294901760, %v1894_v16  ;;  %v19735_v14 = vpack.c.bf16 %v3976_v60, %v3973_v50  ;;  %v1728_v62 = vsel %vm1725_vm5, %v19672_v24, %v1727_v44 }
 0x1eb   : > { %27814 = vst [vmem:[#allocation76_spill] sm:$0xff] %v19704_v23  ;;  %15757 = vmatpush3.bf16.msra.mxu0 %v19647_v10  ;;  %27821 = vst [vmem:[#allocation24_spill] sm:$0xff] %v19718_v59  ;;  %v27825_v10 = vand.u32 4294901760, %v19681_v32  ;;  %v19748_v59 = vld [vmem:[#allocation2 + $0x2f0] sm:$0xff] }
 0x1ec   : > { %15525 = vmatpush3.bf16.msra.mxu1 %v27816_v27  ;;  %15791 = vmatprep.subr.bf16.mxu0 %v19649_v11  ;;  %27823 = vst [vmem:[#allocation113_spill] sm:$0xff] %v19723_v6  ;;  %v3928_v27 = vand.u32 4294901760, %v1877_v13  ;;  %v19733_v11 = vsub.f32 %v1875_v39, %v3922_v28  ;;  %27828 = vst [vmem:[#allocation47_spill] sm:$0xff] %v19735_v14  ;;  %v27833_v28 = vld [vmem:[#allocation50_spill] sm:$0xff]  ;;  %v19767_v39 = vmul.f32 %v18925_v21, %v1728_v62 }
 0x1ed   : > { %15527 = vmatprep.subr.bf16.mxu1 %v27818_v63  ;;  %v3993_v63 = vsub.f32 %v19681_v32, %v27825_v10  ;;  %v19742_v10 = vsub.f32 %v1892_v36, %v3973_v50  ;;  %v19744_v32 = vsub.f32 %v1893_v22, %v3976_v60  ;;  %v19758_v50 = vld [vmem:[#allocation2 + $0x2f8] sm:$0xff]  ;;  %v19762_v60 = vsub.f32 %v1894_v16, %v3979_v48 }
 0x1ee   : > { %3771 = vmatmul.mubr.f32.vlgmr.msra.gmra.mrb[14].mxu0 %v19220_v19  ;;  %27827 = vst [vmem:[#allocation63_spill] sm:$0xff] %v19733_v11  ;;  %v19746_v19 = vsub.f32 %v1876_v38, %v3925_v51  ;;  %v19753_v24 = vpack.c.bf16 %v3928_v27, %v3925_v51  ;;  %v19755_v6 = vsub.f32 %v1877_v13, %v3928_v27  ;;  %v27838_v51 = vld [vmem:[#allocation51_spill] sm:$0xff]  ;;  %v27842_v16 = vrot.slane %v27774_v40, 5 }
 0x1ef   : > { %3776 = vmatprep.mubr.f32.mxu0 %v19229_v30  ;;  %15793 = vmatpush3.bf16.msra.mxu0 %v19653_v2  ;;  %27830 = vst [vmem:[#allocation114_spill] sm:$0xff] %v19742_v10  ;;  %27831 = vst [vmem:[#allocation115_spill] sm:$0xff] %v19744_v32  ;;  %v3931_v30 = vand.u32 4294901760, %v1878_v0  ;;  %v3994_v22 = vand.u32 4294901760, %v3993_v63  ;;  %v19760_v38 = vpack.c.bf16 %v3982_v8, %v3979_v48  ;;  %v19764_v2 = vld [vmem:[#allocation2 + $0x270] sm:$0xff]  ;;  %v27841_v63 = vrot.slane %v27829_v17, 5 }
 0x1f0   : > { %15529 = vmatpush3.bf16.msra.mxu1 %v27826_v15  ;;  %27832 = vst [vmem:[#allocation116_spill] sm:$0xff] %v19746_v19  ;;  %15795 = vmatprep.subr.bf16.mxu0 %v19665_v4  ;;  %27834 = vst [vmem:[#allocation50_spill] sm:$0xff] %v19753_v24  ;;  %v19771_v27 = vsub.f32 %v1895_v58, %v3982_v8  ;;  %v27844_v4 = vrot.slane %v27829_v17, 4  ;;  %v26639_v8 = vand.u32 4294901760, %v19651_v5  ;;  %v26642_v62 = vand.u32 4294901760, %v19657_v56 }
 0x1f1   : > { %15531 = vmatprep.subr.bf16.mxu1 %v27833_v28  ;;  %27835 = vst [vmem:[#allocation117_spill] sm:$0xff] %v19755_v6  ;;  %27836 = vst [vmem:[#allocation118_spill] sm:$0xff] %v19760_v38  ;;  %v19773_v13 = vsub.f32 %v1878_v0, %v3931_v30  ;;  %v19781_v48 = vsel %vm1735_vm4, %v27842_v16, %v27841_v63  ;;  %v27846_v63 = vand.u32 4294901760, %v19729_v61  ;;  %v27852_v36 = vand.u32 4294901760, %v27770_v46 }
 0x1f2   : > { %27837 = vst [vmem:[#allocation119_spill] sm:$0xff] %v19762_v60  ;;  %3778 = vmatmul.mubr.f32.gmra.mrb[16].mxu0 %v19256_v42  ;;  %27839 = vst [vmem:[#allocation51_spill] sm:$0xff] %v19771_v27  ;;  %v19788_v58 = vsel %vm1725_vm5, %v1727_v44, %v27844_v4  ;;  %v27848_v4 = vand.u32 4294901760, %v27769_v1  ;;  %v19804_v44 = vand.u32 4294901760, %v19767_v39 }
 0x1f3   : > { %27840 = vst [vmem:[#allocation120_spill] sm:$0xff] %v19773_v13  ;;  %27843 = vst [vmem:[#allocation121_spill] sm:$0xff] %v19781_v48  ;;  %15797 = vmatpush3.bf16.msra.mxu0 %v19669_v34  ;;  %3995 = vmatprep.mubr.f32.mxu0 %v3994_v22  ;;  %v19796_v16 = vpack.c.bf16 %v27846_v63, %v3931_v30  ;;  %v4137_v30 = vsub.f32 %v19651_v5, %v26639_v8  ;;  %v27851_v63 = vand.u32 4294901760, %v19655_v18 }
 0x1f4   : > { %15533 = vmatpush3.bf16.msra.mxu1 %v27838_v51  ;;  %27845 = vst [vmem:[#allocation122_spill] sm:$0xff] %v19788_v58  ;;  %15799 = vmatprep.subr.bf16.mxu0 %v19684_v25  ;;  %27849 = vst [vmem:[#allocation124_spill] sm:$0xff] %v19804_v44  ;;  %v27853_v8 = vand.u32 4294901760, %v19659_v7 }
 0x1f5   : > { %15567 = vmatprep.subr.bf16.mxu1 %v27768_v53  ;;  %27847 = vst [vmem:[#allocation123_spill] sm:$0xff] %v19796_v16  ;;  %v27850_v53 = vld [vmem:[#allocation69_spill] sm:$0xff]  ;;  %v4144_v22 = vsub.f32 %v19655_v18, %v27851_v63 }
 0x1f6   : > { %v19808_v0 = vmul.f32 %v27850_v53, %v19781_v48  ;;  %v19821_v1 = vmul.f32 %v27850_v53, %v19788_v58  ;;  %v4025_v48 = vsub.f32 %v19657_v56, %v26642_v62  ;;  %v4032_v25 = vsub.f32 %v19659_v7, %v27853_v8  ;;  %v27858_v62 = vld [vmem:[#allocation80_spill] sm:$0xff]  ;;  %v27894_v53 = vld [vmem:[#allocation49_spill] sm:$0xff] }
 0x1f7   : > { %2674 = vmatmul.mubr.f32.vlgmr.msra.gmra.mrb[16].mxu1 %v27848_v4  ;;  %15801 = vmatpush3.bf16.msra.mxu0 %v19690_v37  ;;  %v4145_v63 = vand.u32 4294901760, %v4144_v22  ;;  %v26648_v4 = vand.u32 4294901760, %v19678_v9  ;;  %v27854_v8 = vand.u32 4294901760, %v27776_v57  ;;  %v26653_v37 = vand.u32 4294901760, %v19688_v29 }
 0x1f8   : > { %2681 = vmatprep.mubr.f32.mxu1 %v27852_v36  ;;  %15569 = vmatpush3.bf16.msra.mxu1 %v27771_v47  ;;  %v4138_v36 = vand.u32 4294901760, %v4137_v30  ;;  %v4026_v58 = vand.u32 4294901760, %v4025_v48  ;;  %v4033_v34 = vand.u32 4294901760, %v4032_v25  ;;  %v27856_v47 = vand.u32 4294901760, %v19667_v55 }
 0x1f9   : > { %15571 = vmatprep.subr.bf16.mxu1 %v27775_v52  ;;  %15803 = vmatprep.subr.bf16.mxu0 %v19697_v26  ;;  %v27857_v22 = vand.u32 4294901760, %v19674_v31  ;;  %v27860_v48 = vand.u32 4294901760, %v19676_v35 }
 0x1fa   : > { %v19840_v52 = vpack.c.bf16 %v4145_v63, %v4138_v36  ;;  %v4151_v30 = vsub.f32 %v19667_v55, %v27856_v47  ;;  %v19851_v57 = vpack.c.bf16 %v4033_v34, %v4026_v58  ;;  %v4046_v47 = vsub.f32 %v19678_v9, %v26648_v4  ;;  %v19861_v63 = vld [vmem:[#allocation2 + $0x278] sm:$0xff] }
 0x1fb   : > { %2685 = vmatmul.mubr.f32.gmra.mrb[18].mxu1 %v27854_v8  ;;  %v4158_v46 = vsub.f32 %v19674_v31, %v27857_v22  ;;  %v4039_v36 = vsub.f32 %v19676_v35, %v27860_v48  ;;  %15805 = vmatpush3.bf16.msra.mxu0 %v19704_v23  ;;  %v27861_v34 = vand.u32 4294901760, %v19686_v49  ;;  %v19869_v22 = vand.u32 4294901760, %v19808_v0  ;;  %v27866_v23 = vld [vmem:[#allocation26_spill] sm:$0xff] }
 0x1fc   : > { %27855 = vst [vmem:[#allocation125_spill] sm:$0xff] %v19840_v52  ;;  %15573 = vmatpush3.bf16.msra.mxu1 %v27779_v43  ;;  %2962 = vmatprep.mubr.f32.mxu1 %v27858_v62  ;;  %27859 = vst [vmem:[#allocation80_spill] sm:$0xff] %v19851_v57  ;;  %v4152_v62 = vand.u32 4294901760, %v4151_v30  ;;  %v4047_v4 = vand.u32 4294901760, %v4046_v47 }
 0x1fd   : > { %15575 = vmatprep.subr.bf16.mxu1 %v27782_v54  ;;  %v4159_v8 = vand.u32 4294901760, %v4158_v46  ;;  %v4165_v58 = vsub.f32 %v19686_v49, %v27861_v34  ;;  %15807 = vmatprep.subr.bf16.mxu0 %v19714_v3  ;;  %27862 = vst [vmem:[#allocation126_spill] sm:$0xff] %v19869_v22  ;;  %v4040_v48 = vand.u32 4294901760, %v4039_v36  ;;  %v4172_v54 = vsub.f32 %v19688_v29, %v26653_v37 }
 0x1fe   : > { %v27864_v46 = vand.u32 4294901760, %v19693_v41  ;;  %v27865_v34 = vand.u32 4294901760, %v19695_v45  ;;  %v27867_v36 = vand.u32 4294901760, %v19729_v61  ;;  %v3940_v37 = vand.u32 4294901760, %v19861_v63 }
 0x1ff   : > { %v19874_v25 = vpack.c.bf16 %v4159_v8, %v4152_v62  ;;  %v4166_v43 = vand.u32 4294901760, %v4165_v58  ;;  %v19889_v62 = vpack.c.bf16 %v4047_v4, %v4040_v48  ;;  %v4173_v8 = vand.u32 4294901760, %v4172_v54  ;;  %15809 = vmatpush3.bf16.msra.mxu0 %v19721_v20  ;;  %v27870_v58 = vld [vmem:[#allocation31_spill] sm:$0xff]  ;;  %v27874_v4 = vld [vmem:[#allocation18_spill] sm:$0xff] }
 0x200   : > { %v4053_v30 = vsub.f32 %v19693_v41, %v27864_v46  ;;  %v4060_v3 = vsub.f32 %v19695_v45, %v27865_v34  ;;  %15577 = vmatpush3.bf16.msra.mxu1 %v27866_v23  ;;  %v19886_v47 = vsub.f32 %v19729_v61, %v27867_v36  ;;  %v19895_v46 = vsub.f32 %v19767_v39, %v19804_v44  ;;  %v27873_v61 = vld [vmem:[#allocation42_spill] sm:$0xff]  ;;  %v27875_v54 = vld [vmem:[#allocation87_spill] sm:$0xff]  ;;  %v27883_v36 = vld [vmem:[#allocation32_spill] sm:$0xff] }
 0x201   : > { %27863 = vst [vmem:[#allocation127_spill] sm:$0xff] %v19874_v25  ;;  %27869 = vst [vmem:[#allocation128_spill] sm:$0xff] %v19889_v62  ;;  %15579 = vmatprep.subr.bf16.mxu1 %v27870_v58  ;;  %v19898_v23 = vand.u32 4294901760, %v19821_v1  ;;  %15811 = vmatprep.subr.bf16.mxu0 %v19735_v14  ;;  %v26660_v48 = vand.u32 4294901760, %v27874_v4  ;;  %v19904_v20 = vpack.c.bf16 %v4173_v8, %v4166_v43  ;;  %v27877_v58 = vand.u32 4294901760, %v19748_v59  ;;  %v27898_v44 = vld [vmem:[#allocation40_spill] sm:$0xff] }
 0x202   : > { %27868 = vst [vmem:[#allocation26_spill] sm:$0xff] %v19886_v47  ;;  %27871 = vst [vmem:[#allocation31_spill] sm:$0xff] %v19895_v46  ;;  %v4054_v34 = vand.u32 4294901760, %v4053_v30  ;;  %v4061_v26 = vand.u32 4294901760, %v4060_v3  ;;  %v27878_v39 = vand.u32 4294901760, %v19758_v50  ;;  %v19914_v30 = vsub.f32 %v19808_v0, %v19869_v22  ;;  %v27881_v3 = vld [vmem:[#allocation21_spill] sm:$0xff] }
 0x203   : > { %27872 = vst [vmem:[#allocation129_spill] sm:$0xff] %v19898_v23  ;;  %27876 = vst [vmem:[#allocation130_spill] sm:$0xff] %v19904_v20  ;;  %v27884_v62 = vmov %v27877_v58  ;;  %v27886_v8 = vand.u32 4294901760, %v27873_v61  ;;  %v4186_v0 = vsub.f32 %v27874_v4, %v26660_v48  ;;  %15813 = vmatpush3.bf16.msra.mxu0 %v19753_v24  ;;  %v27893_v48 = vand.u32 4294901760, %v27881_v3 }
 0x204   : > { %v19910_v25 = vpack.c.bf16 %v27878_v39, %v27877_v58  ;;  %27880 = vst [vmem:[#allocation132_spill] sm:$0xff] %v19914_v30  ;;  %v19917_v57 = vpack.c.bf16 %v4061_v26, %v4054_v34  ;;  %15581 = vmatpush3.bf16.msra.mxu1 %v27883_v36  ;;  %v19923_v43 = vsub.f32 %v19748_v59, %v27884_v62  ;;  %v27887_v39 = vand.u32 4294901760, %v27875_v54  ;;  %v27888_v34 = vld [vmem:[#allocation73_spill] sm:$0xff]  ;;  %v27891_v62 = vld [vmem:[#allocation48_spill] sm:$0xff] }
 0x205   : > { %v4179_v58 = vsub.f32 %v27873_v61, %v27886_v8  ;;  %v19935_v14 = vrot.slane %v27888_v34, 1  ;;  %v27889_v36 = vld [vmem:[#allocation37_spill] sm:$0xff]  ;;  %v19941_v59 = vsub.f32 %v19821_v1, %v19898_v23  ;;  %v27892_v8 = vand.u32 4294901760, %v27891_v62  ;;  %15815 = vmatprep.subr.bf16.mxu0 %v19760_v38  ;;  %v27896_v23 = vld [vmem:[#allocation103_spill] sm:$0xff] }
 0x206   : > { %27879 = vst [vmem:[#allocation131_spill] sm:$0xff] %v19910_v25  ;;  %27882 = vst [vmem:[#allocation133_spill] sm:$0xff] %v19917_v57  ;;  %v4067_v26 = vsub.f32 %v27875_v54, %v27887_v39  ;;  %15583 = vmatprep.subr.bf16.mxu1 %v27889_v36  ;;  %v4074_v20 = vsub.f32 %v27881_v3, %v27893_v48  ;;  %v4187_v24 = vand.u32 4294901760, %v4186_v0  ;;  %v27895_v1 = vand.u32 4294901760, %v27894_v53 }
 0x207   : > { %27885 = vst [vmem:[#allocation32_spill] sm:$0xff] %v19923_v43  ;;  %27890 = vst [vmem:[#allocation73_spill] sm:$0xff] %v19941_v59  ;;  %v3219_v57 = vsub.f32 %v27891_v62, %v27892_v8  ;;  %v4180_v34 = vand.u32 4294901760, %v4179_v58  ;;  %v27897_v22 = vand.u32 4294901760, %v27896_v23  ;;  %v27899_v48 = vand.u32 4294901760, %v19758_v50  ;;  %15817 = vmatpush3.bf16.msra.mxu0 %v19796_v16 }
 0x208   : > { %v4068_v52 = vand.u32 4294901760, %v4067_v26  ;;  %v3226_v17 = vsub.f32 %v27894_v53, %v27895_v1  ;;  %v4075_v8 = vand.u32 4294901760, %v4074_v20  ;;  %15585 = vmatpush3.bf16.msra.mxu1 %v27898_v44  ;;  %v27901_v58 = vand.u32 4294901760, %v19764_v2  ;;  %v27903_v26 = vld [vmem:[#allocation105_spill] sm:$0xff]  ;;  %v27906_v20 = vld [vmem:[#allocation43_spill] sm:$0xff]  ;;  %15819 = vmatprep.subr.bf16.mxu0 %v19910_v25  ;;  %v27917_v44 = vld [vmem:[#allocation44_spill] sm:$0xff] }
 0x209   : > { %v3107_v62 = vsub.f32 %v27896_v23, %v27897_v22  ;;  %v19962_v39 = vsub.f32 %v19758_v50, %v27899_v48  ;;  %v27904_v36 = vand.u32 4294901760, %v27903_v26  ;;  %v19971_v1 = vpack.c.bf16 %v4187_v24, %v4180_v34  ;;  %15587 = vmatprep.subr.bf16.mxu1 %v27906_v20  ;;  %v27907_v22 = vld [vmem:[#allocation106_spill] sm:$0xff]  ;;  %v27909_v48 = vld [vmem:[#allocation107_spill] sm:$0xff]  ;;  %v27920_v25 = vld [vmem:[#allocation109_spill] sm:$0xff] }
 0x20a   : > { %v19966_v0 = vpack.c.bf16 %v3940_v37, %v27901_v58  ;;  %v27908_v23 = vand.u32 4294901760, %v27907_v22  ;;  %v27910_v38 = vand.u32 4294901760, %v27909_v48  ;;  %v19982_v21 = vpack.c.bf16 %v4075_v8, %v4068_v52 }
 0x20b   : > { %27900 = vst [vmem:[#allocation37_spill] sm:$0xff] %v19962_v39  ;;  %v3114_v53 = vsub.f32 %v27903_v26, %v27904_v36  ;;  %27905 = vst [vmem:[#allocation49_spill] sm:$0xff] %v19971_v1  ;;  %v27912_v24 = vand.u32 4294901760, %v19764_v2  ;;  %v19991_v36 = vsub.f32 %v19861_v63, %v3940_v37  ;;  %v27915_v26 = vand.u32 4294901760, %v19895_v46 }
 0x20c   : > { %27902 = vst [vmem:[#allocation48_spill] sm:$0xff] %v19966_v0  ;;  %v3233_v50 = vsub.f32 %v27907_v22, %v27908_v23  ;;  %v3240_v58 = vsub.f32 %v27909_v48, %v27910_v38  ;;  %27911 = vst [vmem:[#allocation103_spill] sm:$0xff] %v19982_v21  ;;  %v15854_v22 = vpack.c.bf16 %v19655_v18, %v19651_v5  ;;  %v27916_v38 = vand.u32 4294901760, %v19914_v30 }
 0x20d   : > { %v19988_v34 = vsub.f32 %v19764_v2, %v27912_v24  ;;  %27914 = vst [vmem:[#allocation105_spill] sm:$0xff] %v19991_v36  ;;  %v3999_v20 = vsub.f32 %v19895_v46, %v27915_v26  ;;  %v3220_v8 = vand.u32 4294901760, %v3219_v57  ;;  %v3227_v23 = vand.u32 4294901760, %v3226_v17  ;;  %15589 = vmatpush3.bf16.msra.mxu1 %v27917_v44  ;;  %v27918_v24 = vld [vmem:[#allocation108_spill] sm:$0xff]  ;;  %15821 = vmatpush3.bf16.msra.mxu0 %v19966_v0  ;;  %v27924_v17 = vld [vmem:[#allocation45_spill] sm:$0xff]  ;;  %v27928_v0 = vld [vmem:[#allocation111_spill] sm:$0xff] }
 0x20e   : > { %v4008_v52 = vsub.f32 %v19914_v30, %v27916_v38  ;;  %v3108_v48 = vand.u32 4294901760, %v3107_v62  ;;  %v3115_v2 = vand.u32 4294901760, %v3114_v53  ;;  %v27919_v37 = vand.u32 4294901760, %v27918_v24  ;;  %15591 = vmatprep.subr.bf16.mxu1 %v27924_v17  ;;  %15855 = vmatprep.subr.bf16.mxu0 %v15854_v22 }
 0x20f   : > { %27913 = vst [vmem:[#allocation40_spill] sm:$0xff] %v19988_v34  ;;  %v27921_v16 = vand.u32 4294901760, %v27920_v25  ;;  %v27922_v21 = vrot.slane %v27824_v33, 1  ;;  %v15856_v57 = vpack.c.bf16 %v19659_v7, %v19657_v56  ;;  %v27925_v62 = vand.u32 4294901760, %v19941_v59 }
 0x210   : > { %v3121_v63 = vsub.f32 %v27918_v24, %v27919_v37  ;;  %v3234_v44 = vand.u32 4294901760, %v3233_v50  ;;  %v3241_v38 = vand.u32 4294901760, %v3240_v58  ;;  %v27929_v17 = vand.u32 4294901760, %v27928_v0 }
 0x211   : > { %v3128_v26 = vsub.f32 %v27920_v25, %v27921_v16  ;;  %v20012_v1 = vsel %vm1677_vm1, %v27922_v21, %v19935_v14  ;;  %v4014_v53 = vsub.f32 %v19941_v59, %v27925_v62  ;;  %v4000_v16 = vand.u32 4294901760, %v3999_v20  ;;  %v27926_v21 = vld [vmem:[#allocation110_spill] sm:$0xff]  ;;  %15593 = vmatpush3.bf16.msra.mxu1 %v27826_v15 }
 0x212   : > { %27923 = vst [vmem:[#allocation43_spill] sm:$0xff] %v20012_v1  ;;  %v15858_v25 = vpack.c.bf16 %v19674_v31, %v19667_v55  ;;  %v27927_v24 = vand.u32 4294901760, %v27926_v21  ;;  %v3254_v42 = vsub.f32 %v27928_v0, %v27929_v17  ;;  %v4009_v40 = vand.u32 4294901760, %v4008_v52  ;;  %15595 = vmatprep.subr.bf16.mxu1 %v27833_v28  ;;  %v27938_v28 = vld [vmem:[#allocation8_spill] sm:$0xff] }
 0x213   : > { %v15860_v30 = vpack.c.bf16 %v19678_v9, %v19676_v35  ;;  %v15630_v62 = vpack.c.bf16 %v3227_v23, %v3220_v8  ;;  %v15862_v50 = vpack.c.bf16 %v19688_v29, %v19686_v49  ;;  %4001 = vmatmul.mubr.f32.vlgmr.msra.gmra.mrb[18].mxu0 %v4000_v16  ;;  %v15632_v58 = vpack.c.bf16 %v3115_v2, %v3108_v48  ;;  %v27930_v48 = vld [vmem:[#allocation112_spill] sm:$0xff]  ;;  %v27936_v16 = vld [vmem:[#allocation53_spill] sm:$0xff] }
 0x214   : > { %v3247_v37 = vsub.f32 %v27926_v21, %v27927_v24  ;;  %v15864_v20 = vpack.c.bf16 %v19695_v45, %v19693_v41  ;;  %v3122_v22 = vand.u32 4294901760, %v3121_v63  ;;  %v3129_v21 = vand.u32 4294901760, %v3128_v26  ;;  %4010 = vmatprep.mubr.f32.mxu0 %v4009_v40  ;;  %15857 = vmatpush3.bf16.msra.mxu0 %v15856_v57  ;;  %v27932_v26 = vld [vmem:[#allocation52_spill] sm:$0xff] }
 0x215   : > { %v4015_v0 = vand.u32 4294901760, %v4014_v53  ;;  %v15634_v52 = vpack.c.bf16 %v3241_v38, %v3234_v44  ;;  %v15866_v24 = vpack.c.bf16 %v27874_v4, %v27873_v61  ;;  %v15868_v8 = vpack.c.bf16 %v27881_v3, %v27875_v54  ;;  %15859 = vmatprep.subr.bf16.mxu0 %v15858_v25  ;;  %v27934_v53 = vld [vmem:[#allocation58_spill] sm:$0xff]  ;;  %15597 = vmatpush3.bf16.msra.mxu1 %v27838_v51  ;;  %v27948_v61 = vld [vmem:[#allocation67_spill] sm:$0xff] }
 0x216   : > { %v3248_v15 = vand.u32 4294901760, %v3247_v37  ;;  %v3255_v23 = vand.u32 4294901760, %v3254_v42  ;;  %v27931_v2 = vand.u32 4294901760, %v27930_v48  ;;  %v27933_v40 = vand.u32 4294901760, %v27932_v26  ;;  %v27940_v37 = vld [vmem:[#allocation9_spill] sm:$0xff]  ;;  %v27950_v51 = vld [vmem:[#allocation54_spill] sm:$0xff]  ;;  %15631 = vmatprep.subr.bf16.mxu1 %v15630_v62 }
 0x217   : > { %v27935_v44 = vand.u32 4294901760, %v27934_v53  ;;  %v27937_v17 = vand.u32 4294901760, %v27936_v16  ;;  %v27939_v25 = vand.u32 4294901760, %v27938_v28  ;;  %v27941_v54 = vand.u32 4294901760, %v27940_v37  ;;  %4016 = vmatmul.mubr.f32.gmra.mrb[20].mxu0 %v4015_v0 }
 0x218   : > { %v3135_v63 = vsub.f32 %v27930_v48, %v27931_v2  ;;  %v3142_v57 = vsub.f32 %v27932_v26, %v27933_v40  ;;  %v15636_v2 = vpack.c.bf16 %v3129_v21, %v3122_v22  ;;  %v27942_v26 = vld [vmem:[#allocation24_spill] sm:$0xff]  ;;  %15861 = vmatpush3.bf16.msra.mxu0 %v15860_v30  ;;  %v27951_v22 = vand.u32 4294901760, %v27950_v51  ;;  %v27952_v30 = vld [vmem:[#allocation113_spill] sm:$0xff] }
 0x219   : > { %v3261_v38 = vsub.f32 %v27934_v53, %v27935_v44  ;;  %v3268_v3 = vsub.f32 %v27936_v16, %v27937_v17  ;;  %v3149_v42 = vsub.f32 %v27938_v28, %v27939_v25  ;;  %v3156_v48 = vsub.f32 %v27940_v37, %v27941_v54  ;;  %v27943_v53 = vld [vmem:[#allocation60_spill] sm:$0xff]  ;;  %v27945_v16 = vld [vmem:[#allocation35_spill] sm:$0xff]  ;;  %v27946_v17 = vld [vmem:[#allocation61_spill] sm:$0xff]  ;;  %15863 = vmatprep.subr.bf16.mxu0 %v15862_v50 }
 0x21a   : > { %v15870_v40 = vpack.c.bf16 %v27942_v26, %v19716_v12  ;;  %v27944_v44 = vand.u32 4294901760, %v27943_v53  ;;  %4390 = vmatprep.mubr.f32.mxu0 %v27945_v16  ;;  %v27947_v28 = vand.u32 4294901760, %v27946_v17  ;;  %v27949_v54 = vand.u32 4294901760, %v27948_v61  ;;  %v27953_v16 = vld [vmem:[#allocation71_spill] sm:$0xff]  ;;  %v27957_v50 = vld [vmem:[#allocation10_spill] sm:$0xff] }
 0x21b   : > { %v3170_v21 = vsub.f32 %v27950_v51, %v27951_v22  ;;  %v15638_v37 = vpack.c.bf16 %v3255_v23, %v3248_v15  ;;  %v3136_v26 = vand.u32 4294901760, %v3135_v63  ;;  %2964 = vmatmul.mubr.f32.vlgmr.msra.gmra.mrb[20].mxu1 %v27953_v16  ;;  %v3262_v12 = vand.u32 4294901760, %v3261_v38  ;;  %v27956_v51 = vld [vmem:[#allocation85_spill] sm:$0xff]  ;;  %v27959_v63 = vld [vmem:[#allocation11_spill] sm:$0xff]  ;;  %v27961_v22 = vld [vmem:[#allocation68_spill] sm:$0xff] }
 0x21c   : > { %v3275_v4 = vsub.f32 %v27943_v53, %v27944_v44  ;;  %v3282_v25 = vsub.f32 %v27946_v17, %v27947_v28  ;;  %v3163_v0 = vsub.f32 %v27948_v61, %v27949_v54  ;;  %v3143_v53 = vand.u32 4294901760, %v3142_v57  ;;  %2969 = vmatprep.mubr.f32.mxu1 %v27956_v51  ;;  %15633 = vmatpush3.bf16.msra.mxu1 %v15632_v58 }
 0x21d   : > { %v15872_v44 = vpack.c.bf16 %v19733_v11, %v27952_v30  ;;  %v3269_v17 = vand.u32 4294901760, %v3268_v3  ;;  %v3150_v28 = vand.u32 4294901760, %v3149_v42  ;;  %v3157_v45 = vand.u32 4294901760, %v3156_v48  ;;  %15865 = vmatpush3.bf16.msra.mxu0 %v15864_v20  ;;  %15635 = vmatprep.subr.bf16.mxu1 %v15634_v52  ;;  %v27983_v52 = vld [vmem:[#allocation84_spill] sm:$0xff] }
 0x21e   : > { %v27954_v61 = vrot.slane %v27824_v33, 1  ;;  %v15874_v62 = vpack.c.bf16 %v19744_v32, %v19742_v10  ;;  %v27958_v15 = vand.u32 4294901760, %v27957_v50  ;;  %v27960_v57 = vand.u32 4294901760, %v27959_v63  ;;  %15867 = vmatprep.subr.bf16.mxu0 %v15866_v24  ;;  %v27964_v24 = vld [vmem:[#allocation82_spill] sm:$0xff] }
 0x21f   : > { %v3276_v33 = vand.u32 4294901760, %v3275_v4  ;;  %v3283_v38 = vand.u32 4294901760, %v3282_v25  ;;  %v3164_v42 = vand.u32 4294901760, %v3163_v0  ;;  %v3171_v48 = vand.u32 4294901760, %v3170_v21  ;;  %v27965_v0 = vld [vmem:[#allocation12_spill] sm:$0xff] }
 0x220   : > { %v20081_v54 = vsel %vm1677_vm1, 0.0, %v27954_v61  ;;  %v3289_v23 = vsub.f32 %v27957_v50, %v27958_v15  ;;  %v3296_v3 = vsub.f32 %v27959_v63, %v27960_v57  ;;  %v15640_v58 = vpack.c.bf16 %v3143_v53, %v3136_v26  ;;  %v27963_v15 = vld [vmem:[#allocation78_spill] sm:$0xff]  ;;  %15637 = vmatpush3.bf16.msra.mxu1 %v15636_v2 }
 0x221   : > { %27955 = vst [vmem:[#allocation106_spill] sm:$0xff] %v20081_v54  ;;  %v15876_v16 = vpack.c.bf16 %v19755_v6, %v19746_v19  ;;  %v27962_v61 = vand.u32 4294901760, %v27961_v22  ;;  %v26698_v50 = vrot.slane %v20012_v1, 4  ;;  %2971 = vmatmul.mubr.f32.gmra.mrb[22].mxu1 %v27963_v15  ;;  %v15642_v63 = vpack.c.bf16 %v3269_v17, %v3262_v12  ;;  %15869 = vmatpush3.bf16.msra.mxu0 %v15868_v8 }
 0x222   : > { %v15644_v20 = vpack.c.bf16 %v3157_v45, %v3150_v28  ;;  %v15878_v4 = vpack.c.bf16 %v19771_v27, %v19762_v60  ;;  %3328 = vmatprep.mubr.f32.mxu1 %v27964_v24  ;;  %v3290_v26 = vand.u32 4294901760, %v3289_v23  ;;  %v3297_v25 = vand.u32 4294901760, %v3296_v3  ;;  %15639 = vmatprep.subr.bf16.mxu1 %v15638_v37  ;;  %v27967_v23 = vld [vmem:[#allocation13_spill] sm:$0xff] }
 0x223   : > { %v3177_v51 = vsub.f32 %v27961_v22, %v27962_v61  ;;  %v27966_v21 = vand.u32 4294901760, %v27965_v0  ;;  %v26694_v57 = vrot.slane %v20081_v54, 4  ;;  %v15646_v45 = vpack.c.bf16 %v3283_v38, %v3276_v33  ;;  %15871 = vmatprep.subr.bf16.mxu0 %v15870_v40  ;;  %v27970_v61 = vld [vmem:[#allocation14_spill] sm:$0xff] }
 0x224   : > { %v15648_v12 = vpack.c.bf16 %v3171_v48, %v3164_v42  ;;  %v15882_v17 = vpack.c.bf16 %v19962_v39, %v19923_v43  ;;  %v27968_v3 = vand.u32 4294901760, %v27967_v23  ;;  %v26693_v37 = vrot.slane %v20081_v54, 7  ;;  %15641 = vmatpush3.bf16.msra.mxu1 %v15640_v58 }
 0x225   : > { %v3184_v53 = vsub.f32 %v27965_v0, %v27966_v21  ;;  %v3178_v2 = vand.u32 4294901760, %v3177_v51  ;;  %v20120_v8 = vsel %vm1725_vm5, %v26694_v57, %v26698_v50  ;;  %v26696_v33 = vrot.slane %v20012_v1, 7  ;;  %15873 = vmatpush3.bf16.msra.mxu0 %v15872_v44  ;;  %15643 = vmatprep.subr.bf16.mxu1 %v15642_v63 }
 0x226   : > { %v3303_v22 = vsub.f32 %v27967_v23, %v27968_v3  ;;  %27969 = vst [vmem:[#allocation107_spill] sm:$0xff] %v20120_v8  ;;  %v26695_v40 = vrot.slane %v20081_v54, 1  ;;  %v12087_v38 = vrot.slane %v20012_v1, 1  ;;  %v15650_v42 = vpack.c.bf16 %v3297_v25, %v3290_v26  ;;  %15875 = vmatprep.subr.bf16.mxu0 %v15874_v62  ;;  %v27976_v23 = vld [vmem:[#allocation16_spill] sm:$0xff] }
 0x227   : > { %v3185_v48 = vand.u32 4294901760, %v3184_v53  ;;  %v27971_v51 = vand.u32 4294901760, %v27970_v61  ;;  %v12105_v0 = vrot.slane %v20012_v1, 2  ;;  %v20135_v21 = vsel %vm1755_vm6, %v26693_v37, %v26696_v33  ;;  %v27974_v53 = vld [vmem:[#allocation15_spill] sm:$0xff] }
 0x228   : > { %27972 = vst [vmem:[#allocation44_spill] sm:$0xff] %v20135_v21  ;;  %v20140_v58 = vsel %vm1677_vm1, %v26695_v40, %v12087_v38  ;;  %v12238_v26 = vrot.slane %v19935_v14, 2  ;;  %v26697_v25 = vrot.slane %v20081_v54, 2  ;;  %v27975_v44 = vand.u32 4294901760, %v27974_v53  ;;  %15645 = vmatpush3.bf16.msra.mxu1 %v15644_v20 }
 0x229   : > { %v3310_v15 = vsub.f32 %v27970_v61, %v27971_v51  ;;  %27973 = vst [vmem:[#allocation108_spill] sm:$0xff] %v20140_v58  ;;  %v27977_v3 = vand.u32 4294901760, %v27976_v23  ;;  %v12159_v51 = vrot.slane %v20012_v1, 5  ;;  %v12283_v37 = vrot.slane %v19935_v14, 5  ;;  %15877 = vmatpush3.bf16.msra.mxu0 %v15876_v16  ;;  %15647 = vmatprep.subr.bf16.mxu1 %v15646_v45 }
 0x22a   : > { %v3191_v63 = vsub.f32 %v27974_v53, %v27975_v44  ;;  %v20153_v57 = vsel %vm1705_vm3, %v12105_v0, %v12238_v26  ;;  %v20158_v40 = vsel %vm1705_vm3, %v26697_v25, %v12105_v0  ;;  %v12123_v53 = vrot.slane %v20012_v1, 3  ;;  %v27981_v0 = vld [vmem:[#allocation17_spill] sm:$0xff]  ;;  %15879 = vmatprep.subr.bf16.mxu0 %v15878_v4 }
 0x22b   : > { %v3198_v61 = vsub.f32 %v27976_v23, %v27977_v3  ;;  %27978 = vst [vmem:[#allocation109_spill] sm:$0xff] %v20153_v57  ;;  %27979 = vst [vmem:[#allocation45_spill] sm:$0xff] %v20158_v40  ;;  %v20163_v44 = vsel %vm1735_vm4, %v12159_v51, %v12283_v37  ;;  %v12177_v26 = vrot.slane %v20012_v1, 6  ;;  %v3304_v33 = vand.u32 4294901760, %v3303_v22 }
 0x22c   : > { %27980 = vst [vmem:[#allocation110_spill] sm:$0xff] %v20163_v44  ;;  %v3311_v28 = vand.u32 4294901760, %v3310_v15  ;;  %v27982_v25 = vand.u32 4294901760, %v27981_v0  ;;  %v27984_v62 = vand.u32 4294901760, %v27983_v52  ;;  %v15652_v37 = vpack.c.bf16 %v3185_v48, %v3178_v2  ;;  %15649 = vmatpush3.bf16.msra.mxu1 %v15648_v12  ;;  %v27991_v2 = vld [vmem:[#allocation19_spill] sm:$0xff] }
 0x22d   : > { %v27985_v23 = vrot.slane %v20081_v54, 3  ;;  %v27987_v16 = vrot.slane %v20081_v54, 5  ;;  %v27989_v22 = vrot.slane %v20081_v54, 6  ;;  %v12223_v4 = vrot.slane %v19935_v14, 1  ;;  %15651 = vmatprep.subr.bf16.mxu1 %v15650_v42  ;;  %v20391_v54 = vld [vmem:[#allocation2 + $0x320] sm:$0xff] }
 0x22e   : > { %v3317_v50 = vsub.f32 %v27981_v0, %v27982_v25  ;;  %v3324_v20 = vsub.f32 %v27983_v52, %v27984_v62  ;;  %v3192_v25 = vand.u32 4294901760, %v3191_v63  ;;  %v3199_v0 = vand.u32 4294901760, %v3198_v61 }
 0x22f   : > { %v20177_v3 = vsel %vm1715_vm2, %v27985_v23, %v12123_v53  ;;  %v20182_v45 = vsel %vm1735_vm4, %v27987_v16, %v12159_v51  ;;  %v20187_v15 = vsel %vm1745_vm7, %v27989_v22, %v12177_v26  ;;  %v12253_v52 = vrot.slane %v19935_v14, 3  ;;  %v27993_v23 = vld [vmem:[#allocation20_spill] sm:$0xff] }
 0x230   : > { %27986 = vst [vmem:[#allocation111_spill] sm:$0xff] %v20177_v3  ;;  %27988 = vst [vmem:[#allocation112_spill] sm:$0xff] %v20182_v45  ;;  %v27992_v48 = vand.u32 4294901760, %v27991_v2  ;;  %v27994_v44 = vand.u32 4294901760, %v27993_v23  ;;  %v12268_v16 = vrot.slane %v19935_v14, 4  ;;  %v12298_v22 = vrot.slane %v19935_v14, 6  ;;  %15653 = vmatpush3.bf16.msra.mxu1 %v15652_v37 }
 0x231   : > { %27990 = vst [vmem:[#allocation52_spill] sm:$0xff] %v20187_v15  ;;  %v27995_v63 = vpack.c.bf16 %v19886_v47, %v19773_v13  ;;  %v15654_v61 = vpack.c.bf16 %v3311_v28, %v3304_v33  ;;  %v27996_v12 = vand.u32 4294901760, %v19651_v5  ;;  %v27997_v57 = vand.u32 4294901760, %v19655_v18  ;;  %v20365_v45 = vld [vmem:[#allocation2 + $0x318] sm:$0xff] }
 0x232   : > { %v3205_v62 = vsub.f32 %v27991_v2, %v27992_v48  ;;  %v3212_v51 = vsub.f32 %v27993_v23, %v27994_v44  ;;  %v3318_v2 = vand.u32 4294901760, %v3317_v50  ;;  %v3325_v48 = vand.u32 4294901760, %v3324_v20 }
 0x233   : > { %15881 = vmatpush3.bf16.msra.mxu0 %v27995_v63  ;;  %v15918_v21 = vpack.c.bf16 %v27997_v57, %v27996_v12  ;;  %v20207_v44 = vsel %vm1677_vm1, %v12087_v38, %v12223_v4  ;;  %v20210_v23 = vsel %vm1715_vm2, %v12123_v53, %v12253_v52  ;;  %v28000_v15 = vrot.slane %v20012_v1, 4  ;;  %15655 = vmatprep.subr.bf16.mxu1 %v15654_v61  ;;  %v28015_v52 = vld [vmem:[#allocation29_spill] sm:$0xff] }
 0x234   : > { %15883 = vmatprep.subr.bf16.mxu0 %v15882_v17  ;;  %27998 = vst [vmem:[#allocation58_spill] sm:$0xff] %v20207_v44  ;;  %27999 = vst [vmem:[#allocation53_spill] sm:$0xff] %v20210_v23  ;;  %v20218_v28 = vsel %vm1745_vm7, %v12177_v26, %v12298_v22  ;;  %v15656_v5 = vpack.c.bf16 %v3199_v0, %v3192_v25  ;;  %v3206_v18 = vand.u32 4294901760, %v3205_v62  ;;  %v3213_v50 = vand.u32 4294901760, %v3212_v51  ;;  %v28017_v51 = vld [vmem:[#allocation39_spill] sm:$0xff]  ;;  %v28020_v22 = vld [vmem:[#allocation42_spill] sm:$0xff] }
 0x235   : > { %v20215_v63 = vsel %vm1725_vm5, %v28000_v15, %v12268_v16  ;;  %28002 = vst [vmem:[#allocation9_spill] sm:$0xff] %v20218_v28  ;;  %v12313_v57 = vrot.slane %v19935_v14, 7  ;;  %v28003_v17 = vpack.c.bf16 %v19991_v36, %v19988_v34  ;;  %v28004_v33 = vand.u32 4294901760, %v19657_v56  ;;  %v28010_v56 = vld [vmem:[#allocation132_spill] sm:$0xff]  ;;  %v20340_v28 = vld [vmem:[#allocation2 + $0x390] sm:$0xff] }
 0x236   : > { %28001 = vst [vmem:[#allocation8_spill] sm:$0xff] %v20215_v63  ;;  %v28005_v38 = vand.u32 4294901760, %v19659_v7  ;;  %v15658_v53 = vpack.c.bf16 %v3325_v48, %v3318_v2  ;;  %v28006_v26 = vand.u32 4294901760, %v19667_v55  ;;  %v28007_v20 = vand.u32 4294901760, %v19674_v31  ;;  %15657 = vmatpush3.bf16.msra.mxu1 %v15656_v5  ;;  %v28024_v2 = vld [vmem:[#allocation83_spill] sm:$0xff]  ;;  %v28025_v5 = vld [vmem:[#allocation24_spill] sm:$0xff] }
 0x237   : > { %15885 = vmatpush3.bf16.msra.mxu0 %v28003_v17  ;;  %v28008_v15 = vrot.slane %v20012_v1, 7  ;;  %v15660_v25 = vpack.c.bf16 %v3213_v50, %v3206_v18  ;;  %v28011_v7 = vand.u32 4294901760, %v19676_v35  ;;  %v28013_v31 = vand.u32 4294901760, %v19686_v49  ;;  %v28022_v49 = vld [vmem:[#allocation18_spill] sm:$0xff]  ;;  %v28026_v50 = vld [vmem:[#allocation93_spill] sm:$0xff] }
 0x238   : > { %v15920_v42 = vpack.c.bf16 %v28005_v38, %v28004_v33  ;;  %15919 = vmatprep.subr.bf16.mxu0 %v15918_v21  ;;  %v15922_v37 = vpack.c.bf16 %v28007_v20, %v28006_v26  ;;  %v28012_v21 = vand.u32 4294901760, %v19678_v9  ;;  %15659 = vmatprep.subr.bf16.mxu1 %v15658_v53  ;;  %v28014_v0 = vand.u32 4294901760, %v19688_v29  ;;  %v28019_v9 = vld [vmem:[#allocation46_spill] sm:$0xff]  ;;  %v28032_v53 = vld [vmem:[#allocation64_spill] sm:$0xff]  ;;  %v28033_v26 = vld [vmem:[#allocation87_spill] sm:$0xff] }
 0x239   : > { %v20235_v14 = vsel %vm1755_vm6, %v28008_v15, %v12313_v57  ;;  %v28016_v62 = vand.u32 4294901760, %v19693_v41  ;;  %v28018_v35 = vand.u32 4294901760, %v28017_v51  ;;  %v28021_v61 = vand.u32 4294901760, %v28020_v22  ;;  %v28027_v57 = vld [vmem:[#allocation94_spill] sm:$0xff]  ;;  %v28028_v41 = vld [vmem:[#allocation59_spill] sm:$0xff] }
 0x23a   : > { %28009 = vst [vmem:[#allocation60_spill] sm:$0xff] %v20235_v14  ;;  %4393 = vmatmul.mubr.f32.vlgmr.msra.gmra.mrb[22].mxu0 %v19895_v46  ;;  %v15924_v55 = vpack.c.bf16 %v28012_v21, %v28011_v7  ;;  %v15926_v4 = vpack.c.bf16 %v28014_v0, %v28013_v31  ;;  %15661 = vmatpush3.bf16.msra.mxu1 %v15660_v25  ;;  %v28023_v12 = vand.u32 4294901760, %v28022_v49  ;;  %v26710_v48 = vand.u32 4294901760, %v28024_v2  ;;  %v28031_v38 = vld [vmem:[#allocation70_spill] sm:$0xff]  ;;  %v20336_v14 = vld [vmem:[#allocation2 + $0x300] sm:$0xff] }
 0x23b   : > { %4399 = vmatprep.mubr.f32.mxu0 %v28010_v56  ;;  %15921 = vmatpush3.bf16.msra.mxu0 %v15920_v42  ;;  %v15928_v16 = vpack.c.bf16 %v28018_v35, %v28016_v62  ;;  %v26705_v18 = vand.u32 4294901760, %v28025_v5  ;;  %v28029_v17 = vmov 0.0   ;;  %v26711_v42 = vrot.slane %v28031_v38, 7  ;;  %v28038_v62 = vld [vmem:[#allocation65_spill] sm:$0xff]  ;;  %v28039_v51 = vld [vmem:[#allocation86_spill] sm:$0xff] }
 0x23c   : > { %15923 = vmatprep.subr.bf16.mxu0 %v15922_v37  ;;  %15695 = vmatprep.subr.bf16.mxu1 %v28019_v9  ;;  %v15930_v29 = vpack.c.bf16 %v28023_v12, %v28021_v61  ;;  %v20264_v33 = vrot.slane %v28029_v17, 7  ;;  %v28034_v20 = vand.u32 4294901760, %v28033_v26  ;;  %v28035_v37 = vld [vmem:[#allocation21_spill] sm:$0xff]  ;;  %v26704_v7 = vand.u32 4294901760, %v27952_v30  ;;  %v28041_v22 = vld [vmem:[#allocation66_spill] sm:$0xff] }
 0x23d   : > { %3330 = vmatmul.mubr.f32.vlgmr.msra.gmra.mrb[24].mxu1 %v28026_v50  ;;  %v28036_v15 = vand.u32 4294901760, %v28035_v37  ;;  %v26703_v21 = vand.u32 4294901760, %v19733_v11  ;;  %v26702_v31 = vand.u32 4294901760, %v19742_v10  ;;  %v26701_v0 = vand.u32 4294901760, %v19744_v32  ;;  %v28042_v37 = vld [vmem:[#allocation55_spill] sm:$0xff]  ;;  %v20363_v1 = vld [vmem:[#allocation2 + $0x310] sm:$0xff] }
 0x23e   : > { %4402 = vmatmul.mubr.f32.gmra.mrb[24].mxu0 %v19941_v59  ;;  %3335 = vmatprep.mubr.f32.mxu1 %v28027_v57  ;;  %28030 = vst [vmem:[#allocation61_spill] sm:$0xff] %v20264_v33  ;;  %v28040_v35 = vand.u32 4294901760, %v28039_v51  ;;  %v26707_v49 = vand.u32 4294901760, %v19746_v19  ;;  %v26706_v12 = vand.u32 4294901760, %v19755_v6  ;;  %v26709_v26 = vand.u32 4294901760, %v19762_v60  ;;  %v28044_v51 = vld [vmem:[#allocation75_spill] sm:$0xff] }
 0x23f   : > { %15925 = vmatpush3.bf16.msra.mxu0 %v15924_v55  ;;  %4687 = vmatprep.mubr.f32.mxu0 %v28015_v52  ;;  %v15932_v25 = vpack.c.bf16 %v28036_v15, %v28034_v20  ;;  %v15934_v55 = vpack.c.bf16 %v26705_v18, %v26710_v48  ;;  %v15936_v61 = vpack.c.bf16 %v26703_v21, %v26704_v7  ;;  %v26708_v20 = vand.u32 4294901760, %v19771_v27  ;;  %v20316_v21 = vld [vmem:[#allocation2 + $0x380] sm:$0xff]  ;;  %v20318_v7 = vld [vmem:[#allocation2 + $0x388] sm:$0xff]  ;;  %v28086_v19 = vld [vmem:[#allocation99_spill] sm:$0xff] }
 0x240   : > { %15927 = vmatprep.subr.bf16.mxu0 %v15926_v4  ;;  %15697 = vmatpush3.bf16.msra.mxu1 %v28028_v41  ;;  %v28037_v4 = vld [vmem:[#allocation98_spill] sm:$0xff]  ;;  %v28052_v63 = vand.u32 4294901760, %v20316_v21  ;;  %v28064_v59 = vld [vmem:[#allocation124_spill] sm:$0xff]  ;;  %v1747_v58 = vrot.slane %v28031_v38, 6  ;;  %v28068_v56 = vand.u32 4294901760, %v20363_v1  ;;  %v20462_v27 = vld [vmem:[#allocation2 + $0x348] sm:$0xff] }
 0x241   : > { %15699 = vmatprep.subr.bf16.mxu1 %v28032_v53  ;;  %3337 = vmatmul.mubr.f32.gmra.mrb[26].mxu1 %v28037_v4  ;;  %v28084_v60 = vld [vmem:[#allocation97_spill] sm:$0xff]  ;;  %v20576_v11 = vld [vmem:[#allocation2 + $0x370] sm:$0xff] }
 0x242   : > { %3588 = vmatprep.mubr.f32.mxu1 %v28040_v35  ;;  %v26714_v35 = vand.u32 4294901760, %v19773_v13  ;;  %v28077_v13 = vld [vmem:[#allocation77_spill] sm:$0xff] }
 0x243   : > { %15929 = vmatpush3.bf16.msra.mxu0 %v15928_v16  ;;  %v1758_v16 = vsel %vm1755_vm6, %v20264_v33, %v26711_v42  ;;  %v20338_v33 = vld [vmem:[#allocation2 + $0x308] sm:$0xff] }
 0x244   : > { %15931 = vmatprep.subr.bf16.mxu0 %v15930_v29  ;;  %15701 = vmatpush3.bf16.msra.mxu1 %v28038_v62  ;;  %v15938_v29 = vpack.c.bf16 %v26701_v0, %v26702_v31  ;;  %v1763_v15 = vmul.f32 %v28042_v37, %v1758_v16  ;;  %v26713_v0 = vand.u32 4294901760, %v19886_v47  ;;  %v15942_v16 = vpack.c.bf16 %v26708_v20, %v26709_v26  ;;  %v28050_v26 = vld [vmem:[#allocation92_spill] sm:$0xff]  ;;  %v20370_v42 = vld [vmem:[#allocation2 + $0x3a8] sm:$0xff] }
 0x245   : > { %15703 = vmatprep.subr.bf16.mxu1 %v28041_v22  ;;  %v26716_v31 = vand.u32 4294901760, %v19923_v43  ;;  %v26719_v20 = vand.u32 4294901760, %v19988_v34  ;;  %v20434_v43 = vld [vmem:[#allocation2 + $0x3c8] sm:$0xff]  ;;  %v28076_v47 = vld [vmem:[#allocation104_spill] sm:$0xff] }
 0x246   : > { %v20320_v18 = vand.u32 4294901760, %v1763_v15 }
 0x247   : > { %15933 = vmatpush3.bf16.msra.mxu0 %v15932_v25  ;;  %v28043_v25 = vld [vmem:[#allocation74_spill] sm:$0xff] }
 0x248   : > { %15935 = vmatprep.subr.bf16.mxu0 %v15934_v55  ;;  %15705 = vmatpush3.bf16.msra.mxu1 %v28043_v25  ;;  %v15940_v55 = vpack.c.bf16 %v26706_v12, %v26707_v49  ;;  %28045 = vst [vmem:[#allocation67_spill] sm:$0xff] %v20320_v18  ;;  %v28046_v12 = vld [vmem:[#allocation79_spill] sm:$0xff]  ;;  %v28047_v49 = vld [vmem:[#allocation88_spill] sm:$0xff] }
 0x249   : > { %15707 = vmatprep.subr.bf16.mxu1 %v28044_v51 }
 0x24b   : > { %15937 = vmatpush3.bf16.msra.mxu0 %v15936_v61  ;;  %v26715_v61 = vand.u32 4294901760, %v19962_v39 }
 0x24c   : > { %15939 = vmatprep.subr.bf16.mxu0 %v15938_v29  ;;  %15709 = vmatpush3.bf16.msra.mxu1 %v28046_v12  ;;  %v15944_v29 = vpack.c.bf16 %v26713_v0, %v26714_v35  ;;  %v20342_v0 = vld [vmem:[#allocation2 + $0x398] sm:$0xff]  ;;  %v20345_v35 = vsub.f32 %v1763_v15, %v20320_v18  ;;  %v28053_v15 = vand.u32 4294901760, %v20318_v7 }
 0x24d   : > { %15711 = vmatprep.subr.bf16.mxu1 %v28047_v49  ;;  %v15946_v48 = vpack.c.bf16 %v26715_v61, %v26716_v31  ;;  %v28051_v61 = vand.u32 4294901760, %v19991_v36  ;;  %v28061_v3 = vand.u32 4294901760, %v20342_v0  ;;  %v28071_v36 = vld [vmem:[#allocation101_spill] sm:$0xff] }
 0x24e   : > { %28048 = vst [vmem:[#allocation54_spill] sm:$0xff] %v20345_v35  ;;  %v20359_v23 = vpack.c.bf16 %v28053_v15, %v28052_v63  ;;  %v28057_v63 = vand.u32 4294901760, %v20336_v14  ;;  %v28058_v15 = vand.u32 4294901760, %v20338_v33 }
 0x24f   : > { %15941 = vmatpush3.bf16.msra.mxu0 %v15940_v55  ;;  %v15948_v31 = vpack.c.bf16 %v28051_v61, %v26719_v20  ;;  %v20368_v20 = vld [vmem:[#allocation2 + $0x3a0] sm:$0xff]  ;;  %v28060_v61 = vand.u32 4294901760, %v20340_v28 }
 0x250   : > { %15943 = vmatprep.subr.bf16.mxu0 %v15942_v16  ;;  %v28049_v16 = vld [vmem:[#allocation89_spill] sm:$0xff]  ;;  %28054 = vst [vmem:[#allocation113_spill] sm:$0xff] %v20359_v23  ;;  %v28056_v55 = vld [vmem:[#allocation96_spill] sm:$0xff]  ;;  %v20378_v44 = vpack.c.bf16 %v28058_v15, %v28057_v63  ;;  %v28063_v15 = vand.u32 4294901760, %v20345_v35 }
 0x251   : > { %15713 = vmatpush3.bf16.msra.mxu1 %v28049_v16  ;;  %v20387_v40 = vpack.c.bf16 %v28061_v3, %v28060_v61  ;;  %v20393_v63 = vld [vmem:[#allocation2 + $0x328] sm:$0xff]  ;;  %v28065_v3 = vld [vmem:[#allocation100_spill] sm:$0xff]  ;;  %v20405_v61 = vrot.slane %v28029_v17, 6  ;;  %v28072_v17 = vand.u32 4294901760, %v20368_v20 }
 0x252   : > { %15715 = vmatprep.subr.bf16.mxu1 %v28050_v26  ;;  %28059 = vst [vmem:[#allocation71_spill] sm:$0xff] %v20378_v44  ;;  %v4911_v8 = vsub.f32 %v20345_v35, %v28063_v15  ;;  %v28069_v15 = vand.u32 4294901760, %v20365_v45  ;;  %v28079_v39 = vand.u32 4294901760, %v20393_v63 }
 0x253   : > { %15945 = vmatpush3.bf16.msra.mxu0 %v15944_v29  ;;  %28062 = vst [vmem:[#allocation85_spill] sm:$0xff] %v20387_v40  ;;  %v20398_v29 = vld [vmem:[#allocation2 + $0x3b0] sm:$0xff]  ;;  %28066 = vst [vmem:[#allocation10_spill] sm:$0xff] %v20405_v61 }
 0x254   : > { %15947 = vmatprep.subr.bf16.mxu0 %v15946_v48  ;;  %v28055_v48 = vld [vmem:[#allocation95_spill] sm:$0xff]  ;;  %v20414_v46 = vpack.c.bf16 %v28069_v15, %v28068_v56  ;;  %v20428_v56 = vld [vmem:[#allocation2 + $0x330] sm:$0xff]  ;;  %v4912_v18 = vand.u32 4294901760, %v4911_v8  ;;  %v20460_v8 = vld [vmem:[#allocation2 + $0x340] sm:$0xff] }
 0x255   : > { %15717 = vmatpush3.bf16.msra.mxu1 %v28055_v48  ;;  %v20430_v15 = vld [vmem:[#allocation2 + $0x338] sm:$0xff] }
 0x256   : > { %15719 = vmatprep.subr.bf16.mxu1 %v28056_v55  ;;  %28070 = vst [vmem:[#allocation11_spill] sm:$0xff] %v20414_v46 }
 0x257   : > { %15949 = vmatpush3.bf16.msra.mxu0 %v15948_v31  ;;  %v28067_v31 = vld [vmem:[#allocation126_spill] sm:$0xff] }
 0x258   : > { %15983 = vmatprep.subr.bf16.mxu0 %v20359_v23  ;;  %v20400_v23 = vld [vmem:[#allocation2 + $0x3b8] sm:$0xff] }
 0x259   : > { %15721 = vmatpush3.bf16.msra.mxu1 %v28065_v3 }
 0x25a   : > { %4689 = vmatmul.mubr.f32.vlgmr.msra.gmra.mrb[26].mxu0 %v28064_v59  ;;  %15723 = vmatprep.subr.bf16.mxu1 %v28071_v36  ;;  %v20432_v59 = vld [vmem:[#allocation2 + $0x3c0] sm:$0xff] }
 0x25b   : > { %4694 = vmatprep.mubr.f32.mxu0 %v28067_v31  ;;  %15985 = vmatpush3.bf16.msra.mxu0 %v20378_v44  ;;  %v28073_v31 = vand.u32 4294901760, %v20370_v42  ;;  %v28094_v6 = vand.u32 4294901760, %v20432_v59 }
 0x25c   : > { %15987 = vmatprep.subr.bf16.mxu0 %v20387_v40  ;;  %v28075_v40 = vld [vmem:[#allocation129_spill] sm:$0xff] }
 0x25d   : > { %v20424_v34 = vpack.c.bf16 %v28073_v31, %v28072_v17  ;;  %15725 = vmatpush3.bf16.msra.mxu1 %v28076_v47  ;;  %v28078_v17 = vand.u32 4294901760, %v20391_v54  ;;  %v28081_v31 = vand.u32 4294901760, %v20398_v29 }
 0x25e   : > { %4696 = vmatmul.mubr.f32.gmra.mrb[28].mxu0 %v28075_v40  ;;  %v1748_v40 = vsel %vm1745_vm7, %v20405_v61, %v1747_v58  ;;  %15759 = vmatprep.subr.bf16.mxu1 %v28019_v9  ;;  %v28085_v61 = vand.u32 4294901760, %v28084_v60  ;;  %v20466_v9 = vld [vmem:[#allocation2 + $0x3d0] sm:$0xff] }
 0x25f   : > { %28074 = vst [vmem:[#allocation68_spill] sm:$0xff] %v20424_v34  ;;  %15989 = vmatpush3.bf16.msra.mxu0 %v20414_v46  ;;  %4913 = vmatprep.mubr.f32.mxu0 %v4912_v18  ;;  %v20444_v44 = vpack.c.bf16 %v28079_v39, %v28078_v17  ;;  %v28082_v18 = vand.u32 4294901760, %v20400_v23  ;;  %v28088_v17 = vrot.slane %v28077_v13, 7  ;;  %v28089_v39 = vrot.slane %v28031_v38, 7  ;;  %v20501_v38 = vld [vmem:[#allocation2 + $0x350] sm:$0xff] }
 0x260   : > { %15991 = vmatprep.subr.bf16.mxu0 %v20424_v34  ;;  %3592 = vmatmul.mubr.f32.vlgmr.msra.gmra.mrb[28].mxu1 %v28085_v61  ;;  %v20468_v34 = vld [vmem:[#allocation2 + $0x3d8] sm:$0xff]  ;;  %v28091_v61 = vand.u32 4294901760, %v20428_v56  ;;  %v12686_v10 = vpop.f32.mrb[2].mxu0 }
 0x261   : > { %28080 = vst [vmem:[#allocation78_spill] sm:$0xff] %v20444_v44  ;;  %v20456_v46 = vpack.c.bf16 %v28082_v18, %v28081_v31  ;;  %v28087_v31 = vand.u32 4294901760, %v28086_v19  ;;  %15761 = vmatpush3.bf16.msra.mxu1 %v28028_v41  ;;  %v1753_v18 = vmul.f32 %v28042_v37, %v1748_v40  ;;  %v20480_v60 = vsel %vm1755_vm6, %v28089_v39, %v28088_v17  ;;  %v20507_v40 = vld [vmem:[#allocation2 + $0x3e0] sm:$0xff]  ;;  %v28100_v37 = vld [vmem:[#allocation69_spill] sm:$0xff] }
 0x262   : > { %28090 = vst [vmem:[#allocation12_spill] sm:$0xff] %v20480_v60  ;;  %15763 = vmatprep.subr.bf16.mxu1 %v28032_v53  ;;  %v28092_v19 = vand.u32 4294901760, %v20430_v15  ;;  %v28095_v39 = vand.u32 4294901760, %v20434_v43  ;;  %v1764_v32 = vmul.f32 %v28100_v37, %v20480_v60  ;;  %v20549_v60 = vld [vmem:[#allocation2 + $0x3f8] sm:$0xff] }
 0x263   : > { %28083 = vst [vmem:[#allocation82_spill] sm:$0xff] %v20456_v46  ;;  %3599 = vmatprep.mubr.f32.mxu1 %v28087_v31  ;;  %15993 = vmatpush3.bf16.msra.mxu0 %v20444_v44  ;;  %v20520_v44 = vand.u32 4294901760, %v1753_v18 }
 0x264   : > { %v20488_v31 = vpack.c.bf16 %v28092_v19, %v28091_v61  ;;  %15995 = vmatprep.subr.bf16.mxu0 %v20456_v46  ;;  %v20497_v17 = vpack.c.bf16 %v28095_v39, %v28094_v6  ;;  %v20503_v61 = vld [vmem:[#allocation2 + $0x358] sm:$0xff]  ;;  %v28097_v19 = vld [vmem:[#allocation102_spill] sm:$0xff]  ;;  %v20509_v46 = vld [vmem:[#allocation2 + $0x3e8] sm:$0xff]  ;;  %v28101_v6 = vrot.slane %v28077_v13, 6 }
 0x265   : > { %v28098_v41 = vand.u32 4294901760, %v28097_v19  ;;  %28099 = vst [vmem:[#allocation15_spill] sm:$0xff] %v20509_v46  ;;  %15765 = vmatpush3.bf16.msra.mxu1 %v28038_v62  ;;  %28103 = vst [vmem:[#allocation17_spill] sm:$0xff] %v20520_v44  ;;  %v28105_v19 = vand.u32 4294901760, %v20462_v27  ;;  %v28108_v62 = vand.u32 4294901760, %v20468_v34  ;;  %v20541_v13 = vld [vmem:[#allocation2 + $0x360] sm:$0xff] }
 0x266   : > { %28093 = vst [vmem:[#allocation13_spill] sm:$0xff] %v20488_v31  ;;  %28096 = vst [vmem:[#allocation14_spill] sm:$0xff] %v20497_v17  ;;  %v20516_v39 = vsel %vm1745_vm7, %v1747_v58, %v28101_v6  ;;  %15767 = vmatprep.subr.bf16.mxu1 %v28041_v22  ;;  %v20547_v58 = vld [vmem:[#allocation2 + $0x3f0] sm:$0xff] }
 0x267   : > { %3603 = vmatmul.mubr.f32.gmra.mrb[30].mxu1 %v28098_v41  ;;  %28102 = vst [vmem:[#allocation16_spill] sm:$0xff] %v20516_v39  ;;  %15997 = vmatpush3.bf16.msra.mxu0 %v20488_v31  ;;  %v28104_v41 = vand.u32 4294901760, %v20460_v8  ;;  %v28113_v31 = vand.u32 4294901760, %v20503_v61 }
 0x268   : > { %3880 = vmatprep.mubr.f32.mxu1 %v27964_v24  ;;  %15999 = vmatprep.subr.bf16.mxu0 %v20497_v17  ;;  %v28107_v24 = vand.u32 4294901760, %v20466_v9  ;;  %v20551_v17 = vand.u32 4294901760, %v1764_v32 }
 0x269   : > { %v20528_v53 = vpack.c.bf16 %v28105_v19, %v28104_v41  ;;  %v20543_v41 = vld [vmem:[#allocation2 + $0x368] sm:$0xff]  ;;  %v1754_v19 = vmul.f32 %v28100_v37, %v20516_v39  ;;  %15769 = vmatpush3.bf16.msra.mxu1 %v28043_v25  ;;  %v28115_v25 = vand.u32 4294901760, %v20507_v40  ;;  %v12687_v37 = vpop.f32.mrb[3].mxu0 }
 0x26a   : > { %v20537_v6 = vpack.c.bf16 %v28108_v62, %v28107_v24  ;;  %28110 = vst [vmem:[#allocation20_spill] sm:$0xff] %v20551_v17  ;;  %v20555_v24 = vsub.f32 %v1753_v18, %v20520_v44  ;;  %15771 = vmatprep.subr.bf16.mxu1 %v28044_v51  ;;  %v28112_v62 = vand.u32 4294901760, %v20501_v38  ;;  %v28116_v18 = vand.u32 4294901760, %v20509_v46 }
 0x26b   : > { %28106 = vst [vmem:[#allocation84_spill] sm:$0xff] %v20528_v53  ;;  %16001 = vmatpush3.bf16.msra.mxu0 %v20528_v53  ;;  %v20583_v39 = vsub.f32 %v1764_v32, %v20551_v17  ;;  %v28122_v44 = vand.u32 4294901760, %v20543_v41 }
 0x26c   : > { %28109 = vst [vmem:[#allocation19_spill] sm:$0xff] %v20537_v6  ;;  %28111 = vst [vmem:[#allocation39_spill] sm:$0xff] %v20555_v24  ;;  %v20563_v22 = vpack.c.bf16 %v28113_v31, %v28112_v62  ;;  %16003 = vmatprep.subr.bf16.mxu0 %v20537_v6  ;;  %v20572_v53 = vpack.c.bf16 %v28116_v18, %v28115_v25  ;;  %v20578_v31 = vld [vmem:[#allocation2 + $0x378] sm:$0xff]  ;;  %v20580_v62 = vand.u32 4294901760, %v1754_v19  ;;  %v28121_v18 = vand.u32 4294901760, %v20541_v13 }
 0x26d   : > { %28119 = vst [vmem:[#allocation83_spill] sm:$0xff] %v20583_v39  ;;  %v20585_v6 = vadd.f32 %v12687_v37, %v12686_v10  ;;  %15773 = vmatpush3.bf16.msra.mxu1 %v28046_v12  ;;  %v28124_v10 = vand.u32 4294901760, %v20316_v21  ;;  %v28125_v37 = vand.u32 4294901760, %v20318_v7 }
 0x26e   : > { %28114 = vst [vmem:[#allocation46_spill] sm:$0xff] %v20563_v22  ;;  %28117 = vst [vmem:[#allocation42_spill] sm:$0xff] %v20572_v53  ;;  %15775 = vmatprep.subr.bf16.mxu1 %v28047_v49  ;;  %v20595_v51 = vpack.c.bf16 %v28122_v44, %v28121_v18  ;;  %v12689_v49 = vpop.f32.mrb[4].mxu0  ;;  %v28126_v44 = vand.u32 4294901760, %v20547_v58  ;;  %v28127_v18 = vand.u32 4294901760, %v20549_v60  ;;  %v20617_v32 = vsub.f32 %v1754_v19, %v20580_v62 }
 0x26f   : > { %28118 = vst [vmem:[#allocation18_spill] sm:$0xff] %v20580_v62  ;;  %28120 = vst [vmem:[#allocation24_spill] sm:$0xff] %v20585_v6  ;;  %16005 = vmatpush3.bf16.msra.mxu0 %v20563_v22  ;;  %v20602_v12 = vsub.f32 %v20316_v21, %v28124_v10  ;;  %v20607_v25 = vsub.f32 %v20318_v7, %v28125_v37  ;;  %v12690_v22 = vpop.f32.mrb[5].mxu0  ;;  %v26795_v21 = vand.u32 4294901760, %v20583_v39  ;;  %v28131_v7 = vand.u32 4294901760, %v20555_v24 }
 0x270   : > { %28123 = vst [vmem:[#allocation93_spill] sm:$0xff] %v20595_v51  ;;  %16007 = vmatprep.subr.bf16.mxu0 %v20572_v53  ;;  %v20614_v46 = vpack.c.bf16 %v28127_v18, %v28126_v44  ;;  %28129 = vst [vmem:[#allocation59_spill] sm:$0xff] %v20617_v32  ;;  %v20620_v10 = vadd.f32 %v12690_v22, %v12689_v49  ;;  %v28132_v53 = vand.u32 4294901760, %v20336_v14  ;;  %v28133_v44 = vand.u32 4294901760, %v20338_v33 }
 0x271   : > { %15777 = vmatpush3.bf16.msra.mxu1 %v28049_v16  ;;  %v4917_v37 = vsub.f32 %v20555_v24, %v28131_v7  ;;  %v28134_v16 = vand.u32 4294901760, %v20576_v11  ;;  %v28135_v22 = vand.u32 4294901760, %v20578_v31  ;;  %v28137_v18 = vand.u32 4294901760, %v20340_v28  ;;  %v12534_v7 = vpop.f32.mrb[4].mxu1 }
 0x272   : > { %28128 = vst [vmem:[#allocation94_spill] sm:$0xff] %v20614_v46  ;;  %28130 = vst [vmem:[#allocation64_spill] sm:$0xff] %v20620_v10  ;;  %v20629_v6 = vsub.f32 %v20336_v14, %v28132_v53  ;;  %v20634_v19 = vsub.f32 %v20338_v33, %v28133_v44  ;;  %15779 = vmatprep.subr.bf16.mxu1 %v28050_v26  ;;  %v28138_v53 = vand.u32 4294901760, %v20342_v0 }
 0x273   : > { %16009 = vmatpush3.bf16.msra.mxu0 %v20595_v51  ;;  %v20642_v49 = vpack.c.bf16 %v28135_v22, %v28134_v16  ;;  %v20647_v14 = vsub.f32 %v20340_v28, %v28137_v18  ;;  %v16046_v26 = vpack.c.bf16 %v20607_v25, %v20602_v12  ;;  %v12535_v16 = vpop.f32.mrb[5].mxu1  ;;  %v4926_v22 = vsub.f32 %v20583_v39, %v26795_v21 }
 0x274   : > { %v20652_v33 = vsub.f32 %v20342_v0, %v28138_v53  ;;  %16011 = vmatprep.subr.bf16.mxu0 %v20614_v46  ;;  %v20661_v28 = vadd.f32 %v12535_v16, %v12534_v7  ;;  %v28139_v0 = vand.u32 4294901760, %v20363_v1  ;;  %v28140_v53 = vand.u32 4294901760, %v20365_v45 }
 0x275   : > { %28136 = vst [vmem:[#allocation87_spill] sm:$0xff] %v20642_v49  ;;  %15781 = vmatpush3.bf16.msra.mxu1 %v28055_v48  ;;  %v4918_v44 = vand.u32 4294901760, %v4917_v37  ;;  %v16048_v7 = vpack.c.bf16 %v20634_v19, %v20629_v6  ;;  %v28141_v48 = vand.u32 4294901760, %v20368_v20 }
 0x276   : > { %v20667_v18 = vsub.f32 %v20363_v1, %v28139_v0  ;;  %v20672_v46 = vsub.f32 %v20365_v45, %v28140_v53  ;;  %15783 = vmatprep.subr.bf16.mxu1 %v28056_v55  ;;  %v28142_v1 = vand.u32 4294901760, %v20370_v42  ;;  %v12537_v45 = vpop.f32.mrb[6].mxu1  ;;  %v28143_v53 = vand.u32 4294901760, %v20617_v32 }
 0x277   : > { %16013 = vmatpush3.bf16.msra.mxu0 %v20642_v49  ;;  %v20681_v16 = vsub.f32 %v20368_v20, %v28141_v48  ;;  %v16050_v37 = vpack.c.bf16 %v20652_v33, %v20647_v14  ;;  %v12538_v21 = vpop.f32.mrb[7].mxu1  ;;  %v4927_v49 = vand.u32 4294901760, %v4926_v22  ;;  %v28144_v20 = vand.u32 4294901760, %v20391_v54 }
 0x278   : > { %v20686_v0 = vsub.f32 %v20370_v42, %v28142_v1  ;;  %16047 = vmatprep.subr.bf16.mxu0 %v16046_v26  ;;  %v4932_v55 = vsub.f32 %v20617_v32, %v28143_v53  ;;  %v20693_v51 = vadd.f32 %v12538_v21, %v12537_v45  ;;  %v28146_v26 = vand.u32 4294901760, %v20393_v63 }
 0x279   : > { %15785 = vmatpush3.bf16.msra.mxu1 %v28065_v3  ;;  %v20699_v42 = vsub.f32 %v20391_v54, %v28144_v20  ;;  %v16052_v22 = vpack.c.bf16 %v20672_v46, %v20667_v18  ;;  %v28148_v21 = vand.u32 4294901760, %v20398_v29  ;;  %v28150_v3 = vand.u32 4294901760, %v20400_v23 }
 0x27a   : > { %4919 = vmatmul.mubr.f32.vlgmr.msra.gmra.mrb[30].mxu0 %v4918_v44  ;;  %v20704_v48 = vsub.f32 %v20393_v63, %v28146_v26  ;;  %15787 = vmatprep.subr.bf16.mxu1 %v28071_v36  ;;  %v4933_v1 = vand.u32 4294901760, %v4932_v55  ;;  %v16054_v63 = vpack.c.bf16 %v20686_v0, %v20681_v16  ;;  %v28156_v45 = vand.u32 4294901760, %v20432_v59  ;;  %v28160_v55 = vld [vmem:[#allocation125_spill] sm:$0xff] }
 0x27b   : > { %28145 = vst [vmem:[#allocation21_spill] sm:$0xff] %v20699_v42  ;;  %4928 = vmatprep.mubr.f32.mxu0 %v4927_v49  ;;  %16049 = vmatpush3.bf16.msra.mxu0 %v16048_v7  ;;  %v20711_v44 = vsub.f32 %v20398_v29, %v28148_v21  ;;  %v20716_v54 = vsub.f32 %v20400_v23, %v28150_v3  ;;  %v28152_v49 = vand.u32 4294901760, %v20428_v56  ;;  %v28154_v7 = vand.u32 4294901760, %v20430_v15 }
 0x27c   : > { %28147 = vst [vmem:[#allocation98_spill] sm:$0xff] %v20704_v48  ;;  %16051 = vmatprep.subr.bf16.mxu0 %v16050_v37  ;;  %v16056_v36 = vpack.c.bf16 %v20704_v48, %v20699_v42  ;;  %v28158_v53 = vand.u32 4294901760, %v20434_v43  ;;  %v28161_v37 = vld [vmem:[#allocation80_spill] sm:$0xff]  ;;  %v28163_v26 = vand.u32 4294901760, %v28025_v5  ;;  %v28166_v3 = vand.u32 4294901760, %v20462_v27 }
 0x27d   : > { %28149 = vst [vmem:[#allocation65_spill] sm:$0xff] %v20711_v44  ;;  %28151 = vst [vmem:[#allocation86_spill] sm:$0xff] %v20716_v54  ;;  %15789 = vmatpush3.bf16.msra.mxu1 %v28076_v47  ;;  %v20725_v29 = vsub.f32 %v20428_v56, %v28152_v49  ;;  %v20730_v23 = vsub.f32 %v20430_v15, %v28154_v7  ;;  %v20738_v47 = vsub.f32 %v20432_v59, %v28156_v45 }
 0x27e   : > { %4934 = vmatmul.mubr.f32.gmra.mrb[32].mxu0 %v4933_v1  ;;  %v20743_v56 = vsub.f32 %v20434_v43, %v28158_v53  ;;  %15823 = vmatprep.subr.bf16.mxu1 %v28160_v55  ;;  %v16058_v15 = vpack.c.bf16 %v20716_v54, %v20711_v44  ;;  %v28162_v59 = vand.u32 4294901760, %v28024_v2  ;;  %v4200_v43 = vsub.f32 %v28025_v5, %v28163_v26 }
 0x27f   : > { %28153 = vst [vmem:[#allocation66_spill] sm:$0xff] %v20725_v29  ;;  %28155 = vst [vmem:[#allocation74_spill] sm:$0xff] %v20730_v23  ;;  %16053 = vmatpush3.bf16.msra.mxu0 %v16052_v22  ;;  %5308 = vmatprep.mubr.f32.mxu0 %v20345_v35  ;;  %v28164_v22 = vand.u32 4294901760, %v20460_v8  ;;  %v28169_v1 = vand.u32 4294901760, %v20466_v9  ;;  %v28173_v49 = vand.u32 4294901760, %v20501_v38  ;;  %v28205_v35 = vld [vmem:[#allocation119_spill] sm:$0xff] }
 0x280   : > { %28157 = vst [vmem:[#allocation75_spill] sm:$0xff] %v20738_v47  ;;  %28159 = vst [vmem:[#allocation79_spill] sm:$0xff] %v20743_v56  ;;  %16055 = vmatprep.subr.bf16.mxu0 %v16054_v63  ;;  %3882 = vmatmul.mubr.f32.vlgmr.msra.gmra.mrb[32].mxu1 %v28026_v50  ;;  %v4193_v20 = vsub.f32 %v28024_v2, %v28162_v59  ;;  %v20765_v50 = vsub.f32 %v20462_v27, %v28166_v3  ;;  %v28171_v63 = vand.u32 4294901760, %v20468_v34  ;;  %v28181_v59 = vld [vmem:[#allocation63_spill] sm:$0xff] }
 0x281   : > { %3887 = vmatprep.mubr.f32.mxu1 %v28027_v57  ;;  %15825 = vmatpush3.bf16.msra.mxu1 %v28161_v37  ;;  %v20760_v21 = vsub.f32 %v20460_v8, %v28164_v22  ;;  %v28168_v57 = vld [vmem:[#allocation127_spill] sm:$0xff]  ;;  %v16060_v2 = vpack.c.bf16 %v20730_v23, %v20725_v29  ;;  %v20773_v5 = vsub.f32 %v20466_v9, %v28169_v1  ;;  %v28177_v9 = vand.u32 4294901760, %v20507_v40  ;;  %v28183_v22 = vld [vmem:[#allocation130_spill] sm:$0xff] }
 0x282   : > { %28167 = vst [vmem:[#allocation89_spill] sm:$0xff] %v20765_v50  ;;  %15827 = vmatprep.subr.bf16.mxu1 %v28168_v57  ;;  %v20778_v8 = vsub.f32 %v20468_v34, %v28171_v63  ;;  %v16062_v27 = vpack.c.bf16 %v20743_v56, %v20738_v47  ;;  %v20785_v7 = vsub.f32 %v20501_v38, %v28173_v49  ;;  %v28179_v34 = vld [vmem:[#allocation128_spill] sm:$0xff]  ;;  %v4194_v55 = vand.u32 4294901760, %v4193_v20  ;;  %v28186_v20 = vld [vmem:[#allocation115_spill] sm:$0xff] }
 0x283   : > { %28165 = vst [vmem:[#allocation88_spill] sm:$0xff] %v20760_v21  ;;  %16057 = vmatpush3.bf16.msra.mxu0 %v16056_v36  ;;  %28170 = vst [vmem:[#allocation92_spill] sm:$0xff] %v20773_v5  ;;  %v28175_v36 = vand.u32 4294901760, %v20503_v61  ;;  %v20795_v53 = vsub.f32 %v20507_v40, %v28177_v9  ;;  %v28180_v38 = vand.u32 4294901760, %v27952_v30  ;;  %v28184_v40 = vld [vmem:[#allocation114_spill] sm:$0xff]  ;;  %v28188_v63 = vld [vmem:[#allocation15_spill] sm:$0xff] }
 0x284   : > { %28172 = vst [vmem:[#allocation95_spill] sm:$0xff] %v20778_v8  ;;  %16059 = vmatprep.subr.bf16.mxu0 %v16058_v15  ;;  %28174 = vst [vmem:[#allocation96_spill] sm:$0xff] %v20785_v7  ;;  %3889 = vmatmul.mubr.f32.gmra.mrb[34].mxu1 %v28037_v4  ;;  %v4201_v15 = vand.u32 4294901760, %v4200_v43  ;;  %v16064_v4 = vpack.c.bf16 %v20765_v50, %v20760_v21  ;;  %v28185_v3 = vand.u32 4294901760, %v28184_v40  ;;  %v28187_v43 = vand.u32 4294901760, %v28186_v20 }
 0x285   : > { %v20790_v45 = vsub.f32 %v20503_v61, %v28175_v36  ;;  %28178 = vst [vmem:[#allocation101_spill] sm:$0xff] %v20795_v53  ;;  %15829 = vmatpush3.bf16.msra.mxu1 %v28179_v34  ;;  %4246 = vmatprep.mubr.f32.mxu1 %v28015_v52  ;;  %v4081_v37 = vsub.f32 %v27952_v30, %v28180_v38  ;;  %v28182_v61 = vand.u32 4294901760, %v28181_v59  ;;  %v28189_v30 = vand.u32 4294901760, %v28188_v63 }
 0x286   : > { %15831 = vmatprep.subr.bf16.mxu1 %v28183_v22  ;;  %v4207_v57 = vsub.f32 %v28184_v40, %v28185_v3  ;;  %v4214_v1 = vsub.f32 %v28186_v20, %v28187_v43  ;;  %v28193_v9 = vand.u32 4294901760, %v20543_v41  ;;  %v16066_v38 = vpack.c.bf16 %v20778_v8, %v20773_v5 }
 0x287   : > { %28176 = vst [vmem:[#allocation100_spill] sm:$0xff] %v20790_v45  ;;  %v4088_v26 = vsub.f32 %v28181_v59, %v28182_v61  ;;  %16061 = vmatpush3.bf16.msra.mxu0 %v16060_v2  ;;  %v20818_v49 = vsub.f32 %v28188_v63, %v28189_v30  ;;  %v28191_v2 = vand.u32 4294901760, %v20541_v13  ;;  %v28195_v59 = vand.u32 4294901760, %v20547_v58  ;;  %v28203_v63 = vld [vmem:[#allocation133_spill] sm:$0xff] }
 0x288   : > { %v20828_v34 = vsub.f32 %v20543_v41, %v28193_v9  ;;  %16063 = vmatprep.subr.bf16.mxu0 %v16062_v27  ;;  %v28197_v22 = vand.u32 4294901760, %v20549_v60  ;;  %v28201_v41 = vld [vmem:[#allocation117_spill] sm:$0xff]  ;;  %v16068_v30 = vpack.c.bf16 %v20790_v45, %v20785_v7  ;;  %v28206_v10 = vand.u32 4294901760, %v28205_v35 }
 0x289   : > { %28190 = vst [vmem:[#allocation104_spill] sm:$0xff] %v20818_v49  ;;  %v20823_v36 = vsub.f32 %v20541_v13, %v28191_v2  ;;  %v20835_v61 = vsub.f32 %v20547_v58, %v28195_v59  ;;  %v28199_v13 = vld [vmem:[#allocation116_spill] sm:$0xff]  ;;  %v28202_v43 = vand.u32 4294901760, %v28201_v41  ;;  %15833 = vmatpush3.bf16.msra.mxu1 %v28203_v63  ;;  %v15838_v58 = vpack.c.bf16 %v4201_v15, %v4194_v55  ;;  %v28204_v59 = vld [vmem:[#allocation49_spill] sm:$0xff]  ;;  %v12762_v55 = vpop.f32.mrb[6].mxu0 }
 0x28a   : > { %28194 = vst [vmem:[#allocation99_spill] sm:$0xff] %v20828_v34  ;;  %v20840_v40 = vsub.f32 %v20549_v60, %v28197_v22  ;;  %v28200_v3 = vand.u32 4294901760, %v28199_v13  ;;  %v4082_v2 = vand.u32 4294901760, %v4081_v37  ;;  %v4089_v9 = vand.u32 4294901760, %v4088_v26  ;;  %15835 = vmatprep.subr.bf16.mxu1 %v28204_v59 }
 0x28b   : > { %28192 = vst [vmem:[#allocation97_spill] sm:$0xff] %v20823_v36  ;;  %28196 = vst [vmem:[#allocation102_spill] sm:$0xff] %v20835_v61  ;;  %v4102_v27 = vsub.f32 %v28201_v41, %v28202_v43  ;;  %16065 = vmatpush3.bf16.msra.mxu0 %v16064_v4  ;;  %v4208_v60 = vand.u32 4294901760, %v4207_v57  ;;  %v4215_v22 = vand.u32 4294901760, %v4214_v1  ;;  %v28209_v43 = vand.u32 4294901760, %v20576_v11  ;;  %v28213_v57 = vld [vmem:[#allocation120_spill] sm:$0xff] }
 0x28c   : > { %28198 = vst [vmem:[#allocation125_spill] sm:$0xff] %v20840_v40  ;;  %v4095_v20 = vsub.f32 %v28199_v13, %v28200_v3  ;;  %v4221_v13 = vsub.f32 %v28205_v35, %v28206_v10  ;;  %v28207_v3 = vld [vmem:[#allocation51_spill] sm:$0xff]  ;;  %16067 = vmatprep.subr.bf16.mxu0 %v16066_v38  ;;  %v16070_v15 = vpack.c.bf16 %v20818_v49, %v20795_v53  ;;  %v28211_v37 = vand.u32 4294901760, %v20578_v31  ;;  %v12763_v35 = vpop.f32.mrb[7].mxu0 }
 0x28d   : > { %v28208_v52 = vand.u32 4294901760, %v28207_v3  ;;  %v20861_v63 = vsub.f32 %v20576_v11, %v28209_v43  ;;  %v4103_v4 = vand.u32 4294901760, %v4102_v27  ;;  %v20873_v59 = vadd.f32 %v12763_v35, %v12762_v55  ;;  %v28216_v11 = vld [vmem:[#allocation103_spill] sm:$0xff]  ;;  %v28217_v43 = vld [vmem:[#allocation26_spill] sm:$0xff]  ;;  %v12765_v55 = vpop.f32.mrb[8].mxu0 }
 0x28e   : > { %v20868_v26 = vsub.f32 %v20578_v31, %v28211_v37  ;;  %v4096_v10 = vand.u32 4294901760, %v4095_v20  ;;  %15837 = vmatpush3.bf16.msra.mxu1 %v28216_v11  ;;  %v15840_v38 = vpack.c.bf16 %v4089_v9, %v4082_v2  ;;  %v28218_v62 = vand.u32 4294901760, %v28217_v43  ;;  %v28219_v9 = vld [vmem:[#allocation32_spill] sm:$0xff] }
 0x28f   : > { %v4228_v41 = vsub.f32 %v28207_v3, %v28208_v52  ;;  %28210 = vst [vmem:[#allocation80_spill] sm:$0xff] %v20861_v63  ;;  %v28214_v52 = vand.u32 4294901760, %v28213_v57  ;;  %28215 = vst [vmem:[#allocation128_spill] sm:$0xff] %v20873_v59  ;;  %v16072_v3 = vpack.c.bf16 %v20828_v34, %v20823_v36  ;;  %16069 = vmatpush3.bf16.msra.mxu0 %v16068_v30  ;;  %15839 = vmatprep.subr.bf16.mxu1 %v15838_v58  ;;  %v28221_v59 = vld [vmem:[#allocation37_spill] sm:$0xff]  ;;  %v12766_v58 = vpop.f32.mrb[9].mxu0  ;;  %v28224_v2 = vld [vmem:[#allocation40_spill] sm:$0xff] }
 0x290   : > { %28212 = vst [vmem:[#allocation127_spill] sm:$0xff] %v20868_v26  ;;  %v4116_v31 = vsub.f32 %v28217_v43, %v28218_v62  ;;  %v15842_v20 = vpack.c.bf16 %v4215_v22, %v4208_v60  ;;  %v16074_v27 = vpack.c.bf16 %v20840_v40, %v20835_v61  ;;  %v4222_v37 = vand.u32 4294901760, %v4221_v13  ;;  %16071 = vmatprep.subr.bf16.mxu0 %v16070_v15 }
 0x291   : > { %v4109_v1 = vsub.f32 %v28213_v57, %v28214_v52  ;;  %v4229_v57 = vand.u32 4294901760, %v4228_v41  ;;  %v28220_v52 = vand.u32 4294901760, %v28219_v9  ;;  %v28222_v62 = vand.u32 4294901760, %v28221_v59 }
 0x292   : > { %v15844_v60 = vpack.c.bf16 %v4103_v4, %v4096_v10  ;;  %v16076_v22 = vpack.c.bf16 %v20868_v26, %v20861_v63  ;;  %v20894_v15 = vadd.f32 %v12766_v58, %v12765_v55  ;;  %15841 = vmatpush3.bf16.msra.mxu1 %v15840_v38  ;;  %v4117_v43 = vand.u32 4294901760, %v4116_v31 }
 0x293   : > { %v4235_v11 = vsub.f32 %v28219_v9, %v28220_v52  ;;  %v4242_v30 = vsub.f32 %v28221_v59, %v28222_v62  ;;  %v4110_v13 = vand.u32 4294901760, %v4109_v1  ;;  %v28225_v35 = vand.u32 4294901760, %v28224_v2  ;;  %v28226_v52 = vld [vmem:[#allocation105_spill] sm:$0xff]  ;;  %16073 = vmatpush3.bf16.msra.mxu0 %v16072_v3  ;;  %15843 = vmatprep.subr.bf16.mxu1 %v15842_v20  ;;  %v12572_v62 = vpop.f32.mrb[8].mxu1 }
 0x294   : > { %28223 = vst [vmem:[#allocation63_spill] sm:$0xff] %v20894_v15  ;;  %v28227_v17 = vand.u32 4294901760, %v28226_v52  ;;  %v15846_v10 = vpack.c.bf16 %v4229_v57, %v4222_v37  ;;  %v26824_v4 = vand.u32 4294901760, %v20634_v19  ;;  %v26823_v1 = vand.u32 4294901760, %v20647_v14  ;;  %16075 = vmatprep.subr.bf16.mxu0 %v16074_v27  ;;  %v12573_v41 = vpop.f32.mrb[9].mxu1 }
 0x295   : > { %v4123_v9 = vsub.f32 %v28224_v2, %v28225_v35  ;;  %v26818_v55 = vand.u32 4294901760, %v20652_v33  ;;  %v28228_v38 = vand.u32 4294901760, %v20602_v12  ;;  %v28229_v31 = vand.u32 4294901760, %v20607_v25 }
 0x296   : > { %v4130_v59 = vsub.f32 %v28226_v52, %v28227_v17  ;;  %v4236_v2 = vand.u32 4294901760, %v4235_v11  ;;  %v4243_v58 = vand.u32 4294901760, %v4242_v30  ;;  %v12574_v17 = vadd.f32 %v12573_v41, %v12572_v62  ;;  %15845 = vmatpush3.bf16.msra.mxu1 %v15844_v60 }
 0x297   : > { %v16110_v35 = vpack.c.bf16 %v28229_v31, %v28228_v38  ;;  %v15848_v3 = vpack.c.bf16 %v4117_v43, %v4110_v13  ;;  %v4124_v20 = vand.u32 4294901760, %v4123_v9  ;;  %16077 = vmatpush3.bf16.msra.mxu0 %v16076_v22  ;;  %15847 = vmatprep.subr.bf16.mxu1 %v15846_v10  ;;  %v28230_v57 = vand.u32 4294901760, %v20629_v6  ;;  %v12575_v13 = vpop.f32.mrb[10].mxu1 }
 0x298   : > { %v4131_v37 = vand.u32 4294901760, %v4130_v59  ;;  %v16114_v52 = vpack.c.bf16 %v26818_v55, %v26823_v1  ;;  %v26817_v11 = vand.u32 4294901760, %v20667_v18  ;;  %v26816_v30 = vand.u32 4294901760, %v20672_v46  ;;  %v12576_v9 = vpop.f32.mrb[11].mxu1  ;;  %v28244_v55 = vld [vmem:[#allocation38_spill] sm:$0xff] }
 0x299   : > { %v16112_v27 = vpack.c.bf16 %v26824_v4, %v28230_v57  ;;  %v20920_v60 = vadd.f32 %v12574_v17, %v20661_v28  ;;  %16111 = vmatprep.subr.bf16.mxu0 %v16110_v35  ;;  %v15850_v22 = vpack.c.bf16 %v4243_v58, %v4236_v2  ;;  %v26815_v41 = vand.u32 4294901760, %v20681_v16  ;;  %v28231_v17 = vld [vmem:[#allocation67_spill] sm:$0xff]  ;;  %v21005_v4 = vld [vmem:[#allocation2 + $0x480] sm:$0xff] }
 0x29a   : > { %v26810_v43 = vand.u32 4294901760, %v20686_v0  ;;  %v12577_v59 = vadd.f32 %v12576_v9, %v12575_v13  ;;  %5311 = vmatmul.mubr.f32.vlgmr.msra.gmra.mrb[34].mxu0 %v20555_v24  ;;  %15849 = vmatpush3.bf16.msra.mxu1 %v15848_v3  ;;  %v15852_v10 = vpack.c.bf16 %v4131_v37, %v4124_v20  ;;  %v16116_v28 = vpack.c.bf16 %v26816_v30, %v26817_v11  ;;  %v28232_v37 = vld [vmem:[#allocation27_spill] sm:$0xff]  ;;  %v28233_v13 = vld [vmem:[#allocation124_spill] sm:$0xff] }
 0x29b   : > { %5317 = vmatprep.mubr.f32.mxu0 %v20583_v39  ;;  %16113 = vmatpush3.bf16.msra.mxu0 %v16112_v27  ;;  %v26809_v62 = vand.u32 4294901760, %v20699_v42  ;;  %v26808_v38 = vand.u32 4294901760, %v20704_v48  ;;  %v26807_v2 = vand.u32 4294901760, %v20711_v44  ;;  %v26806_v58 = vand.u32 4294901760, %v20716_v54  ;;  %v28235_v9 = vld [vmem:[#allocation28_spill] sm:$0xff]  ;;  %v28243_v30 = vld [vmem:[#allocation55_spill] sm:$0xff] }
 0x29c   : > { %v20933_v31 = vadd.f32 %v12577_v59, %v20693_v51  ;;  %15851 = vmatprep.subr.bf16.mxu1 %v15850_v22  ;;  %16115 = vmatprep.subr.bf16.mxu0 %v16114_v52  ;;  %v16118_v35 = vpack.c.bf16 %v26810_v43, %v26815_v41  ;;  %v26812_v3 = vand.u32 4294901760, %v20725_v29  ;;  %v26811_v20 = vand.u32 4294901760, %v20730_v23  ;;  %v28234_v22 = vld [vmem:[#allocation126_spill] sm:$0xff]  ;;  %v28239_v43 = vld [vmem:[#allocation35_spill] sm:$0xff]  ;;  %v21205_v48 = vld [vmem:[#allocation2 + $0x4e0] sm:$0xff] }
 0x29d   : > { %v16120_v51 = vpack.c.bf16 %v26808_v38, %v26809_v62  ;;  %v16122_v57 = vpack.c.bf16 %v26806_v58, %v26807_v2  ;;  %v26814_v27 = vand.u32 4294901760, %v20738_v47  ;;  %v26813_v52 = vand.u32 4294901760, %v20743_v56  ;;  %v28236_v59 = vld [vmem:[#allocation30_spill] sm:$0xff]  ;;  %v28237_v38 = vld [vmem:[#allocation129_spill] sm:$0xff]  ;;  %v28277_v56 = vld [vmem:[#allocation20_spill] sm:$0xff]  ;;  %28310 = vst [vmem:[#allocation105_spill] sm:$0xff] %v21205_v48 }
 0x29e   : > { %5320 = vmatmul.mubr.f32.gmra.mrb[36].mxu0 %v20617_v32  ;;  %15853 = vmatpush3.bf16.msra.mxu1 %v15852_v10  ;;  %v16124_v10 = vpack.c.bf16 %v26811_v20, %v26812_v3  ;;  %v26822_v2 = vand.u32 4294901760, %v20773_v5  ;;  %v28238_v62 = vld [vmem:[#allocation33_spill] sm:$0xff]  ;;  %v28240_v20 = vand.u32 4294901760, %v28239_v43  ;;  %v28241_v3 = vld [vmem:[#allocation36_spill] sm:$0xff]  ;;  %v26829_v43 = vand.u32 4294901760, %v20795_v53  ;;  %v28281_v23 = vld [vmem:[#allocation131_spill] sm:$0xff] }
 0x29f   : > { %16117 = vmatpush3.bf16.msra.mxu0 %v16116_v28  ;;  %5605 = vmatprep.mubr.f32.mxu0 %v28231_v17  ;;  %v26820_v28 = vand.u32 4294901760, %v20760_v21  ;;  %v16126_v58 = vpack.c.bf16 %v26813_v52, %v26814_v27  ;;  %v26827_v52 = vand.u32 4294901760, %v20785_v7  ;;  %v26826_v27 = vand.u32 4294901760, %v20790_v45  ;;  %v21007_v32 = vld [vmem:[#allocation2 + $0x488] sm:$0xff]  ;;  %v21097_v21 = vld [vmem:[#allocation2 + $0x4b8] sm:$0xff]  ;;  %v21199_v42 = vld [vmem:[#allocation2 + $0x450] sm:$0xff] }
 0x2a0   : > { %15887 = vmatprep.subr.bf16.mxu1 %v28232_v37  ;;  %16119 = vmatprep.subr.bf16.mxu0 %v16118_v35  ;;  %v26819_v35 = vand.u32 4294901760, %v20765_v50  ;;  %v28252_v24 = vand.u32 4294901760, %v20835_v61  ;;  %v28253_v15 = vand.u32 4294901760, %v20840_v40  ;;  %v28275_v50 = vld [vmem:[#allocation77_spill] sm:$0xff] }
 0x2a1   : > { %4248 = vmatmul.mubr.f32.vlgmr.msra.gmra.mrb[36].mxu1 %v28233_v13  ;;  %v12838_v1 = vpop.f32.mrb[10].mxu0  ;;  %v28286_v13 = vld [vmem:[#allocation69_spill] sm:$0xff] }
 0x2a2   : > { %4253 = vmatprep.mubr.f32.mxu1 %v28234_v22  ;;  %15889 = vmatpush3.bf16.msra.mxu1 %v28235_v9 }
 0x2a3   : > { %16121 = vmatpush3.bf16.msra.mxu0 %v16120_v51  ;;  %15891 = vmatprep.subr.bf16.mxu1 %v28236_v59  ;;  %v26821_v51 = vand.u32 4294901760, %v20778_v8 }
 0x2a4   : > { %16123 = vmatprep.subr.bf16.mxu0 %v16122_v57  ;;  %v16128_v57 = vpack.c.bf16 %v26819_v35, %v26820_v28  ;;  %v28245_v35 = vld [vmem:[#allocation41_spill] sm:$0xff]  ;;  %v28247_v28 = vld [vmem:[#allocation76_spill] sm:$0xff] }
 0x2a5   : > { %4255 = vmatmul.mubr.f32.gmra.mrb[38].mxu1 %v28237_v38  ;;  %v16130_v41 = vpack.c.bf16 %v26821_v51, %v26822_v2  ;;  %v28249_v51 = vld [vmem:[#allocation22_spill] sm:$0xff]  ;;  %v28255_v2 = vld [vmem:[#allocation25_spill] sm:$0xff] }
 0x2a6   : > { %15893 = vmatpush3.bf16.msra.mxu1 %v28238_v62  ;;  %4506 = vmatprep.mubr.f32.mxu1 %v28240_v20  ;;  %v26828_v20 = vand.u32 4294901760, %v20818_v49  ;;  %v16138_v49 = vpack.c.bf16 %v28253_v15, %v28252_v24  ;;  %v28257_v15 = vld [vmem:[#allocation47_spill] sm:$0xff] }
 0x2a7   : > { %16125 = vmatpush3.bf16.msra.mxu0 %v16124_v10  ;;  %15895 = vmatprep.subr.bf16.mxu1 %v28241_v3  ;;  %v28242_v10 = vld [vmem:[#allocation81_spill] sm:$0xff] }
 0x2a8   : > { %16127 = vmatprep.subr.bf16.mxu0 %v16126_v58  ;;  %v1770_v11 = vmul.f32 %v28243_v30, %v28242_v10  ;;  %v16132_v58 = vpack.c.bf16 %v26826_v27, %v26827_v52  ;;  %v16134_v10 = vpack.c.bf16 %v26828_v20, %v26829_v43  ;;  %v12839_v52 = vpop.f32.mrb[11].mxu0  ;;  %v28250_v20 = vand.u32 4294901760, %v20823_v36  ;;  %v21061_v36 = vld [vmem:[#allocation2 + $0x4a0] sm:$0xff] }
 0x2a9   : > { %v28251_v43 = vand.u32 4294901760, %v20828_v34  ;;  %v12841_v34 = vpop.f32.mrb[12].mxu0 }
 0x2aa   : > { %15897 = vmatpush3.bf16.msra.mxu1 %v28244_v55  ;;  %v21009_v27 = vand.u32 4294901760, %v1770_v11  ;;  %v12842_v39 = vpop.f32.mrb[13].mxu0  ;;  %v12610_v53 = vpop.f32.mrb[12].mxu1 }
 0x2ab   : > { %16129 = vmatpush3.bf16.msra.mxu0 %v16128_v57  ;;  %15899 = vmatprep.subr.bf16.mxu1 %v28245_v35  ;;  %v16136_v57 = vpack.c.bf16 %v28251_v43, %v28250_v20  ;;  %v21031_v43 = vld [vmem:[#allocation2 + $0x490] sm:$0xff]  ;;  %v21033_v20 = vld [vmem:[#allocation2 + $0x498] sm:$0xff]  ;;  %v21039_v24 = vadd.f32 %v12842_v39, %v12841_v34 }
 0x2ac   : > { %16131 = vmatprep.subr.bf16.mxu0 %v16130_v41  ;;  %28246 = vst [vmem:[#allocation130_spill] sm:$0xff] %v21009_v27  ;;  %v21012_v41 = vadd.f32 %v12839_v52, %v12838_v1  ;;  %v28258_v52 = vand.u32 4294901760, %v20861_v63  ;;  %v28259_v1 = vand.u32 4294901760, %v20868_v26  ;;  %v21058_v26 = vld [vmem:[#allocation2 + $0x418] sm:$0xff]  ;;  %v28263_v63 = vld [vmem:[#allocation50_spill] sm:$0xff] }
 0x2ad   : > { %28256 = vst [vmem:[#allocation15_spill] sm:$0xff] %v21039_v24  ;;  %v21056_v24 = vld [vmem:[#allocation2 + $0x410] sm:$0xff] }
 0x2ae   : > { %15901 = vmatpush3.bf16.msra.mxu1 %v28247_v28  ;;  %28248 = vst [vmem:[#allocation114_spill] sm:$0xff] %v21012_v41  ;;  %v21029_v41 = vld [vmem:[#allocation2 + $0x408] sm:$0xff]  ;;  %v16140_v40 = vpack.c.bf16 %v28259_v1, %v28258_v52  ;;  %v12611_v1 = vpop.f32.mrb[13].mxu1  ;;  %v28265_v34 = vld [vmem:[#allocation118_spill] sm:$0xff]  ;;  %v28278_v47 = vand.u32 4294901760, %v21056_v24 }
 0x2af   : > { %16133 = vmatpush3.bf16.msra.mxu0 %v16132_v58  ;;  %15903 = vmatprep.subr.bf16.mxu1 %v28249_v51  ;;  %v21027_v58 = vld [vmem:[#allocation2 + $0x400] sm:$0xff]  ;;  %v12612_v61 = vadd.f32 %v12611_v1, %v12610_v53  ;;  %v28267_v45 = vand.u32 4294901760, %v21029_v41  ;;  %v12613_v53 = vpop.f32.mrb[14].mxu1  ;;  %v28270_v1 = vand.u32 4294901760, %v21033_v20  ;;  %v21090_v52 = vld [vmem:[#allocation2 + $0x428] sm:$0xff] }
 0x2b0   : > { %16135 = vmatprep.subr.bf16.mxu0 %v16134_v10  ;;  %v21036_v10 = vsub.f32 %v1770_v11, %v21009_v27  ;;  %v28260_v11 = vand.u32 4294901760, %v21005_v4  ;;  %v28261_v27 = vand.u32 4294901760, %v21007_v32  ;;  %v12614_v8 = vpop.f32.mrb[15].mxu1 }
 0x2b1   : > { %v21077_v5 = vadd.f32 %v12612_v61, %v20920_v60  ;;  %v12615_v17 = vadd.f32 %v12614_v8, %v12613_v53  ;;  %v21127_v8 = vld [vmem:[#allocation2 + $0x430] sm:$0xff]  ;;  %v21129_v53 = vld [vmem:[#allocation2 + $0x438] sm:$0xff] }
 0x2b2   : > { %28254 = vst [vmem:[#allocation115_spill] sm:$0xff] %v21036_v10  ;;  %15905 = vmatpush3.bf16.msra.mxu1 %v28255_v2  ;;  %v21052_v39 = vpack.c.bf16 %v28261_v27, %v28260_v11  ;;  %v28264_v27 = vld [vmem:[#allocation72_spill] sm:$0xff]  ;;  %v28272_v61 = vand.u32 4294901760, %v21036_v10 }
 0x2b3   : > { %16137 = vmatpush3.bf16.msra.mxu0 %v16136_v57  ;;  %15907 = vmatprep.subr.bf16.mxu1 %v28257_v15  ;;  %v1767_v11 = vrot.slane %v28264_v27, 1  ;;  %v28266_v57 = vand.u32 4294901760, %v21027_v58 }
 0x2b4   : > { %16139 = vmatprep.subr.bf16.mxu0 %v16138_v49  ;;  %28262 = vst [vmem:[#allocation116_spill] sm:$0xff] %v21052_v39  ;;  %v21063_v49 = vld [vmem:[#allocation2 + $0x4a8] sm:$0xff]  ;;  %v5829_v60 = vsub.f32 %v21036_v10, %v28272_v61  ;;  %v28279_v61 = vand.u32 4294901760, %v21058_v26 }
 0x2b5   : > { %v21072_v7 = vpack.c.bf16 %v28267_v45, %v28266_v57  ;;  %v21088_v57 = vld [vmem:[#allocation2 + $0x420] sm:$0xff]  ;;  %v28276_v45 = vrot.slane %v28275_v50, 1 }
 0x2b6   : > { %15909 = vmatpush3.bf16.msra.mxu1 %v28263_v63  ;;  %v21110_v22 = vpack.c.bf16 %v28279_v61, %v28278_v47  ;;  %v1766_v61 = vmul.f32 %v28286_v13, %v28275_v50  ;;  %v28290_v47 = vand.u32 4294901760, %v21090_v52 }
 0x2b7   : > { %16141 = vmatpush3.bf16.msra.mxu0 %v16140_v40  ;;  %15911 = vmatprep.subr.bf16.mxu1 %v28265_v34  ;;  %28268 = vst [vmem:[#allocation117_spill] sm:$0xff] %v21072_v7  ;;  %v28269_v40 = vand.u32 4294901760, %v21031_v43  ;;  %v1768_v38 = vsel %vm1677_vm1, %v28276_v45, %v1767_v11  ;;  %v28282_v11 = vand.u32 4294901760, %v21061_v36  ;;  %v28283_v45 = vand.u32 4294901760, %v21063_v49 }
 0x2b8   : > { %16175 = vmatprep.subr.bf16.mxu0 %v21052_v39  ;;  %v21095_v39 = vld [vmem:[#allocation2 + $0x4b0] sm:$0xff]  ;;  %28280 = vst [vmem:[#allocation49_spill] sm:$0xff] %v21110_v22  ;;  %v1771_v54 = vmul.f32 %v28286_v13, %v1768_v38  ;;  %v28293_v13 = vand.u32 4294901760, %v21097_v21  ;;  %v21178_v50 = vand.u32 4294901760, %v1766_v61 }
 0x2b9   : > { %v21084_v27 = vpack.c.bf16 %v28270_v1, %v28269_v40  ;;  %v28273_v40 = vld [vmem:[#allocation17_spill] sm:$0xff]  ;;  %v28274_v1 = vld [vmem:[#allocation123_spill] sm:$0xff] }
 0x2ba   : > { %5607 = vmatmul.mubr.f32.vlgmr.msra.gmra.mrb[38].mxu0 %v28273_v40  ;;  %15913 = vmatpush3.bf16.msra.mxu1 %v28274_v1  ;;  %v21115_v40 = vadd.f32 %v12615_v17, %v20933_v31  ;;  %v5830_v31 = vand.u32 4294901760, %v5829_v60  ;;  %v21131_v17 = vld [vmem:[#allocation2 + $0x4c0] sm:$0xff]  ;;  %v28289_v60 = vand.u32 4294901760, %v21088_v57  ;;  %v21173_v10 = vand.u32 4294901760, %v1771_v54  ;;  %28301 = vst [vmem:[#allocation32_spill] sm:$0xff] %v21178_v50 }
 0x2bb   : > { %28271 = vst [vmem:[#allocation133_spill] sm:$0xff] %v21084_v27  ;;  %5612 = vmatprep.mubr.f32.mxu0 %v28277_v56  ;;  %16177 = vmatpush3.bf16.msra.mxu0 %v21072_v7  ;;  %v21123_v7 = vpack.c.bf16 %v28283_v45, %v28282_v11  ;;  %v21133_v56 = vld [vmem:[#allocation2 + $0x4c8] sm:$0xff]  ;;  %v28287_v11 = vld [vmem:[#allocation18_spill] sm:$0xff]  ;;  %v28288_v45 = vld [vmem:[#allocation48_spill] sm:$0xff] }
 0x2bc   : > { %15915 = vmatprep.subr.bf16.mxu1 %v28281_v23  ;;  %16179 = vmatprep.subr.bf16.mxu0 %v21084_v27  ;;  %v28285_v27 = vld [vmem:[#allocation70_spill] sm:$0xff]  ;;  %v21147_v44 = vpack.c.bf16 %v28290_v47, %v28289_v60  ;;  %v21161_v47 = vld [vmem:[#allocation2 + $0x440] sm:$0xff]  ;;  %v21163_v60 = vld [vmem:[#allocation2 + $0x448] sm:$0xff]  ;;  %28298 = vst [vmem:[#allocation26_spill] sm:$0xff] %v21173_v10 }
 0x2bd   : > { %28284 = vst [vmem:[#allocation119_spill] sm:$0xff] %v21123_v7  ;;  %v1765_v29 = vmul.f32 %v28243_v30, %v28285_v27  ;;  %v28292_v30 = vand.u32 4294901760, %v21095_v39  ;;  %v28295_v27 = vld [vmem:[#allocation31_spill] sm:$0xff] }
 0x2be   : > { %5614 = vmatmul.mubr.f32.gmra.mrb[40].mxu0 %v28287_v11  ;;  %15917 = vmatpush3.bf16.msra.mxu1 %v28288_v45  ;;  %28291 = vst [vmem:[#allocation51_spill] sm:$0xff] %v21147_v44  ;;  %v28296_v38 = vand.u32 4294901760, %v28295_v27  ;;  %v28302_v27 = vand.u32 4294901760, %v21127_v8 }
 0x2bf   : > { %16181 = vmatpush3.bf16.msra.mxu0 %v21110_v22  ;;  %5831 = vmatprep.mubr.f32.mxu0 %v5830_v31  ;;  %v21157_v22 = vpack.c.bf16 %v28293_v13, %v28292_v30  ;;  %v21171_v11 = vand.u32 4294901760, %v1765_v29  ;;  %v28299_v30 = vld [vmem:[#allocation132_spill] sm:$0xff] }
 0x2c0   : > { %15951 = vmatprep.subr.bf16.mxu1 %v28232_v37  ;;  %16183 = vmatprep.subr.bf16.mxu0 %v21123_v7  ;;  %v21167_v37 = vld [vmem:[#allocation2 + $0x4d0] sm:$0xff]  ;;  %v21169_v7 = vld [vmem:[#allocation2 + $0x4d8] sm:$0xff]  ;;  %v28300_v13 = vand.u32 4294901760, %v28299_v30  ;;  %v28306_v30 = vand.u32 4294901760, %v21133_v56 }
 0x2c1   : > { %28294 = vst [vmem:[#allocation120_spill] sm:$0xff] %v21157_v22  ;;  %4510 = vmatmul.mubr.f32.vlgmr.msra.gmra.mrb[40].mxu1 %v28296_v38  ;;  %28297 = vst [vmem:[#allocation103_spill] sm:$0xff] %v21171_v11  ;;  %v28303_v38 = vand.u32 4294901760, %v21129_v53  ;;  %v21210_v23 = vsub.f32 %v1765_v29, %v21171_v11  ;;  %v21270_v11 = vld [vmem:[#allocation2 + $0x470] sm:$0xff] }
 0x2c2   : > { %4517 = vmatprep.mubr.f32.mxu1 %v28300_v13  ;;  %15953 = vmatpush3.bf16.msra.mxu1 %v28235_v9  ;;  %v28305_v9 = vand.u32 4294901760, %v21131_v17 }
 0x2c3   : > { %16185 = vmatpush3.bf16.msra.mxu0 %v21147_v44  ;;  %15955 = vmatprep.subr.bf16.mxu1 %v28236_v59  ;;  %v21186_v31 = vpack.c.bf16 %v28303_v38, %v28302_v27  ;;  %v21201_v27 = vld [vmem:[#allocation2 + $0x458] sm:$0xff]  ;;  %v28308_v38 = vld [vmem:[#allocation73_spill] sm:$0xff]  ;;  %28312 = vst [vmem:[#allocation28_spill] sm:$0xff] %v21210_v23  ;;  %v21218_v44 = vsub.f32 %v1766_v61, %v21178_v50  ;;  %v28320_v61 = vand.u32 4294901760, %v21169_v7  ;;  %v21239_v50 = vld [vmem:[#allocation2 + $0x460] sm:$0xff] }
 0x2c4   : > { %16187 = vmatprep.subr.bf16.mxu0 %v21157_v22  ;;  %v21195_v13 = vpack.c.bf16 %v28306_v30, %v28305_v9  ;;  %v28309_v45 = vand.u32 4294901760, %v28308_v38  ;;  %v21207_v22 = vld [vmem:[#allocation2 + $0x4e8] sm:$0xff]  ;;  %v21213_v9 = vsub.f32 %v1771_v54, %v21173_v10  ;;  %v28317_v38 = vand.u32 4294901760, %v21163_v60  ;;  %v21245_v54 = vld [vmem:[#allocation2 + $0x4f8] sm:$0xff] }
 0x2c5   : > { %28304 = vst [vmem:[#allocation37_spill] sm:$0xff] %v21186_v31  ;;  %28311 = vst [vmem:[#allocation27_spill] sm:$0xff] %v21207_v22  ;;  %v28314_v30 = vld [vmem:[#allocation29_spill] sm:$0xff]  ;;  %v28328_v10 = vand.u32 4294901760, %v21210_v23 }
 0x2c6   : > { %28307 = vst [vmem:[#allocation40_spill] sm:$0xff] %v21195_v13  ;;  %4521 = vmatmul.mubr.f32.gmra.mrb[42].mxu1 %v28309_v45  ;;  %28313 = vst [vmem:[#allocation30_spill] sm:$0xff] %v21213_v9  ;;  %v28316_v45 = vand.u32 4294901760, %v21161_v47 }
 0x2c7   : > { %15957 = vmatpush3.bf16.msra.mxu1 %v28238_v62  ;;  %4798 = vmatprep.mubr.f32.mxu1 %v28314_v30  ;;  %28315 = vst [vmem:[#allocation33_spill] sm:$0xff] %v21218_v44  ;;  %v28319_v62 = vand.u32 4294901760, %v21167_v37  ;;  %v21277_v59 = vsub.f32 %v21210_v23, %v28328_v10 }
 0x2c8   : > { %16189 = vmatpush3.bf16.msra.mxu0 %v21186_v31  ;;  %15959 = vmatprep.subr.bf16.mxu1 %v28241_v3  ;;  %v21226_v29 = vpack.c.bf16 %v28317_v38, %v28316_v45  ;;  %v21241_v45 = vld [vmem:[#allocation2 + $0x468] sm:$0xff]  ;;  %v21243_v38 = vld [vmem:[#allocation2 + $0x4f0] sm:$0xff]  ;;  %v28323_v31 = vand.u32 4294901760, %v21201_v27 }
 0x2c9   : > { %16191 = vmatprep.subr.bf16.mxu0 %v21195_v13  ;;  %v21235_v30 = vpack.c.bf16 %v28320_v61, %v28319_v62  ;;  %v28322_v61 = vand.u32 4294901760, %v21199_v42  ;;  %v28326_v62 = vand.u32 4294901760, %v21207_v22 }
 0x2ca   : > { %28318 = vst [vmem:[#allocation35_spill] sm:$0xff] %v21226_v29 }
 0x2cb   : > { %28321 = vst [vmem:[#allocation36_spill] sm:$0xff] %v21235_v30  ;;  %15961 = vmatpush3.bf16.msra.mxu1 %v28244_v55  ;;  %v21257_v3 = vpack.c.bf16 %v28323_v31, %v28322_v61  ;;  %v28325_v55 = vand.u32 4294901760, %v21205_v48  ;;  %v21272_v31 = vld [vmem:[#allocation2 + $0x478] sm:$0xff]  ;;  %v12914_v61 = vpop.f32.mrb[14].mxu0  ;;  %v28332_v48 = vand.u32 4294901760, %v21027_v58 }
 0x2cc   : > { %16193 = vmatpush3.bf16.msra.mxu0 %v21226_v29  ;;  %15963 = vmatprep.subr.bf16.mxu1 %v28245_v35  ;;  %v28331_v29 = vand.u32 4294901760, %v21007_v32  ;;  %v12915_v23 = vpop.f32.mrb[15].mxu0 }
 0x2cd   : > { %28324 = vst [vmem:[#allocation81_spill] sm:$0xff] %v21257_v3  ;;  %16195 = vmatprep.subr.bf16.mxu0 %v21235_v30  ;;  %v21266_v13 = vpack.c.bf16 %v28326_v62, %v28325_v55  ;;  %v28329_v30 = vand.u32 4294901760, %v21213_v9  ;;  %v28330_v62 = vand.u32 4294901760, %v21005_v4  ;;  %v21297_v10 = vsub.f32 %v21027_v58, %v28332_v48 }
 0x2ce   : > { %v21292_v35 = vsub.f32 %v21007_v32, %v28331_v29  ;;  %v28335_v32 = vand.u32 4294901760, %v21239_v50  ;;  %v28336_v29 = vand.u32 4294901760, %v21241_v45  ;;  %v28347_v58 = vand.u32 4294901760, %v21063_v49 }
 0x2cf   : > { %28327 = vst [vmem:[#allocation38_spill] sm:$0xff] %v21266_v13  ;;  %v21282_v22 = vsub.f32 %v21213_v9, %v28329_v30  ;;  %v21287_v55 = vsub.f32 %v21005_v4, %v28330_v62  ;;  %15965 = vmatpush3.bf16.msra.mxu1 %v28247_v28  ;;  %v28333_v30 = vand.u32 4294901760, %v21218_v44  ;;  %v21305_v4 = vadd.f32 %v12915_v23, %v12914_v61 }
 0x2d0   : > { %16197 = vmatpush3.bf16.msra.mxu0 %v21257_v3  ;;  %15967 = vmatprep.subr.bf16.mxu1 %v28249_v51  ;;  %v21313_v48 = vpack.c.bf16 %v28336_v29, %v28335_v32  ;;  %v28338_v62 = vand.u32 4294901760, %v21029_v41  ;;  %v28339_v23 = vand.u32 4294901760, %v21031_v43  ;;  %v28340_v51 = vand.u32 4294901760, %v21033_v20 }
 0x2d1   : > { %v21303_v9 = vsub.f32 %v21218_v44, %v28333_v30  ;;  %28334 = vst [vmem:[#allocation41_spill] sm:$0xff] %v21305_v4  ;;  %16199 = vmatprep.subr.bf16.mxu0 %v21266_v13  ;;  %v28341_v32 = vand.u32 4294901760, %v21243_v38  ;;  %v28342_v29 = vand.u32 4294901760, %v21245_v54  ;;  %v28348_v13 = vand.u32 4294901760, %v21088_v57 }
 0x2d2   : > { %28337 = vst [vmem:[#allocation76_spill] sm:$0xff] %v21313_v48  ;;  %v21320_v30 = vsub.f32 %v21029_v41, %v28338_v62  ;;  %v21325_v61 = vsub.f32 %v21031_v43, %v28339_v23  ;;  %v21330_v3 = vsub.f32 %v21033_v20, %v28340_v51  ;;  %v28344_v41 = vand.u32 4294901760, %v21056_v24 }
 0x2d3   : > { %v21337_v28 = vpack.c.bf16 %v28342_v29, %v28341_v32  ;;  %v28345_v43 = vand.u32 4294901760, %v21058_v26  ;;  %v28346_v20 = vand.u32 4294901760, %v21061_v36  ;;  %v21357_v32 = vsub.f32 %v21063_v49, %v28347_v58  ;;  %v12917_v29 = vpop.f32.mrb[16].mxu0  ;;  %15969 = vmatpush3.bf16.msra.mxu1 %v28255_v2 }
 0x2d4   : > { %v21342_v62 = vsub.f32 %v21056_v24, %v28344_v41  ;;  %v21362_v24 = vsub.f32 %v21088_v57, %v28348_v13  ;;  %v28350_v41 = vand.u32 4294901760, %v21090_v52  ;;  %v12918_v58 = vpop.f32.mrb[17].mxu0  ;;  %v28356_v57 = vand.u32 4294901760, %v21127_v8  ;;  %16201 = vmatpush3.bf16.msra.mxu0 %v21313_v48  ;;  %15971 = vmatprep.subr.bf16.mxu1 %v28257_v15 }
 0x2d5   : > { %28343 = vst [vmem:[#allocation22_spill] sm:$0xff] %v21337_v28  ;;  %v21347_v23 = vsub.f32 %v21058_v26, %v28345_v43  ;;  %v21352_v51 = vsub.f32 %v21061_v36, %v28346_v20  ;;  %v28352_v43 = vand.u32 4294901760, %v21095_v39  ;;  %v28354_v20 = vand.u32 4294901760, %v21097_v21  ;;  %16203 = vmatprep.subr.bf16.mxu0 %v21337_v28 }
 0x2d6   : > { %28349 = vst [vmem:[#allocation25_spill] sm:$0xff] %v21362_v24  ;;  %v21367_v26 = vsub.f32 %v21090_v52, %v28350_v41  ;;  %v21383_v13 = vsub.f32 %v21127_v8, %v28356_v57  ;;  %v21385_v52 = vadd.f32 %v12918_v58, %v12917_v29  ;;  %v28360_v41 = vand.u32 4294901760, %v21272_v31  ;;  %v12648_v8 = vpop.f32.mrb[16].mxu1 }
 0x2d7   : > { %v21372_v36 = vsub.f32 %v21095_v39, %v28352_v43  ;;  %v21377_v49 = vsub.f32 %v21097_v21, %v28354_v20  ;;  %v28359_v39 = vand.u32 4294901760, %v21270_v11  ;;  %v5836_v43 = vand.u32 4294901760, %v21277_v59  ;;  %v12649_v28 = vpop.f32.mrb[17].mxu1  ;;  %15973 = vmatpush3.bf16.msra.mxu1 %v28263_v63 }
 0x2d8   : > { %28351 = vst [vmem:[#allocation47_spill] sm:$0xff] %v21367_v26  ;;  %28357 = vst [vmem:[#allocation123_spill] sm:$0xff] %v21383_v13  ;;  %v28362_v2 = vand.u32 4294901760, %v21129_v53  ;;  %v16238_v29 = vpack.c.bf16 %v21292_v35, %v21287_v55  ;;  %v28364_v15 = vand.u32 4294901760, %v20602_v12  ;;  %v28365_v57 = vand.u32 4294901760, %v20607_v25  ;;  %15975 = vmatprep.subr.bf16.mxu1 %v28265_v34 }
 0x2d9   : > { %28353 = vst [vmem:[#allocation50_spill] sm:$0xff] %v21372_v36  ;;  %28355 = vst [vmem:[#allocation118_spill] sm:$0xff] %v21377_v49  ;;  %v21393_v21 = vpack.c.bf16 %v28360_v41, %v28359_v39  ;;  %v28366_v59 = vand.u32 4294901760, %v21131_v17  ;;  %v28370_v48 = vand.u32 4294901760, %v20629_v6  ;;  %v16240_v63 = vpack.c.bf16 %v21320_v30, %v21297_v10 }
 0x2da   : > { %28358 = vst [vmem:[#allocation70_spill] sm:$0xff] %v21385_v52  ;;  %v21399_v20 = vsub.f32 %v21129_v53, %v28362_v2  ;;  %v5055_v58 = vsub.f32 %v20602_v12, %v28364_v15  ;;  %v5062_v39 = vsub.f32 %v20607_v25, %v28365_v57  ;;  %v28368_v53 = vand.u32 4294901760, %v21133_v56 }
 0x2db   : > { %28361 = vst [vmem:[#allocation31_spill] sm:$0xff] %v21393_v21  ;;  %v21413_v41 = vsub.f32 %v21131_v17, %v28366_v59  ;;  %v4943_v52 = vsub.f32 %v20629_v6, %v28370_v48  ;;  %v28371_v12 = vand.u32 4294901760, %v20634_v19  ;;  %v28372_v25 = vand.u32 4294901760, %v21161_v47  ;;  %16205 = vmatpush3.bf16.msra.mxu0 %v21393_v21  ;;  %15977 = vmatpush3.bf16.msra.mxu1 %v28274_v1 }
 0x2dc   : > { %28363 = vst [vmem:[#allocation132_spill] sm:$0xff] %v21399_v20  ;;  %v21418_v2 = vsub.f32 %v21133_v56, %v28368_v53  ;;  %v12650_v17 = vadd.f32 %v12649_v28, %v12648_v8  ;;  %v28374_v56 = vand.u32 4294901760, %v20647_v14  ;;  %v28375_v53 = vand.u32 4294901760, %v20652_v33  ;;  %v12651_v28 = vpop.f32.mrb[18].mxu1  ;;  %16239 = vmatprep.subr.bf16.mxu0 %v16238_v29 }
 0x2dd   : > { %28367 = vst [vmem:[#allocation73_spill] sm:$0xff] %v21413_v41  ;;  %v4950_v15 = vsub.f32 %v20634_v19, %v28371_v12  ;;  %v21429_v57 = vsub.f32 %v21161_v47, %v28372_v25  ;;  %v28376_v48 = vand.u32 4294901760, %v21163_v60  ;;  %v28378_v12 = vand.u32 4294901760, %v21167_v37 }
 0x2de   : > { %28369 = vst [vmem:[#allocation29_spill] sm:$0xff] %v21418_v2  ;;  %v5069_v59 = vsub.f32 %v20647_v14, %v28374_v56  ;;  %v5076_v6 = vsub.f32 %v20652_v33, %v28375_v53  ;;  %v5845_v14 = vand.u32 4294901760, %v21282_v22  ;;  %v2676_v33 = vadd.f32 %v12650_v17, %v21077_v5  ;;  %5837 = vmatmul.mubr.f32.vlgmr.msra.gmra.mrb[42].mxu0 %v5836_v43  ;;  %v28382_v17 = vld [vmem:[#allocation24_spill] sm:$0xff] }
 0x2df   : > { %28373 = vst [vmem:[#allocation134_spill] sm:$0xff] %v21429_v57  ;;  %v21441_v19 = vsub.f32 %v21163_v60, %v28376_v48  ;;  %v21446_v47 = vsub.f32 %v21167_v37, %v28378_v12  ;;  %v16242_v60 = vpack.c.bf16 %v21330_v3, %v21325_v61  ;;  %v5056_v8 = vand.u32 4294901760, %v5055_v58  ;;  %v12652_v37 = vpop.f32.mrb[19].mxu1  ;;  %16241 = vmatpush3.bf16.msra.mxu0 %v16240_v63 }
 0x2e0   : > { %v5063_v25 = vand.u32 4294901760, %v5062_v39  ;;  %v4944_v56 = vand.u32 4294901760, %v4943_v52  ;;  %v4951_v53 = vand.u32 4294901760, %v4950_v15  ;;  %v28380_v48 = vand.u32 4294901760, %v20667_v18  ;;  %5846 = vmatprep.mubr.f32.mxu0 %v5845_v14  ;;  %v28385_v15 = vld [vmem:[#allocation131_spill] sm:$0xff] }
 0x2e1   : > { %28377 = vst [vmem:[#allocation135_spill] sm:$0xff] %v21441_v19  ;;  %28379 = vst [vmem:[#allocation136_spill] sm:$0xff] %v21446_v47  ;;  %v28381_v22 = vand.u32 4294901760, %v20672_v46  ;;  %v12653_v21 = vadd.f32 %v12652_v37, %v12651_v28  ;;  %v5070_v5 = vand.u32 4294901760, %v5069_v59  ;;  %v5077_v29 = vand.u32 4294901760, %v5076_v6  ;;  %15979 = vmatprep.subr.bf16.mxu1 %v28385_v15  ;;  %16243 = vmatprep.subr.bf16.mxu0 %v16242_v60 }
 0x2e2   : > { %v4957_v34 = vsub.f32 %v20667_v18, %v28380_v48  ;;  %v21464_v58 = vadd.f32 %v28382_v17, %v2676_v33  ;;  %v16244_v52 = vpack.c.bf16 %v21347_v23, %v21342_v62  ;;  %v28383_v18 = vand.u32 4294901760, %v20681_v16 }
 0x2e3   : > { %v4964_v12 = vsub.f32 %v20672_v46, %v28381_v22  ;;  %v28384_v46 = vand.u32 4294901760, %v20686_v0  ;;  %v2687_v1 = vadd.f32 %v12653_v21, %v21115_v40  ;;  %v5851_v59 = vand.u32 4294901760, %v21303_v9  ;;  %v28390_v21 = vld [vmem:[#allocation48_spill] sm:$0xff] }
 0x2e4   : > { %v5083_v39 = vsub.f32 %v20681_v16, %v28383_v18  ;;  %v16014_v6 = vpack.c.bf16 %v5063_v25, %v5056_v8  ;;  %v16246_v14 = vpack.c.bf16 %v21357_v32, %v21352_v51  ;;  %v16016_v63 = vpack.c.bf16 %v4951_v53, %v4944_v56  ;;  %v28386_v16 = vld [vmem:[#allocation21_spill] sm:$0xff]  ;;  %15981 = vmatpush3.bf16.msra.mxu1 %v28390_v21  ;;  %v28391_v25 = vld [vmem:[#allocation64_spill] sm:$0xff]  ;;  %v28392_v56 = vld [vmem:[#allocation115_spill] sm:$0xff] }
 0x2e5   : > { %v5090_v43 = vsub.f32 %v20686_v0, %v28384_v46  ;;  %v16248_v33 = vpack.c.bf16 %v21367_v26, %v21362_v24  ;;  %v28387_v28 = vand.u32 4294901760, %v28386_v16  ;;  %v28388_v0 = vld [vmem:[#allocation98_spill] sm:$0xff]  ;;  %5852 = vmatmul.mubr.f32.gmra.mrb[44].mxu0 %v5851_v59  ;;  %v16018_v9 = vpack.c.bf16 %v5077_v29, %v5070_v5  ;;  %v28393_v18 = vld [vmem:[#allocation65_spill] sm:$0xff] }
 0x2e6   : > { %v28389_v48 = vand.u32 4294901760, %v28388_v0  ;;  %v4958_v60 = vand.u32 4294901760, %v4957_v34  ;;  %v4965_v8 = vand.u32 4294901760, %v4964_v12  ;;  %v21489_v22 = vadd.f32 %v28391_v25, %v2687_v1  ;;  %16245 = vmatpush3.bf16.msra.mxu0 %v16244_v52  ;;  %6226 = vmatprep.mubr.f32.mxu0 %v28392_v56 }
 0x2e7   : > { %v4971_v37 = vsub.f32 %v28386_v16, %v28387_v28  ;;  %v5084_v53 = vand.u32 4294901760, %v5083_v39  ;;  %v5091_v17 = vand.u32 4294901760, %v5090_v43  ;;  %v28394_v46 = vand.u32 4294901760, %v28393_v18  ;;  %v28395_v16 = vld [vmem:[#allocation86_spill] sm:$0xff]  ;;  %16015 = vmatprep.subr.bf16.mxu1 %v16014_v6  ;;  %16247 = vmatprep.subr.bf16.mxu0 %v16246_v14  ;;  %v28401_v39 = vld [vmem:[#allocation124_spill] sm:$0xff]  ;;  %v28407_v6 = vld [vmem:[#allocation75_spill] sm:$0xff] }
 0x2e8   : > { %v4978_v40 = vsub.f32 %v28388_v0, %v28389_v48  ;;  %v28396_v28 = vand.u32 4294901760, %v28395_v16  ;;  %v28397_v5 = vand.u32 4294901760, %v21169_v7  ;;  %v28399_v12 = vand.u32 4294901760, %v21199_v42  ;;  %4800 = vmatmul.mubr.f32.vlgmr.msra.gmra.mrb[44].mxu1 %v28401_v39  ;;  %v28402_v0 = vld [vmem:[#allocation66_spill] sm:$0xff] }
 0x2e9   : > { %v5097_v15 = vsub.f32 %v28393_v18, %v28394_v46  ;;  %v16250_v52 = vpack.c.bf16 %v21377_v49, %v21372_v36  ;;  %v4972_v43 = vand.u32 4294901760, %v4971_v37  ;;  %v28403_v48 = vand.u32 4294901760, %v28402_v0  ;;  %v28406_v46 = vld [vmem:[#allocation126_spill] sm:$0xff]  ;;  %16017 = vmatpush3.bf16.msra.mxu1 %v16016_v63 }
 0x2ea   : > { %v5104_v59 = vsub.f32 %v28395_v16, %v28396_v28  ;;  %v21501_v34 = vsub.f32 %v21169_v7, %v28397_v5  ;;  %v21506_v29 = vsub.f32 %v21199_v42, %v28399_v12  ;;  %v4979_v1 = vand.u32 4294901760, %v4978_v40  ;;  %v28404_v7 = vld [vmem:[#allocation74_spill] sm:$0xff]  ;;  %4805 = vmatprep.mubr.f32.mxu1 %v28406_v46  ;;  %v28409_v28 = vld [vmem:[#allocation79_spill] sm:$0xff]  ;;  %16249 = vmatpush3.bf16.msra.mxu0 %v16248_v33 }
 0x2eb   : > { %v4985_v21 = vsub.f32 %v28402_v0, %v28403_v48  ;;  %v28405_v25 = vand.u32 4294901760, %v28404_v7  ;;  %v16020_v42 = vpack.c.bf16 %v4965_v8, %v4958_v60  ;;  %v28408_v14 = vand.u32 4294901760, %v28407_v6  ;;  %16019 = vmatprep.subr.bf16.mxu1 %v16018_v9  ;;  %v28413_v60 = vld [vmem:[#allocation105_spill] sm:$0xff]  ;;  %16251 = vmatprep.subr.bf16.mxu0 %v16250_v52 }
 0x2ec   : > { %28398 = vst [vmem:[#allocation24_spill] sm:$0xff] %v21501_v34  ;;  %28400 = vst [vmem:[#allocation131_spill] sm:$0xff] %v21506_v29  ;;  %v28410_v5 = vand.u32 4294901760, %v28409_v28  ;;  %v16252_v40 = vpack.c.bf16 %v21399_v20, %v21383_v13  ;;  %v16022_v12 = vpack.c.bf16 %v5091_v17, %v5084_v53  ;;  %v5098_v39 = vand.u32 4294901760, %v5097_v15  ;;  %v28419_v53 = vld [vmem:[#allocation129_spill] sm:$0xff] }
 0x2ed   : > { %v4992_v18 = vsub.f32 %v28404_v7, %v28405_v25  ;;  %v5111_v16 = vsub.f32 %v28407_v6, %v28408_v14  ;;  %v5105_v0 = vand.u32 4294901760, %v5104_v59  ;;  %v28411_v48 = vand.u32 4294901760, %v21201_v27  ;;  %v28416_v25 = vld [vmem:[#allocation27_spill] sm:$0xff]  ;;  %4807 = vmatmul.mubr.f32.gmra.mrb[46].mxu1 %v28419_v53 }
 0x2ee   : > { %v5118_v37 = vsub.f32 %v28409_v28, %v28410_v5  ;;  %v28414_v8 = vand.u32 4294901760, %v28413_v60  ;;  %v28417_v46 = vand.u32 4294901760, %v28416_v25  ;;  %v16254_v9 = vpack.c.bf16 %v21418_v2, %v21413_v41  ;;  %16021 = vmatpush3.bf16.msra.mxu1 %v16020_v42  ;;  %v28420_v6 = vld [vmem:[#allocation67_spill] sm:$0xff]  ;;  %v28421_v5 = vld [vmem:[#allocation88_spill] sm:$0xff]  ;;  %16253 = vmatpush3.bf16.msra.mxu0 %v16252_v40 }
 0x2ef   : > { %v21529_v63 = vsub.f32 %v21201_v27, %v28411_v48  ;;  %v16024_v17 = vpack.c.bf16 %v4979_v1, %v4972_v43  ;;  %v16256_v27 = vpack.c.bf16 %v21441_v19, %v21429_v57  ;;  %v4986_v15 = vand.u32 4294901760, %v4985_v21  ;;  %5164 = vmatprep.mubr.f32.mxu1 %v28420_v6  ;;  %16023 = vmatprep.subr.bf16.mxu1 %v16022_v12  ;;  %v28425_v1 = vld [vmem:[#allocation92_spill] sm:$0xff] }
 0x2f0   : > { %v21534_v7 = vsub.f32 %v28413_v60, %v28414_v8  ;;  %v21539_v33 = vsub.f32 %v28416_v25, %v28417_v46  ;;  %v4993_v59 = vand.u32 4294901760, %v4992_v18  ;;  %v5112_v14 = vand.u32 4294901760, %v5111_v16  ;;  %v28423_v60 = vld [vmem:[#allocation89_spill] sm:$0xff]  ;;  %v28427_v18 = vld [vmem:[#allocation95_spill] sm:$0xff]  ;;  %16255 = vmatprep.subr.bf16.mxu0 %v16254_v9  ;;  %v28443_v6 = vld [vmem:[#allocation104_spill] sm:$0xff] }
 0x2f1   : > { %28412 = vst [vmem:[#allocation21_spill] sm:$0xff] %v21529_v63  ;;  %v5119_v28 = vand.u32 4294901760, %v5118_v37  ;;  %v28422_v48 = vand.u32 4294901760, %v28421_v5  ;;  %v28424_v8 = vand.u32 4294901760, %v28423_v60  ;;  %v16026_v43 = vpack.c.bf16 %v5105_v0, %v5098_v39 }
 0x2f2   : > { %28415 = vst [vmem:[#allocation98_spill] sm:$0xff] %v21534_v7  ;;  %28418 = vst [vmem:[#allocation48_spill] sm:$0xff] %v21539_v33  ;;  %v28426_v46 = vand.u32 4294901760, %v28425_v1  ;;  %v28428_v42 = vand.u32 4294901760, %v28427_v18  ;;  %v28429_v37 = vand.u32 4294901760, %v21239_v50  ;;  %v28433_v40 = vand.u32 4294901760, %v21243_v38  ;;  %16025 = vmatpush3.bf16.msra.mxu1 %v16024_v17  ;;  %16257 = vmatpush3.bf16.msra.mxu0 %v16256_v27 }
 0x2f3   : > { %v4999_v52 = vsub.f32 %v28421_v5, %v28422_v48  ;;  %v5006_v25 = vsub.f32 %v28423_v60, %v28424_v8  ;;  %v28431_v5 = vand.u32 4294901760, %v21241_v45  ;;  %v16258_v39 = vpack.c.bf16 %v21501_v34, %v21446_v47  ;;  %v28437_v8 = vld [vmem:[#allocation96_spill] sm:$0xff]  ;;  %16027 = vmatprep.subr.bf16.mxu1 %v16026_v43 }
 0x2f4   : > { %v5125_v21 = vsub.f32 %v28425_v1, %v28426_v46  ;;  %v5132_v16 = vsub.f32 %v28427_v18, %v28428_v42  ;;  %v21562_v53 = vsub.f32 %v21239_v50, %v28429_v37  ;;  %v21572_v12 = vsub.f32 %v21243_v38, %v28433_v40  ;;  %v28439_v46 = vld [vmem:[#allocation100_spill] sm:$0xff] }
 0x2f5   : > { %v21567_v48 = vsub.f32 %v21241_v45, %v28431_v5  ;;  %v28435_v0 = vand.u32 4294901760, %v21245_v54  ;;  %v16260_v50 = vpack.c.bf16 %v21529_v63, %v21506_v29  ;;  %v28438_v45 = vand.u32 4294901760, %v28437_v8  ;;  %16259 = vmatprep.subr.bf16.mxu0 %v16258_v39 }
 0x2f6   : > { %28430 = vst [vmem:[#allocation64_spill] sm:$0xff] %v21562_v53  ;;  %28434 = vst [vmem:[#allocation86_spill] sm:$0xff] %v21572_v12  ;;  %v28440_v18 = vand.u32 4294901760, %v28439_v46  ;;  %v16028_v9 = vpack.c.bf16 %v4993_v59, %v4986_v15  ;;  %v16030_v42 = vpack.c.bf16 %v5119_v28, %v5112_v14  ;;  %v5000_v37 = vand.u32 4294901760, %v4999_v52  ;;  %v12990_v14 = vpop.f32.mrb[18].mxu0 }
 0x2f7   : > { %28432 = vst [vmem:[#allocation65_spill] sm:$0xff] %v21567_v48  ;;  %v21579_v60 = vsub.f32 %v21245_v54, %v28435_v0  ;;  %v5013_v1 = vsub.f32 %v28437_v8, %v28438_v45  ;;  %v5007_v5 = vand.u32 4294901760, %v5006_v25  ;;  %v5126_v54 = vand.u32 4294901760, %v5125_v21  ;;  %v28441_v0 = vld [vmem:[#allocation101_spill] sm:$0xff]  ;;  %16261 = vmatpush3.bf16.msra.mxu0 %v16260_v50 }
 0x2f8   : > { %v5020_v38 = vsub.f32 %v28439_v46, %v28440_v18  ;;  %v5133_v40 = vand.u32 4294901760, %v5132_v16  ;;  %v28442_v56 = vand.u32 4294901760, %v28441_v0  ;;  %v28444_v63 = vand.u32 4294901760, %v28443_v6  ;;  %16029 = vmatpush3.bf16.msra.mxu1 %v16028_v9  ;;  %v28449_v25 = vld [vmem:[#allocation97_spill] sm:$0xff]  ;;  %v28451_v16 = vld [vmem:[#allocation99_spill] sm:$0xff] }
 0x2f9   : > { %28436 = vst [vmem:[#allocation124_spill] sm:$0xff] %v21579_v60  ;;  %v28445_v45 = vand.u32 4294901760, %v21270_v11  ;;  %v16262_v27 = vpack.c.bf16 %v21539_v33, %v21534_v7  ;;  %v28447_v15 = vand.u32 4294901760, %v21272_v31  ;;  %v5014_v28 = vand.u32 4294901760, %v5013_v1  ;;  %16031 = vmatprep.subr.bf16.mxu1 %v16030_v42 }
 0x2fa   : > { %v5139_v4 = vsub.f32 %v28441_v0, %v28442_v56  ;;  %v5146_v8 = vsub.f32 %v28443_v6, %v28444_v63  ;;  %v16264_v56 = vpack.c.bf16 %v21567_v48, %v21562_v53  ;;  %v5021_v63 = vand.u32 4294901760, %v5020_v38  ;;  %v12991_v6 = vpop.f32.mrb[19].mxu0 }
 0x2fb   : > { %v21598_v17 = vsub.f32 %v21270_v11, %v28445_v45  ;;  %v21605_v59 = vsub.f32 %v21272_v31, %v28447_v15  ;;  %v16032_v52 = vpack.c.bf16 %v5007_v5, %v5000_v37  ;;  %v16266_v11 = vpack.c.bf16 %v21579_v60, %v21572_v12  ;;  %16263 = vmatprep.subr.bf16.mxu0 %v16262_v27  ;;  %v28454_v5 = vld [vmem:[#allocation102_spill] sm:$0xff]  ;;  %v28456_v15 = vld [vmem:[#allocation125_spill] sm:$0xff]  ;;  %v28458_v27 = vld [vmem:[#allocation80_spill] sm:$0xff] }
 0x2fc   : > { %v28450_v43 = vand.u32 4294901760, %v28449_v25  ;;  %v28452_v39 = vand.u32 4294901760, %v28451_v16  ;;  %v21617_v46 = vadd.f32 %v12991_v6, %v12990_v14  ;;  %v16034_v1 = vpack.c.bf16 %v5133_v40, %v5126_v54  ;;  %v12993_v14 = vpop.f32.mrb[20].mxu0  ;;  %16265 = vmatpush3.bf16.msra.mxu0 %v16264_v56 }
 0x2fd   : > { %28446 = vst [vmem:[#allocation66_spill] sm:$0xff] %v21598_v17  ;;  %28448 = vst [vmem:[#allocation74_spill] sm:$0xff] %v21605_v59  ;;  %v5140_v18 = vand.u32 4294901760, %v5139_v4  ;;  %v5147_v38 = vand.u32 4294901760, %v5146_v8  ;;  %v26951_v9 = vand.u32 4294901760, %v21287_v55  ;;  %v26946_v37 = vand.u32 4294901760, %v21292_v35  ;;  %16033 = vmatpush3.bf16.msra.mxu1 %v16032_v52  ;;  %16267 = vmatprep.subr.bf16.mxu0 %v16266_v11 }
 0x2fe   : > { %v5027_v21 = vsub.f32 %v28449_v25, %v28450_v43  ;;  %v5034_v31 = vsub.f32 %v28451_v16, %v28452_v39  ;;  %28453 = vst [vmem:[#allocation126_spill] sm:$0xff] %v21617_v46  ;;  %v28455_v0 = vand.u32 4294901760, %v28454_v5  ;;  %v28457_v25 = vand.u32 4294901760, %v28456_v15  ;;  %v12994_v54 = vpop.f32.mrb[21].mxu0  ;;  %16035 = vmatprep.subr.bf16.mxu1 %v16034_v1  ;;  %v12724_v52 = vpop.f32.mrb[20].mxu1 }
 0x2ff   : > { %v16036_v6 = vpack.c.bf16 %v5021_v63, %v5014_v28  ;;  %v16268_v50 = vpack.c.bf16 %v21605_v59, %v21598_v17  ;;  %v26945_v4 = vand.u32 4294901760, %v21297_v10  ;;  %v28459_v16 = vand.u32 4294901760, %v28458_v27 }
 0x300   : > { %v5153_v45 = vsub.f32 %v28454_v5, %v28455_v0  ;;  %v5160_v43 = vsub.f32 %v28456_v15, %v28457_v25  ;;  %v5028_v40 = vand.u32 4294901760, %v5027_v21  ;;  %v5035_v8 = vand.u32 4294901760, %v5034_v31  ;;  %v28460_v5 = vld [vmem:[#allocation127_spill] sm:$0xff] }
 0x301   : > { %v5041_v39 = vsub.f32 %v28458_v27, %v28459_v16  ;;  %v28461_v0 = vand.u32 4294901760, %v28460_v5  ;;  %v21637_v28 = vadd.f32 %v12994_v54, %v12993_v14  ;;  %v16038_v63 = vpack.c.bf16 %v5147_v38, %v5140_v18  ;;  %v12725_v16 = vpop.f32.mrb[21].mxu1  ;;  %16037 = vmatpush3.bf16.msra.mxu1 %v16036_v6  ;;  %16269 = vmatpush3.bf16.msra.mxu0 %v16268_v50 }
 0x302   : > { %v26944_v25 = vand.u32 4294901760, %v21325_v61  ;;  %v26943_v42 = vand.u32 4294901760, %v21330_v3  ;;  %v16302_v21 = vpack.c.bf16 %v26946_v37, %v26951_v9  ;;  %v5154_v31 = vand.u32 4294901760, %v5153_v45  ;;  %v12727_v54 = vpop.f32.mrb[22].mxu1  ;;  %v28482_v37 = vld [vmem:[#allocation78_spill] sm:$0xff] }
 0x303   : > { %v5048_v15 = vsub.f32 %v28460_v5, %v28461_v0  ;;  %28462 = vst [vmem:[#allocation75_spill] sm:$0xff] %v21637_v28  ;;  %v5161_v27 = vand.u32 4294901760, %v5160_v43  ;;  %v12726_v5 = vadd.f32 %v12725_v16, %v12724_v52  ;;  %v16040_v14 = vpack.c.bf16 %v5035_v8, %v5028_v40  ;;  %16039 = vmatprep.subr.bf16.mxu1 %v16038_v63  ;;  %v28465_v52 = vld [vmem:[#allocation128_spill] sm:$0xff] }
 0x304   : > { %v5042_v56 = vand.u32 4294901760, %v5041_v39  ;;  %v28463_v18 = vand.u32 4294901760, %v21320_v30  ;;  %v16306_v38 = vpack.c.bf16 %v26943_v42, %v26944_v25  ;;  %v26942_v45 = vand.u32 4294901760, %v21342_v62  ;;  %16303 = vmatprep.subr.bf16.mxu0 %v16302_v21  ;;  %v12728_v39 = vpop.f32.mrb[23].mxu1  ;;  %v28481_v25 = vld [vmem:[#allocation55_spill] sm:$0xff] }
 0x305   : > { %v5049_v1 = vand.u32 4294901760, %v5048_v15  ;;  %v26937_v43 = vand.u32 4294901760, %v21347_v23  ;;  %v2966_v6 = vadd.f32 %v12726_v5, %v21464_v58  ;;  %v16042_v50 = vpack.c.bf16 %v5161_v27, %v5154_v31  ;;  %v28464_v15 = vld [vmem:[#allocation28_spill] sm:$0xff]  ;;  %16041 = vmatpush3.bf16.msra.mxu1 %v16040_v14 }
 0x306   : > { %v16304_v11 = vpack.c.bf16 %v28463_v18, %v26945_v4  ;;  %v26936_v40 = vand.u32 4294901760, %v21352_v51  ;;  %v26935_v8 = vand.u32 4294901760, %v21357_v32  ;;  %v12729_v0 = vadd.f32 %v12728_v39, %v12727_v54  ;;  %6229 = vmatmul.mubr.f32.vlgmr.msra.gmra.mrb[46].mxu0 %v28464_v15  ;;  %v28466_v18 = vld [vmem:[#allocation30_spill] sm:$0xff] }
 0x307   : > { %v16044_v63 = vpack.c.bf16 %v5049_v1, %v5042_v56  ;;  %v21660_v16 = vadd.f32 %v28465_v52, %v2966_v6  ;;  %6235 = vmatprep.mubr.f32.mxu0 %v28466_v18  ;;  %v16308_v58 = vpack.c.bf16 %v26937_v43, %v26942_v45  ;;  %v26934_v21 = vand.u32 4294901760, %v21362_v24  ;;  %16043 = vmatprep.subr.bf16.mxu1 %v16042_v50  ;;  %v28467_v1 = vld [vmem:[#allocation63_spill] sm:$0xff]  ;;  %v28468_v6 = vld [vmem:[#allocation130_spill] sm:$0xff]  ;;  %v28469_v50 = vld [vmem:[#allocation113_spill] sm:$0xff] }
 0x308   : > { %16305 = vmatpush3.bf16.msra.mxu0 %v16304_v11  ;;  %v26933_v31 = vand.u32 4294901760, %v21367_v26  ;;  %v2973_v27 = vadd.f32 %v12729_v0, %v21489_v22  ;;  %v16310_v5 = vpack.c.bf16 %v26935_v8, %v26936_v40  ;;  %v26932_v14 = vand.u32 4294901760, %v21372_v36  ;;  %v28470_v52 = vld [vmem:[#allocation17_spill] sm:$0xff]  ;;  %v28474_v8 = vld [vmem:[#allocation18_spill] sm:$0xff]  ;;  %v28475_v40 = vld [vmem:[#allocation11_spill] sm:$0xff] }
 0x309   : > { %16307 = vmatprep.subr.bf16.mxu0 %v16306_v38  ;;  %v26931_v56 = vand.u32 4294901760, %v21377_v49  ;;  %16045 = vmatpush3.bf16.msra.mxu1 %v16044_v63  ;;  %v26939_v38 = vand.u32 4294901760, %v21383_v13  ;;  %v26938_v54 = vand.u32 4294901760, %v21399_v20  ;;  %v26941_v0 = vand.u32 4294901760, %v21413_v41  ;;  %v28476_v43 = vld [vmem:[#allocation54_spill] sm:$0xff]  ;;  %v21745_v18 = vld [vmem:[#allocation2 + $0x588] sm:$0xff] }
 0x30a   : > { %6238 = vmatmul.mubr.f32.gmra.mrb[48].mxu0 %v21218_v44  ;;  %v21678_v11 = vadd.f32 %v28467_v1, %v2973_v27  ;;  %v16312_v22 = vpack.c.bf16 %v26933_v31, %v26934_v21  ;;  %16079 = vmatprep.subr.bf16.mxu1 %v28469_v50  ;;  %v26940_v63 = vand.u32 4294901760, %v21418_v2  ;;  %v28472_v27 = vld [vmem:[#allocation71_spill] sm:$0xff]  ;;  %v28473_v1 = vld [vmem:[#allocation85_spill] sm:$0xff]  ;;  %v26950_v21 = vand.u32 4294901760, %v21446_v47  ;;  %v21743_v44 = vld [vmem:[#allocation2 + $0x580] sm:$0xff] }
 0x30b   : > { %6523 = vmatprep.mubr.f32.mxu0 %v28468_v6  ;;  %v16314_v39 = vpack.c.bf16 %v26931_v56, %v26932_v14  ;;  %v26948_v56 = vand.u32 4294901760, %v21429_v57  ;;  %v26947_v14 = vand.u32 4294901760, %v21441_v19  ;;  %v28490_v28 = vand.u32 4294901760, %v21572_v12  ;;  %v21834_v6 = vld [vmem:[#allocation2 + $0x5b8] sm:$0xff]  ;;  %v28514_v2 = vld [vmem:[#allocation77_spill] sm:$0xff]  ;;  %v28516_v20 = vld [vmem:[#allocation26_spill] sm:$0xff] }
 0x30c   : > { %16309 = vmatpush3.bf16.msra.mxu0 %v16308_v58  ;;  %5166 = vmatmul.mubr.f32.vlgmr.msra.gmra.mrb[48].mxu1 %v28470_v52  ;;  %v28471_v58 = vld [vmem:[#allocation20_spill] sm:$0xff]  ;;  %v16318_v31 = vpack.c.bf16 %v26940_v63, %v26941_v0  ;;  %v26954_v63 = vand.u32 4294901760, %v21506_v29  ;;  %v28479_v0 = vld [vmem:[#allocation21_spill] sm:$0xff]  ;;  %v28491_v46 = vand.u32 4294901760, %v21579_v60  ;;  %v28515_v41 = vrot.slane %v28514_v2, 3  ;;  %v21942_v24 = vld [vmem:[#allocation2 + $0x550] sm:$0xff] }
 0x30d   : > { %16311 = vmatprep.subr.bf16.mxu0 %v16310_v5  ;;  %5171 = vmatprep.mubr.f32.mxu1 %v28471_v58  ;;  %v16316_v5 = vpack.c.bf16 %v26938_v54, %v26939_v38  ;;  %v28477_v54 = vand.u32 4294901760, %v28476_v43  ;;  %v28478_v38 = vld [vmem:[#allocation68_spill] sm:$0xff]  ;;  %v26953_v45 = vand.u32 4294901760, %v28479_v0  ;;  %v26956_v43 = vand.u32 4294901760, %v21534_v7  ;;  %v13066_v9 = vpop.f32.mrb[22].mxu0  ;;  %v28526_v52 = vld [vmem:[#allocation69_spill] sm:$0xff] }
 0x30e   : > { %16081 = vmatpush3.bf16.msra.mxu1 %v28472_v27  ;;  %v28550_v26 = vld [vmem:[#allocation59_spill] sm:$0xff] }
 0x30f   : > { %16083 = vmatprep.subr.bf16.mxu1 %v28473_v1 }
 0x310   : > { %16313 = vmatpush3.bf16.msra.mxu0 %v16312_v22  ;;  %v26949_v22 = vand.u32 4294901760, %v21501_v34  ;;  %5173 = vmatmul.mubr.f32.gmra.mrb[50].mxu1 %v28474_v8  ;;  %v12800_v7 = vpop.f32.mrb[24].mxu1  ;;  %v21827_v34 = vld [vmem:[#allocation2 + $0x528] sm:$0xff] }
 0x311   : > { %16315 = vmatprep.subr.bf16.mxu0 %v16314_v39  ;;  %5424 = vmatprep.mubr.f32.mxu1 %v28477_v54  ;;  %v16320_v39 = vpack.c.bf16 %v26947_v14, %v26948_v56  ;;  %v26955_v54 = vand.u32 4294901760, %v21539_v33  ;;  %v28483_v14 = vld [vmem:[#allocation82_spill] sm:$0xff]  ;;  %v28485_v56 = vld [vmem:[#allocation13_spill] sm:$0xff]  ;;  %v16330_v33 = vpack.c.bf16 %v28491_v46, %v28490_v28  ;;  %v28495_v28 = vld [vmem:[#allocation19_spill] sm:$0xff] }
 0x312   : > { %16085 = vmatpush3.bf16.msra.mxu1 %v28475_v40  ;;  %v16322_v42 = vpack.c.bf16 %v26949_v22, %v26950_v21  ;;  %v28487_v22 = vld [vmem:[#allocation14_spill] sm:$0xff]  ;;  %v28493_v21 = vld [vmem:[#allocation84_spill] sm:$0xff] }
 0x313   : > { %16087 = vmatprep.subr.bf16.mxu1 %v28478_v38 }
 0x314   : > { %16317 = vmatpush3.bf16.msra.mxu0 %v16316_v5  ;;  %v28480_v5 = vld [vmem:[#allocation90_spill] sm:$0xff] }
 0x315   : > { %16319 = vmatprep.subr.bf16.mxu0 %v16318_v31  ;;  %v1780_v4 = vmul.f32 %v28481_v25, %v28480_v5  ;;  %v16324_v31 = vpack.c.bf16 %v26953_v45, %v26954_v63  ;;  %v16326_v5 = vpack.c.bf16 %v26955_v54, %v26956_v43  ;;  %v13067_v63 = vpop.f32.mrb[23].mxu0  ;;  %v28488_v54 = vand.u32 4294901760, %v21562_v53  ;;  %v21799_v53 = vld [vmem:[#allocation2 + $0x5a0] sm:$0xff] }
 0x316   : > { %16089 = vmatpush3.bf16.msra.mxu1 %v28482_v37  ;;  %v28489_v43 = vand.u32 4294901760, %v21567_v48  ;;  %v13069_v48 = vpop.f32.mrb[24].mxu0 }
 0x317   : > { %16091 = vmatprep.subr.bf16.mxu1 %v28483_v14  ;;  %v21747_v45 = vand.u32 4294901760, %v1780_v4  ;;  %v13070_v15 = vpop.f32.mrb[25].mxu0 }
 0x318   : > { %16321 = vmatpush3.bf16.msra.mxu0 %v16320_v39  ;;  %v16328_v39 = vpack.c.bf16 %v28489_v43, %v28488_v54  ;;  %v21769_v43 = vld [vmem:[#allocation2 + $0x590] sm:$0xff]  ;;  %v21771_v54 = vld [vmem:[#allocation2 + $0x598] sm:$0xff]  ;;  %v21777_v46 = vadd.f32 %v13070_v15, %v13069_v48 }
 0x319   : > { %16323 = vmatprep.subr.bf16.mxu0 %v16322_v42  ;;  %28484 = vst [vmem:[#allocation79_spill] sm:$0xff] %v21747_v45  ;;  %v21750_v42 = vadd.f32 %v13067_v63, %v13066_v9  ;;  %v28496_v63 = vand.u32 4294901760, %v21598_v17  ;;  %v28497_v9 = vand.u32 4294901760, %v21605_v59  ;;  %v21796_v59 = vld [vmem:[#allocation2 + $0x518] sm:$0xff]  ;;  %v28501_v17 = vld [vmem:[#allocation46_spill] sm:$0xff]  ;;  %v28508_v19 = vand.u32 4294901760, %v21771_v54 }
 0x31a   : > { %16093 = vmatpush3.bf16.msra.mxu1 %v28485_v56  ;;  %28494 = vst [vmem:[#allocation129_spill] sm:$0xff] %v21777_v46  ;;  %v21794_v46 = vld [vmem:[#allocation2 + $0x510] sm:$0xff]  ;;  %v28518_v13 = vand.u32 4294901760, %v21796_v59 }
 0x31b   : > { %28486 = vst [vmem:[#allocation105_spill] sm:$0xff] %v21750_v42  ;;  %16095 = vmatprep.subr.bf16.mxu1 %v28487_v22  ;;  %v21767_v42 = vld [vmem:[#allocation2 + $0x508] sm:$0xff]  ;;  %v16332_v60 = vpack.c.bf16 %v28497_v9, %v28496_v63  ;;  %v12801_v9 = vpop.f32.mrb[25].mxu1  ;;  %v28503_v15 = vld [vmem:[#allocation42_spill] sm:$0xff]  ;;  %v21825_v63 = vld [vmem:[#allocation2 + $0x520] sm:$0xff] }
 0x31c   : > { %16325 = vmatpush3.bf16.msra.mxu0 %v16324_v31  ;;  %v21765_v31 = vld [vmem:[#allocation2 + $0x500] sm:$0xff]  ;;  %v12802_v12 = vadd.f32 %v12801_v9, %v12800_v7  ;;  %v28505_v0 = vand.u32 4294901760, %v21767_v42  ;;  %v12803_v9 = vpop.f32.mrb[26].mxu1 }
 0x31d   : > { %16327 = vmatprep.subr.bf16.mxu0 %v16326_v5  ;;  %v21774_v5 = vsub.f32 %v1780_v4, %v21747_v45  ;;  %v28498_v4 = vand.u32 4294901760, %v21743_v44  ;;  %v28499_v45 = vand.u32 4294901760, %v21745_v18 }
 0x31e   : > { %16097 = vmatpush3.bf16.msra.mxu1 %v28493_v21  ;;  %v3332_v7 = vadd.f32 %v12802_v12, %v21660_v16 }
 0x31f   : > { %28492 = vst [vmem:[#allocation27_spill] sm:$0xff] %v21774_v5  ;;  %16099 = vmatprep.subr.bf16.mxu1 %v28495_v28  ;;  %v21790_v48 = vpack.c.bf16 %v28499_v45, %v28498_v4  ;;  %v28502_v45 = vld [vmem:[#allocation72_spill] sm:$0xff]  ;;  %v28510_v12 = vand.u32 4294901760, %v21774_v5 }
 0x320   : > { %16329 = vmatpush3.bf16.msra.mxu0 %v16328_v39  ;;  %v1777_v4 = vrot.slane %v28502_v45, 3  ;;  %v28504_v39 = vand.u32 4294901760, %v21765_v31  ;;  %v1772_v47 = vrot.slane %v28502_v45, 2  ;;  %v12804_v45 = vpop.f32.mrb[27].mxu1 }
 0x321   : > { %16331 = vmatprep.subr.bf16.mxu0 %v16330_v33  ;;  %28500 = vst [vmem:[#allocation88_spill] sm:$0xff] %v21790_v48  ;;  %v21801_v33 = vld [vmem:[#allocation2 + $0x5a8] sm:$0xff]  ;;  %v6747_v16 = vsub.f32 %v21774_v5, %v28510_v12  ;;  %v12805_v8 = vadd.f32 %v12804_v45, %v12803_v9  ;;  %v28517_v12 = vand.u32 4294901760, %v21794_v46  ;;  %v21868_v9 = vld [vmem:[#allocation2 + $0x530] sm:$0xff] }
 0x322   : > { %16101 = vmatpush3.bf16.msra.mxu1 %v28501_v17  ;;  %v21810_v29 = vpack.c.bf16 %v28505_v0, %v28504_v39  ;;  %v28513_v0 = vld [vmem:[#allocation114_spill] sm:$0xff]  ;;  %v1778_v58 = vsel %vm1715_vm2, %v28515_v41, %v1777_v4 }
 0x323   : > { %16103 = vmatprep.subr.bf16.mxu1 %v28503_v15  ;;  %v21839_v39 = vadd.f32 %v28513_v0, %v3332_v7  ;;  %v21850_v45 = vpack.c.bf16 %v28518_v13, %v28517_v12  ;;  %v28520_v7 = vrot.slane %v28514_v2, 2  ;;  %v3339_v41 = vadd.f32 %v12805_v8, %v21678_v11  ;;  %v28521_v4 = vld [vmem:[#allocation94_spill] sm:$0xff]  ;;  %v21870_v2 = vld [vmem:[#allocation2 + $0x538] sm:$0xff] }
 0x324   : > { %16333 = vmatpush3.bf16.msra.mxu0 %v16332_v60  ;;  %28506 = vst [vmem:[#allocation89_spill] sm:$0xff] %v21810_v29  ;;  %v28507_v60 = vand.u32 4294901760, %v21769_v43  ;;  %v6748_v11 = vand.u32 4294901760, %v6747_v16  ;;  %v1781_v49 = vmul.f32 %v28526_v52, %v1778_v58  ;;  %v28529_v12 = vld [vmem:[#allocation15_spill] sm:$0xff]  ;;  %v28530_v16 = vand.u32 4294901760, %v21825_v63 }
 0x325   : > { %16367 = vmatprep.subr.bf16.mxu0 %v21790_v48  ;;  %v21832_v48 = vld [vmem:[#allocation2 + $0x5b0] sm:$0xff]  ;;  %28519 = vst [vmem:[#allocation95_spill] sm:$0xff] %v21850_v45  ;;  %v1773_v0 = vsel %vm1705_vm3, %v28520_v7, %v1772_v47  ;;  %v28525_v47 = vld [vmem:[#allocation91_spill] sm:$0xff]  ;;  %v21874_v7 = vld [vmem:[#allocation2 + $0x5c0] sm:$0xff] }
 0x326   : > { %v21821_v57 = vpack.c.bf16 %v28508_v19, %v28507_v60  ;;  %v28511_v19 = vld [vmem:[#allocation103_spill] sm:$0xff]  ;;  %v28512_v60 = vld [vmem:[#allocation93_spill] sm:$0xff]  ;;  %v1775_v8 = vmul.f32 %v28481_v25, %v28525_v47  ;;  %v1776_v36 = vmul.f32 %v28526_v52, %v1773_v0  ;;  %v28531_v47 = vand.u32 4294901760, %v21827_v34 }
 0x327   : > { %6525 = vmatmul.mubr.f32.vlgmr.msra.gmra.mrb[50].mxu0 %v28511_v19  ;;  %16105 = vmatpush3.bf16.msra.mxu1 %v28512_v60  ;;  %v21882_v19 = vadd.f32 %v28529_v12, %v3339_v41  ;;  %v28533_v41 = vand.u32 4294901760, %v21832_v48  ;;  %v28534_v0 = vand.u32 4294901760, %v21834_v6  ;;  %v21914_v52 = vld [vmem:[#allocation2 + $0x5d8] sm:$0xff]  ;;  %v21916_v5 = vand.u32 4294901760, %v1781_v49 }
 0x328   : > { %28509 = vst [vmem:[#allocation92_spill] sm:$0xff] %v21821_v57  ;;  %6530 = vmatprep.mubr.f32.mxu0 %v28516_v20  ;;  %16369 = vmatpush3.bf16.msra.mxu0 %v21810_v29  ;;  %v28522_v29 = vand.u32 4294901760, %v21799_v53  ;;  %v28523_v20 = vand.u32 4294901760, %v21801_v33  ;;  %v21890_v25 = vpack.c.bf16 %v28531_v47, %v28530_v16  ;;  %v21904_v16 = vld [vmem:[#allocation2 + $0x540] sm:$0xff]  ;;  %v21906_v47 = vld [vmem:[#allocation2 + $0x548] sm:$0xff]  ;;  %v21908_v58 = vand.u32 4294901760, %v1775_v8 }
 0x329   : > { %16107 = vmatprep.subr.bf16.mxu1 %v28521_v4  ;;  %16371 = vmatprep.subr.bf16.mxu0 %v21821_v57  ;;  %v21876_v57 = vld [vmem:[#allocation2 + $0x5c8] sm:$0xff]  ;;  %v21900_v12 = vpack.c.bf16 %v28534_v0, %v28533_v41  ;;  %28539 = vst [vmem:[#allocation97_spill] sm:$0xff] %v21916_v5  ;;  %v28540_v41 = vld [vmem:[#allocation83_spill] sm:$0xff] }
 0x32a   : > { %v21864_v13 = vpack.c.bf16 %v28523_v20, %v28522_v29  ;;  %v28527_v20 = vld [vmem:[#allocation32_spill] sm:$0xff]  ;;  %v28528_v29 = vld [vmem:[#allocation87_spill] sm:$0xff]  ;;  %28532 = vst [vmem:[#allocation100_spill] sm:$0xff] %v21890_v25  ;;  %28536 = vst [vmem:[#allocation104_spill] sm:$0xff] %v21908_v58  ;;  %v28541_v0 = vand.u32 4294901760, %v28540_v41  ;;  %v28547_v41 = vand.u32 4294901760, %v21876_v57 }
 0x32b   : > { %6532 = vmatmul.mubr.f32.gmra.mrb[52].mxu0 %v28527_v20  ;;  %16109 = vmatpush3.bf16.msra.mxu1 %v28528_v29  ;;  %28535 = vst [vmem:[#allocation101_spill] sm:$0xff] %v21900_v12  ;;  %v28537_v20 = vld [vmem:[#allocation39_spill] sm:$0xff]  ;;  %v28551_v29 = vand.u32 4294901760, %v28550_v26  ;;  %v21953_v4 = vld [vmem:[#allocation2 + $0x5e8] sm:$0xff]  ;;  %v28557_v26 = vand.u32 4294901760, %v21904_v16 }
 0x32c   : > { %28524 = vst [vmem:[#allocation96_spill] sm:$0xff] %v21864_v13  ;;  %16373 = vmatpush3.bf16.msra.mxu0 %v21850_v45  ;;  %6749 = vmatprep.mubr.f32.mxu0 %v6748_v11  ;;  %v21921_v45 = vand.u32 4294901760, %v1776_v36  ;;  %28553 = vst [vmem:[#allocation128_spill] sm:$0xff] %v21953_v4 }
 0x32d   : > { %16143 = vmatprep.subr.bf16.mxu1 %v28469_v50  ;;  %16375 = vmatprep.subr.bf16.mxu0 %v21864_v13  ;;  %v28538_v50 = vand.u32 4294901760, %v28537_v20  ;;  %v21912_v13 = vld [vmem:[#allocation2 + $0x5d0] sm:$0xff]  ;;  %v28543_v20 = vand.u32 4294901760, %v21868_v9 }
 0x32e   : > { %28542 = vst [vmem:[#allocation99_spill] sm:$0xff] %v21921_v45 }
 0x32f   : > { %5428 = vmatmul.mubr.f32.vlgmr.msra.gmra.mrb[52].mxu1 %v28538_v50  ;;  %v28544_v50 = vand.u32 4294901760, %v21870_v2 }
 0x330   : > { %5435 = vmatprep.mubr.f32.mxu1 %v28541_v0  ;;  %16145 = vmatpush3.bf16.msra.mxu1 %v28472_v27  ;;  %v28546_v27 = vand.u32 4294901760, %v21874_v7 }
 0x331   : > { %16377 = vmatpush3.bf16.msra.mxu0 %v21890_v25  ;;  %16147 = vmatprep.subr.bf16.mxu1 %v28473_v1  ;;  %v21929_v11 = vpack.c.bf16 %v28544_v50, %v28543_v20  ;;  %v21944_v20 = vld [vmem:[#allocation2 + $0x558] sm:$0xff]  ;;  %v21947_v50 = vsub.f32 %v1775_v8, %v21908_v58  ;;  %v21961_v25 = vsub.f32 %v1776_v36, %v21921_v45  ;;  %v28558_v8 = vand.u32 4294901760, %v21906_v47  ;;  %v21982_v45 = vld [vmem:[#allocation2 + $0x560] sm:$0xff]  ;;  %v22013_v58 = vld [vmem:[#allocation2 + $0x570] sm:$0xff] }
 0x332   : > { %16379 = vmatprep.subr.bf16.mxu0 %v21900_v12  ;;  %v21938_v0 = vpack.c.bf16 %v28547_v41, %v28546_v27  ;;  %v21951_v12 = vld [vmem:[#allocation2 + $0x5e0] sm:$0xff]  ;;  %v21956_v27 = vsub.f32 %v1781_v49, %v21916_v5  ;;  %v28555_v41 = vld [vmem:[#allocation67_spill] sm:$0xff]  ;;  %v28561_v36 = vand.u32 4294901760, %v21914_v52 }
 0x333   : > { %28545 = vst [vmem:[#allocation102_spill] sm:$0xff] %v21929_v11  ;;  %28549 = vst [vmem:[#allocation80_spill] sm:$0xff] %v21947_v50  ;;  %5439 = vmatmul.mubr.f32.gmra.mrb[54].mxu1 %v28551_v29  ;;  %v21969_v29 = vpack.c.bf16 %v28558_v8, %v28557_v26  ;;  %v21984_v26 = vld [vmem:[#allocation2 + $0x568] sm:$0xff]  ;;  %v21986_v8 = vld [vmem:[#allocation2 + $0x5f0] sm:$0xff]  ;;  %v28569_v5 = vand.u32 4294901760, %v21947_v50 }
 0x334   : > { %28548 = vst [vmem:[#allocation125_spill] sm:$0xff] %v21938_v0  ;;  %28552 = vst [vmem:[#allocation127_spill] sm:$0xff] %v21951_v12  ;;  %16149 = vmatpush3.bf16.msra.mxu1 %v28475_v40  ;;  %5716 = vmatprep.mubr.f32.mxu1 %v28555_v41  ;;  %v28560_v40 = vand.u32 4294901760, %v21912_v13  ;;  %v21988_v49 = vld [vmem:[#allocation2 + $0x5f8] sm:$0xff] }
 0x335   : > { %28554 = vst [vmem:[#allocation63_spill] sm:$0xff] %v21956_v27  ;;  %28556 = vst [vmem:[#allocation113_spill] sm:$0xff] %v21961_v25  ;;  %16381 = vmatpush3.bf16.msra.mxu0 %v21929_v11  ;;  %16151 = vmatprep.subr.bf16.mxu1 %v28478_v38  ;;  %v28564_v11 = vand.u32 4294901760, %v21944_v20  ;;  %v22020_v1 = vsub.f32 %v21947_v50, %v28569_v5 }
 0x336   : > { %28559 = vst [vmem:[#allocation71_spill] sm:$0xff] %v21969_v29  ;;  %16383 = vmatprep.subr.bf16.mxu0 %v21938_v0  ;;  %v21978_v41 = vpack.c.bf16 %v28561_v36, %v28560_v40  ;;  %v28563_v36 = vand.u32 4294901760, %v21942_v24  ;;  %v28567_v40 = vand.u32 4294901760, %v21953_v4 }
 0x338   : > { %28562 = vst [vmem:[#allocation85_spill] sm:$0xff] %v21978_v41  ;;  %16153 = vmatpush3.bf16.msra.mxu1 %v28482_v37  ;;  %v22000_v38 = vpack.c.bf16 %v28564_v11, %v28563_v36  ;;  %v28566_v37 = vand.u32 4294901760, %v21951_v12  ;;  %v22015_v11 = vld [vmem:[#allocation2 + $0x578] sm:$0xff]  ;;  %v13142_v36 = vpop.f32.mrb[26].mxu0  ;;  %v28573_v12 = vand.u32 4294901760, %v21765_v31 }
 0x339   : > { %16385 = vmatpush3.bf16.msra.mxu0 %v21969_v29  ;;  %16155 = vmatprep.subr.bf16.mxu1 %v28483_v14  ;;  %v28572_v29 = vand.u32 4294901760, %v21745_v18  ;;  %v13143_v50 = vpop.f32.mrb[27].mxu0 }
 0x33a   : > { %28565 = vst [vmem:[#allocation11_spill] sm:$0xff] %v22000_v38  ;;  %16387 = vmatprep.subr.bf16.mxu0 %v21978_v41  ;;  %v22009_v0 = vpack.c.bf16 %v28567_v40, %v28566_v37  ;;  %v28570_v41 = vand.u32 4294901760, %v21956_v27  ;;  %v28571_v40 = vand.u32 4294901760, %v21743_v44  ;;  %v22040_v5 = vsub.f32 %v21765_v31, %v28573_v12 }
 0x33b   : > { %v22035_v14 = vsub.f32 %v21745_v18, %v28572_v29  ;;  %v28576_v18 = vand.u32 4294901760, %v21982_v45  ;;  %v28577_v29 = vand.u32 4294901760, %v21984_v26  ;;  %v28588_v12 = vand.u32 4294901760, %v21801_v33 }
 0x33c   : > { %28568 = vst [vmem:[#allocation54_spill] sm:$0xff] %v22009_v0  ;;  %v22025_v4 = vsub.f32 %v21956_v27, %v28570_v41  ;;  %v22030_v37 = vsub.f32 %v21743_v44, %v28571_v40  ;;  %16157 = vmatpush3.bf16.msra.mxu1 %v28485_v56  ;;  %v28574_v41 = vand.u32 4294901760, %v21961_v25  ;;  %v22048_v44 = vadd.f32 %v13143_v50, %v13142_v36 }
 0x33d   : > { %16389 = vmatpush3.bf16.msra.mxu0 %v22000_v38  ;;  %16159 = vmatprep.subr.bf16.mxu1 %v28487_v22  ;;  %v22056_v31 = vpack.c.bf16 %v28577_v29, %v28576_v18  ;;  %v28579_v40 = vand.u32 4294901760, %v21767_v42  ;;  %v28580_v50 = vand.u32 4294901760, %v21769_v43  ;;  %v28581_v22 = vand.u32 4294901760, %v21771_v54 }
 0x33e   : > { %v22046_v27 = vsub.f32 %v21961_v25, %v28574_v41  ;;  %28575 = vst [vmem:[#allocation68_spill] sm:$0xff] %v22048_v44  ;;  %16391 = vmatprep.subr.bf16.mxu0 %v22009_v0  ;;  %v28582_v18 = vand.u32 4294901760, %v21986_v8  ;;  %v28583_v29 = vand.u32 4294901760, %v21988_v49  ;;  %v28589_v0 = vand.u32 4294901760, %v21825_v63 }
 0x33f   : > { %28578 = vst [vmem:[#allocation90_spill] sm:$0xff] %v22056_v31  ;;  %v22063_v41 = vsub.f32 %v21767_v42, %v28579_v40  ;;  %v22068_v36 = vsub.f32 %v21769_v43, %v28580_v50  ;;  %v22073_v38 = vsub.f32 %v21771_v54, %v28581_v22  ;;  %v28585_v42 = vand.u32 4294901760, %v21794_v46 }
 0x340   : > { %v22080_v56 = vpack.c.bf16 %v28583_v29, %v28582_v18  ;;  %v28586_v43 = vand.u32 4294901760, %v21796_v59  ;;  %v28587_v54 = vand.u32 4294901760, %v21799_v53  ;;  %v22100_v18 = vsub.f32 %v21801_v33, %v28588_v12  ;;  %v13145_v29 = vpop.f32.mrb[28].mxu0  ;;  %16161 = vmatpush3.bf16.msra.mxu1 %v28493_v21 }
 0x341   : > { %v22085_v40 = vsub.f32 %v21794_v46, %v28585_v42  ;;  %v22105_v46 = vsub.f32 %v21825_v63, %v28589_v0  ;;  %v28591_v42 = vand.u32 4294901760, %v21827_v34  ;;  %v13146_v12 = vpop.f32.mrb[29].mxu0  ;;  %v28597_v63 = vand.u32 4294901760, %v21868_v9  ;;  %16393 = vmatpush3.bf16.msra.mxu0 %v22056_v31  ;;  %16163 = vmatprep.subr.bf16.mxu1 %v28495_v28 }
 0x342   : > { %28584 = vst [vmem:[#allocation78_spill] sm:$0xff] %v22080_v56  ;;  %v22090_v50 = vsub.f32 %v21796_v59, %v28586_v43  ;;  %v22095_v22 = vsub.f32 %v21799_v53, %v28587_v54  ;;  %v28593_v43 = vand.u32 4294901760, %v21832_v48  ;;  %v28595_v54 = vand.u32 4294901760, %v21834_v6  ;;  %16395 = vmatprep.subr.bf16.mxu0 %v22080_v56 }
 0x343   : > { %28590 = vst [vmem:[#allocation82_spill] sm:$0xff] %v22105_v46  ;;  %v22110_v59 = vsub.f32 %v21827_v34, %v28591_v42  ;;  %v22126_v0 = vsub.f32 %v21868_v9, %v28597_v63  ;;  %v22128_v34 = vadd.f32 %v13146_v12, %v13145_v29  ;;  %v28601_v42 = vand.u32 4294901760, %v22015_v11  ;;  %v12876_v9 = vpop.f32.mrb[28].mxu1 }
 0x344   : > { %v22115_v53 = vsub.f32 %v21832_v48, %v28593_v43  ;;  %v22120_v33 = vsub.f32 %v21834_v6, %v28595_v54  ;;  %v28600_v48 = vand.u32 4294901760, %v22013_v58  ;;  %v6754_v43 = vand.u32 4294901760, %v22020_v1  ;;  %v12877_v56 = vpop.f32.mrb[29].mxu1  ;;  %16165 = vmatpush3.bf16.msra.mxu1 %v28501_v17 }
 0x345   : > { %28592 = vst [vmem:[#allocation13_spill] sm:$0xff] %v22110_v59  ;;  %28598 = vst [vmem:[#allocation19_spill] sm:$0xff] %v22126_v0  ;;  %v28603_v21 = vand.u32 4294901760, %v21870_v2  ;;  %v16430_v29 = vpack.c.bf16 %v22035_v14, %v22030_v37  ;;  %v28605_v28 = vand.u32 4294901760, %v21287_v55  ;;  %v28606_v63 = vand.u32 4294901760, %v21292_v35  ;;  %16167 = vmatprep.subr.bf16.mxu1 %v28503_v15 }
 0x346   : > { %28594 = vst [vmem:[#allocation14_spill] sm:$0xff] %v22115_v53  ;;  %28596 = vst [vmem:[#allocation84_spill] sm:$0xff] %v22120_v33  ;;  %v22136_v6 = vpack.c.bf16 %v28601_v42, %v28600_v48  ;;  %v28607_v1 = vand.u32 4294901760, %v21874_v7  ;;  %v28611_v31 = vand.u32 4294901760, %v21297_v10  ;;  %v16432_v17 = vpack.c.bf16 %v22063_v41, %v22040_v5 }
 0x347   : > { %28599 = vst [vmem:[#allocation46_spill] sm:$0xff] %v22128_v34  ;;  %v22142_v54 = vsub.f32 %v21870_v2, %v28603_v21  ;;  %v5973_v12 = vsub.f32 %v21287_v55, %v28605_v28  ;;  %v5980_v48 = vsub.f32 %v21292_v35, %v28606_v63  ;;  %v28609_v2 = vand.u32 4294901760, %v21876_v57 }
 0x348   : > { %28602 = vst [vmem:[#allocation42_spill] sm:$0xff] %v22136_v6  ;;  %v22156_v42 = vsub.f32 %v21874_v7, %v28607_v1  ;;  %v5861_v34 = vsub.f32 %v21297_v10, %v28611_v31  ;;  %v28612_v55 = vand.u32 4294901760, %v21320_v30  ;;  %v28613_v35 = vand.u32 4294901760, %v21904_v16  ;;  %16397 = vmatpush3.bf16.msra.mxu0 %v22136_v6  ;;  %16169 = vmatpush3.bf16.msra.mxu1 %v28512_v60 }
 0x349   : > { %28604 = vst [vmem:[#allocation93_spill] sm:$0xff] %v22142_v54  ;;  %v22161_v21 = vsub.f32 %v21876_v57, %v28609_v2  ;;  %v12878_v7 = vadd.f32 %v12877_v56, %v12876_v9  ;;  %v28615_v57 = vand.u32 4294901760, %v21325_v61  ;;  %v28616_v2 = vand.u32 4294901760, %v21330_v3  ;;  %v12879_v56 = vpop.f32.mrb[30].mxu1  ;;  %16431 = vmatprep.subr.bf16.mxu0 %v16430_v29 }
 0x34a   : > { %28608 = vst [vmem:[#allocation114_spill] sm:$0xff] %v22156_v42  ;;  %v5868_v28 = vsub.f32 %v21320_v30, %v28612_v55  ;;  %v22172_v63 = vsub.f32 %v21904_v16, %v28613_v35  ;;  %v28617_v31 = vand.u32 4294901760, %v21906_v47  ;;  %v28619_v55 = vand.u32 4294901760, %v21912_v13 }
 0x34b   : > { %28610 = vst [vmem:[#allocation91_spill] sm:$0xff] %v22161_v21  ;;  %v5987_v1 = vsub.f32 %v21325_v61, %v28615_v57  ;;  %v5994_v10 = vsub.f32 %v21330_v3, %v28616_v2  ;;  %v6763_v61 = vand.u32 4294901760, %v22025_v4  ;;  %v3594_v3 = vadd.f32 %v12878_v7, %v21839_v39  ;;  %6755 = vmatmul.mubr.f32.vlgmr.msra.gmra.mrb[54].mxu0 %v6754_v43  ;;  %v28623_v7 = vld [vmem:[#allocation41_spill] sm:$0xff] }
 0x34c   : > { %28614 = vst [vmem:[#allocation15_spill] sm:$0xff] %v22172_v63  ;;  %v22184_v30 = vsub.f32 %v21906_v47, %v28617_v31  ;;  %v22189_v16 = vsub.f32 %v21912_v13, %v28619_v55  ;;  %v16434_v47 = vpack.c.bf16 %v22073_v38, %v22068_v36  ;;  %v5974_v9 = vand.u32 4294901760, %v5973_v12  ;;  %v12880_v13 = vpop.f32.mrb[31].mxu1  ;;  %16433 = vmatpush3.bf16.msra.mxu0 %v16432_v17 }
 0x34d   : > { %v5981_v35 = vand.u32 4294901760, %v5980_v48  ;;  %v5862_v57 = vand.u32 4294901760, %v5861_v34  ;;  %v5869_v2 = vand.u32 4294901760, %v5868_v28  ;;  %v28621_v31 = vand.u32 4294901760, %v21342_v62  ;;  %6764 = vmatprep.mubr.f32.mxu0 %v6763_v61  ;;  %v28626_v28 = vld [vmem:[#allocation94_spill] sm:$0xff] }
 0x34e   : > { %28618 = vst [vmem:[#allocation39_spill] sm:$0xff] %v22184_v30  ;;  %28620 = vst [vmem:[#allocation83_spill] sm:$0xff] %v22189_v16  ;;  %v28622_v4 = vand.u32 4294901760, %v21347_v23  ;;  %v12881_v6 = vadd.f32 %v12880_v13, %v12879_v56  ;;  %v5988_v39 = vand.u32 4294901760, %v5987_v1  ;;  %v5995_v29 = vand.u32 4294901760, %v5994_v10  ;;  %16171 = vmatprep.subr.bf16.mxu1 %v28626_v28  ;;  %16435 = vmatprep.subr.bf16.mxu0 %v16434_v47 }
 0x34f   : > { %v5875_v15 = vsub.f32 %v21342_v62, %v28621_v31  ;;  %v22207_v12 = vadd.f32 %v28623_v7, %v3594_v3  ;;  %v16436_v34 = vpack.c.bf16 %v22090_v50, %v22085_v40  ;;  %v28624_v62 = vand.u32 4294901760, %v21352_v51 }
 0x350   : > { %v5882_v55 = vsub.f32 %v21347_v23, %v28622_v4  ;;  %v28625_v23 = vand.u32 4294901760, %v21357_v32  ;;  %v3605_v60 = vadd.f32 %v12881_v6, %v21882_v19  ;;  %v6769_v1 = vand.u32 4294901760, %v22046_v27  ;;  %v28631_v6 = vld [vmem:[#allocation87_spill] sm:$0xff] }
 0x351   : > { %v6001_v48 = vsub.f32 %v21352_v51, %v28624_v62  ;;  %v16206_v10 = vpack.c.bf16 %v5981_v35, %v5974_v9  ;;  %v16438_v61 = vpack.c.bf16 %v22100_v18, %v22095_v22  ;;  %v16208_v17 = vpack.c.bf16 %v5869_v2, %v5862_v57  ;;  %v28627_v51 = vld [vmem:[#allocation25_spill] sm:$0xff]  ;;  %16173 = vmatpush3.bf16.msra.mxu1 %v28631_v6  ;;  %v28632_v35 = vld [vmem:[#allocation70_spill] sm:$0xff]  ;;  %v28633_v57 = vld [vmem:[#allocation27_spill] sm:$0xff] }
 0x352   : > { %v6008_v43 = vsub.f32 %v21357_v32, %v28625_v23  ;;  %v16440_v3 = vpack.c.bf16 %v22110_v59, %v22105_v46  ;;  %v28628_v56 = vand.u32 4294901760, %v28627_v51  ;;  %v28629_v32 = vld [vmem:[#allocation47_spill] sm:$0xff]  ;;  %6770 = vmatmul.mubr.f32.gmra.mrb[56].mxu0 %v6769_v1  ;;  %v16210_v27 = vpack.c.bf16 %v5995_v29, %v5988_v39  ;;  %v28634_v62 = vld [vmem:[#allocation50_spill] sm:$0xff] }
 0x353   : > { %v28630_v31 = vand.u32 4294901760, %v28629_v32  ;;  %v5876_v47 = vand.u32 4294901760, %v5875_v15  ;;  %v5883_v9 = vand.u32 4294901760, %v5882_v55  ;;  %v22232_v4 = vadd.f32 %v28632_v35, %v3605_v60  ;;  %16437 = vmatpush3.bf16.msra.mxu0 %v16436_v34  ;;  %7144 = vmatprep.mubr.f32.mxu0 %v28633_v57 }
 0x354   : > { %v5889_v13 = vsub.f32 %v28627_v51, %v28628_v56  ;;  %v6002_v2 = vand.u32 4294901760, %v6001_v48  ;;  %v6009_v7 = vand.u32 4294901760, %v6008_v43  ;;  %v28635_v23 = vand.u32 4294901760, %v28634_v62  ;;  %v28636_v51 = vld [vmem:[#allocation118_spill] sm:$0xff]  ;;  %16207 = vmatprep.subr.bf16.mxu1 %v16206_v10  ;;  %16439 = vmatprep.subr.bf16.mxu0 %v16438_v61  ;;  %v28642_v48 = vld [vmem:[#allocation17_spill] sm:$0xff] }
 0x355   : > { %v5896_v19 = vsub.f32 %v28629_v32, %v28630_v31  ;;  %v28637_v56 = vand.u32 4294901760, %v28636_v51  ;;  %v28638_v39 = vand.u32 4294901760, %v21914_v52  ;;  %v28640_v55 = vand.u32 4294901760, %v21942_v24  ;;  %5718 = vmatmul.mubr.f32.vlgmr.msra.gmra.mrb[56].mxu1 %v28642_v48  ;;  %v28643_v32 = vld [vmem:[#allocation123_spill] sm:$0xff]  ;;  %v28648_v10 = vld [vmem:[#allocation73_spill] sm:$0xff] }
 0x356   : > { %v6015_v28 = vsub.f32 %v28634_v62, %v28635_v23  ;;  %v16442_v34 = vpack.c.bf16 %v22120_v33, %v22115_v53  ;;  %v5890_v43 = vand.u32 4294901760, %v5889_v13  ;;  %v28644_v31 = vand.u32 4294901760, %v28643_v32  ;;  %v28647_v23 = vld [vmem:[#allocation20_spill] sm:$0xff]  ;;  %16209 = vmatpush3.bf16.msra.mxu1 %v16208_v17 }
 0x357   : > { %v6022_v1 = vsub.f32 %v28636_v51, %v28637_v56  ;;  %v22244_v15 = vsub.f32 %v21914_v52, %v28638_v39  ;;  %v22249_v29 = vsub.f32 %v21942_v24, %v28640_v55  ;;  %v5897_v60 = vand.u32 4294901760, %v5896_v19  ;;  %v28645_v52 = vld [vmem:[#allocation132_spill] sm:$0xff]  ;;  %5723 = vmatprep.mubr.f32.mxu1 %v28647_v23  ;;  %v28650_v56 = vld [vmem:[#allocation29_spill] sm:$0xff]  ;;  %16441 = vmatpush3.bf16.msra.mxu0 %v16440_v3 }
 0x358   : > { %v5903_v6 = vsub.f32 %v28643_v32, %v28644_v31  ;;  %v28646_v35 = vand.u32 4294901760, %v28645_v52  ;;  %v16212_v24 = vpack.c.bf16 %v5883_v9, %v5876_v47  ;;  %v28649_v61 = vand.u32 4294901760, %v28648_v10  ;;  %16211 = vmatprep.subr.bf16.mxu1 %v16210_v27  ;;  %v28654_v47 = vld [vmem:[#allocation127_spill] sm:$0xff]  ;;  %16443 = vmatprep.subr.bf16.mxu0 %v16442_v34 }
 0x359   : > { %28639 = vst [vmem:[#allocation59_spill] sm:$0xff] %v22244_v15  ;;  %28641 = vst [vmem:[#allocation67_spill] sm:$0xff] %v22249_v29  ;;  %v28651_v39 = vand.u32 4294901760, %v28650_v56  ;;  %v16444_v19 = vpack.c.bf16 %v22142_v54, %v22126_v0  ;;  %v16214_v55 = vpack.c.bf16 %v6009_v7, %v6002_v2  ;;  %v6016_v48 = vand.u32 4294901760, %v6015_v28  ;;  %v28660_v2 = vld [vmem:[#allocation18_spill] sm:$0xff] }
 0x35a   : > { %v5910_v62 = vsub.f32 %v28645_v52, %v28646_v35  ;;  %v6029_v51 = vsub.f32 %v28648_v10, %v28649_v61  ;;  %v6023_v32 = vand.u32 4294901760, %v6022_v1  ;;  %v28652_v31 = vand.u32 4294901760, %v21944_v20  ;;  %v28657_v35 = vld [vmem:[#allocation128_spill] sm:$0xff]  ;;  %5725 = vmatmul.mubr.f32.gmra.mrb[58].mxu1 %v28660_v2  ;;  %v28661_v10 = vld [vmem:[#allocation130_spill] sm:$0xff] }
 0x35b   : > { %v6036_v13 = vsub.f32 %v28650_v56, %v28651_v39  ;;  %v28655_v9 = vand.u32 4294901760, %v28654_v47  ;;  %v28658_v23 = vand.u32 4294901760, %v28657_v35  ;;  %v16446_v27 = vpack.c.bf16 %v22161_v21, %v22156_v42  ;;  %16213 = vmatpush3.bf16.msra.mxu1 %v16212_v24  ;;  %6082 = vmatprep.mubr.f32.mxu1 %v28661_v10  ;;  %v28662_v39 = vld [vmem:[#allocation134_spill] sm:$0xff]  ;;  %v28684_v10 = vld [vmem:[#allocation48_spill] sm:$0xff] }
 0x35c   : > { %v22272_v17 = vsub.f32 %v21944_v20, %v28652_v31  ;;  %v16216_v7 = vpack.c.bf16 %v5897_v60, %v5890_v43  ;;  %v16448_v20 = vpack.c.bf16 %v22184_v30, %v22172_v63  ;;  %v5904_v28 = vand.u32 4294901760, %v5903_v6  ;;  %16445 = vmatpush3.bf16.msra.mxu0 %v16444_v19  ;;  %16215 = vmatprep.subr.bf16.mxu1 %v16214_v55  ;;  %v28666_v60 = vld [vmem:[#allocation136_spill] sm:$0xff] }
 0x35d   : > { %v22277_v52 = vsub.f32 %v28654_v47, %v28655_v9  ;;  %v22282_v3 = vsub.f32 %v28657_v35, %v28658_v23  ;;  %v5911_v1 = vand.u32 4294901760, %v5910_v62  ;;  %v6030_v61 = vand.u32 4294901760, %v6029_v51  ;;  %v28664_v47 = vld [vmem:[#allocation135_spill] sm:$0xff]  ;;  %v28668_v62 = vld [vmem:[#allocation24_spill] sm:$0xff]  ;;  %16447 = vmatprep.subr.bf16.mxu0 %v16446_v27 }
 0x35e   : > { %28653 = vst [vmem:[#allocation41_spill] sm:$0xff] %v22272_v17  ;;  %v6037_v56 = vand.u32 4294901760, %v6036_v13  ;;  %v28663_v31 = vand.u32 4294901760, %v28662_v39  ;;  %v28665_v9 = vand.u32 4294901760, %v28664_v47  ;;  %v16218_v43 = vpack.c.bf16 %v6023_v32, %v6016_v48 }
 0x35f   : > { %28656 = vst [vmem:[#allocation94_spill] sm:$0xff] %v22277_v52  ;;  %28659 = vst [vmem:[#allocation25_spill] sm:$0xff] %v22282_v3  ;;  %v28667_v23 = vand.u32 4294901760, %v28666_v60  ;;  %v28669_v24 = vand.u32 4294901760, %v28668_v62  ;;  %v28670_v13 = vand.u32 4294901760, %v21982_v45  ;;  %v28674_v19 = vand.u32 4294901760, %v21986_v8  ;;  %16217 = vmatpush3.bf16.msra.mxu1 %v16216_v7 }
 0x360   : > { %v5917_v34 = vsub.f32 %v28662_v39, %v28663_v31  ;;  %v5924_v35 = vsub.f32 %v28664_v47, %v28665_v9  ;;  %v28672_v39 = vand.u32 4294901760, %v21984_v26  ;;  %v16450_v48 = vpack.c.bf16 %v22244_v15, %v22189_v16  ;;  %v28678_v9 = vld [vmem:[#allocation131_spill] sm:$0xff]  ;;  %16449 = vmatpush3.bf16.msra.mxu0 %v16448_v20  ;;  %16219 = vmatprep.subr.bf16.mxu1 %v16218_v43 }
 0x361   : > { %v6043_v6 = vsub.f32 %v28666_v60, %v28667_v23  ;;  %v6050_v51 = vsub.f32 %v28668_v62, %v28669_v24  ;;  %v22305_v2 = vsub.f32 %v21982_v45, %v28670_v13  ;;  %v22315_v55 = vsub.f32 %v21986_v8, %v28674_v19  ;;  %v28680_v23 = vld [vmem:[#allocation21_spill] sm:$0xff] }
 0x362   : > { %v22310_v31 = vsub.f32 %v21984_v26, %v28672_v39  ;;  %v28676_v32 = vand.u32 4294901760, %v21988_v49  ;;  %v16452_v45 = vpack.c.bf16 %v22272_v17, %v22249_v29  ;;  %v28679_v26 = vand.u32 4294901760, %v28678_v9  ;;  %16451 = vmatprep.subr.bf16.mxu0 %v16450_v48 }
 0x363   : > { %28671 = vst [vmem:[#allocation47_spill] sm:$0xff] %v22305_v2  ;;  %28675 = vst [vmem:[#allocation70_spill] sm:$0xff] %v22315_v55  ;;  %v28681_v62 = vand.u32 4294901760, %v28680_v23  ;;  %v16220_v27 = vpack.c.bf16 %v5911_v1, %v5904_v28  ;;  %v16222_v24 = vpack.c.bf16 %v6037_v56, %v6030_v61  ;;  %v5918_v13 = vand.u32 4294901760, %v5917_v34  ;;  %v13218_v61 = vpop.f32.mrb[30].mxu0  ;;  %v28690_v34 = vld [vmem:[#allocation64_spill] sm:$0xff] }
 0x364   : > { %28673 = vst [vmem:[#allocation87_spill] sm:$0xff] %v22310_v31  ;;  %v22322_v47 = vsub.f32 %v21988_v49, %v28676_v32  ;;  %v5931_v60 = vsub.f32 %v28678_v9, %v28679_v26  ;;  %v5925_v39 = vand.u32 4294901760, %v5924_v35  ;;  %v6044_v49 = vand.u32 4294901760, %v6043_v6  ;;  %v28682_v32 = vld [vmem:[#allocation98_spill] sm:$0xff]  ;;  %16453 = vmatpush3.bf16.msra.mxu0 %v16452_v45 }
 0x365   : > { %v5938_v8 = vsub.f32 %v28680_v23, %v28681_v62  ;;  %v6051_v19 = vand.u32 4294901760, %v6050_v51  ;;  %v28683_v57 = vand.u32 4294901760, %v28682_v32  ;;  %v28685_v17 = vand.u32 4294901760, %v28684_v10  ;;  %16221 = vmatpush3.bf16.msra.mxu1 %v16220_v27  ;;  %v28692_v51 = vld [vmem:[#allocation65_spill] sm:$0xff] }
 0x366   : > { %28677 = vst [vmem:[#allocation50_spill] sm:$0xff] %v22322_v47  ;;  %v28686_v26 = vand.u32 4294901760, %v22013_v58  ;;  %v16454_v20 = vpack.c.bf16 %v22282_v3, %v22277_v52  ;;  %v28688_v28 = vand.u32 4294901760, %v22015_v11  ;;  %v28691_v35 = vand.u32 4294901760, %v28690_v34  ;;  %16223 = vmatprep.subr.bf16.mxu1 %v16222_v24 }
 0x367   : > { %v6057_v44 = vsub.f32 %v28682_v32, %v28683_v57  ;;  %v6064_v9 = vsub.f32 %v28684_v10, %v28685_v17  ;;  %v5932_v57 = vand.u32 4294901760, %v5931_v60  ;;  %v5939_v56 = vand.u32 4294901760, %v5938_v8  ;;  %v13219_v10 = vpop.f32.mrb[31].mxu0 }
 0x368   : > { %v22341_v7 = vsub.f32 %v22013_v58, %v28686_v26  ;;  %v22348_v1 = vsub.f32 %v22015_v11, %v28688_v28  ;;  %v5945_v17 = vsub.f32 %v28690_v34, %v28691_v35  ;;  %v16224_v58 = vpack.c.bf16 %v5925_v39, %v5918_v13  ;;  %16455 = vmatprep.subr.bf16.mxu0 %v16454_v20  ;;  %v28695_v39 = vld [vmem:[#allocation86_spill] sm:$0xff]  ;;  %v28697_v28 = vld [vmem:[#allocation124_spill] sm:$0xff] }
 0x369   : > { %v16456_v43 = vpack.c.bf16 %v22310_v31, %v22305_v2  ;;  %v16458_v6 = vpack.c.bf16 %v22322_v47, %v22315_v55  ;;  %v28693_v48 = vand.u32 4294901760, %v28692_v51  ;;  %v22360_v23 = vadd.f32 %v13219_v10, %v13218_v61  ;;  %v13221_v61 = vpop.f32.mrb[32].mxu0  ;;  %v28699_v20 = vld [vmem:[#allocation66_spill] sm:$0xff] }
 0x36a   : > { %28687 = vst [vmem:[#allocation118_spill] sm:$0xff] %v22341_v7  ;;  %28689 = vst [vmem:[#allocation17_spill] sm:$0xff] %v22348_v1  ;;  %v16226_v60 = vpack.c.bf16 %v6051_v19, %v6044_v49  ;;  %v6058_v62 = vand.u32 4294901760, %v6057_v44  ;;  %v6065_v8 = vand.u32 4294901760, %v6064_v9  ;;  %v27076_v27 = vand.u32 4294901760, %v22030_v37  ;;  %v13222_v49 = vpop.f32.mrb[33].mxu0  ;;  %16225 = vmatpush3.bf16.msra.mxu1 %v16224_v58 }
 0x36b   : > { %v5952_v11 = vsub.f32 %v28692_v51, %v28693_v48  ;;  %28694 = vst [vmem:[#allocation123_spill] sm:$0xff] %v22360_v23  ;;  %v27071_v13 = vand.u32 4294901760, %v22035_v14  ;;  %v28696_v32 = vand.u32 4294901760, %v28695_v39  ;;  %v28698_v34 = vand.u32 4294901760, %v28697_v28  ;;  %16457 = vmatpush3.bf16.msra.mxu0 %v16456_v43 }
 0x36c   : > { %v16228_v10 = vpack.c.bf16 %v5939_v56, %v5932_v57  ;;  %v16460_v45 = vpack.c.bf16 %v22348_v1, %v22341_v7  ;;  %v5946_v44 = vand.u32 4294901760, %v5945_v17  ;;  %v27070_v24 = vand.u32 4294901760, %v22040_v5  ;;  %16227 = vmatprep.subr.bf16.mxu1 %v16226_v60  ;;  %16459 = vmatprep.subr.bf16.mxu0 %v16458_v6 }
 0x36d   : > { %v6071_v26 = vsub.f32 %v28695_v39, %v28696_v32  ;;  %v6078_v35 = vsub.f32 %v28697_v28, %v28698_v34  ;;  %v5953_v19 = vand.u32 4294901760, %v5952_v11  ;;  %v28700_v51 = vand.u32 4294901760, %v28699_v20  ;;  %v28701_v39 = vld [vmem:[#allocation74_spill] sm:$0xff]  ;;  %v12952_v11 = vpop.f32.mrb[32].mxu1 }
 0x36e   : > { %v28702_v32 = vand.u32 4294901760, %v28701_v39  ;;  %v22380_v57 = vadd.f32 %v13222_v49, %v13221_v61  ;;  %v16230_v56 = vpack.c.bf16 %v6065_v8, %v6058_v62  ;;  %v27069_v17 = vand.u32 4294901760, %v22068_v36  ;;  %v12953_v9 = vpop.f32.mrb[33].mxu1  ;;  %16229 = vmatpush3.bf16.msra.mxu1 %v16228_v10 }
 0x36f   : > { %v5959_v48 = vsub.f32 %v28699_v20, %v28700_v51  ;;  %v27068_v58 = vand.u32 4294901760, %v22073_v38  ;;  %v16494_v34 = vpack.c.bf16 %v27071_v13, %v27076_v27  ;;  %v6072_v20 = vand.u32 4294901760, %v6071_v26  ;;  %16461 = vmatpush3.bf16.msra.mxu0 %v16460_v45  ;;  %v28723_v13 = vld [vmem:[#allocation51_spill] sm:$0xff]  ;;  %v13294_v27 = vpop.f32.mrb[34].mxu0 }
 0x370   : > { %v5966_v28 = vsub.f32 %v28701_v39, %v28702_v32  ;;  %28703 = vst [vmem:[#allocation132_spill] sm:$0xff] %v22380_v57  ;;  %v6079_v51 = vand.u32 4294901760, %v6078_v35  ;;  %v12954_v39 = vadd.f32 %v12953_v9, %v12952_v11  ;;  %v16232_v61 = vpack.c.bf16 %v5953_v19, %v5946_v44  ;;  %16231 = vmatprep.subr.bf16.mxu1 %v16230_v56  ;;  %v12955_v44 = vpop.f32.mrb[34].mxu1  ;;  %v28705_v32 = vld [vmem:[#allocation80_spill] sm:$0xff]  ;;  %v28706_v56 = vld [vmem:[#allocation126_spill] sm:$0xff] }
 0x371   : > { %v5960_v43 = vand.u32 4294901760, %v5959_v48  ;;  %v28704_v62 = vand.u32 4294901760, %v22063_v41  ;;  %v16498_v8 = vpack.c.bf16 %v27068_v58, %v27069_v17  ;;  %v27067_v26 = vand.u32 4294901760, %v22085_v40  ;;  %16495 = vmatprep.subr.bf16.mxu0 %v16494_v34  ;;  %v12956_v9 = vpop.f32.mrb[35].mxu1  ;;  %v28722_v17 = vld [vmem:[#allocation55_spill] sm:$0xff] }
 0x372   : > { %v5967_v60 = vand.u32 4294901760, %v5966_v28  ;;  %v27062_v35 = vand.u32 4294901760, %v22090_v50  ;;  %v3884_v10 = vadd.f32 %v12954_v39, %v22207_v12  ;;  %v16234_v45 = vpack.c.bf16 %v6079_v51, %v6072_v20  ;;  %7147 = vmatmul.mubr.f32.vlgmr.msra.gmra.mrb[58].mxu0 %v28705_v32  ;;  %16233 = vmatpush3.bf16.msra.mxu1 %v16232_v61 }
 0x373   : > { %v16496_v6 = vpack.c.bf16 %v28704_v62, %v27070_v24  ;;  %v27061_v49 = vand.u32 4294901760, %v22095_v22  ;;  %v27060_v19 = vand.u32 4294901760, %v22100_v18  ;;  %v12957_v48 = vadd.f32 %v12956_v9, %v12955_v44  ;;  %v28707_v62 = vld [vmem:[#allocation63_spill] sm:$0xff] }
 0x374   : > { %v16236_v28 = vpack.c.bf16 %v5967_v60, %v5960_v43  ;;  %v22403_v11 = vadd.f32 %v28706_v56, %v3884_v10  ;;  %7153 = vmatprep.mubr.f32.mxu0 %v28707_v62  ;;  %v16500_v12 = vpack.c.bf16 %v27062_v35, %v27067_v26  ;;  %v27059_v34 = vand.u32 4294901760, %v22105_v46  ;;  %16235 = vmatprep.subr.bf16.mxu1 %v16234_v45  ;;  %v28708_v60 = vld [vmem:[#allocation75_spill] sm:$0xff]  ;;  %v28710_v45 = vld [vmem:[#allocation116_spill] sm:$0xff]  ;;  %v22488_v62 = vld [vmem:[#allocation2 + $0x688] sm:$0xff] }
 0x375   : > { %16497 = vmatpush3.bf16.msra.mxu0 %v16496_v6  ;;  %v27058_v20 = vand.u32 4294901760, %v22110_v59  ;;  %v3891_v51 = vadd.f32 %v12957_v48, %v22232_v4  ;;  %v16502_v39 = vpack.c.bf16 %v27060_v19, %v27061_v49  ;;  %v27057_v61 = vand.u32 4294901760, %v22115_v53  ;;  %v28709_v10 = vld [vmem:[#allocation79_spill] sm:$0xff]  ;;  %v28715_v19 = vld [vmem:[#allocation32_spill] sm:$0xff]  ;;  %v28716_v49 = vld [vmem:[#allocation49_spill] sm:$0xff] }
 0x376   : > { %16499 = vmatprep.subr.bf16.mxu0 %v16498_v8  ;;  %v27056_v43 = vand.u32 4294901760, %v22120_v33  ;;  %7156 = vmatmul.mubr.f32.gmra.mrb[60].mxu0 %v21961_v25  ;;  %v27064_v8 = vand.u32 4294901760, %v22126_v0  ;;  %v27063_v44 = vand.u32 4294901760, %v22142_v54  ;;  %v27066_v48 = vand.u32 4294901760, %v22156_v42  ;;  %v28711_v56 = vld [vmem:[#allocation103_spill] sm:$0xff]  ;;  %v22486_v25 = vld [vmem:[#allocation2 + $0x680] sm:$0xff] }
 0x377   : > { %16237 = vmatpush3.bf16.msra.mxu1 %v16236_v28  ;;  %v22421_v6 = vadd.f32 %v28708_v60, %v3891_v51  ;;  %7441 = vmatprep.mubr.f32.mxu0 %v28709_v10  ;;  %v16504_v4 = vpack.c.bf16 %v27058_v20, %v27059_v34  ;;  %v27065_v28 = vand.u32 4294901760, %v22161_v21  ;;  %v28713_v51 = vld [vmem:[#allocation117_spill] sm:$0xff]  ;;  %v27075_v34 = vand.u32 4294901760, %v22189_v16  ;;  %v28717_v35 = vld [vmem:[#allocation115_spill] sm:$0xff]  ;;  %v22685_v46 = vld [vmem:[#allocation2 + $0x650] sm:$0xff] }
 0x378   : > { %16271 = vmatprep.subr.bf16.mxu1 %v28710_v45  ;;  %v16506_v9 = vpack.c.bf16 %v27056_v43, %v27057_v61  ;;  %v28714_v60 = vld [vmem:[#allocation133_spill] sm:$0xff]  ;;  %v27073_v43 = vand.u32 4294901760, %v22172_v63  ;;  %v27072_v61 = vand.u32 4294901760, %v22184_v30  ;;  %v28731_v57 = vand.u32 4294901760, %v22315_v55  ;;  %v22577_v10 = vld [vmem:[#allocation2 + $0x6b8] sm:$0xff] }
 0x379   : > { %16501 = vmatpush3.bf16.msra.mxu0 %v16500_v12  ;;  %v28712_v12 = vld [vmem:[#allocation26_spill] sm:$0xff]  ;;  %v16510_v20 = vpack.c.bf16 %v27065_v28, %v27066_v48  ;;  %v27079_v28 = vand.u32 4294901760, %v22249_v29  ;;  %v28720_v48 = vld [vmem:[#allocation41_spill] sm:$0xff]  ;;  %v28732_v23 = vand.u32 4294901760, %v22322_v47 }
 0x37a   : > { %16503 = vmatprep.subr.bf16.mxu0 %v16502_v39  ;;  %6084 = vmatmul.mubr.f32.vlgmr.msra.gmra.mrb[60].mxu1 %v28711_v56  ;;  %v16508_v39 = vpack.c.bf16 %v27063_v44, %v27064_v8  ;;  %v28718_v44 = vand.u32 4294901760, %v28717_v35  ;;  %v28719_v8 = vld [vmem:[#allocation119_spill] sm:$0xff]  ;;  %v27078_v26 = vand.u32 4294901760, %v28720_v48  ;;  %v27081_v35 = vand.u32 4294901760, %v22277_v52  ;;  %v13028_v52 = vpop.f32.mrb[36].mxu1  ;;  %v28755_v21 = vld [vmem:[#allocation77_spill] sm:$0xff] }
 0x37b   : > { %6089 = vmatprep.mubr.f32.mxu1 %v28712_v12  ;;  %16273 = vmatpush3.bf16.msra.mxu1 %v28713_v51  ;;  %v28756_v42 = vrot.slane %v28755_v21, 5  ;;  %v28757_v54 = vld [vmem:[#allocation97_spill] sm:$0xff] }
 0x37c   : > { %16275 = vmatprep.subr.bf16.mxu1 %v28714_v60  ;;  %v28767_v56 = vld [vmem:[#allocation69_spill] sm:$0xff] }
 0x37d   : > { %16505 = vmatpush3.bf16.msra.mxu0 %v16504_v4  ;;  %v27074_v4 = vand.u32 4294901760, %v22244_v15  ;;  %v22570_v15 = vld [vmem:[#allocation2 + $0x628] sm:$0xff] }
 0x37e   : > { %16507 = vmatprep.subr.bf16.mxu0 %v16506_v9  ;;  %6091 = vmatmul.mubr.f32.gmra.mrb[62].mxu1 %v28715_v19  ;;  %v16512_v9 = vpack.c.bf16 %v27072_v61, %v27073_v43  ;;  %v28724_v61 = vld [vmem:[#allocation120_spill] sm:$0xff]  ;;  %v28726_v43 = vld [vmem:[#allocation37_spill] sm:$0xff] }
 0x37f   : > { %16277 = vmatpush3.bf16.msra.mxu1 %v28716_v49  ;;  %6342 = vmatprep.mubr.f32.mxu1 %v28718_v44  ;;  %v16514_v58 = vpack.c.bf16 %v27074_v4, %v27075_v34  ;;  %v27080_v44 = vand.u32 4294901760, %v22282_v3  ;;  %v28728_v4 = vld [vmem:[#allocation40_spill] sm:$0xff]  ;;  %v16522_v3 = vpack.c.bf16 %v28732_v23, %v28731_v57  ;;  %v28734_v34 = vld [vmem:[#allocation35_spill] sm:$0xff]  ;;  %v28791_v59 = vld [vmem:[#allocation33_spill] sm:$0xff] }
 0x380   : > { %16279 = vmatprep.subr.bf16.mxu1 %v28719_v8  ;;  %v28736_v57 = vld [vmem:[#allocation36_spill] sm:$0xff] }
 0x381   : > { %16509 = vmatpush3.bf16.msra.mxu0 %v16508_v39  ;;  %v28721_v39 = vld [vmem:[#allocation121_spill] sm:$0xff] }
 0x382   : > { %16511 = vmatprep.subr.bf16.mxu0 %v16510_v20  ;;  %v1790_v24 = vmul.f32 %v28722_v17, %v28721_v39  ;;  %v16516_v20 = vpack.c.bf16 %v27078_v26, %v27079_v28  ;;  %v16518_v39 = vpack.c.bf16 %v27080_v44, %v27081_v35  ;;  %v13295_v28 = vpop.f32.mrb[35].mxu0  ;;  %v28729_v44 = vand.u32 4294901760, %v22305_v2  ;;  %v22542_v2 = vld [vmem:[#allocation2 + $0x6a0] sm:$0xff] }
 0x383   : > { %16281 = vmatpush3.bf16.msra.mxu1 %v28723_v13  ;;  %v28730_v35 = vand.u32 4294901760, %v22310_v31  ;;  %v13297_v31 = vpop.f32.mrb[36].mxu0 }
 0x384   : > { %16283 = vmatprep.subr.bf16.mxu1 %v28724_v61  ;;  %v22490_v26 = vand.u32 4294901760, %v1790_v24  ;;  %v13298_v32 = vpop.f32.mrb[37].mxu0 }
 0x385   : > { %16513 = vmatpush3.bf16.msra.mxu0 %v16512_v9  ;;  %v16520_v9 = vpack.c.bf16 %v28730_v35, %v28729_v44  ;;  %v22512_v35 = vld [vmem:[#allocation2 + $0x690] sm:$0xff]  ;;  %v22514_v44 = vld [vmem:[#allocation2 + $0x698] sm:$0xff]  ;;  %v22520_v23 = vadd.f32 %v13298_v32, %v13297_v31 }
 0x386   : > { %16515 = vmatprep.subr.bf16.mxu0 %v16514_v58  ;;  %28725 = vst [vmem:[#allocation20_spill] sm:$0xff] %v22490_v26  ;;  %v22493_v58 = vadd.f32 %v13295_v28, %v13294_v27  ;;  %v28737_v28 = vand.u32 4294901760, %v22341_v7  ;;  %v28738_v27 = vand.u32 4294901760, %v22348_v1  ;;  %v22539_v1 = vld [vmem:[#allocation2 + $0x618] sm:$0xff]  ;;  %v28742_v7 = vld [vmem:[#allocation81_spill] sm:$0xff]  ;;  %v28744_v32 = vld [vmem:[#allocation38_spill] sm:$0xff] }
 0x387   : > { %16285 = vmatpush3.bf16.msra.mxu1 %v28726_v43  ;;  %28735 = vst [vmem:[#allocation127_spill] sm:$0xff] %v22520_v23  ;;  %v22537_v23 = vld [vmem:[#allocation2 + $0x610] sm:$0xff]  ;;  %v28749_v30 = vand.u32 4294901760, %v22514_v44  ;;  %v28759_v0 = vand.u32 4294901760, %v22539_v1 }
 0x388   : > { %28727 = vst [vmem:[#allocation73_spill] sm:$0xff] %v22493_v58  ;;  %16287 = vmatprep.subr.bf16.mxu1 %v28728_v4  ;;  %v22510_v58 = vld [vmem:[#allocation2 + $0x608] sm:$0xff]  ;;  %v16524_v47 = vpack.c.bf16 %v28738_v27, %v28737_v28  ;;  %v13029_v27 = vpop.f32.mrb[37].mxu1  ;;  %v22568_v28 = vld [vmem:[#allocation2 + $0x620] sm:$0xff] }
 0x389   : > { %16517 = vmatpush3.bf16.msra.mxu0 %v16516_v20  ;;  %v22508_v20 = vld [vmem:[#allocation2 + $0x600] sm:$0xff]  ;;  %v13030_v55 = vadd.f32 %v13029_v27, %v13028_v52  ;;  %v28746_v48 = vand.u32 4294901760, %v22510_v58  ;;  %v13031_v27 = vpop.f32.mrb[38].mxu1 }
 0x38a   : > { %16519 = vmatprep.subr.bf16.mxu0 %v16518_v39  ;;  %v22517_v39 = vsub.f32 %v1790_v24, %v22490_v26  ;;  %v28739_v24 = vand.u32 4294901760, %v22486_v25  ;;  %v28740_v26 = vand.u32 4294901760, %v22488_v62 }
 0x38b   : > { %16289 = vmatpush3.bf16.msra.mxu1 %v28734_v34  ;;  %v4250_v52 = vadd.f32 %v13030_v55, %v22403_v11 }
 0x38c   : > { %28733 = vst [vmem:[#allocation29_spill] sm:$0xff] %v22517_v39  ;;  %16291 = vmatprep.subr.bf16.mxu1 %v28736_v57  ;;  %v22533_v31 = vpack.c.bf16 %v28740_v26, %v28739_v24  ;;  %v28743_v26 = vld [vmem:[#allocation72_spill] sm:$0xff]  ;;  %v28751_v55 = vand.u32 4294901760, %v22517_v39 }
 0x38d   : > { %16521 = vmatpush3.bf16.msra.mxu0 %v16520_v9  ;;  %v1787_v24 = vrot.slane %v28743_v26, 5  ;;  %v28745_v9 = vand.u32 4294901760, %v22508_v20  ;;  %v1782_v16 = vrot.slane %v28743_v26, 4  ;;  %v13032_v26 = vpop.f32.mrb[39].mxu1 }
 0x38e   : > { %16523 = vmatprep.subr.bf16.mxu0 %v16522_v3  ;;  %28741 = vst [vmem:[#allocation128_spill] sm:$0xff] %v22533_v31  ;;  %v22544_v3 = vld [vmem:[#allocation2 + $0x6a8] sm:$0xff]  ;;  %v7665_v11 = vsub.f32 %v22517_v39, %v28751_v55  ;;  %v13033_v19 = vadd.f32 %v13032_v26, %v13031_v27  ;;  %v28758_v55 = vand.u32 4294901760, %v22537_v23  ;;  %v22611_v27 = vld [vmem:[#allocation2 + $0x630] sm:$0xff] }
 0x38f   : > { %16293 = vmatpush3.bf16.msra.mxu1 %v28742_v7  ;;  %v22553_v29 = vpack.c.bf16 %v28746_v48, %v28745_v9  ;;  %v28754_v48 = vld [vmem:[#allocation105_spill] sm:$0xff]  ;;  %v1788_v12 = vsel %vm1735_vm4, %v28756_v42, %v1787_v24  ;;  %v28762_v24 = vld [vmem:[#allocation22_spill] sm:$0xff] }
 0x390   : > { %16295 = vmatprep.subr.bf16.mxu1 %v28744_v32  ;;  %v22582_v9 = vadd.f32 %v28754_v48, %v4250_v52  ;;  %v22593_v26 = vpack.c.bf16 %v28759_v0, %v28758_v55  ;;  %v28761_v52 = vrot.slane %v28755_v21, 4  ;;  %v4257_v42 = vadd.f32 %v13033_v19, %v22421_v6  ;;  %v22613_v21 = vld [vmem:[#allocation2 + $0x638] sm:$0xff]  ;;  %v28770_v55 = vld [vmem:[#allocation129_spill] sm:$0xff] }
 0x391   : > { %16525 = vmatpush3.bf16.msra.mxu0 %v16524_v47  ;;  %28747 = vst [vmem:[#allocation18_spill] sm:$0xff] %v22553_v29  ;;  %v28748_v47 = vand.u32 4294901760, %v22512_v35  ;;  %v7666_v6 = vand.u32 4294901760, %v7665_v11  ;;  %v1791_v33 = vmul.f32 %v28767_v56, %v1788_v12  ;;  %v28771_v11 = vand.u32 4294901760, %v22568_v28 }
 0x392   : > { %16559 = vmatprep.subr.bf16.mxu0 %v22533_v31  ;;  %v22575_v31 = vld [vmem:[#allocation2 + $0x6b0] sm:$0xff]  ;;  %28760 = vst [vmem:[#allocation135_spill] sm:$0xff] %v22593_v26  ;;  %v1783_v48 = vsel %vm1725_vm5, %v28761_v52, %v1782_v16  ;;  %v22617_v52 = vld [vmem:[#allocation2 + $0x6c0] sm:$0xff] }
 0x393   : > { %v22564_v63 = vpack.c.bf16 %v28749_v30, %v28748_v47  ;;  %v28752_v30 = vld [vmem:[#allocation104_spill] sm:$0xff]  ;;  %v28766_v16 = vld [vmem:[#allocation122_spill] sm:$0xff]  ;;  %v1786_v53 = vmul.f32 %v28767_v56, %v1783_v48  ;;  %v28775_v48 = vand.u32 4294901760, %v22577_v10  ;;  %v22657_v56 = vld [vmem:[#allocation2 + $0x6d8] sm:$0xff]  ;;  %v22659_v39 = vand.u32 4294901760, %v1791_v33 }
 0x394   : > { %7443 = vmatmul.mubr.f32.vlgmr.msra.gmra.mrb[62].mxu0 %v28752_v30  ;;  %v28753_v47 = vld [vmem:[#allocation76_spill] sm:$0xff]  ;;  %v1785_v19 = vmul.f32 %v28722_v17, %v28766_v16  ;;  %v22625_v30 = vadd.f32 %v28770_v55, %v4257_v42  ;;  %v28772_v16 = vand.u32 4294901760, %v22570_v15  ;;  %v28774_v42 = vand.u32 4294901760, %v22575_v31 }
 0x395   : > { %28750 = vst [vmem:[#allocation134_spill] sm:$0xff] %v22564_v63  ;;  %16297 = vmatpush3.bf16.msra.mxu1 %v28753_v47  ;;  %7448 = vmatprep.mubr.f32.mxu0 %v28757_v54  ;;  %v28764_v54 = vand.u32 4294901760, %v22544_v3  ;;  %28780 = vst [vmem:[#allocation98_spill] sm:$0xff] %v22659_v39 }
 0x396   : > { %16561 = vmatpush3.bf16.msra.mxu0 %v22553_v29  ;;  %16299 = vmatprep.subr.bf16.mxu1 %v28762_v24  ;;  %v28763_v29 = vand.u32 4294901760, %v22542_v2  ;;  %v22633_v17 = vpack.c.bf16 %v28772_v16, %v28771_v11  ;;  %v22643_v55 = vpack.c.bf16 %v28775_v48, %v28774_v42  ;;  %v22647_v11 = vld [vmem:[#allocation2 + $0x640] sm:$0xff]  ;;  %v22649_v16 = vld [vmem:[#allocation2 + $0x648] sm:$0xff]  ;;  %v22651_v12 = vand.u32 4294901760, %v1785_v19  ;;  %v28781_v42 = vld [vmem:[#allocation30_spill] sm:$0xff] }
 0x397   : > { %16563 = vmatprep.subr.bf16.mxu0 %v22564_v63  ;;  %v22619_v63 = vld [vmem:[#allocation2 + $0x6c8] sm:$0xff]  ;;  %v28782_v48 = vand.u32 4294901760, %v28781_v42 }
 0x398   : > { %v22607_v0 = vpack.c.bf16 %v28764_v54, %v28763_v29  ;;  %v28768_v54 = vld [vmem:[#allocation99_spill] sm:$0xff]  ;;  %28773 = vst [vmem:[#allocation24_spill] sm:$0xff] %v22633_v17  ;;  %28776 = vst [vmem:[#allocation131_spill] sm:$0xff] %v22643_v55  ;;  %v28788_v42 = vand.u32 4294901760, %v22619_v63  ;;  %v22696_v24 = vld [vmem:[#allocation2 + $0x6e8] sm:$0xff] }
 0x399   : > { %7450 = vmatmul.mubr.f32.gmra.mrb[64].mxu0 %v28768_v54  ;;  %v28769_v29 = vld [vmem:[#allocation31_spill] sm:$0xff]  ;;  %28777 = vst [vmem:[#allocation21_spill] sm:$0xff] %v22651_v12  ;;  %v28778_v54 = vld [vmem:[#allocation28_spill] sm:$0xff]  ;;  %28794 = vst [vmem:[#allocation66_spill] sm:$0xff] %v22696_v24 }
 0x39a   : > { %28765 = vst [vmem:[#allocation136_spill] sm:$0xff] %v22607_v0  ;;  %16301 = vmatpush3.bf16.msra.mxu1 %v28769_v29  ;;  %16565 = vmatpush3.bf16.msra.mxu0 %v22593_v26  ;;  %v22664_v26 = vand.u32 4294901760, %v1786_v53  ;;  %v28792_v29 = vand.u32 4294901760, %v28791_v59  ;;  %v28798_v59 = vand.u32 4294901760, %v22647_v11 }
 0x39b   : > { %7667 = vmatprep.mubr.f32.mxu0 %v7666_v6  ;;  %16335 = vmatprep.subr.bf16.mxu1 %v28710_v45  ;;  %v28779_v45 = vand.u32 4294901760, %v28778_v54  ;;  %v28784_v54 = vand.u32 4294901760, %v22611_v27 }
 0x39c   : > { %16567 = vmatprep.subr.bf16.mxu0 %v22607_v0  ;;  %v22655_v0 = vld [vmem:[#allocation2 + $0x6d0] sm:$0xff]  ;;  %28783 = vst [vmem:[#allocation48_spill] sm:$0xff] %v22664_v26 }
 0x39d   : > { %6346 = vmatmul.mubr.f32.vlgmr.msra.gmra.mrb[64].mxu1 %v28779_v45  ;;  %v28785_v45 = vand.u32 4294901760, %v22613_v21 }
 0x39e   : > { %6353 = vmatprep.mubr.f32.mxu1 %v28782_v48  ;;  %16337 = vmatpush3.bf16.msra.mxu1 %v28713_v51  ;;  %v28787_v51 = vand.u32 4294901760, %v22617_v52 }
 0x39f   : > { %16569 = vmatpush3.bf16.msra.mxu0 %v22633_v17  ;;  %16339 = vmatprep.subr.bf16.mxu1 %v28714_v60  ;;  %v22672_v6 = vpack.c.bf16 %v28785_v45, %v28784_v54  ;;  %v22687_v54 = vld [vmem:[#allocation2 + $0x658] sm:$0xff]  ;;  %v22690_v45 = vsub.f32 %v1785_v19, %v22651_v12  ;;  %v22704_v17 = vsub.f32 %v1786_v53, %v22664_v26  ;;  %v28799_v19 = vand.u32 4294901760, %v22649_v16  ;;  %v22725_v26 = vld [vmem:[#allocation2 + $0x660] sm:$0xff]  ;;  %v22756_v12 = vld [vmem:[#allocation2 + $0x670] sm:$0xff] }
 0x3a0   : > { %16571 = vmatprep.subr.bf16.mxu0 %v22643_v55  ;;  %v22681_v48 = vpack.c.bf16 %v28788_v42, %v28787_v51  ;;  %v22694_v55 = vld [vmem:[#allocation2 + $0x6e0] sm:$0xff]  ;;  %v22699_v51 = vsub.f32 %v1791_v33, %v22659_v39  ;;  %v28796_v42 = vld [vmem:[#allocation130_spill] sm:$0xff]  ;;  %v28802_v53 = vand.u32 4294901760, %v22657_v56  ;;  %v22731_v33 = vld [vmem:[#allocation2 + $0x6f8] sm:$0xff] }
 0x3a1   : > { %28786 = vst [vmem:[#allocation64_spill] sm:$0xff] %v22672_v6  ;;  %28790 = vst [vmem:[#allocation86_spill] sm:$0xff] %v22690_v45  ;;  %6357 = vmatmul.mubr.f32.gmra.mrb[66].mxu1 %v28792_v29  ;;  %v22712_v29 = vpack.c.bf16 %v28799_v19, %v28798_v59  ;;  %v22727_v59 = vld [vmem:[#allocation2 + $0x668] sm:$0xff]  ;;  %v22729_v19 = vld [vmem:[#allocation2 + $0x6f0] sm:$0xff]  ;;  %v28810_v39 = vand.u32 4294901760, %v22690_v45 }
 0x3a2   : > { %28789 = vst [vmem:[#allocation65_spill] sm:$0xff] %v22681_v48  ;;  %28793 = vst [vmem:[#allocation124_spill] sm:$0xff] %v22694_v55  ;;  %16341 = vmatpush3.bf16.msra.mxu1 %v28716_v49  ;;  %6634 = vmatprep.mubr.f32.mxu1 %v28796_v42  ;;  %v28801_v49 = vand.u32 4294901760, %v22655_v0 }
 0x3a3   : > { %28795 = vst [vmem:[#allocation74_spill] sm:$0xff] %v22699_v51  ;;  %28797 = vst [vmem:[#allocation126_spill] sm:$0xff] %v22704_v17  ;;  %16573 = vmatpush3.bf16.msra.mxu0 %v22672_v6  ;;  %16343 = vmatprep.subr.bf16.mxu1 %v28719_v8  ;;  %v28805_v6 = vand.u32 4294901760, %v22687_v54  ;;  %v22763_v60 = vsub.f32 %v22690_v45, %v28810_v39 }
 0x3a4   : > { %28800 = vst [vmem:[#allocation75_spill] sm:$0xff] %v22712_v29  ;;  %16575 = vmatprep.subr.bf16.mxu0 %v22681_v48  ;;  %v22721_v42 = vpack.c.bf16 %v28802_v53, %v28801_v49  ;;  %v28804_v53 = vand.u32 4294901760, %v22685_v46  ;;  %v28808_v49 = vand.u32 4294901760, %v22696_v24 }
 0x3a6   : > { %28803 = vst [vmem:[#allocation116_spill] sm:$0xff] %v22721_v42  ;;  %16345 = vmatpush3.bf16.msra.mxu1 %v28723_v13  ;;  %v22743_v8 = vpack.c.bf16 %v28805_v6, %v28804_v53  ;;  %v28807_v13 = vand.u32 4294901760, %v22694_v55  ;;  %v22758_v6 = vld [vmem:[#allocation2 + $0x678] sm:$0xff]  ;;  %v13370_v53 = vpop.f32.mrb[38].mxu0  ;;  %v28814_v55 = vand.u32 4294901760, %v22508_v20 }
 0x3a7   : > { %16577 = vmatpush3.bf16.msra.mxu0 %v22712_v29  ;;  %16347 = vmatprep.subr.bf16.mxu1 %v28724_v61  ;;  %v28813_v29 = vand.u32 4294901760, %v22488_v62  ;;  %v13371_v45 = vpop.f32.mrb[39].mxu0 }
 0x3a8   : > { %28806 = vst [vmem:[#allocation117_spill] sm:$0xff] %v22743_v8  ;;  %16579 = vmatprep.subr.bf16.mxu0 %v22721_v42  ;;  %v22752_v48 = vpack.c.bf16 %v28808_v49, %v28807_v13  ;;  %v28811_v42 = vand.u32 4294901760, %v22699_v51  ;;  %v28812_v49 = vand.u32 4294901760, %v22486_v25  ;;  %v22783_v39 = vsub.f32 %v22508_v20, %v28814_v55 }
 0x3a9   : > { %v22778_v61 = vsub.f32 %v22488_v62, %v28813_v29  ;;  %v28817_v62 = vand.u32 4294901760, %v22725_v26  ;;  %v28818_v29 = vand.u32 4294901760, %v22727_v59  ;;  %v28829_v55 = vand.u32 4294901760, %v22544_v3 }
 0x3aa   : > { %28809 = vst [vmem:[#allocation133_spill] sm:$0xff] %v22752_v48  ;;  %v22768_v24 = vsub.f32 %v22699_v51, %v28811_v42  ;;  %v22773_v13 = vsub.f32 %v22486_v25, %v28812_v49  ;;  %16349 = vmatpush3.bf16.msra.mxu1 %v28726_v43  ;;  %v28815_v42 = vand.u32 4294901760, %v22704_v17  ;;  %v22791_v25 = vadd.f32 %v13371_v45, %v13370_v53 }
 0x3ab   : > { %16581 = vmatpush3.bf16.msra.mxu0 %v22743_v8  ;;  %16351 = vmatprep.subr.bf16.mxu1 %v28728_v4  ;;  %v22799_v20 = vpack.c.bf16 %v28818_v29, %v28817_v62  ;;  %v28820_v49 = vand.u32 4294901760, %v22510_v58  ;;  %v28821_v45 = vand.u32 4294901760, %v22512_v35  ;;  %v28822_v4 = vand.u32 4294901760, %v22514_v44 }
 0x3ac   : > { %v22789_v51 = vsub.f32 %v22704_v17, %v28815_v42  ;;  %28816 = vst [vmem:[#allocation49_spill] sm:$0xff] %v22791_v25  ;;  %16583 = vmatprep.subr.bf16.mxu0 %v22752_v48  ;;  %v28823_v62 = vand.u32 4294901760, %v22729_v19  ;;  %v28824_v29 = vand.u32 4294901760, %v22731_v33  ;;  %v28830_v48 = vand.u32 4294901760, %v22568_v28 }
 0x3ad   : > { %28819 = vst [vmem:[#allocation115_spill] sm:$0xff] %v22799_v20  ;;  %v22806_v42 = vsub.f32 %v22510_v58, %v28820_v49  ;;  %v22811_v53 = vsub.f32 %v22512_v35, %v28821_v45  ;;  %v22816_v8 = vsub.f32 %v22514_v44, %v28822_v4  ;;  %v28826_v58 = vand.u32 4294901760, %v22537_v23 }
 0x3ae   : > { %v22823_v43 = vpack.c.bf16 %v28824_v29, %v28823_v62  ;;  %v28827_v35 = vand.u32 4294901760, %v22539_v1  ;;  %v28828_v44 = vand.u32 4294901760, %v22542_v2  ;;  %v22843_v62 = vsub.f32 %v22544_v3, %v28829_v55  ;;  %v13373_v29 = vpop.f32.mrb[40].mxu0  ;;  %16353 = vmatpush3.bf16.msra.mxu1 %v28734_v34 }
 0x3af   : > { %v22828_v49 = vsub.f32 %v22537_v23, %v28826_v58  ;;  %v22848_v23 = vsub.f32 %v22568_v28, %v28830_v48  ;;  %v28832_v58 = vand.u32 4294901760, %v22570_v15  ;;  %v13374_v55 = vpop.f32.mrb[41].mxu0  ;;  %v28838_v28 = vand.u32 4294901760, %v22611_v27  ;;  %16585 = vmatpush3.bf16.msra.mxu0 %v22799_v20  ;;  %16355 = vmatprep.subr.bf16.mxu1 %v28736_v57 }
 0x3b0   : > { %28825 = vst [vmem:[#allocation119_spill] sm:$0xff] %v22823_v43  ;;  %v22833_v45 = vsub.f32 %v22539_v1, %v28827_v35  ;;  %v22838_v4 = vsub.f32 %v22542_v2, %v28828_v44  ;;  %v28834_v35 = vand.u32 4294901760, %v22575_v31  ;;  %v28836_v44 = vand.u32 4294901760, %v22577_v10  ;;  %16587 = vmatprep.subr.bf16.mxu0 %v22823_v43 }
 0x3b1   : > { %28831 = vst [vmem:[#allocation121_spill] sm:$0xff] %v22848_v23  ;;  %v22853_v1 = vsub.f32 %v22570_v15, %v28832_v58  ;;  %v22869_v48 = vsub.f32 %v22611_v27, %v28838_v28  ;;  %v22871_v15 = vadd.f32 %v13374_v55, %v13373_v29  ;;  %v28842_v58 = vand.u32 4294901760, %v22758_v6  ;;  %v13104_v27 = vpop.f32.mrb[40].mxu1 }
 0x3b2   : > { %v22858_v2 = vsub.f32 %v22575_v31, %v28834_v35  ;;  %v22863_v3 = vsub.f32 %v22577_v10, %v28836_v44  ;;  %v28841_v31 = vand.u32 4294901760, %v22756_v12  ;;  %v7672_v35 = vand.u32 4294901760, %v22763_v60  ;;  %v13105_v43 = vpop.f32.mrb[41].mxu1  ;;  %16357 = vmatpush3.bf16.msra.mxu1 %v28742_v7 }
 0x3b3   : > { %28833 = vst [vmem:[#allocation51_spill] sm:$0xff] %v22853_v1  ;;  %28839 = vst [vmem:[#allocation40_spill] sm:$0xff] %v22869_v48  ;;  %v28844_v34 = vand.u32 4294901760, %v22613_v21  ;;  %v16622_v29 = vpack.c.bf16 %v22778_v61, %v22773_v13  ;;  %v28846_v57 = vand.u32 4294901760, %v22030_v37  ;;  %v28847_v28 = vand.u32 4294901760, %v22035_v14  ;;  %16359 = vmatprep.subr.bf16.mxu1 %v28744_v32 }
 0x3b4   : > { %28835 = vst [vmem:[#allocation120_spill] sm:$0xff] %v22858_v2  ;;  %28837 = vst [vmem:[#allocation37_spill] sm:$0xff] %v22863_v3  ;;  %v22879_v10 = vpack.c.bf16 %v28842_v58, %v28841_v31  ;;  %v28848_v60 = vand.u32 4294901760, %v22617_v52  ;;  %v28852_v20 = vand.u32 4294901760, %v22040_v5  ;;  %v16624_v7 = vpack.c.bf16 %v22806_v42, %v22783_v39 }
 0x3b5   : > { %28840 = vst [vmem:[#allocation35_spill] sm:$0xff] %v22871_v15  ;;  %v22885_v44 = vsub.f32 %v22613_v21, %v28844_v34  ;;  %v6891_v55 = vsub.f32 %v22030_v37, %v28846_v57  ;;  %v6898_v31 = vsub.f32 %v22035_v14, %v28847_v28  ;;  %v28850_v21 = vand.u32 4294901760, %v22619_v63 }
 0x3b6   : > { %28843 = vst [vmem:[#allocation36_spill] sm:$0xff] %v22879_v10  ;;  %v22899_v58 = vsub.f32 %v22617_v52, %v28848_v60  ;;  %v6779_v15 = vsub.f32 %v22040_v5, %v28852_v20  ;;  %v28853_v37 = vand.u32 4294901760, %v22063_v41  ;;  %v28854_v14 = vand.u32 4294901760, %v22647_v11  ;;  %16589 = vmatpush3.bf16.msra.mxu0 %v22879_v10  ;;  %16361 = vmatpush3.bf16.msra.mxu1 %v28753_v47 }
 0x3b7   : > { %28845 = vst [vmem:[#allocation81_spill] sm:$0xff] %v22885_v44  ;;  %v22904_v34 = vsub.f32 %v22619_v63, %v28850_v21  ;;  %v13106_v52 = vadd.f32 %v13105_v43, %v13104_v27  ;;  %v28856_v63 = vand.u32 4294901760, %v22068_v36  ;;  %v28857_v21 = vand.u32 4294901760, %v22073_v38  ;;  %v13107_v43 = vpop.f32.mrb[42].mxu1  ;;  %16623 = vmatprep.subr.bf16.mxu0 %v16622_v29 }
 0x3b8   : > { %28849 = vst [vmem:[#allocation38_spill] sm:$0xff] %v22899_v58  ;;  %v6786_v57 = vsub.f32 %v22063_v41, %v28853_v37  ;;  %v22915_v28 = vsub.f32 %v22647_v11, %v28854_v14  ;;  %v28858_v20 = vand.u32 4294901760, %v22649_v16  ;;  %v28860_v37 = vand.u32 4294901760, %v22655_v0 }
 0x3b9   : > { %28851 = vst [vmem:[#allocation76_spill] sm:$0xff] %v22904_v34  ;;  %v6905_v60 = vsub.f32 %v22068_v36, %v28856_v63  ;;  %v6912_v5 = vsub.f32 %v22073_v38, %v28857_v21  ;;  %v7681_v36 = vand.u32 4294901760, %v22768_v24  ;;  %v4512_v38 = vadd.f32 %v13106_v52, %v22582_v9  ;;  %7673 = vmatmul.mubr.f32.vlgmr.msra.gmra.mrb[66].mxu0 %v7672_v35  ;;  %v28864_v52 = vld [vmem:[#allocation68_spill] sm:$0xff] }
 0x3ba   : > { %28855 = vst [vmem:[#allocation105_spill] sm:$0xff] %v22915_v28  ;;  %v22927_v41 = vsub.f32 %v22649_v16, %v28858_v20  ;;  %v22932_v11 = vsub.f32 %v22655_v0, %v28860_v37  ;;  %v16626_v16 = vpack.c.bf16 %v22816_v8, %v22811_v53  ;;  %v6892_v27 = vand.u32 4294901760, %v6891_v55  ;;  %v13108_v0 = vpop.f32.mrb[43].mxu1  ;;  %16625 = vmatpush3.bf16.msra.mxu0 %v16624_v7 }
 0x3bb   : > { %v6899_v14 = vand.u32 4294901760, %v6898_v31  ;;  %v6780_v63 = vand.u32 4294901760, %v6779_v15  ;;  %v6787_v21 = vand.u32 4294901760, %v6786_v57  ;;  %v28862_v20 = vand.u32 4294901760, %v22085_v40  ;;  %7682 = vmatprep.mubr.f32.mxu0 %v7681_v36  ;;  %v28867_v57 = vld [vmem:[#allocation22_spill] sm:$0xff] }
 0x3bc   : > { %28859 = vst [vmem:[#allocation122_spill] sm:$0xff] %v22927_v41  ;;  %28861 = vst [vmem:[#allocation129_spill] sm:$0xff] %v22932_v11  ;;  %v28863_v24 = vand.u32 4294901760, %v22090_v50  ;;  %v13109_v10 = vadd.f32 %v13108_v0, %v13107_v43  ;;  %v6906_v9 = vand.u32 4294901760, %v6905_v60  ;;  %v6913_v29 = vand.u32 4294901760, %v6912_v5  ;;  %16363 = vmatprep.subr.bf16.mxu1 %v28867_v57  ;;  %16627 = vmatprep.subr.bf16.mxu0 %v16626_v16 }
 0x3bd   : > { %v6793_v32 = vsub.f32 %v22085_v40, %v28862_v20  ;;  %v22950_v55 = vadd.f32 %v28864_v52, %v4512_v38  ;;  %v16628_v15 = vpack.c.bf16 %v22833_v45, %v22828_v49  ;;  %v28865_v40 = vand.u32 4294901760, %v22095_v22 }
 0x3be   : > { %v6800_v37 = vsub.f32 %v22090_v50, %v28863_v24  ;;  %v28866_v50 = vand.u32 4294901760, %v22100_v18  ;;  %v4523_v47 = vadd.f32 %v13109_v10, %v22625_v30  ;;  %v7687_v60 = vand.u32 4294901760, %v22789_v51  ;;  %v28872_v10 = vld [vmem:[#allocation31_spill] sm:$0xff] }
 0x3bf   : > { %v6919_v31 = vsub.f32 %v22095_v22, %v28865_v40  ;;  %v16398_v5 = vpack.c.bf16 %v6899_v14, %v6892_v27  ;;  %v16630_v36 = vpack.c.bf16 %v22843_v62, %v22838_v4  ;;  %v16400_v7 = vpack.c.bf16 %v6787_v21, %v6780_v63  ;;  %v28868_v22 = vld [vmem:[#allocation82_spill] sm:$0xff]  ;;  %16365 = vmatpush3.bf16.msra.mxu1 %v28872_v10  ;;  %v28874_v63 = vld [vmem:[#allocation29_spill] sm:$0xff] }
 0x3c0   : > { %v6926_v35 = vsub.f32 %v22100_v18, %v28866_v50  ;;  %v16632_v38 = vpack.c.bf16 %v22853_v1, %v22848_v23  ;;  %v28869_v43 = vand.u32 4294901760, %v28868_v22  ;;  %v28870_v18 = vld [vmem:[#allocation13_spill] sm:$0xff]  ;;  %7688 = vmatmul.mubr.f32.gmra.mrb[68].mxu0 %v7687_v60  ;;  %v16402_v51 = vpack.c.bf16 %v6913_v29, %v6906_v9  ;;  %v28873_v14 = vld [vmem:[#allocation46_spill] sm:$0xff] }
 0x3c1   : > { %v28871_v20 = vand.u32 4294901760, %v28870_v18  ;;  %v6794_v16 = vand.u32 4294901760, %v6793_v32  ;;  %v6801_v27 = vand.u32 4294901760, %v6800_v37  ;;  %v22975_v24 = vadd.f32 %v28873_v14, %v4523_v47  ;;  %16629 = vmatpush3.bf16.msra.mxu0 %v16628_v15  ;;  %8062 = vmatprep.mubr.f32.mxu0 %v28874_v63  ;;  %v28875_v40 = vld [vmem:[#allocation14_spill] sm:$0xff] }
 0x3c2   : > { %v6807_v0 = vsub.f32 %v28868_v22, %v28869_v43  ;;  %v6920_v21 = vand.u32 4294901760, %v6919_v31  ;;  %v6927_v52 = vand.u32 4294901760, %v6926_v35  ;;  %v28876_v50 = vand.u32 4294901760, %v28875_v40  ;;  %v28877_v22 = vld [vmem:[#allocation84_spill] sm:$0xff]  ;;  %16399 = vmatprep.subr.bf16.mxu1 %v16398_v5  ;;  %16631 = vmatprep.subr.bf16.mxu0 %v16630_v36  ;;  %v28883_v31 = vld [vmem:[#allocation103_spill] sm:$0xff]  ;;  %v28889_v5 = vld [vmem:[#allocation114_spill] sm:$0xff] }
 0x3c3   : > { %v6814_v30 = vsub.f32 %v28870_v18, %v28871_v20  ;;  %v28878_v43 = vand.u32 4294901760, %v28877_v22  ;;  %v28879_v9 = vand.u32 4294901760, %v22657_v56  ;;  %v28881_v37 = vand.u32 4294901760, %v22685_v46  ;;  %6636 = vmatmul.mubr.f32.vlgmr.msra.gmra.mrb[68].mxu1 %v28883_v31  ;;  %v28884_v18 = vld [vmem:[#allocation19_spill] sm:$0xff] }
 0x3c4   : > { %v6933_v57 = vsub.f32 %v28875_v40, %v28876_v50  ;;  %v16634_v15 = vpack.c.bf16 %v22863_v3, %v22858_v2  ;;  %v6808_v35 = vand.u32 4294901760, %v6807_v0  ;;  %v28885_v20 = vand.u32 4294901760, %v28884_v18  ;;  %v28888_v50 = vld [vmem:[#allocation26_spill] sm:$0xff]  ;;  %16401 = vmatpush3.bf16.msra.mxu1 %v16400_v7 }
 0x3c5   : > { %v6940_v60 = vsub.f32 %v28877_v22, %v28878_v43  ;;  %v22987_v32 = vsub.f32 %v22657_v56, %v28879_v9  ;;  %v22992_v29 = vsub.f32 %v22685_v46, %v28881_v37  ;;  %v6815_v47 = vand.u32 4294901760, %v6814_v30  ;;  %v28886_v56 = vld [vmem:[#allocation93_spill] sm:$0xff]  ;;  %6641 = vmatprep.mubr.f32.mxu1 %v28888_v50  ;;  %v28891_v43 = vld [vmem:[#allocation91_spill] sm:$0xff]  ;;  %16633 = vmatpush3.bf16.msra.mxu0 %v16632_v38 }
 0x3c6   : > { %v6821_v10 = vsub.f32 %v28884_v18, %v28885_v20  ;;  %v28887_v14 = vand.u32 4294901760, %v28886_v56  ;;  %v16404_v46 = vpack.c.bf16 %v6801_v27, %v6794_v16  ;;  %v28890_v36 = vand.u32 4294901760, %v28889_v5  ;;  %16403 = vmatprep.subr.bf16.mxu1 %v16402_v51  ;;  %v28895_v16 = vld [vmem:[#allocation124_spill] sm:$0xff]  ;;  %16635 = vmatprep.subr.bf16.mxu0 %v16634_v15 }
 0x3c7   : > { %28880 = vst [vmem:[#allocation28_spill] sm:$0xff] %v22987_v32  ;;  %28882 = vst [vmem:[#allocation30_spill] sm:$0xff] %v22992_v29  ;;  %v28892_v9 = vand.u32 4294901760, %v28891_v43  ;;  %v16636_v30 = vpack.c.bf16 %v22885_v44, %v22869_v48  ;;  %v16406_v37 = vpack.c.bf16 %v6927_v52, %v6920_v21  ;;  %v6934_v31 = vand.u32 4294901760, %v6933_v57  ;;  %v28901_v21 = vld [vmem:[#allocation32_spill] sm:$0xff] }
 0x3c8   : > { %v6828_v40 = vsub.f32 %v28886_v56, %v28887_v14  ;;  %v6947_v22 = vsub.f32 %v28889_v5, %v28890_v36  ;;  %v6941_v18 = vand.u32 4294901760, %v6940_v60  ;;  %v28893_v20 = vand.u32 4294901760, %v22687_v54  ;;  %v28898_v14 = vld [vmem:[#allocation66_spill] sm:$0xff]  ;;  %6643 = vmatmul.mubr.f32.gmra.mrb[70].mxu1 %v28901_v21  ;;  %v28902_v5 = vld [vmem:[#allocation79_spill] sm:$0xff] }
 0x3c9   : > { %v6954_v0 = vsub.f32 %v28891_v43, %v28892_v9  ;;  %v28896_v27 = vand.u32 4294901760, %v28895_v16  ;;  %v28899_v50 = vand.u32 4294901760, %v28898_v14  ;;  %v16638_v51 = vpack.c.bf16 %v22904_v34, %v22899_v58  ;;  %16405 = vmatpush3.bf16.msra.mxu1 %v16404_v46  ;;  %7000 = vmatprep.mubr.f32.mxu1 %v28902_v5  ;;  %v28903_v9 = vld [vmem:[#allocation15_spill] sm:$0xff]  ;;  %v28925_v5 = vld [vmem:[#allocation25_spill] sm:$0xff] }
 0x3ca   : > { %v23015_v7 = vsub.f32 %v22687_v54, %v28893_v20  ;;  %v16408_v52 = vpack.c.bf16 %v6815_v47, %v6808_v35  ;;  %v16640_v54 = vpack.c.bf16 %v22927_v41, %v22915_v28  ;;  %v6822_v57 = vand.u32 4294901760, %v6821_v10  ;;  %16637 = vmatpush3.bf16.msra.mxu0 %v16636_v30  ;;  %16407 = vmatprep.subr.bf16.mxu1 %v16406_v37  ;;  %v28907_v47 = vld [vmem:[#allocation83_spill] sm:$0xff] }
 0x3cb   : > { %v23020_v56 = vsub.f32 %v28895_v16, %v28896_v27  ;;  %v23025_v38 = vsub.f32 %v28898_v14, %v28899_v50  ;;  %v6829_v60 = vand.u32 4294901760, %v6828_v40  ;;  %v6948_v36 = vand.u32 4294901760, %v6947_v22  ;;  %v28905_v16 = vld [vmem:[#allocation39_spill] sm:$0xff]  ;;  %16639 = vmatprep.subr.bf16.mxu0 %v16638_v51 }
 0x3cc   : > { %28894 = vst [vmem:[#allocation33_spill] sm:$0xff] %v23015_v7  ;;  %v6955_v43 = vand.u32 4294901760, %v6954_v0  ;;  %v28904_v20 = vand.u32 4294901760, %v28903_v9  ;;  %v28906_v27 = vand.u32 4294901760, %v28905_v16  ;;  %v16410_v35 = vpack.c.bf16 %v6941_v18, %v6934_v31  ;;  %v28909_v40 = vld [vmem:[#allocation59_spill] sm:$0xff] }
 0x3cd   : > { %28897 = vst [vmem:[#allocation130_spill] sm:$0xff] %v23020_v56  ;;  %28900 = vst [vmem:[#allocation68_spill] sm:$0xff] %v23025_v38  ;;  %v28908_v50 = vand.u32 4294901760, %v28907_v47  ;;  %v28910_v46 = vand.u32 4294901760, %v28909_v40  ;;  %v28911_v0 = vand.u32 4294901760, %v22725_v26  ;;  %v28915_v30 = vand.u32 4294901760, %v22729_v19  ;;  %16409 = vmatpush3.bf16.msra.mxu1 %v16408_v52 }
 0x3ce   : > { %v6835_v15 = vsub.f32 %v28903_v9, %v28904_v20  ;;  %v6842_v14 = vsub.f32 %v28905_v16, %v28906_v27  ;;  %v28913_v9 = vand.u32 4294901760, %v22727_v59  ;;  %v16642_v31 = vpack.c.bf16 %v22987_v32, %v22932_v11  ;;  %v28919_v27 = vld [vmem:[#allocation67_spill] sm:$0xff]  ;;  %16641 = vmatpush3.bf16.msra.mxu0 %v16640_v54  ;;  %16411 = vmatprep.subr.bf16.mxu1 %v16410_v35 }
 0x3cf   : > { %v6961_v10 = vsub.f32 %v28907_v47, %v28908_v50  ;;  %v6968_v22 = vsub.f32 %v28909_v40, %v28910_v46  ;;  %v23048_v21 = vsub.f32 %v22725_v26, %v28911_v0  ;;  %v23058_v37 = vsub.f32 %v22729_v19, %v28915_v30  ;;  %v28921_v50 = vld [vmem:[#allocation41_spill] sm:$0xff] }
 0x3d0   : > { %v23053_v20 = vsub.f32 %v22727_v59, %v28913_v9  ;;  %v28917_v18 = vand.u32 4294901760, %v22731_v33  ;;  %v16644_v26 = vpack.c.bf16 %v23015_v7, %v22992_v29  ;;  %v28920_v59 = vand.u32 4294901760, %v28919_v27  ;;  %16643 = vmatprep.subr.bf16.mxu0 %v16642_v31 }
 0x3d1   : > { %28912 = vst [vmem:[#allocation22_spill] sm:$0xff] %v23048_v21  ;;  %28916 = vst [vmem:[#allocation13_spill] sm:$0xff] %v23058_v37  ;;  %v28922_v40 = vand.u32 4294901760, %v28921_v50  ;;  %v16412_v51 = vpack.c.bf16 %v6829_v60, %v6822_v57  ;;  %v16414_v46 = vpack.c.bf16 %v6955_v43, %v6948_v36  ;;  %v6836_v0 = vand.u32 4294901760, %v6835_v15  ;;  %v13446_v36 = vpop.f32.mrb[42].mxu0  ;;  %v28931_v15 = vld [vmem:[#allocation47_spill] sm:$0xff] }
 0x3d2   : > { %28914 = vst [vmem:[#allocation82_spill] sm:$0xff] %v23053_v20  ;;  %v23065_v16 = vsub.f32 %v22731_v33, %v28917_v18  ;;  %v6849_v47 = vsub.f32 %v28919_v27, %v28920_v59  ;;  %v6843_v9 = vand.u32 4294901760, %v6842_v14  ;;  %v6962_v33 = vand.u32 4294901760, %v6961_v10  ;;  %v28923_v18 = vld [vmem:[#allocation94_spill] sm:$0xff]  ;;  %16645 = vmatpush3.bf16.msra.mxu0 %v16644_v26 }
 0x3d3   : > { %v6856_v19 = vsub.f32 %v28921_v50, %v28922_v40  ;;  %v6969_v30 = vand.u32 4294901760, %v6968_v22  ;;  %v28924_v63 = vand.u32 4294901760, %v28923_v18  ;;  %v28926_v7 = vand.u32 4294901760, %v28925_v5  ;;  %16413 = vmatpush3.bf16.msra.mxu1 %v16412_v51  ;;  %v28933_v22 = vld [vmem:[#allocation87_spill] sm:$0xff] }
 0x3d4   : > { %28918 = vst [vmem:[#allocation31_spill] sm:$0xff] %v23065_v16  ;;  %v28927_v59 = vand.u32 4294901760, %v22756_v12  ;;  %v16646_v54 = vpack.c.bf16 %v23025_v38, %v23020_v56  ;;  %v28929_v57 = vand.u32 4294901760, %v22758_v6  ;;  %v28932_v14 = vand.u32 4294901760, %v28931_v15  ;;  %16415 = vmatprep.subr.bf16.mxu1 %v16414_v46 }
 0x3d5   : > { %v6975_v25 = vsub.f32 %v28923_v18, %v28924_v63  ;;  %v6982_v27 = vsub.f32 %v28925_v5, %v28926_v7  ;;  %v6850_v63 = vand.u32 4294901760, %v6849_v47  ;;  %v6857_v43 = vand.u32 4294901760, %v6856_v19  ;;  %v13447_v5 = vpop.f32.mrb[43].mxu0 }
 0x3d6   : > { %v23084_v52 = vsub.f32 %v22756_v12, %v28927_v59  ;;  %v23091_v60 = vsub.f32 %v22758_v6, %v28929_v57  ;;  %v6863_v7 = vsub.f32 %v28931_v15, %v28932_v14  ;;  %v16416_v12 = vpack.c.bf16 %v6843_v9, %v6836_v0  ;;  %16647 = vmatprep.subr.bf16.mxu0 %v16646_v54  ;;  %v28936_v9 = vld [vmem:[#allocation70_spill] sm:$0xff] }
 0x3d7   : > { %v16648_v35 = vpack.c.bf16 %v23053_v20, %v23048_v21  ;;  %v16650_v10 = vpack.c.bf16 %v23065_v16, %v23058_v37  ;;  %v28934_v31 = vand.u32 4294901760, %v28933_v22  ;;  %v23103_v50 = vadd.f32 %v13447_v5, %v13446_v36  ;;  %v28938_v57 = vld [vmem:[#allocation50_spill] sm:$0xff]  ;;  %v13449_v36 = vpop.f32.mrb[44].mxu0 }
 0x3d8   : > { %28928 = vst [vmem:[#allocation46_spill] sm:$0xff] %v23084_v52  ;;  %28930 = vst [vmem:[#allocation14_spill] sm:$0xff] %v23091_v60  ;;  %v16418_v47 = vpack.c.bf16 %v6969_v30, %v6962_v33  ;;  %v6976_v40 = vand.u32 4294901760, %v6975_v25  ;;  %v6983_v19 = vand.u32 4294901760, %v6982_v27  ;;  %v27201_v51 = vand.u32 4294901760, %v22773_v13  ;;  %v13450_v33 = vpop.f32.mrb[45].mxu0  ;;  %16417 = vmatpush3.bf16.msra.mxu1 %v16416_v12 }
 0x3d9   : > { %v6870_v6 = vsub.f32 %v28933_v22, %v28934_v31  ;;  %28935 = vst [vmem:[#allocation84_spill] sm:$0xff] %v23103_v50  ;;  %v27196_v0 = vand.u32 4294901760, %v22778_v61  ;;  %v28937_v18 = vand.u32 4294901760, %v28936_v9  ;;  %v28939_v15 = vand.u32 4294901760, %v28938_v57  ;;  %v28940_v54 = vld [vmem:[#allocation118_spill] sm:$0xff]  ;;  %16649 = vmatpush3.bf16.msra.mxu0 %v16648_v35 }
 0x3da   : > { %v16420_v5 = vpack.c.bf16 %v6857_v43, %v6850_v63  ;;  %v16652_v26 = vpack.c.bf16 %v23091_v60, %v23084_v52  ;;  %v6864_v25 = vand.u32 4294901760, %v6863_v7  ;;  %v27195_v46 = vand.u32 4294901760, %v22783_v39  ;;  %16419 = vmatprep.subr.bf16.mxu1 %v16418_v47  ;;  %16651 = vmatprep.subr.bf16.mxu0 %v16650_v10 }
 0x3db   : > { %v6989_v59 = vsub.f32 %v28936_v9, %v28937_v18  ;;  %v6996_v14 = vsub.f32 %v28938_v57, %v28939_v15  ;;  %v6871_v30 = vand.u32 4294901760, %v6870_v6  ;;  %v28941_v22 = vand.u32 4294901760, %v28940_v54  ;;  %v28942_v9 = vld [vmem:[#allocation17_spill] sm:$0xff]  ;;  %v13180_v6 = vpop.f32.mrb[44].mxu1 }
 0x3dc   : > { %v28943_v18 = vand.u32 4294901760, %v28942_v9  ;;  %v23123_v63 = vadd.f32 %v13450_v33, %v13449_v36  ;;  %v16422_v43 = vpack.c.bf16 %v6983_v19, %v6976_v40  ;;  %v27194_v7 = vand.u32 4294901760, %v22811_v53  ;;  %v13181_v27 = vpop.f32.mrb[45].mxu1  ;;  %16421 = vmatpush3.bf16.msra.mxu1 %v16420_v5 }
 0x3dd   : > { %v6877_v31 = vsub.f32 %v28940_v54, %v28941_v22  ;;  %v27193_v12 = vand.u32 4294901760, %v22816_v8  ;;  %v16686_v15 = vpack.c.bf16 %v27196_v0, %v27201_v51  ;;  %v6990_v54 = vand.u32 4294901760, %v6989_v59  ;;  %16653 = vmatpush3.bf16.msra.mxu0 %v16652_v26  ;;  %v28964_v0 = vld [vmem:[#allocation100_spill] sm:$0xff]  ;;  %v13522_v51 = vpop.f32.mrb[46].mxu0 }
 0x3de   : > { %v6884_v57 = vsub.f32 %v28942_v9, %v28943_v18  ;;  %28944 = vst [vmem:[#allocation103_spill] sm:$0xff] %v23123_v63  ;;  %v6997_v22 = vand.u32 4294901760, %v6996_v14  ;;  %v13182_v9 = vadd.f32 %v13181_v27, %v13180_v6  ;;  %v16424_v36 = vpack.c.bf16 %v6871_v30, %v6864_v25  ;;  %16423 = vmatprep.subr.bf16.mxu1 %v16422_v43  ;;  %v13183_v25 = vpop.f32.mrb[46].mxu1  ;;  %v28946_v18 = vld [vmem:[#allocation86_spill] sm:$0xff]  ;;  %v28947_v43 = vld [vmem:[#allocation123_spill] sm:$0xff] }
 0x3df   : > { %v6878_v35 = vand.u32 4294901760, %v6877_v31  ;;  %v28945_v40 = vand.u32 4294901760, %v22806_v42  ;;  %v16690_v19 = vpack.c.bf16 %v27193_v12, %v27194_v7  ;;  %v27192_v59 = vand.u32 4294901760, %v22828_v49  ;;  %16687 = vmatprep.subr.bf16.mxu0 %v16686_v15  ;;  %v13184_v27 = vpop.f32.mrb[47].mxu1  ;;  %v28963_v7 = vld [vmem:[#allocation55_spill] sm:$0xff] }
 0x3e0   : > { %v6885_v47 = vand.u32 4294901760, %v6884_v57  ;;  %v27187_v14 = vand.u32 4294901760, %v22833_v45  ;;  %v4802_v5 = vadd.f32 %v13182_v9, %v22950_v55  ;;  %v16426_v26 = vpack.c.bf16 %v6997_v22, %v6990_v54  ;;  %8065 = vmatmul.mubr.f32.vlgmr.msra.gmra.mrb[70].mxu0 %v28946_v18  ;;  %16425 = vmatpush3.bf16.msra.mxu1 %v16424_v36 }
 0x3e1   : > { %v16688_v10 = vpack.c.bf16 %v28945_v40, %v27195_v46  ;;  %v27186_v33 = vand.u32 4294901760, %v22838_v4  ;;  %v27185_v30 = vand.u32 4294901760, %v22843_v62  ;;  %v13185_v31 = vadd.f32 %v13184_v27, %v13183_v25  ;;  %v28948_v40 = vld [vmem:[#allocation74_spill] sm:$0xff] }
 0x3e2   : > { %v16428_v57 = vpack.c.bf16 %v6885_v47, %v6878_v35  ;;  %v23146_v6 = vadd.f32 %v28947_v43, %v4802_v5  ;;  %8071 = vmatprep.mubr.f32.mxu0 %v28948_v40  ;;  %v16692_v55 = vpack.c.bf16 %v27187_v14, %v27192_v59  ;;  %v27184_v15 = vand.u32 4294901760, %v22848_v23  ;;  %16427 = vmatprep.subr.bf16.mxu1 %v16426_v26  ;;  %v28949_v47 = vld [vmem:[#allocation132_spill] sm:$0xff]  ;;  %v28958_v14 = vld [vmem:[#allocation27_spill] sm:$0xff]  ;;  %v23231_v40 = vld [vmem:[#allocation2 + $0x788] sm:$0xff] }
 0x3e3   : > { %16689 = vmatpush3.bf16.msra.mxu0 %v16688_v10  ;;  %v27183_v54 = vand.u32 4294901760, %v22853_v1  ;;  %v4809_v22 = vadd.f32 %v13185_v31, %v22975_v24  ;;  %v16694_v9 = vpack.c.bf16 %v27185_v30, %v27186_v33  ;;  %v27182_v36 = vand.u32 4294901760, %v22858_v2  ;;  %v28950_v5 = vld [vmem:[#allocation20_spill] sm:$0xff]  ;;  %v28956_v30 = vld [vmem:[#allocation99_spill] sm:$0xff]  ;;  %v23428_v23 = vld [vmem:[#allocation2 + $0x750] sm:$0xff] }
 0x3e4   : > { %16691 = vmatprep.subr.bf16.mxu0 %v16690_v19  ;;  %v27181_v35 = vand.u32 4294901760, %v22863_v3  ;;  %8074 = vmatmul.mubr.f32.gmra.mrb[72].mxu0 %v22704_v17  ;;  %v27189_v19 = vand.u32 4294901760, %v22869_v48  ;;  %v27188_v25 = vand.u32 4294901760, %v22885_v44  ;;  %v28951_v26 = vld [vmem:[#allocation88_spill] sm:$0xff]  ;;  %v27191_v31 = vand.u32 4294901760, %v22899_v58  ;;  %v28957_v33 = vld [vmem:[#allocation95_spill] sm:$0xff] }
 0x3e5   : > { %16429 = vmatpush3.bf16.msra.mxu1 %v16428_v57  ;;  %v23164_v10 = vadd.f32 %v28949_v47, %v4809_v22  ;;  %8359 = vmatprep.mubr.f32.mxu0 %v28950_v5  ;;  %v16696_v24 = vpack.c.bf16 %v27183_v54, %v27184_v15  ;;  %v27190_v57 = vand.u32 4294901760, %v22904_v34  ;;  %v28952_v43 = vld [vmem:[#allocation104_spill] sm:$0xff]  ;;  %v28954_v22 = vld [vmem:[#allocation89_spill] sm:$0xff]  ;;  %v27200_v15 = vand.u32 4294901760, %v22932_v11  ;;  %v23320_v5 = vld [vmem:[#allocation2 + $0x7b8] sm:$0xff] }
 0x3e6   : > { %16463 = vmatprep.subr.bf16.mxu1 %v28951_v26  ;;  %v16698_v27 = vpack.c.bf16 %v27181_v35, %v27182_v36  ;;  %v28955_v47 = vld [vmem:[#allocation92_spill] sm:$0xff]  ;;  %v27198_v35 = vand.u32 4294901760, %v22915_v28  ;;  %v27197_v36 = vand.u32 4294901760, %v22927_v41  ;;  %v28972_v63 = vand.u32 4294901760, %v23058_v37  ;;  %v28996_v34 = vld [vmem:[#allocation77_spill] sm:$0xff]  ;;  %v28998_v44 = vld [vmem:[#allocation98_spill] sm:$0xff] }
 0x3e7   : > { %16693 = vmatpush3.bf16.msra.mxu0 %v16692_v55  ;;  %v28953_v55 = vld [vmem:[#allocation97_spill] sm:$0xff]  ;;  %v16702_v54 = vpack.c.bf16 %v27190_v57, %v27191_v31  ;;  %v27204_v57 = vand.u32 4294901760, %v22992_v29  ;;  %v23229_v17 = vld [vmem:[#allocation2 + $0x780] sm:$0xff]  ;;  %v28973_v50 = vand.u32 4294901760, %v23065_v16  ;;  %v28997_v58 = vrot.slane %v28996_v34, 7 }
 0x3e8   : > { %16695 = vmatprep.subr.bf16.mxu0 %v16694_v9  ;;  %7002 = vmatmul.mubr.f32.vlgmr.msra.gmra.mrb[72].mxu1 %v28952_v43  ;;  %v16700_v9 = vpack.c.bf16 %v27188_v25, %v27189_v19  ;;  %v28959_v25 = vand.u32 4294901760, %v28958_v14  ;;  %v28960_v19 = vld [vmem:[#allocation96_spill] sm:$0xff]  ;;  %v28961_v31 = vld [vmem:[#allocation33_spill] sm:$0xff]  ;;  %v27206_v14 = vand.u32 4294901760, %v23020_v56  ;;  %v13256_v56 = vpop.f32.mrb[48].mxu1 }
 0x3e9   : > { %7007 = vmatprep.mubr.f32.mxu1 %v28953_v55  ;;  %16465 = vmatpush3.bf16.msra.mxu1 %v28954_v22  ;;  %v27203_v59 = vand.u32 4294901760, %v28961_v31  ;;  %v29008_v43 = vld [vmem:[#allocation69_spill] sm:$0xff] }
 0x3ea   : > { %16467 = vmatprep.subr.bf16.mxu1 %v28955_v47  ;;  %v29032_v1 = vld [vmem:[#allocation113_spill] sm:$0xff] }
 0x3eb   : > { %16697 = vmatpush3.bf16.msra.mxu0 %v16696_v24  ;;  %v27199_v24 = vand.u32 4294901760, %v22987_v32  ;;  %v23313_v32 = vld [vmem:[#allocation2 + $0x728] sm:$0xff] }
 0x3ec   : > { %16699 = vmatprep.subr.bf16.mxu0 %v16698_v27  ;;  %7009 = vmatmul.mubr.f32.gmra.mrb[74].mxu1 %v28956_v30  ;;  %v16704_v27 = vpack.c.bf16 %v27197_v36, %v27198_v35  ;;  %v28965_v36 = vld [vmem:[#allocation101_spill] sm:$0xff]  ;;  %v28967_v35 = vld [vmem:[#allocation102_spill] sm:$0xff] }
 0x3ed   : > { %16469 = vmatpush3.bf16.msra.mxu1 %v28957_v33  ;;  %7260 = vmatprep.mubr.f32.mxu1 %v28959_v25  ;;  %v16706_v12 = vpack.c.bf16 %v27199_v24, %v27200_v15  ;;  %v27205_v25 = vand.u32 4294901760, %v23025_v38  ;;  %v28969_v24 = vld [vmem:[#allocation125_spill] sm:$0xff]  ;;  %v16714_v38 = vpack.c.bf16 %v28973_v50, %v28972_v63  ;;  %v28975_v15 = vld [vmem:[#allocation71_spill] sm:$0xff] }
 0x3ee   : > { %16471 = vmatprep.subr.bf16.mxu1 %v28960_v19  ;;  %v28977_v63 = vld [vmem:[#allocation85_spill] sm:$0xff] }
 0x3ef   : > { %16701 = vmatpush3.bf16.msra.mxu0 %v16700_v9  ;;  %v28962_v9 = vld [vmem:[#allocation12_spill] sm:$0xff] }
 0x3f0   : > { %16703 = vmatprep.subr.bf16.mxu0 %v16702_v54  ;;  %v1800_v46 = vmul.f32 %v28963_v7, %v28962_v9  ;;  %v16708_v54 = vpack.c.bf16 %v27203_v59, %v27204_v57  ;;  %v16710_v9 = vpack.c.bf16 %v27205_v25, %v27206_v14  ;;  %v13523_v57 = vpop.f32.mrb[47].mxu0  ;;  %v28970_v25 = vand.u32 4294901760, %v23048_v21  ;;  %v23285_v21 = vld [vmem:[#allocation2 + $0x7a0] sm:$0xff] }
 0x3f1   : > { %16473 = vmatpush3.bf16.msra.mxu1 %v28964_v0  ;;  %v28971_v14 = vand.u32 4294901760, %v23053_v20  ;;  %v13525_v20 = vpop.f32.mrb[48].mxu0 }
 0x3f2   : > { %16475 = vmatprep.subr.bf16.mxu1 %v28965_v36  ;;  %v23233_v59 = vand.u32 4294901760, %v1800_v46  ;;  %v13526_v18 = vpop.f32.mrb[49].mxu0 }
 0x3f3   : > { %16705 = vmatpush3.bf16.msra.mxu0 %v16704_v27  ;;  %v16712_v27 = vpack.c.bf16 %v28971_v14, %v28970_v25  ;;  %v23255_v14 = vld [vmem:[#allocation2 + $0x790] sm:$0xff]  ;;  %v23257_v25 = vld [vmem:[#allocation2 + $0x798] sm:$0xff]  ;;  %v23263_v50 = vadd.f32 %v13526_v18, %v13525_v20 }
 0x3f4   : > { %16707 = vmatprep.subr.bf16.mxu0 %v16706_v12  ;;  %28966 = vst [vmem:[#allocation19_spill] sm:$0xff] %v23233_v59  ;;  %v23236_v12 = vadd.f32 %v13523_v57, %v13522_v51  ;;  %v28978_v57 = vand.u32 4294901760, %v23084_v52  ;;  %v28979_v51 = vand.u32 4294901760, %v23091_v60  ;;  %v23282_v60 = vld [vmem:[#allocation2 + $0x718] sm:$0xff]  ;;  %v28985_v18 = vld [vmem:[#allocation54_spill] sm:$0xff]  ;;  %v28990_v41 = vand.u32 4294901760, %v23257_v25 }
 0x3f5   : > { %16477 = vmatpush3.bf16.msra.mxu1 %v28967_v35  ;;  %28976 = vst [vmem:[#allocation114_spill] sm:$0xff] %v23263_v50  ;;  %v23280_v50 = vld [vmem:[#allocation2 + $0x710] sm:$0xff]  ;;  %v28983_v52 = vld [vmem:[#allocation11_spill] sm:$0xff]  ;;  %v29000_v48 = vand.u32 4294901760, %v23282_v60 }
 0x3f6   : > { %28968 = vst [vmem:[#allocation93_spill] sm:$0xff] %v23236_v12  ;;  %16479 = vmatprep.subr.bf16.mxu1 %v28969_v24  ;;  %v23253_v12 = vld [vmem:[#allocation2 + $0x708] sm:$0xff]  ;;  %v16716_v16 = vpack.c.bf16 %v28979_v51, %v28978_v57  ;;  %v13257_v51 = vpop.f32.mrb[49].mxu1  ;;  %v23311_v57 = vld [vmem:[#allocation2 + $0x720] sm:$0xff] }
 0x3f7   : > { %16709 = vmatpush3.bf16.msra.mxu0 %v16708_v54  ;;  %v23251_v54 = vld [vmem:[#allocation2 + $0x700] sm:$0xff]  ;;  %v13258_v37 = vadd.f32 %v13257_v51, %v13256_v56  ;;  %v28987_v31 = vand.u32 4294901760, %v23253_v12  ;;  %v13259_v51 = vpop.f32.mrb[50].mxu1 }
 0x3f8   : > { %16711 = vmatprep.subr.bf16.mxu0 %v16710_v9  ;;  %v23260_v9 = vsub.f32 %v1800_v46, %v23233_v59  ;;  %v28980_v46 = vand.u32 4294901760, %v23229_v17  ;;  %v28981_v59 = vand.u32 4294901760, %v23231_v40 }
 0x3f9   : > { %16481 = vmatpush3.bf16.msra.mxu1 %v28975_v15  ;;  %v5168_v56 = vadd.f32 %v13258_v37, %v23146_v6 }
 0x3fa   : > { %28974 = vst [vmem:[#allocation26_spill] sm:$0xff] %v23260_v9  ;;  %16483 = vmatprep.subr.bf16.mxu1 %v28977_v63  ;;  %v23276_v20 = vpack.c.bf16 %v28981_v59, %v28980_v46  ;;  %v28984_v59 = vld [vmem:[#allocation72_spill] sm:$0xff]  ;;  %v28992_v37 = vand.u32 4294901760, %v23260_v9 }
 0x3fb   : > { %16713 = vmatpush3.bf16.msra.mxu0 %v16712_v27  ;;  %v1797_v46 = vrot.slane %v28984_v59, 7  ;;  %v28986_v27 = vand.u32 4294901760, %v23251_v54  ;;  %v1792_v11 = vrot.slane %v28984_v59, 6  ;;  %v13260_v59 = vpop.f32.mrb[51].mxu1 }
 0x3fc   : > { %16715 = vmatprep.subr.bf16.mxu0 %v16714_v38  ;;  %28982 = vst [vmem:[#allocation91_spill] sm:$0xff] %v23276_v20  ;;  %v23287_v38 = vld [vmem:[#allocation2 + $0x7a8] sm:$0xff]  ;;  %v8583_v6 = vsub.f32 %v23260_v9, %v28992_v37  ;;  %v13261_v30 = vadd.f32 %v13260_v59, %v13259_v51  ;;  %v28999_v37 = vand.u32 4294901760, %v23280_v50  ;;  %v23354_v59 = vld [vmem:[#allocation2 + $0x730] sm:$0xff] }
 0x3fd   : > { %16485 = vmatpush3.bf16.msra.mxu1 %v28983_v52  ;;  %v23296_v29 = vpack.c.bf16 %v28987_v31, %v28986_v27  ;;  %v28995_v31 = vld [vmem:[#allocation73_spill] sm:$0xff]  ;;  %v1798_v55 = vsel %vm1755_vm6, %v28997_v58, %v1797_v46  ;;  %v29003_v46 = vld [vmem:[#allocation78_spill] sm:$0xff] }
 0x3fe   : > { %16487 = vmatprep.subr.bf16.mxu1 %v28985_v18  ;;  %v23325_v27 = vadd.f32 %v28995_v31, %v5168_v56  ;;  %v23336_v51 = vpack.c.bf16 %v29000_v48, %v28999_v37  ;;  %v29002_v56 = vrot.slane %v28996_v34, 6  ;;  %v5175_v58 = vadd.f32 %v13261_v30, %v23164_v10  ;;  %v23356_v34 = vld [vmem:[#allocation2 + $0x738] sm:$0xff] }
 0x3ff   : > { %16717 = vmatpush3.bf16.msra.mxu0 %v16716_v16  ;;  %28988 = vst [vmem:[#allocation124_spill] sm:$0xff] %v23296_v29  ;;  %v28989_v16 = vand.u32 4294901760, %v23255_v14  ;;  %v8584_v10 = vand.u32 4294901760, %v8583_v6  ;;  %v1801_v3 = vmul.f32 %v29008_v43, %v1798_v55  ;;  %v29011_v37 = vld [vmem:[#allocation127_spill] sm:$0xff]  ;;  %v29013_v6 = vand.u32 4294901760, %v23313_v32 }
 0x400   : > { %16751 = vmatprep.subr.bf16.mxu0 %v23276_v20  ;;  %v23318_v20 = vld [vmem:[#allocation2 + $0x7b0] sm:$0xff]  ;;  %29001 = vst [vmem:[#allocation32_spill] sm:$0xff] %v23336_v51  ;;  %v1793_v31 = vsel %vm1745_vm7, %v29002_v56, %v1792_v11  ;;  %v29007_v11 = vld [vmem:[#allocation16_spill] sm:$0xff] }
 0x401   : > { %v23307_v28 = vpack.c.bf16 %v28990_v41, %v28989_v16  ;;  %v28993_v41 = vld [vmem:[#allocation21_spill] sm:$0xff]  ;;  %v28994_v16 = vld [vmem:[#allocation90_spill] sm:$0xff]  ;;  %v1795_v30 = vmul.f32 %v28963_v7, %v29007_v11  ;;  %v23360_v56 = vld [vmem:[#allocation2 + $0x7c0] sm:$0xff]  ;;  %v1796_v2 = vmul.f32 %v29008_v43, %v1793_v31  ;;  %v29012_v7 = vand.u32 4294901760, %v23311_v57 }
 0x402   : > { %8361 = vmatmul.mubr.f32.vlgmr.msra.gmra.mrb[74].mxu0 %v28993_v41  ;;  %16489 = vmatpush3.bf16.msra.mxu1 %v28994_v16  ;;  %v23368_v41 = vadd.f32 %v29011_v37, %v5175_v58  ;;  %v29015_v58 = vand.u32 4294901760, %v23318_v20  ;;  %v29016_v43 = vand.u32 4294901760, %v23320_v5  ;;  %v23402_v9 = vand.u32 4294901760, %v1801_v3 }
 0x403   : > { %28991 = vst [vmem:[#allocation66_spill] sm:$0xff] %v23307_v28  ;;  %8366 = vmatprep.mubr.f32.mxu0 %v28998_v44  ;;  %16753 = vmatpush3.bf16.msra.mxu0 %v23296_v29  ;;  %v29004_v29 = vand.u32 4294901760, %v23285_v21  ;;  %v29005_v44 = vand.u32 4294901760, %v23287_v38  ;;  %v23376_v11 = vpack.c.bf16 %v29013_v6, %v29012_v7  ;;  %v23390_v7 = vld [vmem:[#allocation2 + $0x740] sm:$0xff]  ;;  %v23392_v6 = vld [vmem:[#allocation2 + $0x748] sm:$0xff]  ;;  %v23394_v55 = vand.u32 4294901760, %v1795_v30 }
 0x404   : > { %16491 = vmatprep.subr.bf16.mxu1 %v29003_v46  ;;  %16755 = vmatprep.subr.bf16.mxu0 %v23307_v28  ;;  %v23362_v28 = vld [vmem:[#allocation2 + $0x7c8] sm:$0xff]  ;;  %v23386_v31 = vpack.c.bf16 %v29016_v43, %v29015_v58  ;;  %29021 = vst [vmem:[#allocation67_spill] sm:$0xff] %v23402_v9  ;;  %v29022_v58 = vld [vmem:[#allocation63_spill] sm:$0xff] }
 0x405   : > { %v23350_v48 = vpack.c.bf16 %v29005_v44, %v29004_v29  ;;  %v29009_v44 = vld [vmem:[#allocation48_spill] sm:$0xff]  ;;  %v29010_v29 = vld [vmem:[#allocation42_spill] sm:$0xff]  ;;  %29014 = vst [vmem:[#allocation39_spill] sm:$0xff] %v23376_v11  ;;  %29018 = vst [vmem:[#allocation59_spill] sm:$0xff] %v23394_v55  ;;  %v29023_v43 = vand.u32 4294901760, %v29022_v58  ;;  %v29029_v58 = vand.u32 4294901760, %v23362_v28 }
 0x406   : > { %8368 = vmatmul.mubr.f32.gmra.mrb[76].mxu0 %v29009_v44  ;;  %16493 = vmatpush3.bf16.msra.mxu1 %v29010_v29  ;;  %29017 = vst [vmem:[#allocation83_spill] sm:$0xff] %v23386_v31  ;;  %v29019_v44 = vld [vmem:[#allocation80_spill] sm:$0xff]  ;;  %v29033_v29 = vand.u32 4294901760, %v29032_v1  ;;  %v23439_v46 = vld [vmem:[#allocation2 + $0x7e8] sm:$0xff]  ;;  %v29039_v1 = vand.u32 4294901760, %v23390_v7 }
 0x407   : > { %29006 = vst [vmem:[#allocation15_spill] sm:$0xff] %v23350_v48  ;;  %16757 = vmatpush3.bf16.msra.mxu0 %v23336_v51  ;;  %8585 = vmatprep.mubr.f32.mxu0 %v8584_v10  ;;  %v23400_v51 = vld [vmem:[#allocation2 + $0x7d8] sm:$0xff]  ;;  %v23407_v10 = vand.u32 4294901760, %v1796_v2  ;;  %29035 = vst [vmem:[#allocation70_spill] sm:$0xff] %v23439_v46 }
 0x408   : > { %16527 = vmatprep.subr.bf16.mxu1 %v28951_v26  ;;  %16759 = vmatprep.subr.bf16.mxu0 %v23350_v48  ;;  %v29020_v26 = vand.u32 4294901760, %v29019_v44  ;;  %v23398_v48 = vld [vmem:[#allocation2 + $0x7d0] sm:$0xff]  ;;  %v29025_v44 = vand.u32 4294901760, %v23354_v59 }
 0x409   : > { %29024 = vst [vmem:[#allocation41_spill] sm:$0xff] %v23407_v10 }
 0x40a   : > { %7264 = vmatmul.mubr.f32.vlgmr.msra.gmra.mrb[76].mxu1 %v29020_v26  ;;  %v29026_v26 = vand.u32 4294901760, %v23356_v34 }
 0x40b   : > { %7271 = vmatprep.mubr.f32.mxu1 %v29023_v43  ;;  %16529 = vmatpush3.bf16.msra.mxu1 %v28954_v22  ;;  %v29028_v22 = vand.u32 4294901760, %v23360_v56 }
 0x40c   : > { %16761 = vmatpush3.bf16.msra.mxu0 %v23376_v11  ;;  %16531 = vmatprep.subr.bf16.mxu1 %v28955_v47  ;;  %v23415_v37 = vpack.c.bf16 %v29026_v26, %v29025_v44  ;;  %v23430_v44 = vld [vmem:[#allocation2 + $0x758] sm:$0xff]  ;;  %v23433_v26 = vsub.f32 %v1795_v30, %v23394_v55  ;;  %v23447_v11 = vsub.f32 %v1796_v2, %v23407_v10  ;;  %v29040_v30 = vand.u32 4294901760, %v23392_v6  ;;  %v23468_v10 = vld [vmem:[#allocation2 + $0x760] sm:$0xff]  ;;  %v23499_v55 = vld [vmem:[#allocation2 + $0x770] sm:$0xff] }
 0x40d   : > { %16763 = vmatprep.subr.bf16.mxu0 %v23386_v31  ;;  %v23424_v43 = vpack.c.bf16 %v29029_v58, %v29028_v22  ;;  %v23437_v31 = vld [vmem:[#allocation2 + $0x7e0] sm:$0xff]  ;;  %v23442_v22 = vsub.f32 %v1801_v3, %v23402_v9  ;;  %v29037_v58 = vld [vmem:[#allocation79_spill] sm:$0xff]  ;;  %v29043_v2 = vand.u32 4294901760, %v23400_v51 }
 0x40e   : > { %29027 = vst [vmem:[#allocation94_spill] sm:$0xff] %v23415_v37  ;;  %29031 = vst [vmem:[#allocation47_spill] sm:$0xff] %v23433_v26  ;;  %7275 = vmatmul.mubr.f32.gmra.mrb[78].mxu1 %v29033_v29  ;;  %v23455_v29 = vpack.c.bf16 %v29040_v30, %v29039_v1  ;;  %v23470_v1 = vld [vmem:[#allocation2 + $0x768] sm:$0xff]  ;;  %v23472_v30 = vld [vmem:[#allocation2 + $0x7f0] sm:$0xff]  ;;  %v29051_v9 = vand.u32 4294901760, %v23433_v26 }
 0x40f   : > { %29030 = vst [vmem:[#allocation25_spill] sm:$0xff] %v23424_v43  ;;  %29034 = vst [vmem:[#allocation87_spill] sm:$0xff] %v23437_v31  ;;  %16533 = vmatpush3.bf16.msra.mxu1 %v28957_v33  ;;  %7552 = vmatprep.mubr.f32.mxu1 %v29037_v58  ;;  %v29042_v33 = vand.u32 4294901760, %v23398_v48  ;;  %v23474_v3 = vld [vmem:[#allocation2 + $0x7f8] sm:$0xff] }
 0x410   : > { %29036 = vst [vmem:[#allocation50_spill] sm:$0xff] %v23442_v22  ;;  %29038 = vst [vmem:[#allocation118_spill] sm:$0xff] %v23447_v11  ;;  %16765 = vmatpush3.bf16.msra.mxu0 %v23415_v37  ;;  %16535 = vmatprep.subr.bf16.mxu1 %v28960_v19  ;;  %v29046_v37 = vand.u32 4294901760, %v23430_v44  ;;  %v23506_v47 = vsub.f32 %v23433_v26, %v29051_v9 }
 0x411   : > { %29041 = vst [vmem:[#allocation17_spill] sm:$0xff] %v23455_v29  ;;  %16767 = vmatprep.subr.bf16.mxu0 %v23424_v43  ;;  %v23464_v58 = vpack.c.bf16 %v29043_v2, %v29042_v33  ;;  %v29045_v2 = vand.u32 4294901760, %v23428_v23  ;;  %v29049_v33 = vand.u32 4294901760, %v23439_v46 }
 0x413   : > { %29044 = vst [vmem:[#allocation123_spill] sm:$0xff] %v23464_v58  ;;  %16537 = vmatpush3.bf16.msra.mxu1 %v28964_v0  ;;  %v23486_v19 = vpack.c.bf16 %v29046_v37, %v29045_v2  ;;  %v29048_v0 = vand.u32 4294901760, %v23437_v31  ;;  %v23501_v37 = vld [vmem:[#allocation2 + $0x778] sm:$0xff]  ;;  %v13598_v2 = vpop.f32.mrb[50].mxu0  ;;  %v29055_v31 = vand.u32 4294901760, %v23251_v54 }
 0x414   : > { %16769 = vmatpush3.bf16.msra.mxu0 %v23455_v29  ;;  %16539 = vmatprep.subr.bf16.mxu1 %v28965_v36  ;;  %v29054_v29 = vand.u32 4294901760, %v23231_v40  ;;  %v13599_v26 = vpop.f32.mrb[51].mxu0 }
 0x415   : > { %29047 = vst [vmem:[#allocation132_spill] sm:$0xff] %v23486_v19  ;;  %16771 = vmatprep.subr.bf16.mxu0 %v23464_v58  ;;  %v23495_v43 = vpack.c.bf16 %v29049_v33, %v29048_v0  ;;  %v29052_v58 = vand.u32 4294901760, %v23442_v22  ;;  %v29053_v33 = vand.u32 4294901760, %v23229_v17  ;;  %v23526_v9 = vsub.f32 %v23251_v54, %v29055_v31 }
 0x416   : > { %v23521_v36 = vsub.f32 %v23231_v40, %v29054_v29  ;;  %v29058_v40 = vand.u32 4294901760, %v23468_v10  ;;  %v29059_v29 = vand.u32 4294901760, %v23470_v1  ;;  %v29070_v31 = vand.u32 4294901760, %v23287_v38 }
 0x417   : > { %29050 = vst [vmem:[#allocation88_spill] sm:$0xff] %v23495_v43  ;;  %v23511_v46 = vsub.f32 %v23442_v22, %v29052_v58  ;;  %v23516_v0 = vsub.f32 %v23229_v17, %v29053_v33  ;;  %16541 = vmatpush3.bf16.msra.mxu1 %v28967_v35  ;;  %v29056_v58 = vand.u32 4294901760, %v23447_v11  ;;  %v23534_v17 = vadd.f32 %v13599_v26, %v13598_v2 }
 0x418   : > { %16773 = vmatpush3.bf16.msra.mxu0 %v23486_v19  ;;  %16543 = vmatprep.subr.bf16.mxu1 %v28969_v24  ;;  %v23542_v54 = vpack.c.bf16 %v29059_v29, %v29058_v40  ;;  %v29061_v33 = vand.u32 4294901760, %v23253_v12  ;;  %v29062_v26 = vand.u32 4294901760, %v23255_v14  ;;  %v29063_v24 = vand.u32 4294901760, %v23257_v25 }
 0x419   : > { %v23532_v22 = vsub.f32 %v23447_v11, %v29056_v58  ;;  %29057 = vst [vmem:[#allocation89_spill] sm:$0xff] %v23534_v17  ;;  %16775 = vmatprep.subr.bf16.mxu0 %v23495_v43  ;;  %v29064_v40 = vand.u32 4294901760, %v23472_v30  ;;  %v29065_v29 = vand.u32 4294901760, %v23474_v3  ;;  %v29071_v43 = vand.u32 4294901760, %v23311_v57 }
 0x41a   : > { %29060 = vst [vmem:[#allocation92_spill] sm:$0xff] %v23542_v54  ;;  %v23549_v58 = vsub.f32 %v23253_v12, %v29061_v33  ;;  %v23554_v2 = vsub.f32 %v23255_v14, %v29062_v26  ;;  %v23559_v19 = vsub.f32 %v23257_v25, %v29063_v24  ;;  %v29067_v12 = vand.u32 4294901760, %v23280_v50 }
 0x41b   : > { %v23566_v35 = vpack.c.bf16 %v29065_v29, %v29064_v40  ;;  %v29068_v14 = vand.u32 4294901760, %v23282_v60  ;;  %v29069_v25 = vand.u32 4294901760, %v23285_v21  ;;  %v23586_v40 = vsub.f32 %v23287_v38, %v29070_v31  ;;  %v13601_v29 = vpop.f32.mrb[52].mxu0  ;;  %16545 = vmatpush3.bf16.msra.mxu1 %v28975_v15 }
 0x41c   : > { %v23571_v33 = vsub.f32 %v23280_v50, %v29067_v12  ;;  %v23591_v50 = vsub.f32 %v23311_v57, %v29071_v43  ;;  %v29072_v12 = vand.u32 4294901760, %v23313_v32  ;;  %v13602_v31 = vpop.f32.mrb[53].mxu0  ;;  %v29075_v57 = vand.u32 4294901760, %v23354_v59  ;;  %16777 = vmatpush3.bf16.msra.mxu0 %v23542_v54  ;;  %16547 = vmatprep.subr.bf16.mxu1 %v28977_v63 }
 0x41d   : > { %29066 = vst [vmem:[#allocation95_spill] sm:$0xff] %v23566_v35  ;;  %v23576_v26 = vsub.f32 %v23282_v60, %v29068_v14  ;;  %v23581_v24 = vsub.f32 %v23285_v21, %v29069_v25  ;;  %v29073_v14 = vand.u32 4294901760, %v23318_v20  ;;  %v29074_v25 = vand.u32 4294901760, %v23320_v5  ;;  %16779 = vmatprep.subr.bf16.mxu0 %v23566_v35 }
 0x41e   : > { %v23596_v60 = vsub.f32 %v23313_v32, %v29072_v12  ;;  %v23612_v43 = vsub.f32 %v23354_v59, %v29075_v57  ;;  %v23614_v32 = vadd.f32 %v13602_v31, %v13601_v29  ;;  %v29078_v12 = vand.u32 4294901760, %v23501_v37  ;;  %v13332_v59 = vpop.f32.mrb[52].mxu1 }
 0x41f   : > { %v23601_v21 = vsub.f32 %v23318_v20, %v29073_v14  ;;  %v23606_v38 = vsub.f32 %v23320_v5, %v29074_v25  ;;  %v29077_v20 = vand.u32 4294901760, %v23499_v55  ;;  %v8590_v14 = vand.u32 4294901760, %v23506_v47  ;;  %v13333_v35 = vpop.f32.mrb[53].mxu1  ;;  %16549 = vmatpush3.bf16.msra.mxu1 %v28983_v52 }
 0x420   : > { %29076 = vst [vmem:[#allocation27_spill] sm:$0xff] %v23614_v32  ;;  %v29080_v15 = vand.u32 4294901760, %v23356_v34  ;;  %v16814_v29 = vpack.c.bf16 %v23521_v36, %v23516_v0  ;;  %v29081_v63 = vand.u32 4294901760, %v22773_v13  ;;  %v29082_v57 = vand.u32 4294901760, %v22778_v61  ;;  %16551 = vmatprep.subr.bf16.mxu1 %v28985_v18 }
 0x421   : > { %v23622_v5 = vpack.c.bf16 %v29078_v12, %v29077_v20  ;;  %v29083_v47 = vand.u32 4294901760, %v23360_v56  ;;  %v29085_v54 = vand.u32 4294901760, %v22783_v39  ;;  %v16816_v52 = vpack.c.bf16 %v23549_v58, %v23526_v9 }
 0x422   : > { %v23628_v25 = vsub.f32 %v23356_v34, %v29080_v15  ;;  %v7809_v31 = vsub.f32 %v22773_v13, %v29081_v63  ;;  %v7816_v20 = vsub.f32 %v22778_v61, %v29082_v57  ;;  %v29084_v34 = vand.u32 4294901760, %v23362_v28 }
 0x423   : > { %29079 = vst [vmem:[#allocation96_spill] sm:$0xff] %v23622_v5  ;;  %v23642_v12 = vsub.f32 %v23360_v56, %v29083_v47  ;;  %v7697_v32 = vsub.f32 %v22783_v39, %v29085_v54  ;;  %v29086_v13 = vand.u32 4294901760, %v22806_v42  ;;  %v29087_v61 = vand.u32 4294901760, %v23390_v7  ;;  %16781 = vmatpush3.bf16.msra.mxu0 %v23622_v5  ;;  %16553 = vmatpush3.bf16.msra.mxu1 %v28994_v16 }
 0x424   : > { %v23647_v15 = vsub.f32 %v23362_v28, %v29084_v34  ;;  %v13334_v56 = vadd.f32 %v13333_v35, %v13332_v59  ;;  %v29088_v28 = vand.u32 4294901760, %v22811_v53  ;;  %v29089_v34 = vand.u32 4294901760, %v22816_v8  ;;  %v13335_v35 = vpop.f32.mrb[54].mxu1  ;;  %16815 = vmatprep.subr.bf16.mxu0 %v16814_v29 }
 0x425   : > { %v7704_v63 = vsub.f32 %v22806_v42, %v29086_v13  ;;  %v23658_v57 = vsub.f32 %v23390_v7, %v29087_v61  ;;  %v29090_v54 = vand.u32 4294901760, %v23392_v6  ;;  %v29091_v13 = vand.u32 4294901760, %v23398_v48 }
 0x426   : > { %v7823_v47 = vsub.f32 %v22811_v53, %v29088_v28  ;;  %v7830_v39 = vsub.f32 %v22816_v8, %v29089_v34  ;;  %v8599_v53 = vand.u32 4294901760, %v23511_v46  ;;  %v5430_v8 = vadd.f32 %v13334_v56, %v23325_v27  ;;  %8591 = vmatmul.mubr.f32.vlgmr.msra.gmra.mrb[78].mxu0 %v8590_v14  ;;  %v29094_v56 = vld [vmem:[#allocation49_spill] sm:$0xff] }
 0x427   : > { %v23670_v42 = vsub.f32 %v23392_v6, %v29090_v54  ;;  %v23675_v7 = vsub.f32 %v23398_v48, %v29091_v13  ;;  %v16818_v6 = vpack.c.bf16 %v23559_v19, %v23554_v2  ;;  %v7810_v59 = vand.u32 4294901760, %v7809_v31  ;;  %v13336_v48 = vpop.f32.mrb[55].mxu1  ;;  %16817 = vmatpush3.bf16.msra.mxu0 %v16816_v52 }
 0x428   : > { %v7817_v61 = vand.u32 4294901760, %v7816_v20  ;;  %v7698_v28 = vand.u32 4294901760, %v7697_v32  ;;  %v7705_v34 = vand.u32 4294901760, %v7704_v63  ;;  %v29092_v54 = vand.u32 4294901760, %v22828_v49  ;;  %8600 = vmatprep.mubr.f32.mxu0 %v8599_v53  ;;  %v29097_v63 = vld [vmem:[#allocation78_spill] sm:$0xff] }
 0x429   : > { %v29093_v46 = vand.u32 4294901760, %v22833_v45  ;;  %v13337_v5 = vadd.f32 %v13336_v48, %v13335_v35  ;;  %v7824_v27 = vand.u32 4294901760, %v7823_v47  ;;  %v7831_v29 = vand.u32 4294901760, %v7830_v39  ;;  %16555 = vmatprep.subr.bf16.mxu1 %v29097_v63  ;;  %16819 = vmatprep.subr.bf16.mxu0 %v16818_v6 }
 0x42a   : > { %v7711_v18 = vsub.f32 %v22828_v49, %v29092_v54  ;;  %v23693_v31 = vadd.f32 %v29094_v56, %v5430_v8  ;;  %v16820_v32 = vpack.c.bf16 %v23576_v26, %v23571_v33  ;;  %v29095_v49 = vand.u32 4294901760, %v22838_v4 }
 0x42b   : > { %v7718_v13 = vsub.f32 %v22833_v45, %v29093_v46  ;;  %v29096_v45 = vand.u32 4294901760, %v22843_v62  ;;  %v5441_v16 = vadd.f32 %v13337_v5, %v23368_v41  ;;  %v8605_v47 = vand.u32 4294901760, %v23532_v22  ;;  %v29102_v5 = vld [vmem:[#allocation42_spill] sm:$0xff] }
 0x42c   : > { %v7837_v20 = vsub.f32 %v22838_v4, %v29095_v49  ;;  %v16590_v39 = vpack.c.bf16 %v7817_v61, %v7810_v59  ;;  %v16822_v53 = vpack.c.bf16 %v23586_v40, %v23581_v24  ;;  %v16592_v52 = vpack.c.bf16 %v7705_v34, %v7698_v28  ;;  %v29098_v4 = vld [vmem:[#allocation121_spill] sm:$0xff]  ;;  %16557 = vmatpush3.bf16.msra.mxu1 %v29102_v5  ;;  %v29103_v61 = vld [vmem:[#allocation35_spill] sm:$0xff]  ;;  %v29104_v28 = vld [vmem:[#allocation26_spill] sm:$0xff] }
 0x42d   : > { %v7844_v14 = vsub.f32 %v22843_v62, %v29096_v45  ;;  %v16824_v8 = vpack.c.bf16 %v23596_v60, %v23591_v50  ;;  %v29099_v35 = vand.u32 4294901760, %v29098_v4  ;;  %v29100_v62 = vld [vmem:[#allocation51_spill] sm:$0xff]  ;;  %8606 = vmatmul.mubr.f32.gmra.mrb[80].mxu0 %v8605_v47  ;;  %v16594_v22 = vpack.c.bf16 %v7831_v29, %v7824_v27  ;;  %v29105_v49 = vld [vmem:[#allocation120_spill] sm:$0xff] }
 0x42e   : > { %v29101_v54 = vand.u32 4294901760, %v29100_v62  ;;  %v7712_v6 = vand.u32 4294901760, %v7711_v18  ;;  %v7719_v59 = vand.u32 4294901760, %v7718_v13  ;;  %v23718_v46 = vadd.f32 %v29103_v61, %v5441_v16  ;;  %16821 = vmatpush3.bf16.msra.mxu0 %v16820_v32  ;;  %8980 = vmatprep.mubr.f32.mxu0 %v29104_v28 }
 0x42f   : > { %v7725_v48 = vsub.f32 %v29098_v4, %v29099_v35  ;;  %v7838_v34 = vand.u32 4294901760, %v7837_v20  ;;  %v7845_v56 = vand.u32 4294901760, %v7844_v14  ;;  %v29106_v45 = vand.u32 4294901760, %v29105_v49  ;;  %v29107_v4 = vld [vmem:[#allocation37_spill] sm:$0xff]  ;;  %16591 = vmatprep.subr.bf16.mxu1 %v16590_v39  ;;  %16823 = vmatprep.subr.bf16.mxu0 %v16822_v53  ;;  %v29111_v20 = vld [vmem:[#allocation104_spill] sm:$0xff]  ;;  %v29117_v39 = vld [vmem:[#allocation38_spill] sm:$0xff] }
 0x430   : > { %v7732_v41 = vsub.f32 %v29100_v62, %v29101_v54  ;;  %v29108_v35 = vand.u32 4294901760, %v29107_v4  ;;  %v29109_v27 = vand.u32 4294901760, %v23400_v51  ;;  %v29110_v13 = vand.u32 4294901760, %v23428_v23  ;;  %7554 = vmatmul.mubr.f32.vlgmr.msra.gmra.mrb[80].mxu1 %v29111_v20  ;;  %v29112_v62 = vld [vmem:[#allocation40_spill] sm:$0xff] }
 0x431   : > { %v7851_v63 = vsub.f32 %v29105_v49, %v29106_v45  ;;  %v16826_v32 = vpack.c.bf16 %v23606_v38, %v23601_v21  ;;  %v7726_v14 = vand.u32 4294901760, %v7725_v48  ;;  %v29113_v54 = vand.u32 4294901760, %v29112_v62  ;;  %v29116_v45 = vld [vmem:[#allocation97_spill] sm:$0xff]  ;;  %16593 = vmatpush3.bf16.msra.mxu1 %v16592_v52 }
 0x432   : > { %v7858_v47 = vsub.f32 %v29107_v4, %v29108_v35  ;;  %v23730_v18 = vsub.f32 %v23400_v51, %v29109_v27  ;;  %v23735_v29 = vsub.f32 %v23428_v23, %v29110_v13  ;;  %v7733_v16 = vand.u32 4294901760, %v7732_v41  ;;  %v29114_v51 = vld [vmem:[#allocation81_spill] sm:$0xff]  ;;  %7559 = vmatprep.mubr.f32.mxu1 %v29116_v45  ;;  %v29119_v35 = vld [vmem:[#allocation76_spill] sm:$0xff]  ;;  %16825 = vmatpush3.bf16.msra.mxu0 %v16824_v8 }
 0x433   : > { %v7739_v5 = vsub.f32 %v29112_v62, %v29113_v54  ;;  %v29115_v61 = vand.u32 4294901760, %v29114_v51  ;;  %v16596_v23 = vpack.c.bf16 %v7719_v59, %v7712_v6  ;;  %v29118_v53 = vand.u32 4294901760, %v29117_v39  ;;  %16595 = vmatprep.subr.bf16.mxu1 %v16594_v22  ;;  %v29123_v6 = vld [vmem:[#allocation87_spill] sm:$0xff]  ;;  %16827 = vmatprep.subr.bf16.mxu0 %v16826_v32 }
 0x434   : > { %v29120_v27 = vand.u32 4294901760, %v29119_v35  ;;  %v16828_v41 = vpack.c.bf16 %v23628_v25, %v23612_v43  ;;  %v16598_v13 = vpack.c.bf16 %v7845_v56, %v7838_v34  ;;  %v7852_v20 = vand.u32 4294901760, %v7851_v63  ;;  %v29127_v34 = vld [vmem:[#allocation99_spill] sm:$0xff] }
 0x435   : > { %v7746_v49 = vsub.f32 %v29114_v51, %v29115_v61  ;;  %v7865_v4 = vsub.f32 %v29117_v39, %v29118_v53  ;;  %v7859_v62 = vand.u32 4294901760, %v7858_v47  ;;  %v29121_v54 = vand.u32 4294901760, %v23430_v44  ;;  %v29125_v61 = vld [vmem:[#allocation70_spill] sm:$0xff]  ;;  %7561 = vmatmul.mubr.f32.gmra.mrb[82].mxu1 %v29127_v34  ;;  %v29128_v39 = vld [vmem:[#allocation20_spill] sm:$0xff] }
 0x436   : > { %v7872_v48 = vsub.f32 %v29119_v35, %v29120_v27  ;;  %v29124_v59 = vand.u32 4294901760, %v29123_v6  ;;  %v29126_v45 = vand.u32 4294901760, %v29125_v61  ;;  %v16830_v22 = vpack.c.bf16 %v23647_v15, %v23642_v12  ;;  %16597 = vmatpush3.bf16.msra.mxu1 %v16596_v23  ;;  %7918 = vmatprep.mubr.f32.mxu1 %v29128_v39  ;;  %v29129_v27 = vld [vmem:[#allocation105_spill] sm:$0xff]  ;;  %v29147_v39 = vld [vmem:[#allocation68_spill] sm:$0xff] }
 0x437   : > { %v23758_v52 = vsub.f32 %v23430_v44, %v29121_v54  ;;  %v16600_v56 = vpack.c.bf16 %v7733_v16, %v7726_v14  ;;  %v16832_v44 = vpack.c.bf16 %v23670_v42, %v23658_v57  ;;  %v7740_v63 = vand.u32 4294901760, %v7739_v5  ;;  %16829 = vmatpush3.bf16.msra.mxu0 %v16828_v41  ;;  %16599 = vmatprep.subr.bf16.mxu1 %v16598_v13  ;;  %v29133_v16 = vld [vmem:[#allocation129_spill] sm:$0xff] }
 0x438   : > { %v23763_v51 = vsub.f32 %v29123_v6, %v29124_v59  ;;  %v23768_v8 = vsub.f32 %v29125_v61, %v29126_v45  ;;  %v7747_v47 = vand.u32 4294901760, %v7746_v49  ;;  %v7866_v53 = vand.u32 4294901760, %v7865_v4  ;;  %v29131_v6 = vld [vmem:[#allocation122_spill] sm:$0xff]  ;;  %v29135_v49 = vld [vmem:[#allocation28_spill] sm:$0xff]  ;;  %16831 = vmatprep.subr.bf16.mxu0 %v16830_v22 }
 0x439   : > { %29122 = vst [vmem:[#allocation12_spill] sm:$0xff] %v23758_v52  ;;  %v7873_v35 = vand.u32 4294901760, %v7872_v48  ;;  %v29130_v54 = vand.u32 4294901760, %v29129_v27  ;;  %v29132_v59 = vand.u32 4294901760, %v29131_v6  ;;  %v16602_v14 = vpack.c.bf16 %v7859_v62, %v7852_v20 }
 0x43a   : > { %v29134_v45 = vand.u32 4294901760, %v29133_v16  ;;  %v29136_v23 = vand.u32 4294901760, %v29135_v49  ;;  %v29137_v48 = vand.u32 4294901760, %v23468_v10  ;;  %v29139_v41 = vand.u32 4294901760, %v23472_v30  ;;  %16601 = vmatpush3.bf16.msra.mxu1 %v16600_v56 }
 0x43b   : > { %v7753_v32 = vsub.f32 %v29129_v27, %v29130_v54  ;;  %v7760_v61 = vsub.f32 %v29131_v6, %v29132_v59  ;;  %v29138_v27 = vand.u32 4294901760, %v23470_v1  ;;  %v16834_v20 = vpack.c.bf16 %v23730_v18, %v23675_v7  ;;  %v29141_v59 = vld [vmem:[#allocation30_spill] sm:$0xff]  ;;  %16833 = vmatpush3.bf16.msra.mxu0 %v16832_v44  ;;  %16603 = vmatprep.subr.bf16.mxu1 %v16602_v14 }
 0x43c   : > { %v7879_v5 = vsub.f32 %v29133_v16, %v29134_v45  ;;  %v7886_v4 = vsub.f32 %v29135_v49, %v29136_v23  ;;  %v23791_v34 = vsub.f32 %v23468_v10, %v29137_v48  ;;  %v23801_v13 = vsub.f32 %v23472_v30, %v29139_v41  ;;  %v29143_v45 = vld [vmem:[#allocation33_spill] sm:$0xff] }
 0x43d   : > { %v23796_v54 = vsub.f32 %v23470_v1, %v29138_v27  ;;  %v29140_v62 = vand.u32 4294901760, %v23474_v3  ;;  %v16836_v10 = vpack.c.bf16 %v23758_v52, %v23735_v29  ;;  %v29142_v1 = vand.u32 4294901760, %v29141_v59  ;;  %16835 = vmatprep.subr.bf16.mxu0 %v16834_v20 }
 0x43e   : > { %v29144_v49 = vand.u32 4294901760, %v29143_v45  ;;  %v16604_v22 = vpack.c.bf16 %v7747_v47, %v7740_v63  ;;  %v16606_v23 = vpack.c.bf16 %v7873_v35, %v7866_v53  ;;  %v7754_v48 = vand.u32 4294901760, %v7753_v32  ;;  %v13674_v53 = vpop.f32.mrb[54].mxu0  ;;  %v29153_v32 = vld [vmem:[#allocation22_spill] sm:$0xff] }
 0x43f   : > { %v23808_v6 = vsub.f32 %v23474_v3, %v29140_v62  ;;  %v7767_v16 = vsub.f32 %v29141_v59, %v29142_v1  ;;  %v7761_v27 = vand.u32 4294901760, %v7760_v61  ;;  %v7880_v3 = vand.u32 4294901760, %v7879_v5  ;;  %v29145_v62 = vld [vmem:[#allocation130_spill] sm:$0xff]  ;;  %16837 = vmatpush3.bf16.msra.mxu0 %v16836_v10 }
 0x440   : > { %v7774_v30 = vsub.f32 %v29143_v45, %v29144_v49  ;;  %v7887_v41 = vand.u32 4294901760, %v7886_v4  ;;  %v29146_v28 = vand.u32 4294901760, %v29145_v62  ;;  %v29148_v52 = vand.u32 4294901760, %v29147_v39  ;;  %16605 = vmatpush3.bf16.msra.mxu1 %v16604_v22  ;;  %v29155_v4 = vld [vmem:[#allocation82_spill] sm:$0xff] }
 0x441   : > { %v29149_v1 = vand.u32 4294901760, %v23499_v55  ;;  %v16838_v44 = vpack.c.bf16 %v23768_v8, %v23763_v51  ;;  %v29151_v63 = vand.u32 4294901760, %v23501_v37  ;;  %v29154_v61 = vand.u32 4294901760, %v29153_v32  ;;  %16607 = vmatprep.subr.bf16.mxu1 %v16606_v23 }
 0x442   : > { %v7893_v17 = vsub.f32 %v29145_v62, %v29146_v28  ;;  %v7900_v59 = vsub.f32 %v29147_v39, %v29148_v52  ;;  %v7768_v28 = vand.u32 4294901760, %v7767_v16  ;;  %v7775_v35 = vand.u32 4294901760, %v7774_v30  ;;  %v13675_v39 = vpop.f32.mrb[55].mxu0 }
 0x443   : > { %v23827_v56 = vsub.f32 %v23499_v55, %v29149_v1  ;;  %v23834_v47 = vsub.f32 %v23501_v37, %v29151_v63  ;;  %v7781_v52 = vsub.f32 %v29153_v32, %v29154_v61  ;;  %v16608_v55 = vpack.c.bf16 %v7761_v27, %v7754_v48  ;;  %16839 = vmatprep.subr.bf16.mxu0 %v16838_v44  ;;  %v29158_v27 = vld [vmem:[#allocation13_spill] sm:$0xff]  ;;  %v29160_v63 = vld [vmem:[#allocation31_spill] sm:$0xff]  ;;  %v29162_v44 = vld [vmem:[#allocation46_spill] sm:$0xff] }
 0x444   : > { %v16840_v14 = vpack.c.bf16 %v23796_v54, %v23791_v34  ;;  %v16842_v5 = vpack.c.bf16 %v23808_v6, %v23801_v13  ;;  %v29156_v20 = vand.u32 4294901760, %v29155_v4  ;;  %v23846_v45 = vadd.f32 %v13675_v39, %v13674_v53  ;;  %v13677_v53 = vpop.f32.mrb[56].mxu0 }
 0x445   : > { %29150 = vst [vmem:[#allocation55_spill] sm:$0xff] %v23827_v56  ;;  %29152 = vst [vmem:[#allocation100_spill] sm:$0xff] %v23834_v47  ;;  %v16610_v16 = vpack.c.bf16 %v7887_v41, %v7880_v3  ;;  %v7894_v49 = vand.u32 4294901760, %v7893_v17  ;;  %v7901_v30 = vand.u32 4294901760, %v7900_v59  ;;  %v27322_v22 = vand.u32 4294901760, %v23516_v0  ;;  %v13678_v3 = vpop.f32.mrb[57].mxu0  ;;  %16609 = vmatpush3.bf16.msra.mxu1 %v16608_v55 }
 0x446   : > { %v7788_v37 = vsub.f32 %v29155_v4, %v29156_v20  ;;  %29157 = vst [vmem:[#allocation101_spill] sm:$0xff] %v23846_v45  ;;  %v27321_v48 = vand.u32 4294901760, %v23521_v36  ;;  %v29159_v62 = vand.u32 4294901760, %v29158_v27  ;;  %v29161_v32 = vand.u32 4294901760, %v29160_v63  ;;  %16841 = vmatpush3.bf16.msra.mxu0 %v16840_v14  ;;  %v29195_v45 = vld [vmem:[#allocation115_spill] sm:$0xff] }
 0x447   : > { %v16612_v39 = vpack.c.bf16 %v7775_v35, %v7768_v28  ;;  %v16844_v10 = vpack.c.bf16 %v23834_v47, %v23827_v56  ;;  %v7782_v17 = vand.u32 4294901760, %v7781_v52  ;;  %v27320_v23 = vand.u32 4294901760, %v23526_v9  ;;  %16611 = vmatprep.subr.bf16.mxu1 %v16610_v16  ;;  %16843 = vmatprep.subr.bf16.mxu0 %v16842_v5 }
 0x448   : > { %v7907_v1 = vsub.f32 %v29158_v27, %v29159_v62  ;;  %v7914_v61 = vsub.f32 %v29160_v63, %v29161_v32  ;;  %v7789_v41 = vand.u32 4294901760, %v7788_v37  ;;  %v29163_v4 = vand.u32 4294901760, %v29162_v44  ;;  %v29164_v27 = vld [vmem:[#allocation14_spill] sm:$0xff]  ;;  %v13408_v37 = vpop.f32.mrb[56].mxu1 }
 0x449   : > { %v29165_v62 = vand.u32 4294901760, %v29164_v27  ;;  %v23866_v28 = vadd.f32 %v13678_v3, %v13677_v53  ;;  %v16614_v35 = vpack.c.bf16 %v7901_v30, %v7894_v49  ;;  %v27315_v52 = vand.u32 4294901760, %v23554_v2  ;;  %v13409_v59 = vpop.f32.mrb[57].mxu1  ;;  %16613 = vmatpush3.bf16.msra.mxu1 %v16612_v39 }
 0x44a   : > { %v7795_v20 = vsub.f32 %v29162_v44, %v29163_v4  ;;  %v27314_v55 = vand.u32 4294901760, %v23559_v19  ;;  %v16878_v32 = vpack.c.bf16 %v27321_v48, %v27322_v22  ;;  %v7908_v44 = vand.u32 4294901760, %v7907_v1  ;;  %16845 = vmatpush3.bf16.msra.mxu0 %v16844_v10  ;;  %v29186_v22 = vld [vmem:[#allocation64_spill] sm:$0xff] }
 0x44b   : > { %v7802_v63 = vsub.f32 %v29164_v27, %v29165_v62  ;;  %29166 = vst [vmem:[#allocation102_spill] sm:$0xff] %v23866_v28  ;;  %v7915_v4 = vand.u32 4294901760, %v7914_v61  ;;  %v13410_v27 = vadd.f32 %v13409_v59, %v13408_v37  ;;  %v16616_v53 = vpack.c.bf16 %v7789_v41, %v7782_v17  ;;  %16615 = vmatprep.subr.bf16.mxu1 %v16614_v35  ;;  %v13411_v17 = vpop.f32.mrb[58].mxu1  ;;  %v29168_v62 = vld [vmem:[#allocation47_spill] sm:$0xff]  ;;  %v29169_v35 = vld [vmem:[#allocation84_spill] sm:$0xff]  ;;  %v29192_v28 = vld [vmem:[#allocation117_spill] sm:$0xff] }
 0x44c   : > { %v7796_v14 = vand.u32 4294901760, %v7795_v20  ;;  %v29167_v49 = vand.u32 4294901760, %v23549_v58  ;;  %v16882_v30 = vpack.c.bf16 %v27314_v55, %v27315_v52  ;;  %v27313_v1 = vand.u32 4294901760, %v23571_v33  ;;  %16879 = vmatprep.subr.bf16.mxu0 %v16878_v32  ;;  %v13412_v59 = vpop.f32.mrb[59].mxu1  ;;  %v29185_v52 = vld [vmem:[#allocation131_spill] sm:$0xff] }
 0x44d   : > { %v7803_v16 = vand.u32 4294901760, %v7802_v63  ;;  %v27308_v61 = vand.u32 4294901760, %v23576_v26  ;;  %v5720_v39 = vadd.f32 %v13410_v27, %v23693_v31  ;;  %v16618_v10 = vpack.c.bf16 %v7915_v4, %v7908_v44  ;;  %8983 = vmatmul.mubr.f32.vlgmr.msra.gmra.mrb[82].mxu0 %v29168_v62  ;;  %16617 = vmatpush3.bf16.msra.mxu1 %v16616_v53  ;;  %v29191_v62 = vld [vmem:[#allocation116_spill] sm:$0xff] }
 0x44e   : > { %v16880_v5 = vpack.c.bf16 %v29167_v49, %v27320_v23  ;;  %v27307_v3 = vand.u32 4294901760, %v23581_v24  ;;  %v27306_v41 = vand.u32 4294901760, %v23586_v40  ;;  %v13413_v20 = vadd.f32 %v13412_v59, %v13411_v17  ;;  %v29170_v49 = vld [vmem:[#allocation50_spill] sm:$0xff]  ;;  %v13750_v23 = vpop.f32.mrb[58].mxu0 }
 0x44f   : > { %v16620_v63 = vpack.c.bf16 %v7803_v16, %v7796_v14  ;;  %v23889_v37 = vadd.f32 %v29169_v35, %v5720_v39  ;;  %8989 = vmatprep.mubr.f32.mxu0 %v29170_v49  ;;  %v16884_v31 = vpack.c.bf16 %v27308_v61, %v27313_v1  ;;  %v27305_v32 = vand.u32 4294901760, %v23591_v50  ;;  %16619 = vmatprep.subr.bf16.mxu1 %v16618_v10  ;;  %v29171_v16 = vld [vmem:[#allocation103_spill] sm:$0xff]  ;;  %v29173_v10 = vld [vmem:[#allocation128_spill] sm:$0xff]  ;;  %v29174_v35 = vld [vmem:[#allocation21_spill] sm:$0xff]  ;;  %v13751_v48 = vpop.f32.mrb[59].mxu0 }
 0x450   : > { %16881 = vmatpush3.bf16.msra.mxu0 %v16880_v5  ;;  %v27304_v44 = vand.u32 4294901760, %v23596_v60  ;;  %v5727_v4 = vadd.f32 %v13413_v20, %v23718_v46  ;;  %v16886_v27 = vpack.c.bf16 %v27306_v41, %v27307_v3  ;;  %v27303_v53 = vand.u32 4294901760, %v23601_v21  ;;  %v29172_v39 = vld [vmem:[#allocation19_spill] sm:$0xff]  ;;  %v29178_v41 = vld [vmem:[#allocation48_spill] sm:$0xff]  ;;  %v29180_v61 = vld [vmem:[#allocation29_spill] sm:$0xff] }
 0x451   : > { %16883 = vmatprep.subr.bf16.mxu0 %v16882_v30  ;;  %v27302_v14 = vand.u32 4294901760, %v23606_v38  ;;  %8992 = vmatmul.mubr.f32.gmra.mrb[84].mxu0 %v23447_v11  ;;  %v27310_v30 = vand.u32 4294901760, %v23612_v43  ;;  %v27309_v17 = vand.u32 4294901760, %v23628_v25  ;;  %v27312_v20 = vand.u32 4294901760, %v23642_v12  ;;  %v29179_v3 = vld [vmem:[#allocation135_spill] sm:$0xff] }
 0x452   : > { %16621 = vmatpush3.bf16.msra.mxu1 %v16620_v63  ;;  %v23907_v5 = vadd.f32 %v29171_v16, %v5727_v4  ;;  %9277 = vmatprep.mubr.f32.mxu0 %v29172_v39  ;;  %v16888_v46 = vpack.c.bf16 %v27304_v44, %v27305_v32  ;;  %v27311_v63 = vand.u32 4294901760, %v23647_v15  ;;  %v29176_v4 = vld [vmem:[#allocation18_spill] sm:$0xff]  ;;  %v27319_v32 = vand.u32 4294901760, %v23675_v7 }
 0x453   : > { %16655 = vmatprep.subr.bf16.mxu1 %v29173_v10  ;;  %v16890_v59 = vpack.c.bf16 %v27302_v14, %v27303_v53  ;;  %v29177_v16 = vld [vmem:[#allocation134_spill] sm:$0xff]  ;;  %v27317_v14 = vand.u32 4294901760, %v23658_v57  ;;  %v27316_v53 = vand.u32 4294901760, %v23670_v42  ;;  %v23971_v11 = vadd.f32 %v13751_v48, %v13750_v23  ;;  %v13753_v48 = vpop.f32.mrb[60].mxu0 }
 0x454   : > { %16885 = vmatpush3.bf16.msra.mxu0 %v16884_v31  ;;  %v29175_v31 = vld [vmem:[#allocation98_spill] sm:$0xff]  ;;  %v16894_v44 = vpack.c.bf16 %v27311_v63, %v27312_v20  ;;  %v27327_v63 = vand.u32 4294901760, %v23735_v29  ;;  %v29183_v20 = vld [vmem:[#allocation12_spill] sm:$0xff]  ;;  %v13754_v23 = vpop.f32.mrb[61].mxu0 }
 0x455   : > { %16887 = vmatprep.subr.bf16.mxu0 %v16886_v27  ;;  %7920 = vmatmul.mubr.f32.vlgmr.msra.gmra.mrb[84].mxu1 %v29174_v35  ;;  %v16892_v27 = vpack.c.bf16 %v27309_v17, %v27310_v30  ;;  %v29181_v17 = vand.u32 4294901760, %v29180_v61  ;;  %v29182_v30 = vld [vmem:[#allocation136_spill] sm:$0xff]  ;;  %v27324_v1 = vand.u32 4294901760, %v29183_v20  ;;  %v27326_v61 = vand.u32 4294901760, %v23763_v51  ;;  %29187 = vst [vmem:[#allocation125_spill] sm:$0xff] %v23971_v11 }
 0x456   : > { %7925 = vmatprep.mubr.f32.mxu1 %v29175_v31  ;;  %16657 = vmatpush3.bf16.msra.mxu1 %v29176_v4  ;;  %v23985_v49 = vadd.f32 %v13754_v23, %v13753_v48 }
 0x457   : > { %16659 = vmatprep.subr.bf16.mxu1 %v29177_v16 }
 0x458   : > { %16889 = vmatpush3.bf16.msra.mxu0 %v16888_v46  ;;  %v27318_v46 = vand.u32 4294901760, %v23730_v18  ;;  %29190 = vst [vmem:[#allocation71_spill] sm:$0xff] %v23985_v49  ;;  %v29194_v49 = vld [vmem:[#allocation59_spill] sm:$0xff] }
 0x459   : > { %16891 = vmatprep.subr.bf16.mxu0 %v16890_v59  ;;  %7927 = vmatmul.mubr.f32.gmra.mrb[86].mxu1 %v29178_v41  ;;  %v16896_v59 = vpack.c.bf16 %v27316_v53, %v27317_v14  ;;  %v16900_v53 = vpack.c.bf16 %v27324_v1, %v27327_v63  ;;  %v27328_v14 = vand.u32 4294901760, %v23796_v54  ;;  %v29188_v1 = vld [vmem:[#allocation65_spill] sm:$0xff] }
 0x45a   : > { %16661 = vmatpush3.bf16.msra.mxu1 %v29179_v3  ;;  %8178 = vmatprep.mubr.f32.mxu1 %v29181_v17  ;;  %v16898_v55 = vpack.c.bf16 %v27318_v46, %v27319_v32  ;;  %v27325_v17 = vand.u32 4294901760, %v23768_v8  ;;  %v27331_v32 = vand.u32 4294901760, %v23801_v13 }
 0x45b   : > { %16663 = vmatprep.subr.bf16.mxu1 %v29182_v30 }
 0x45c   : > { %16893 = vmatpush3.bf16.msra.mxu0 %v16892_v27  ;;  %v29184_v27 = vld [vmem:[#allocation24_spill] sm:$0xff]  ;;  %v16902_v46 = vpack.c.bf16 %v27325_v17, %v27326_v61  ;;  %v27335_v17 = vand.u32 4294901760, %v23827_v56  ;;  %v27334_v61 = vand.u32 4294901760, %v23834_v47  ;;  %v29196_v47 = vld [vmem:[#allocation93_spill] sm:$0xff] }
 0x45d   : > { %16895 = vmatprep.subr.bf16.mxu0 %v16894_v44  ;;  %v27329_v44 = vand.u32 4294901760, %v23791_v34 }
 0x45e   : > { %16665 = vmatpush3.bf16.msra.mxu1 %v29184_v27 }
 0x45f   : > { %16667 = vmatprep.subr.bf16.mxu1 %v29185_v52 }
 0x460   : > { %16897 = vmatpush3.bf16.msra.mxu0 %v16896_v59  ;;  %v27330_v59 = vand.u32 4294901760, %v23808_v6 }
 0x461   : > { %16899 = vmatprep.subr.bf16.mxu0 %v16898_v55  ;;  %v16904_v55 = vpack.c.bf16 %v27328_v14, %v27329_v44  ;;  %v16908_v14 = vpack.c.bf16 %v27334_v61, %v27335_v17  ;;  %v29197_v17 = vld [vmem:[#allocation67_spill] sm:$0xff] }
 0x462   : > { %16669 = vmatpush3.bf16.msra.mxu1 %v29186_v22  ;;  %v16906_v63 = vpack.c.bf16 %v27330_v59, %v27331_v32  ;;  %v29193_v59 = vld [vmem:[#allocation133_spill] sm:$0xff] }
 0x463   : > { %16671 = vmatprep.subr.bf16.mxu1 %v29188_v1 }
 0x464   : > { %16901 = vmatpush3.bf16.msra.mxu0 %v16900_v53  ;;  %v29189_v53 = vld [vmem:[#allocation75_spill] sm:$0xff] }
 0x465   : > { %16903 = vmatprep.subr.bf16.mxu0 %v16902_v46  ;;  %v13484_v46 = vpop.f32.mrb[60].mxu1 }
 0x466   : > { %16673 = vmatpush3.bf16.msra.mxu1 %v29189_v53  ;;  %v13485_v44 = vpop.f32.mrb[61].mxu1 }
 0x467   : > { %16675 = vmatprep.subr.bf16.mxu1 %v29191_v62  ;;  %v13486_v11 = vadd.f32 %v13485_v44, %v13484_v46  ;;  %v13487_v23 = vpop.f32.mrb[62].mxu1  ;;  %v29200_v46 = vld [vmem:[#allocation36_spill] sm:$0xff] }
 0x468   : > { %16905 = vmatpush3.bf16.msra.mxu0 %v16904_v55  ;;  %v13488_v55 = vpop.f32.mrb[63].mxu1 }
 0x469   : > { %16907 = vmatprep.subr.bf16.mxu0 %v16906_v63  ;;  %v6086_v48 = vadd.f32 %v13486_v11, %v23889_v37  ;;  %v13489_v32 = vadd.f32 %v13488_v55, %v13487_v23  ;;  %v29198_v63 = vld [vmem:[#allocation119_spill] sm:$0xff]  ;;  %v29201_v11 = vld [vmem:[#allocation114_spill] sm:$0xff] }
 0x46a   : > { %16677 = vmatpush3.bf16.msra.mxu1 %v29192_v28  ;;  %v29202_v23 = vld [vmem:[#allocation86_spill] sm:$0xff] }
 0x46b   : > { %16679 = vmatprep.subr.bf16.mxu1 %v29193_v59  ;;  %v6231_v61 = vadd.f32 %v29196_v47, %v6086_v48  ;;  %v6093_v44 = vadd.f32 %v13489_v32, %v23907_v5  ;;  %v29203_v55 = vand.u32 4294901760, %v29202_v23  ;;  %v29206_v47 = vld [vmem:[#allocation126_spill] sm:$0xff]  ;;  %v29208_v5 = vld [vmem:[#allocation20_spill] sm:$0xff] }
 0x46c   : > { %16909 = vmatpush3.bf16.msra.mxu0 %v16908_v14  ;;  %v29199_v14 = vld [vmem:[#allocation41_spill] sm:$0xff]  ;;  %v29207_v32 = vand.u32 4294901760, %v29206_v47  ;;  %v29213_v47 = vand.u32 4294901760, %v23554_v2 }
 0x46d   : > { %v6240_v37 = vadd.f32 %v29201_v11, %v6093_v44 }
 0x46e   : > { %16681 = vmatpush3.bf16.msra.mxu1 %v29195_v45 }
 0x46f   : > { %9279 = vmatmul.mubr.f32.vlgmr.msra.gmra.mrb[86].mxu0 %v29194_v49  ;;  %16683 = vmatprep.subr.bf16.mxu1 %v29198_v63  ;;  %v29204_v49 = vld [vmem:[#allocation74_spill] sm:$0xff] }
 0x470   : > { %9284 = vmatprep.mubr.f32.mxu0 %v29197_v17  ;;  %v29205_v56 = vand.u32 4294901760, %v29204_v49  ;;  %v13560_v48 = vpop.f32.mrb[64].mxu1 }
 0x471   : > { %v13561_v44 = vpop.f32.mrb[65].mxu1 }
 0x472   : > { %16685 = vmatpush3.bf16.msra.mxu1 %v29200_v46 }
 0x473   : > { %9286 = vmatmul.mubr.f32.gmra.mrb[88].mxu0 %v29199_v14  ;;  %16719 = vmatprep.subr.bf16.mxu1 %v29173_v10  ;;  %v13826_v10 = vpop.f32.mrb[62].mxu0 }
 0x474   : > { %v13827_v49 = vpop.f32.mrb[63].mxu0 }
 0x475   : > { %8182 = vmatmul.mubr.f32.vlgmr.msra.gmra.mrb[88].mxu1 %v29203_v55  ;;  %v13562_v55 = vadd.f32 %v13561_v44, %v13560_v48 }
 0x476   : > { %8189 = vmatprep.mubr.f32.mxu1 %v29205_v56  ;;  %16721 = vmatpush3.bf16.msra.mxu1 %v29176_v4  ;;  %v24019_v56 = vadd.f32 %v13827_v49, %v13826_v10  ;;  %v13829_v4 = vpop.f32.mrb[64].mxu0  ;;  %v13563_v10 = vpop.f32.mrb[66].mxu1 }
 0x477   : > { %16723 = vmatprep.subr.bf16.mxu1 %v29177_v16  ;;  %v13830_v16 = vpop.f32.mrb[65].mxu0  ;;  %v13564_v49 = vpop.f32.mrb[67].mxu1 }
 0x479   : > { %8193 = vmatmul.mubr.f32.gmra.mrb[90].mxu1 %v29207_v32  ;;  %v29214_v32 = vand.u32 4294901760, %v23559_v19 }
 0x47a   : > { %16725 = vmatpush3.bf16.msra.mxu1 %v29179_v3  ;;  %8470 = vmatprep.mubr.f32.mxu1 %v29208_v5  ;;  %v24023_v3 = vadd.f32 %v13830_v16, %v13829_v4  ;;  %v29215_v16 = vand.u32 4294901760, %v23571_v33 }
 0x47b   : > { %16727 = vmatprep.subr.bf16.mxu1 %v29182_v30  ;;  %v29209_v30 = vand.u32 4294901760, %v23516_v0  ;;  %v8748_v5 = vsub.f32 %v23559_v19, %v29214_v32 }
 0x47e   : > { %16729 = vmatpush3.bf16.msra.mxu1 %v29184_v27  ;;  %v29210_v27 = vand.u32 4294901760, %v23521_v36 }
 0x47f   : > { %16731 = vmatprep.subr.bf16.mxu1 %v29185_v52  ;;  %v8727_v52 = vsub.f32 %v23516_v0, %v29209_v30 }
 0x481   : > { %v8728_v0 = vand.u32 4294901760, %v8727_v52  ;;  %v13565_v52 = vadd.f32 %v13564_v49, %v13563_v10  ;;  %v29225_v49 = vand.u32 4294901760, %v23612_v43 }
 0x482   : > { %16733 = vmatpush3.bf16.msra.mxu1 %v29186_v22  ;;  %v8734_v22 = vsub.f32 %v23521_v36, %v29210_v27  ;;  %v8741_v36 = vsub.f32 %v23554_v2, %v29213_v47  ;;  %v29217_v2 = vand.u32 4294901760, %v23581_v24 }
 0x483   : > { %16735 = vmatprep.subr.bf16.mxu1 %v29188_v1  ;;  %v29211_v1 = vand.u32 4294901760, %v23526_v9 }
 0x484   : > { %v8755_v19 = vsub.f32 %v23581_v24, %v29217_v2  ;;  %v8742_v44 = vand.u32 4294901760, %v8741_v36  ;;  %v29221_v24 = vand.u32 4294901760, %v23596_v60 }
 0x485   : > { %v8615_v11 = vsub.f32 %v23526_v9, %v29211_v1  ;;  %v6348_v9 = vadd.f32 %v13562_v55, %v6231_v61  ;;  %v29218_v61 = vand.u32 4294901760, %v23586_v40  ;;  %v8749_v1 = vand.u32 4294901760, %v8748_v5 }
 0x486   : > { %16737 = vmatpush3.bf16.msra.mxu1 %v29189_v53  ;;  %v29212_v53 = vand.u32 4294901760, %v23549_v58  ;;  %v8650_v55 = vsub.f32 %v23596_v60, %v29221_v24  ;;  %v8756_v47 = vand.u32 4294901760, %v8755_v19 }
 0x487   : > { %16739 = vmatprep.subr.bf16.mxu1 %v29191_v62  ;;  %v8735_v62 = vand.u32 4294901760, %v8734_v22  ;;  %v8616_v4 = vand.u32 4294901760, %v8615_v11  ;;  %v8762_v27 = vsub.f32 %v23586_v40, %v29218_v61  ;;  %v29219_v22 = vld [vmem:[#allocation89_spill] sm:$0xff]  ;;  %v29231_v61 = vand.u32 4294901760, %v23675_v7 }
 0x488   : > { %v8622_v23 = vsub.f32 %v23549_v58, %v29212_v53  ;;  %v24060_v48 = vadd.f32 %v29219_v22, %v6348_v9  ;;  %v8651_v9 = vand.u32 4294901760, %v8650_v55 }
 0x489   : > { %v8763_v32 = vand.u32 4294901760, %v8762_v27 }
 0x48a   : > { %16741 = vmatpush3.bf16.msra.mxu1 %v29192_v28  ;;  %v8623_v58 = vand.u32 4294901760, %v8622_v23  ;;  %v8629_v28 = vsub.f32 %v23571_v33, %v29215_v16  ;;  %v16782_v33 = vpack.c.bf16 %v8735_v62, %v8728_v0  ;;  %v29223_v62 = vand.u32 4294901760, %v23601_v21 }
 0x48b   : > { %16743 = vmatprep.subr.bf16.mxu1 %v29193_v59  ;;  %v29216_v59 = vand.u32 4294901760, %v23576_v26  ;;  %v16790_v10 = vpack.c.bf16 %v8763_v32, %v8756_v47 }
 0x48c   : > { %v8630_v11 = vand.u32 4294901760, %v8629_v28  ;;  %v16784_v40 = vpack.c.bf16 %v8623_v58, %v8616_v4  ;;  %v8769_v36 = vsub.f32 %v23601_v21, %v29223_v62  ;;  %v8657_v4 = vsub.f32 %v23612_v43, %v29225_v49  ;;  %v13902_v32 = vpop.f32.mrb[66].mxu0 }
 0x48d   : > { %v8636_v30 = vsub.f32 %v23576_v26, %v29216_v59  ;;  %v6359_v26 = vadd.f32 %v13565_v52, %v6240_v37  ;;  %v16786_v37 = vpack.c.bf16 %v8749_v1, %v8742_v44  ;;  %v29226_v58 = vand.u32 4294901760, %v23628_v25  ;;  %v13903_v62 = vpop.f32.mrb[67].mxu0 }
 0x48e   : > { %16745 = vmatpush3.bf16.msra.mxu1 %v29195_v45  ;;  %v29220_v45 = vand.u32 4294901760, %v23591_v50  ;;  %v8770_v16 = vand.u32 4294901760, %v8769_v36  ;;  %v29228_v59 = vand.u32 4294901760, %v23647_v15  ;;  %v29229_v43 = vand.u32 4294901760, %v23658_v57 }
 0x48f   : > { %16747 = vmatprep.subr.bf16.mxu1 %v29198_v63  ;;  %v8637_v53 = vand.u32 4294901760, %v8636_v30  ;;  %v29222_v63 = vld [vmem:[#allocation27_spill] sm:$0xff]  ;;  %v8664_v21 = vsub.f32 %v23628_v25, %v29226_v58  ;;  %v29230_v25 = vand.u32 4294901760, %v23670_v42  ;;  %v8658_v19 = vand.u32 4294901760, %v8657_v4 }
 0x490   : > { %v8643_v23 = vsub.f32 %v23591_v50, %v29220_v45  ;;  %v24071_v0 = vadd.f32 %v29222_v63, %v6359_v26  ;;  %v29224_v50 = vand.u32 4294901760, %v23606_v38  ;;  %v8671_v52 = vsub.f32 %v23658_v57, %v29229_v43 }
 0x491   : > { %v16788_v60 = vpack.c.bf16 %v8637_v53, %v8630_v11  ;;  %v8678_v2 = vsub.f32 %v23670_v42, %v29230_v25  ;;  %v29233_v42 = vand.u32 4294901760, %v23735_v29  ;;  %v29234_v11 = vand.u32 4294901760, %v29183_v20 }
 0x492   : > { %16749 = vmatpush3.bf16.msra.mxu1 %v29200_v46  ;;  %v8776_v5 = vsub.f32 %v23606_v38, %v29224_v50  ;;  %v8644_v46 = vand.u32 4294901760, %v8643_v23  ;;  %v8672_v44 = vand.u32 4294901760, %v8671_v52  ;;  %v29237_v50 = vand.u32 4294901760, %v23791_v34 }
 0x493   : > { %16783 = vmatprep.subr.bf16.mxu1 %v16782_v33  ;;  %v8679_v1 = vand.u32 4294901760, %v8678_v2  ;;  %v8685_v26 = vsub.f32 %v23735_v29, %v29233_v42  ;;  %v8692_v53 = vsub.f32 %v29183_v20, %v29234_v11  ;;  %v29240_v49 = vand.u32 4294901760, %v23808_v6  ;;  %v13905_v58 = vpop.f32.mrb[68].mxu0  ;;  %v29246_v11 = vld [vmem:[#allocation102_spill] sm:$0xff] }
 0x494   : > { %v8777_v38 = vand.u32 4294901760, %v8776_v5  ;;  %v16792_v30 = vpack.c.bf16 %v8651_v9, %v8644_v46  ;;  %v8699_v5 = vsub.f32 %v23791_v34, %v29237_v50  ;;  %v24125_v46 = vadd.f32 %v13903_v62, %v13902_v32  ;;  %v29258_v62 = vld [vmem:[#allocation25_spill] sm:$0xff] }
 0x495   : > { %8472 = vmatmul.mubr.f32.vlgmr.msra.gmra.mrb[92].mxu1 %v29174_v35  ;;  %v29227_v35 = vand.u32 4294901760, %v23642_v12  ;;  %v16800_v29 = vpack.c.bf16 %v8679_v1, %v8672_v44  ;;  %v8686_v63 = vand.u32 4294901760, %v8685_v26  ;;  %v29239_v9 = vand.u32 4294901760, %v23801_v13  ;;  %v29245_v1 = vld [vmem:[#allocation101_spill] sm:$0xff] }
 0x496   : > { %8477 = vmatprep.mubr.f32.mxu1 %v29175_v31  ;;  %16785 = vmatpush3.bf16.msra.mxu1 %v16784_v40  ;;  %v8790_v31 = vsub.f32 %v23647_v15, %v29228_v59  ;;  %v8797_v15 = vsub.f32 %v23675_v7, %v29231_v61  ;;  %v16794_v22 = vpack.c.bf16 %v8777_v38, %v8770_v16  ;;  %v29236_v40 = vand.u32 4294901760, %v23768_v8  ;;  %v13906_v16 = vpop.f32.mrb[69].mxu0  ;;  %v29243_v59 = vld [vmem:[#allocation100_spill] sm:$0xff]  ;;  %v13636_v25 = vpop.f32.mrb[68].mxu1  ;;  %v29259_v50 = vld [vmem:[#allocation17_spill] sm:$0xff] }
 0x497   : > { %16787 = vmatprep.subr.bf16.mxu1 %v16786_v37  ;;  %v8783_v28 = vsub.f32 %v23642_v12, %v29227_v35  ;;  %v8665_v12 = vand.u32 4294901760, %v8664_v21  ;;  %v8693_v37 = vand.u32 4294901760, %v8692_v53  ;;  %v8832_v4 = vsub.f32 %v23808_v6, %v29240_v49  ;;  %v29241_v35 = vld [vmem:[#allocation55_spill] sm:$0xff]  ;;  %v13637_v2 = vpop.f32.mrb[69].mxu1  ;;  %v29262_v49 = vld [vmem:[#allocation88_spill] sm:$0xff] }
 0x498   : > { %v8791_v33 = vand.u32 4294901760, %v8790_v31  ;;  %v8798_v45 = vand.u32 4294901760, %v8797_v15  ;;  %v8818_v47 = vsub.f32 %v23768_v8, %v29236_v40  ;;  %v8700_v34 = vand.u32 4294901760, %v8699_v5  ;;  %v29255_v40 = vld [vmem:[#allocation39_spill] sm:$0xff] }
 0x499   : > { %8479 = vmatmul.mubr.f32.gmra.mrb[94].mxu1 %v29178_v41  ;;  %v29232_v41 = vand.u32 4294901760, %v23730_v18  ;;  %v8784_v57 = vand.u32 4294901760, %v8783_v28  ;;  %v16796_v7 = vpack.c.bf16 %v8665_v12, %v8658_v19  ;;  %v16804_v21 = vpack.c.bf16 %v8693_v37, %v8686_v63  ;;  %v29257_v63 = vld [vmem:[#allocation94_spill] sm:$0xff] }
 0x49a   : > { %16789 = vmatpush3.bf16.msra.mxu1 %v16788_v60  ;;  %8836 = vmatprep.mubr.f32.mxu1 %v29172_v39  ;;  %v8819_v8 = vand.u32 4294901760, %v8818_v47  ;;  %v29244_v31 = vand.u32 4294901760, %v29243_v59  ;;  %v24139_v43 = vadd.f32 %v13906_v16, %v13905_v58  ;;  %v8833_v6 = vand.u32 4294901760, %v8832_v4  ;;  %v29256_v47 = vld [vmem:[#allocation83_spill] sm:$0xff] }
 0x49b   : > { %v8804_v27 = vsub.f32 %v23730_v18, %v29232_v41  ;;  %16791 = vmatprep.subr.bf16.mxu1 %v16790_v10  ;;  %v29235_v18 = vand.u32 4294901760, %v23763_v51  ;;  %v16798_v55 = vpack.c.bf16 %v8791_v33, %v8784_v57  ;;  %v8825_v10 = vsub.f32 %v23801_v13, %v29239_v9 }
 0x49c   : > { %v13638_v19 = vadd.f32 %v13637_v2, %v13636_v25  ;;  %v29272_v2 = vld [vmem:[#allocation118_spill] sm:$0xff] }
 0x49d   : > { %v8805_v23 = vand.u32 4294901760, %v8804_v27  ;;  %v8811_v24 = vsub.f32 %v23763_v51, %v29235_v18  ;;  %v29238_v51 = vand.u32 4294901760, %v23796_v54  ;;  %v8826_v52 = vand.u32 4294901760, %v8825_v10  ;;  %v29251_v18 = vld [vmem:[#allocation32_spill] sm:$0xff] }
 0x49e   : > { %16793 = vmatpush3.bf16.msra.mxu1 %v16792_v30  ;;  %v8720_v30 = vsub.f32 %v29243_v59, %v29244_v31  ;;  %v6638_v27 = vadd.f32 %v13638_v19, %v24060_v48  ;;  %v29249_v48 = vld [vmem:[#allocation124_spill] sm:$0xff]  ;;  %v29267_v31 = vld [vmem:[#allocation71_spill] sm:$0xff]  ;;  %v29273_v19 = vand.u32 4294901760, %v29272_v2 }
 0x49f   : > { %16795 = vmatprep.subr.bf16.mxu1 %v16794_v22  ;;  %v16802_v20 = vpack.c.bf16 %v8805_v23, %v8798_v45  ;;  %v8812_v36 = vand.u32 4294901760, %v8811_v24  ;;  %v8706_v60 = vsub.f32 %v23796_v54, %v29238_v51  ;;  %v29242_v54 = vand.u32 4294901760, %v29241_v35  ;;  %v13639_v22 = vpop.f32.mrb[70].mxu1  ;;  %v29248_v45 = vld [vmem:[#allocation59_spill] sm:$0xff]  ;;  %v29250_v23 = vld [vmem:[#allocation66_spill] sm:$0xff]  ;;  %v29261_v10 = vld [vmem:[#allocation132_spill] sm:$0xff] }
 0x4a0   : > { %v8721_v15 = vand.u32 4294901760, %v8720_v30  ;;  %v16810_v41 = vpack.c.bf16 %v8833_v6, %v8826_v52  ;;  %v13640_v57 = vpop.f32.mrb[71].mxu1  ;;  %v6757_v42 = vadd.f32 %v29245_v1, %v6638_v27  ;;  %v29252_v24 = vld [vmem:[#allocation26_spill] sm:$0xff]  ;;  %v29260_v51 = vld [vmem:[#allocation123_spill] sm:$0xff]  ;;  %v29266_v59 = vld [vmem:[#allocation96_spill] sm:$0xff] }
 0x4a1   : > { %v8707_v38 = vand.u32 4294901760, %v8706_v60  ;;  %v8713_v28 = vsub.f32 %v29241_v35, %v29242_v54  ;;  %v16806_v13 = vpack.c.bf16 %v8819_v8, %v8812_v36  ;;  %v13641_v33 = vadd.f32 %v13640_v57, %v13639_v22  ;;  %v29265_v54 = vld [vmem:[#allocation95_spill] sm:$0xff]  ;;  %v29270_v6 = vld [vmem:[#allocation50_spill] sm:$0xff] }
 0x4a2   : > { %16797 = vmatpush3.bf16.msra.mxu1 %v16796_v7  ;;  %v29247_v7 = vld [vmem:[#allocation91_spill] sm:$0xff]  ;;  %v29271_v25 = vand.u32 4294901760, %v29270_v6 }
 0x4a3   : > { %16799 = vmatprep.subr.bf16.mxu1 %v16798_v55  ;;  %v16808_v12 = vpack.c.bf16 %v8707_v38, %v8700_v34  ;;  %v8714_v61 = vand.u32 4294901760, %v8713_v28  ;;  %v6645_v26 = vadd.f32 %v13641_v33, %v24071_v0  ;;  %v29253_v55 = vand.u32 4294901760, %v29252_v24  ;;  %v29254_v0 = vld [vmem:[#allocation15_spill] sm:$0xff]  ;;  %v29263_v34 = vld [vmem:[#allocation92_spill] sm:$0xff]  ;;  %v29264_v38 = vld [vmem:[#allocation125_spill] sm:$0xff] }
 0x4a4   : > { %v24255_v2 = vld [vmem:[%s26326_s7 + $0x18] sm:$0xff] }
 0x4a5   : > { %v16812_v44 = vpack.c.bf16 %v8721_v15, %v8714_v61  ;;  %v6772_v53 = vadd.f32 %v29246_v11, %v6645_v26 }
 0x4a6   : > { %16801 = vmatpush3.bf16.msra.mxu1 %v16800_v29 }
 0x4a7   : > { %16803 = vmatprep.subr.bf16.mxu1 %v16802_v20 }
 0x4aa   : > { %16805 = vmatpush3.bf16.msra.mxu1 %v16804_v21 }
 0x4ab   : > { %16807 = vmatprep.subr.bf16.mxu1 %v16806_v13  ;;  %v29268_v13 = vld [vmem:[#allocation47_spill] sm:$0xff] }
 0x4ac   : > { %v29269_v52 = vand.u32 4294901760, %v29268_v13 }
 0x4ae   : > { %16809 = vmatpush3.bf16.msra.mxu1 %v16808_v12 }
 0x4af   : > { %16811 = vmatprep.subr.bf16.mxu1 %v16810_v41 }
 0x4b2   : > { %16813 = vmatpush3.bf16.msra.mxu1 %v16812_v44 }
 0x4b3   : > { %16847 = vmatprep.subr.bf16.mxu1 %v29247_v7  ;;  %v13978_v32 = vpop.f32.mrb[70].mxu0 }
 0x4b4   : > { %v13979_v29 = vpop.f32.mrb[71].mxu0 }
 0x4b5   : > { %8838 = vmatmul.mubr.f32.vlgmr.msra.gmra.mrb[96].mxu1 %v29248_v45  ;;  %v24158_v37 = vadd.f32 %v13979_v29, %v13978_v32 }
 0x4b6   : > { %8843 = vmatprep.mubr.f32.mxu1 %v29197_v17  ;;  %16849 = vmatpush3.bf16.msra.mxu1 %v29249_v48 }
 0x4b7   : > { %16851 = vmatprep.subr.bf16.mxu1 %v29250_v23  ;;  %v13981_v20 = vpop.f32.mrb[72].mxu0 }
 0x4b8   : > { %v13982_v36 = vpop.f32.mrb[73].mxu0 }
 0x4b9   : > { %8845 = vmatmul.mubr.f32.gmra.mrb[98].mxu1 %v29199_v14  ;;  %v24162_v5 = vadd.f32 %v13982_v36, %v13981_v20 }
 0x4ba   : > { %16853 = vmatpush3.bf16.msra.mxu1 %v29251_v18  ;;  %9096 = vmatprep.mubr.f32.mxu1 %v29253_v55 }
 0x4bb   : > { %16855 = vmatprep.subr.bf16.mxu1 %v29254_v0  ;;  %v13712_v60 = vpop.f32.mrb[72].mxu1 }
 0x4bc   : > { %v13713_v8 = vpop.f32.mrb[73].mxu1 }
 0x4bd   : > { %v13714_v9 = vadd.f32 %v13713_v8, %v13712_v60 }
 0x4be   : > { %16857 = vmatpush3.bf16.msra.mxu1 %v29255_v40 }
 0x4bf   : > { %16859 = vmatprep.subr.bf16.mxu1 %v29256_v47  ;;  %v7004_v4 = vadd.f32 %v13714_v9, %v6757_v42  ;;  %v13715_v58 = vpop.f32.mrb[74].mxu1 }
 0x4c0   : > { %v13716_v21 = vpop.f32.mrb[75].mxu1 }
 0x4c1   : > { %v13717_v16 = vadd.f32 %v13716_v21, %v13715_v58  ;;  %v7149_v35 = vadd.f32 %v29264_v38, %v7004_v4  ;;  %v24226_v38 = vld [vmem:[%s26326_s7] sm:$0xff] }
 0x4c2   : > { %16861 = vmatpush3.bf16.msra.mxu1 %v29257_v63 }
 0x4c3   : > { %16863 = vmatprep.subr.bf16.mxu1 %v29258_v62  ;;  %v7011_v28 = vadd.f32 %v13717_v16, %v6772_v53 }
 0x4c5   : > { %v7158_v30 = vadd.f32 %v29267_v31, %v7011_v28  ;;  %v9520_v28 = vand.u32 4294901760, %v24226_v38  ;;  %v24240_v31 = vld [vmem:[%s26326_s7 + $0x98] sm:$0xff] }
 0x4c6   : > { %16865 = vmatpush3.bf16.msra.mxu1 %v29259_v50  ;;  %v9577_v6 = vand.u32 4294901760, %v24240_v31 }
 0x4c7   : > { %16867 = vmatprep.subr.bf16.mxu1 %v29260_v51 }
 0x4ca   : > { %16869 = vmatpush3.bf16.msra.mxu1 %v29261_v10 }
 0x4cb   : > { %16871 = vmatprep.subr.bf16.mxu1 %v29262_v49 }
 0x4ce   : > { %16873 = vmatpush3.bf16.msra.mxu1 %v29263_v34 }
 0x4cf   : > { %16875 = vmatprep.subr.bf16.mxu1 %v29265_v54 }
 0x4d2   : > { %16877 = vmatpush3.bf16.msra.mxu1 %v29266_v59 }
 0x4d3   : > { %16911 = vmatprep.subr.bf16.mxu1 %v29247_v7 }
 0x4d5   : > { %9100 = vmatmul.mubr.f32.vlgmr.msra.gmra.mrb[100].mxu1 %v29269_v52  ;;  %v14054_v12 = vpop.f32.mrb[74].mxu0 }
 0x4d6   : > { %9107 = vmatprep.mubr.f32.mxu1 %v29271_v25  ;;  %16913 = vmatpush3.bf16.msra.mxu1 %v29249_v48  ;;  %v14055_v61 = vpop.f32.mrb[75].mxu0  ;;  %v24250_v25 = vld [vmem:[%s26326_s7 + $0x10] sm:$0xff] }
 0x4d7   : > { %16915 = vmatprep.subr.bf16.mxu1 %v29250_v23  ;;  %v24187_v15 = vadd.f32 %v14055_v61, %v14054_v12  ;;  %v9526_v61 = vand.u32 4294901760, %v24250_v25 }
 0x4d9   : > { %9111 = vmatmul.mubr.f32.gmra.mrb[102].mxu1 %v29273_v19  ;;  %v14057_v41 = vpop.f32.mrb[76].mxu0 }
 0x4da   : > { %16917 = vmatpush3.bf16.msra.mxu1 %v29251_v18  ;;  %9388 = vmatprep.mubr.f32.mxu1 %v29172_v39  ;;  %v14058_v27 = vpop.f32.mrb[77].mxu0 }
 0x4db   : > { %16919 = vmatprep.subr.bf16.mxu1 %v29254_v0  ;;  %v24191_v22 = vadd.f32 %v14058_v27, %v14057_v41 }
 0x4dd   : > { %v13788_v39 = vpop.f32.mrb[76].mxu1 }
 0x4de   : > { %16921 = vmatpush3.bf16.msra.mxu1 %v29255_v40  ;;  %v13789_v57 = vpop.f32.mrb[77].mxu1 }
 0x4df   : > { %16923 = vmatprep.subr.bf16.mxu1 %v29256_v47  ;;  %v13790_v33 = vadd.f32 %v13789_v57, %v13788_v39  ;;  %v24271_v39 = vsub.f32 %v24240_v31, %v9577_v6  ;;  %v9529_v57 = vand.u32 4294901760, %v24255_v2 }
 0x4e1   : > { %v7266_v44 = vadd.f32 %v13790_v33, %v7149_v35  ;;  %v13791_v1 = vpop.f32.mrb[78].mxu1  ;;  %29276 = vst [vmem:[#allocation72_spill] sm:$0xff] %v24271_v39 }
 0x4e2   : > { %16925 = vmatpush3.bf16.msra.mxu1 %v29257_v63  ;;  %v13792_v42 = vpop.f32.mrb[79].mxu1 }
 0x4e3   : > { %16927 = vmatprep.subr.bf16.mxu1 %v29258_v62  ;;  %v13793_v26 = vadd.f32 %v13792_v42, %v13791_v1  ;;  %v7445_v11 = vadd.f32 %v24019_v56, %v7266_v44  ;;  %v24280_v42 = vsub.f32 %v24250_v25, %v9526_v61 }
 0x4e5   : > { %v7277_v53 = vadd.f32 %v13793_v26, %v7158_v30 }
 0x4e6   : > { %16929 = vmatpush3.bf16.msra.mxu1 %v29259_v50 }
 0x4e7   : > { %16931 = vmatprep.subr.bf16.mxu1 %v29260_v51  ;;  %v7452_v7 = vadd.f32 %v24023_v3, %v7277_v53  ;;  %v27344_v53 = vand.u32 4294901760, %v24271_v39 }
 0x4ea   : > { %16933 = vmatpush3.bf16.msra.mxu1 %v29261_v10 }
 0x4eb   : > { %16935 = vmatprep.subr.bf16.mxu1 %v29262_v49 }
 0x4ee   : > { %16937 = vmatpush3.bf16.msra.mxu1 %v29263_v34  ;;  %v9456_v34 = vld [vmem:[%s26326_s7 + $0x88] sm:$0xff] }
 0x4ef   : > { %16939 = vmatprep.subr.bf16.mxu1 %v29265_v54  ;;  %v9571_v54 = vand.u32 4294901760, %v9456_v34 }
 0x4f1   : > { %v24259_v12 = vsub.f32 %v9456_v34, %v9571_v54 }
 0x4f2   : > { %16941 = vmatpush3.bf16.msra.mxu1 %v29266_v59  ;;  %v24235_v59 = vld [vmem:[%s26326_s7 + $0x90] sm:$0xff] }
 0x4f3   : > { %v9574_v52 = vand.u32 4294901760, %v24235_v59  ;;  %29275 = vst [vmem:[#allocation11_spill] sm:$0xff] %v24259_v12  ;;  %v27349_v44 = vand.u32 4294901760, %v24259_v12 }
 0x4f5   : > { %9390 = vmatmul.mubr.f32.vlgmr.msra.gmra.mrb[104].mxu1 %v29248_v45  ;;  %v24268_v27 = vsub.f32 %v24235_v59, %v9574_v52 }
 0x4f6   : > { %9395 = vmatprep.mubr.f32.mxu1 %v29197_v17 }
 0x4f9   : > { %9397 = vmatmul.mubr.f32.gmra.mrb[106].mxu1 %v29199_v14  ;;  %v14130_v48 = vpop.f32.mrb[78].mxu0 }
 0x4fa   : > { %v14131_v23 = vpop.f32.mrb[79].mxu0 }
 0x4fb   : > { %v24204_v18 = vadd.f32 %v14131_v23, %v14130_v48  ;;  %v9769_v23 = vsub.f32 %v24259_v12, %v27349_v44 }
 0x500   : > { %v14133_v24 = vpop.f32.mrb[80].mxu0 }
 0x501   : > { %v14134_v55 = vpop.f32.mrb[81].mxu0 }
 0x502   : > { %v24206_v56 = vadd.f32 %v14134_v55, %v14133_v24  ;;  %v27341_v55 = vand.u32 4294901760, %v24280_v42 }
 0x503   : > { %v13864_v0 = vpop.f32.mrb[80].mxu1 }
 0x504   : > { %v13865_v40 = vpop.f32.mrb[81].mxu1 }
 0x505   : > { %v13866_v47 = vadd.f32 %v13865_v40, %v13864_v0 }
 0x507   : > { %v7556_v32 = vadd.f32 %v13866_v47, %v7445_v11  ;;  %v27345_v11 = vand.u32 4294901760, %v24268_v27  ;;  %v9783_v47 = vsub.f32 %v24271_v39, %v27344_v53 }
 0x508   : > { %v13867_v29 = vpop.f32.mrb[82].mxu1 }
 0x509   : > { %v13868_v3 = vpop.f32.mrb[83].mxu1  ;;  %v7675_v45 = vadd.f32 %v24125_v46, %v7556_v32  ;;  %v9776_v40 = vsub.f32 %v24268_v27, %v27345_v11 }
 0x50a   : > { %v13869_v63 = vadd.f32 %v13868_v3, %v13867_v29  ;;  %v24311_v29 = vld [vmem:[%s26326_s7 + $0xa0] sm:$0xff] }
 0x50c   : > { %v7563_v17 = vadd.f32 %v13869_v63, %v7452_v7  ;;  %v24286_v7 = vsub.f32 %v24255_v2, %v9529_v57  ;;  %v9770_v63 = vand.u32 4294901760, %v9769_v23  ;;  %v24361_v2 = vld [vmem:[%s26326_s7 + $0x30] sm:$0xff] }
 0x50e   : > { %v7690_v14 = vadd.f32 %v24139_v43, %v7563_v17  ;;  %v9455_v43 = vld [vmem:[%s26326_s7 + $0x80] sm:$0xff]  ;;  %v27340_v32 = vand.u32 4294901760, %v24286_v7  ;;  %v9664_v17 = vsub.f32 %v24280_v42, %v27341_v55 }
 0x50f   : > { %v9568_v35 = vand.u32 4294901760, %v9455_v43 }
 0x511   : > { %v24257_v19 = vsub.f32 %v9455_v43, %v9568_v35 }
 0x513   : > { %29274 = vst [vmem:[#allocation85_spill] sm:$0xff] %v24257_v19  ;;  %v27350_v33 = vand.u32 4294901760, %v24257_v19 }
 0x515   : > { %v9762_v48 = vsub.f32 %v24257_v19, %v27350_v33 }
 0x517   : > { %v9763_v3 = vand.u32 4294901760, %v9762_v48 }
 0x520   : > { %v14206_v62 = vpop.f32.mrb[82].mxu0 }
 0x521   : > { %v14207_v20 = vpop.f32.mrb[83].mxu0 }
 0x522   : > { %v24210_v36 = vadd.f32 %v14207_v20, %v14206_v62  ;;  %v9777_v20 = vand.u32 4294901760, %v9776_v40 }
 0x524   : > { %v14209_v50 = vpop.f32.mrb[84].mxu0 }
 0x525   : > { %v14210_v51 = vpop.f32.mrb[85].mxu0 }
 0x526   : > { %v24212_v60 = vadd.f32 %v14210_v51, %v14209_v50  ;;  %v9784_v50 = vand.u32 4294901760, %v9783_v47  ;;  %v9671_v51 = vsub.f32 %v24286_v7, %v27340_v32 }
 0x528   : > { %v13940_v8 = vpop.f32.mrb[84].mxu1  ;;  %v16978_v43 = vpack.c.bf16 %v9784_v50, %v9777_v20  ;;  %v9672_v34 = vand.u32 4294901760, %v9671_v51 }
 0x529   : > { %v13941_v9 = vpop.f32.mrb[85].mxu1 }
 0x52a   : > { %v13942_v10 = vadd.f32 %v13941_v9, %v13940_v8  ;;  %v24327_v8 = vld [vmem:[%s26326_s7 + $0x20] sm:$0xff]  ;;  %v24332_v9 = vld [vmem:[%s26326_s7 + $0x28] sm:$0xff] }
 0x52b   : > { %v9532_v59 = vand.u32 4294901760, %v24327_v8  ;;  %v9535_v31 = vand.u32 4294901760, %v24332_v9 }
 0x52c   : > { %v7922_v49 = vadd.f32 %v13942_v10, %v7675_v45  ;;  %v13943_v4 = vpop.f32.mrb[86].mxu1  ;;  %v16974_v10 = vpack.c.bf16 %v9770_v63, %v9763_v3  ;;  %v24398_v63 = vpack.c.bf16 %v9529_v57, %v9526_v61 }
 0x52d   : > { %v13944_v58 = vpop.f32.mrb[87].mxu1  ;;  %v24381_v40 = vsub.f32 %v24332_v9, %v9535_v31 }
 0x52e   : > { %v13945_v21 = vadd.f32 %v13944_v58, %v13943_v4  ;;  %v24215_v46 = vadd.f32 %v24158_v37, %v7922_v49  ;;  %v9440_v37 = vld [vmem:[%s26326_s7 + $0x8] sm:$0xff]  ;;  %v9665_v49 = vand.u32 4294901760, %v9664_v17  ;;  %v24334_v4 = vpack.c.bf16 %v9571_v54, %v9568_v35  ;;  %16975 = vmatprep.subr.bf16.mxu1 %v16974_v10  ;;  %29279 = vst [vmem:[#allocation73_spill] sm:$0xff] %v24398_v63 }
 0x52f   : > { %v9523_v13 = vand.u32 4294901760, %v9440_v37  ;;  %v9580_v58 = vand.u32 4294901760, %v24311_v29  ;;  %v27343_v50 = vand.u32 4294901760, %v24381_v40 }
 0x530   : > { %v7929_v16 = vadd.f32 %v13945_v21, %v7690_v14  ;;  %v24319_v14 = vld [vmem:[%s26326_s7 + $0xa8] sm:$0xff]  ;;  %v24340_v21 = vld [vmem:[%s26326_s7 + $0xb0] sm:$0xff]  ;;  %16943 = vmatprep.subr.bf16.mxu0 %v24334_v4  ;;  %v16980_v48 = vpack.c.bf16 %v9672_v34, %v9665_v49 }
 0x531   : > { %v24265_v41 = vsub.f32 %v9440_v37, %v9523_v13  ;;  %v24346_v37 = vld [vmem:[%s26326_s7 + $0xb8] sm:$0xff]  ;;  %v24352_v35 = vsub.f32 %v24311_v29, %v9580_v58  ;;  %v24354_v54 = vpack.c.bf16 %v9523_v13, %v9520_v28  ;;  %v9448_v29 = vld [vmem:[%s26326_s7 + $0x48] sm:$0xff] }
 0x532   : > { %v24243_v30 = vadd.f32 %v24162_v5, %v7929_v16  ;;  %v24262_v5 = vsub.f32 %v24226_v38, %v9520_v28  ;;  %v9583_v38 = vand.u32 4294901760, %v24319_v14  ;;  %v9586_v28 = vand.u32 4294901760, %v24340_v21 }
 0x533   : > { %v27347_v26 = vand.u32 4294901760, %v24265_v41  ;;  %29277 = vst [vmem:[#allocation54_spill] sm:$0xff] %v24354_v54  ;;  %v27339_v13 = vand.u32 4294901760, %v24352_v35  ;;  %16945 = vmatpush3.bf16.msra.mxu0 %v24354_v54 }
 0x534   : > { %v27348_v1 = vand.u32 4294901760, %v24262_v5  ;;  %v24366_v23 = vsub.f32 %v24319_v14, %v9583_v38  ;;  %v24394_v3 = vsub.f32 %v24340_v21, %v9586_v28 }
 0x535   : > { %v9657_v0 = vsub.f32 %v24265_v41, %v27347_v26 }
 0x536   : > { %v9650_v24 = vsub.f32 %v24262_v5, %v27348_v1  ;;  %v27338_v47 = vand.u32 4294901760, %v24366_v23  ;;  %v27346_v61 = vand.u32 4294901760, %v24394_v3 }
 0x537   : > { %v9658_v62 = vand.u32 4294901760, %v9657_v0  ;;  %v24376_v0 = vsub.f32 %v24327_v8, %v9532_v59  ;;  %v9547_v8 = vand.u32 4294901760, %v9448_v29 }
 0x538   : > { %v9651_v45 = vand.u32 4294901760, %v9650_v24  ;;  %v24368_v24 = vpack.c.bf16 %v9577_v6, %v9574_v52  ;;  %v9589_v52 = vand.u32 4294901760, %v24346_v37  ;;  %v24387_v6 = vld [vmem:[%s26326_s7 + $0x38] sm:$0xff]  ;;  %v9797_v25 = vsub.f32 %v24366_v23, %v27338_v47 }
 0x539   : > { %v27342_v20 = vand.u32 4294901760, %v24376_v0  ;;  %v27352_v57 = vand.u32 4294901760, %v24387_v6 }
 0x53a   : > { %v16976_v16 = vpack.c.bf16 %v9658_v62, %v9651_v45  ;;  %29278 = vst [vmem:[#allocation90_spill] sm:$0xff] %v24368_v24  ;;  %16947 = vmatprep.subr.bf16.mxu0 %v24368_v24  ;;  %v9538_v45 = vand.u32 4294901760, %v24361_v2  ;;  %v9790_v62 = vsub.f32 %v24352_v35, %v27339_v13  ;;  %v24409_v51 = vsub.f32 %v24346_v37, %v9589_v52 }
 0x53b   : > { %v9678_v34 = vsub.f32 %v24376_v0, %v27342_v20  ;;  %16949 = vmatpush3.bf16.msra.mxu0 %v24398_v63  ;;  %v9798_v47 = vand.u32 4294901760, %v9797_v25  ;;  %v9804_v13 = vsub.f32 %v24394_v3, %v27346_v61  ;;  %v24438_v20 = vsub.f32 %v24387_v6, %v27352_v57 }
 0x53c   : > { %16977 = vmatpush3.bf16.msra.mxu1 %v16976_v16  ;;  %v24419_v49 = vsub.f32 %v24361_v2, %v9538_v45  ;;  %v27351_v32 = vand.u32 4294901760, %v24409_v51 }
 0x53d   : > { %16979 = vmatprep.subr.bf16.mxu1 %v16978_v43  ;;  %v9791_v43 = vand.u32 4294901760, %v9790_v62  ;;  %v9805_v11 = vand.u32 4294901760, %v9804_v13 }
 0x53e   : > { %v9811_v25 = vsub.f32 %v24409_v51, %v27351_v32 }
 0x53f   : > { %v16982_v53 = vpack.c.bf16 %v9798_v47, %v9791_v43 }
 0x540   : > { %16981 = vmatpush3.bf16.msra.mxu1 %v16980_v48  ;;  %v9685_v48 = vsub.f32 %v24381_v40, %v27343_v50  ;;  %v9812_v44 = vand.u32 4294901760, %v9811_v25  ;;  %v24527_v25 = vld [vmem:[%s26326_s7 + $0x58] sm:$0xff] }
 0x541   : > { %16983 = vmatprep.subr.bf16.mxu1 %v16982_v53 }
 0x542   : > { %v14282_v17 = vpop.f32.mrb[86].mxu0  ;;  %v9686_v55 = vand.u32 4294901760, %v9685_v48  ;;  %v27354_v48 = vand.u32 4294901760, %v24438_v20  ;;  %v16986_v32 = vpack.c.bf16 %v9812_v44, %v9805_v11  ;;  %v9464_v44 = vld [vmem:[%s26326_s7 + $0xc8] sm:$0xff] }
 0x543   : > { %v14283_v10 = vpop.f32.mrb[87].mxu0 }
 0x544   : > { %v24421_v16 = vadd.f32 %v14283_v10, %v14282_v17  ;;  %v27353_v17 = vand.u32 4294901760, %v24419_v49  ;;  %v9679_v10 = vand.u32 4294901760, %v9678_v34  ;;  %v9699_v13 = vsub.f32 %v24438_v20, %v27354_v48 }
 0x546   : > { %29280 = vst [vmem:[#allocation77_spill] sm:$0xff] %v24421_v16  ;;  %v14285_v62 = vpop.f32.mrb[88].mxu0  ;;  %v9692_v61 = vsub.f32 %v24419_v49, %v27353_v17  ;;  %v16984_v34 = vpack.c.bf16 %v9686_v55, %v9679_v10  ;;  %v9700_v57 = vand.u32 4294901760, %v9699_v13 }
 0x547   : > { %v14286_v50 = vpop.f32.mrb[89].mxu0 }
 0x548   : > { %v24446_v26 = vadd.f32 %v14286_v50, %v14285_v62  ;;  %v14016_v1 = vpop.f32.mrb[88].mxu1  ;;  %16985 = vmatpush3.bf16.msra.mxu1 %v16984_v34  ;;  %v9693_v47 = vand.u32 4294901760, %v9692_v61 }
 0x549   : > { %v14017_v33 = vpop.f32.mrb[89].mxu1  ;;  %16987 = vmatprep.subr.bf16.mxu1 %v16986_v32  ;;  %v9595_v32 = vand.u32 4294901760, %v9464_v44 }
 0x54a   : > { %29281 = vst [vmem:[#allocation16_spill] sm:$0xff] %v24446_v26  ;;  %v14018_v43 = vadd.f32 %v14017_v33, %v14016_v1  ;;  %v16988_v62 = vpack.c.bf16 %v9700_v57, %v9693_v47  ;;  %v24461_v33 = vpack.c.bf16 %v9583_v38, %v9580_v58  ;;  %v24500_v38 = vpack.c.bf16 %v9589_v52, %v9586_v28  ;;  %v24513_v57 = vld [vmem:[%s26326_s7 + $0x50] sm:$0xff] }
 0x54b   : > { %v24490_v58 = vsub.f32 %v9464_v44, %v9595_v32  ;;  %v29285_v28 = vand.u32 4294901760, %v24387_v6 }
 0x54c   : > { %v8184_v17 = vadd.f32 %v14018_v43, %v24215_v46  ;;  %v14019_v50 = vpop.f32.mrb[90].mxu1  ;;  %16989 = vmatpush3.bf16.msra.mxu1 %v16988_v62  ;;  %29282 = vst [vmem:[#allocation69_spill] sm:$0xff] %v24461_v33  ;;  %v9463_v46 = vld [vmem:[%s26326_s7 + $0xc0] sm:$0xff]  ;;  %16951 = vmatprep.subr.bf16.mxu0 %v24461_v33  ;;  %29284 = vst [vmem:[#allocation80_spill] sm:$0xff] %v24500_v38  ;;  %v27359_v43 = vand.u32 4294901760, %v24513_v57 }
 0x54d   : > { %v14020_v55 = vpop.f32.mrb[91].mxu1  ;;  %v9592_v11 = vand.u32 4294901760, %v9463_v46  ;;  %v24522_v52 = vpack.c.bf16 %v29285_v28, %v9538_v45  ;;  %v27356_v47 = vand.u32 4294901760, %v24490_v58 }
 0x54e   : > { %v14021_v10 = vadd.f32 %v14020_v55, %v14019_v50  ;;  %v24454_v53 = vadd.f32 %v24187_v15, %v8184_v17  ;;  %v24473_v15 = vpack.c.bf16 %v9535_v31, %v9532_v59  ;;  %v24505_v59 = vld [vmem:[%s26326_s7 + $0xd0] sm:$0xff]  ;;  %v9466_v31 = vld [vmem:[%s26326_s7 + $0xd8] sm:$0xff]  ;;  %v24515_v17 = vsub.f32 %v9448_v29, %v9547_v8 }
 0x54f   : > { %v24488_v9 = vsub.f32 %v9463_v46, %v9592_v11  ;;  %v9598_v21 = vand.u32 4294901760, %v24505_v59  ;;  %v9601_v37 = vand.u32 4294901760, %v9466_v31  ;;  %29286 = vst [vmem:[#allocation63_spill] sm:$0xff] %v24522_v52  ;;  %v9553_v50 = vand.u32 4294901760, %v24527_v25 }
 0x550   : > { %v8195_v61 = vadd.f32 %v14021_v10, %v24243_v30  ;;  %29283 = vst [vmem:[#allocation127_spill] sm:$0xff] %v24473_v15  ;;  %v24478_v30 = vld [vmem:[%s26326_s7 + $0x40] sm:$0xff]  ;;  %16953 = vmatpush3.bf16.msra.mxu0 %v24473_v15  ;;  %v27357_v2 = vand.u32 4294901760, %v24515_v17  ;;  %v9825_v62 = vsub.f32 %v24490_v58, %v27356_v47 }
 0x551   : > { %v9544_v14 = vand.u32 4294901760, %v24478_v30  ;;  %v27358_v34 = vand.u32 4294901760, %v24488_v9  ;;  %16955 = vmatprep.subr.bf16.mxu0 %v24500_v38  ;;  %v24536_v6 = vsub.f32 %v24505_v59, %v9598_v21  ;;  %v24538_v45 = vsub.f32 %v9466_v31, %v9601_v37  ;;  %v24567_v59 = vld [vmem:[%s26326_s7 + $0xe0] sm:$0xff] }
 0x552   : > { %v24481_v1 = vadd.f32 %v24191_v22, %v8195_v61  ;;  %v24554_v61 = vsub.f32 %v24513_v57, %v27359_v43  ;;  %v9713_v46 = vsub.f32 %v24515_v17, %v27357_v2  ;;  %v24562_v29 = vsub.f32 %v24527_v25, %v9553_v50  ;;  %v9468_v43 = vld [vmem:[%s26326_s7 + $0xe8] sm:$0xff] }
 0x553   : > { %v24494_v22 = vsub.f32 %v24478_v30, %v9544_v14  ;;  %v9818_v55 = vsub.f32 %v24488_v9, %v27358_v34  ;;  %v27360_v44 = vand.u32 4294901760, %v24536_v6  ;;  %v27361_v30 = vand.u32 4294901760, %v24538_v45 }
 0x554   : > { %16957 = vmatpush3.bf16.msra.mxu0 %v24522_v52  ;;  %v9826_v28 = vand.u32 4294901760, %v9825_v62  ;;  %v9714_v47 = vand.u32 4294901760, %v9713_v46  ;;  %v9604_v46 = vand.u32 4294901760, %v24567_v59  ;;  %v29288_v52 = vand.u32 4294901760, %v24562_v29 }
 0x555   : > { %v27355_v13 = vand.u32 4294901760, %v24494_v22  ;;  %v9819_v31 = vand.u32 4294901760, %v9818_v55  ;;  %v9832_v2 = vsub.f32 %v24536_v6, %v27360_v44  ;;  %v9839_v25 = vsub.f32 %v24538_v45, %v27361_v30  ;;  %v24589_v44 = vld [vmem:[%s26326_s7 + $0x60] sm:$0xff]  ;;  %v24594_v30 = vld [vmem:[%s26326_s7 + $0x68] sm:$0xff] }
 0x556   : > { %v9607_v38 = vand.u32 4294901760, %v9468_v43  ;;  %v24606_v15 = vsub.f32 %v24567_v59, %v9604_v46  ;;  %v24619_v59 = vpack.c.bf16 %v9601_v37, %v9598_v21  ;;  %v9454_v21 = vld [vmem:[%s26326_s7 + $0x78] sm:$0xff] }
 0x557   : > { %v9706_v10 = vsub.f32 %v24494_v22, %v27355_v13  ;;  %v27364_v13 = vand.u32 4294901760, %v24554_v61  ;;  %v16990_v55 = vpack.c.bf16 %v9826_v28, %v9819_v31  ;;  %v9833_v31 = vand.u32 4294901760, %v9832_v2 }
 0x558   : > { %v9840_v28 = vand.u32 4294901760, %v9839_v25  ;;  %v9556_v25 = vand.u32 4294901760, %v24589_v44  ;;  %29290 = vst [vmem:[#allocation49_spill] sm:$0xff] %v24619_v59 }
 0x559   : > { %v9707_v48 = vand.u32 4294901760, %v9706_v10  ;;  %v9720_v62 = vsub.f32 %v24554_v61, %v27364_v13  ;;  %v24583_v10 = vpack.c.bf16 %v9595_v32, %v9592_v11  ;;  %v9727_v11 = vsub.f32 %v24562_v29, %v29288_v52  ;;  %v24602_v32 = vld [vmem:[%s26326_s7 + $0xf0] sm:$0xff]  ;;  %16991 = vmatprep.subr.bf16.mxu1 %v16990_v55 }
 0x55a   : > { %v16994_v52 = vpack.c.bf16 %v9840_v28, %v9833_v31  ;;  %v9559_v55 = vand.u32 4294901760, %v24594_v30  ;;  %v24626_v31 = vsub.f32 %v24589_v44, %v9556_v25  ;;  %v29292_v44 = vand.u32 4294901760, %v24513_v57 }
 0x55b   : > { %29287 = vst [vmem:[#allocation113_spill] sm:$0xff] %v24583_v10  ;;  %v16992_v34 = vpack.c.bf16 %v9714_v47, %v9707_v48  ;;  %v9721_v13 = vand.u32 4294901760, %v9720_v62  ;;  %16959 = vmatprep.subr.bf16.mxu0 %v24583_v10  ;;  %v24608_v48 = vpack.c.bf16 %v9547_v8, %v9544_v14  ;;  %v9470_v47 = vld [vmem:[%s26326_s7 + $0xf8] sm:$0xff]  ;;  %v9728_v2 = vand.u32 4294901760, %v9727_v11  ;;  %v9453_v8 = vld [vmem:[%s26326_s7 + $0x70] sm:$0xff] }
 0x55c   : > { %v27375_v62 = vand.u32 4294901760, %v24606_v15  ;;  %v24616_v10 = vsub.f32 %v9468_v43, %v9607_v38  ;;  %v9610_v14 = vand.u32 4294901760, %v24602_v32  ;;  %v24629_v28 = vsub.f32 %v24594_v30, %v9559_v55 }
 0x55d   : > { %29289 = vst [vmem:[#allocation79_spill] sm:$0xff] %v24608_v48  ;;  %16993 = vmatpush3.bf16.msra.mxu1 %v16992_v34  ;;  %16961 = vmatpush3.bf16.msra.mxu0 %v24608_v48  ;;  %v16996_v34 = vpack.c.bf16 %v9728_v2, %v9721_v13  ;;  %v9613_v43 = vand.u32 4294901760, %v9470_v47  ;;  %v24644_v30 = vpack.c.bf16 %v9553_v50, %v29292_v44  ;;  %v9562_v33 = vand.u32 4294901760, %v9453_v8 }
 0x55e   : > { %16995 = vmatprep.subr.bf16.mxu1 %v16994_v52  ;;  %v9846_v37 = vsub.f32 %v24606_v15, %v27375_v62  ;;  %v27378_v11 = vand.u32 4294901760, %v24616_v10  ;;  %16963 = vmatprep.subr.bf16.mxu0 %v24619_v59  ;;  %v24640_v13 = vsub.f32 %v24602_v32, %v9610_v14  ;;  %v27387_v52 = vand.u32 4294901760, %v24626_v31 }
 0x55f   : > { %29293 = vst [vmem:[#allocation121_spill] sm:$0xff] %v24644_v30  ;;  %v27388_v2 = vand.u32 4294901760, %v24629_v28  ;;  %v24648_v48 = vsub.f32 %v9470_v47, %v9613_v43  ;;  %v9565_v57 = vand.u32 4294901760, %v9454_v21 }
 0x560   : > { %29291 = vst [vmem:[#allocation78_spill] sm:$0xff] %v24640_v13  ;;  %v9847_v62 = vand.u32 4294901760, %v9846_v37  ;;  %v9853_v59 = vsub.f32 %v24616_v10, %v27378_v11  ;;  %v27389_v32 = vand.u32 4294901760, %v24640_v13  ;;  %v9734_v50 = vsub.f32 %v24626_v31, %v27387_v52 }
 0x561   : > { %16997 = vmatpush3.bf16.msra.mxu1 %v16996_v34  ;;  %29294 = vst [vmem:[#allocation51_spill] sm:$0xff] %v24648_v48  ;;  %16965 = vmatpush3.bf16.msra.mxu0 %v24644_v30  ;;  %v9741_v47 = vsub.f32 %v24629_v28, %v27388_v2  ;;  %v27390_v34 = vand.u32 4294901760, %v24648_v48  ;;  %v24662_v37 = vsub.f32 %v9453_v8, %v9562_v33 }
 0x562   : > { %v9854_v44 = vand.u32 4294901760, %v9853_v59  ;;  %v9860_v11 = vsub.f32 %v24640_v13, %v27389_v32  ;;  %v24667_v63 = vsub.f32 %v9454_v21, %v9565_v57  ;;  %v24669_v30 = vpack.c.bf16 %v9607_v38, %v9604_v46 }
 0x563   : > { %29295 = vst [vmem:[#allocation42_spill] sm:$0xff] %v24662_v37  ;;  %v9735_v24 = vand.u32 4294901760, %v9734_v50  ;;  %v9742_v54 = vand.u32 4294901760, %v9741_v47  ;;  %v9867_v52 = vsub.f32 %v24648_v48, %v27390_v34  ;;  %v9747_v2 = vand.u32 4294901760, %v24662_v37 }
 0x564   : > { %29296 = vst [vmem:[#allocation35_spill] sm:$0xff] %v24667_v63  ;;  %v16998_v8 = vpack.c.bf16 %v9854_v44, %v9847_v62  ;;  %v9861_v16 = vand.u32 4294901760, %v9860_v11  ;;  %v9754_v59 = vand.u32 4294901760, %v24667_v63  ;;  %16967 = vmatprep.subr.bf16.mxu0 %v24669_v30  ;;  %v24677_v32 = vpack.c.bf16 %v9559_v55, %v9556_v25 }
 0x565   : > { %v17000_v38 = vpack.c.bf16 %v9742_v54, %v9735_v24  ;;  %v9868_v46 = vand.u32 4294901760, %v9867_v52  ;;  %v9748_v50 = vsub.f32 %v24662_v37, %v9747_v2  ;;  %v24682_v47 = vpack.c.bf16 %v9613_v43, %v9610_v14 }
 0x566   : > { %16999 = vmatprep.subr.bf16.mxu1 %v16998_v8  ;;  %v9755_v62 = vsub.f32 %v24667_v63, %v9754_v59  ;;  %16969 = vmatpush3.bf16.msra.mxu0 %v24677_v32  ;;  %v24688_v11 = vpack.c.bf16 %v9565_v57, %v9562_v33  ;;  %v17006_v24 = vpack.c.bf16 %v24259_v12, %v24257_v19  ;;  %v29320_v33 = vld [vmem:[#allocation16_spill] sm:$0xff] }
 0x567   : > { %17001 = vmatpush3.bf16.msra.mxu1 %v17000_v38  ;;  %v17002_v25 = vpack.c.bf16 %v9868_v46, %v9861_v16  ;;  %v9749_v54 = vand.u32 4294901760, %v9748_v50  ;;  %16971 = vmatprep.subr.bf16.mxu0 %v24682_v47 }
 0x568   : > { %v14092_v26 = vpop.f32.mrb[92].mxu1  ;;  %v9756_v43 = vand.u32 4294901760, %v9755_v62 }
 0x569   : > { %v14093_v21 = vpop.f32.mrb[93].mxu1  ;;  %17003 = vmatprep.subr.bf16.mxu1 %v17002_v25 }
 0x56a   : > { %v14094_v34 = vadd.f32 %v14093_v21, %v14092_v26  ;;  %v17004_v38 = vpack.c.bf16 %v9756_v43, %v9749_v54  ;;  %16973 = vmatpush3.bf16.msra.mxu0 %v24688_v11 }
 0x56b   : > { %17007 = vmatprep.subr.bf16.mxu0 %v17006_v24  ;;  %v29298_v24 = vand.u32 4294901760, %v24490_v58 }
 0x56c   : > { %v8474_v55 = vadd.f32 %v14094_v34, %v24454_v53  ;;  %v14095_v14 = vpop.f32.mrb[94].mxu1  ;;  %17005 = vmatpush3.bf16.msra.mxu1 %v17004_v38  ;;  %v29301_v53 = vand.u32 4294901760, %v24515_v17 }
 0x56d   : > { %v14096_v16 = vpop.f32.mrb[95].mxu1  ;;  %17039 = vmatprep.subr.bf16.mxu1 %v24334_v4 }
 0x56e   : > { %v14097_v34 = vadd.f32 %v14096_v16, %v14095_v14  ;;  %v8593_v21 = vadd.f32 %v24204_v18, %v8474_v55  ;;  %v29300_v14 = vand.u32 4294901760, %v24494_v22 }
 0x570   : > { %v8481_v46 = vadd.f32 %v14097_v34, %v24481_v1  ;;  %v29297_v1 = vand.u32 4294901760, %v24488_v9 }
 0x572   : > { %v8608_v25 = vadd.f32 %v24206_v56, %v8481_v46  ;;  %v24734_v50 = vpack.c.bf16 %v29298_v24, %v29297_v1 }
 0x574   : > { %29299 = vst [vmem:[#allocation120_spill] sm:$0xff] %v24734_v50 }
 0x588   : > { %v14168_v43 = vpop.f32.mrb[96].mxu1 }
 0x589   : > { %v14169_v56 = vpop.f32.mrb[97].mxu1 }
 0x58a   : > { %v14170_v16 = vadd.f32 %v14169_v56, %v14168_v43  ;;  %v24741_v43 = vpack.c.bf16 %v29301_v53, %v29300_v14  ;;  %v29304_v56 = vand.u32 4294901760, %v24538_v45  ;;  %v29312_v53 = vand.u32 4294901760, %v24626_v31 }
 0x58b   : > { %v29313_v14 = vand.u32 4294901760, %v24629_v28 }
 0x58c   : > { %v8840_v34 = vadd.f32 %v14170_v16, %v8593_v21  ;;  %v14171_v38 = vpop.f32.mrb[98].mxu1  ;;  %29302 = vst [vmem:[#allocation37_spill] sm:$0xff] %v24741_v43  ;;  %v29303_v21 = vand.u32 4294901760, %v24536_v6 }
 0x58d   : > { %v14172_v46 = vpop.f32.mrb[99].mxu1  ;;  %v24765_v16 = vpack.c.bf16 %v29313_v14, %v29312_v53  ;;  %v29319_v14 = vld [vmem:[#allocation77_spill] sm:$0xff] }
 0x58e   : > { %v14173_v18 = vadd.f32 %v14172_v46, %v14171_v38  ;;  %v8985_v54 = vadd.f32 %v24210_v36, %v8840_v34  ;;  %v24747_v36 = vpack.c.bf16 %v29304_v56, %v29303_v21  ;;  %v29315_v34 = vand.u32 4294901760, %v24640_v13 }
 0x58f   : > { %29314 = vst [vmem:[#allocation97_spill] sm:$0xff] %v24765_v16  ;;  %v29316_v38 = vand.u32 4294901760, %v24648_v48  ;;  %v24777_v21 = vpack.c.bf16 %v9754_v59, %v9747_v2 }
 0x590   : > { %v8847_v62 = vadd.f32 %v14173_v18, %v8608_v25  ;;  %29305 = vst [vmem:[#allocation104_spill] sm:$0xff] %v24747_v36  ;;  %v29306_v25 = vand.u32 4294901760, %v24554_v61  ;;  %v29307_v18 = vand.u32 4294901760, %v24562_v29 }
 0x591   : > { %v24771_v46 = vpack.c.bf16 %v29316_v38, %v29315_v34  ;;  %29318 = vst [vmem:[#allocation76_spill] sm:$0xff] %v24777_v21 }
 0x592   : > { %v8994_v55 = vadd.f32 %v24212_v60, %v8847_v62  ;;  %v24753_v1 = vpack.c.bf16 %v29307_v18, %v29306_v25  ;;  %v29309_v60 = vand.u32 4294901760, %v24606_v15  ;;  %v29310_v62 = vand.u32 4294901760, %v24616_v10 }
 0x593   : > { %29317 = vst [vmem:[#allocation38_spill] sm:$0xff] %v24771_v46 }
 0x594   : > { %29308 = vst [vmem:[#allocation40_spill] sm:$0xff] %v24753_v1  ;;  %v24759_v24 = vpack.c.bf16 %v29310_v62, %v29309_v60  ;;  %v24834_v1 = vld [vmem:[%s26326_s7 + $0x118] sm:$0xff] }
 0x595   : > { %29328 = vst [vmem:[#allocation30_spill] sm:$0xff] %v24834_v1 }
 0x596   : > { %29311 = vst [vmem:[#allocation81_spill] sm:$0xff] %v24759_v24 }
 0x5a8   : > { %v14244_v56 = vpop.f32.mrb[100].mxu1 }
 0x5a9   : > { %v14245_v25 = vpop.f32.mrb[101].mxu1 }
 0x5aa   : > { %v14246_v18 = vadd.f32 %v14245_v25, %v14244_v56 }
 0x5ac   : > { %v9102_v60 = vadd.f32 %v14246_v18, %v8985_v54  ;;  %v14247_v62 = vpop.f32.mrb[102].mxu1 }
 0x5ad   : > { %v14248_v8 = vpop.f32.mrb[103].mxu1 }
 0x5ae   : > { %v14249_v53 = vadd.f32 %v14248_v8, %v14247_v62  ;;  %v9281_v44 = vadd.f32 %v29319_v14, %v9102_v60 }
 0x5b0   : > { %v9113_v57 = vadd.f32 %v14249_v53, %v8994_v55 }
 0x5b2   : > { %v9288_v52 = vadd.f32 %v29320_v33, %v9113_v57 }
 0x5c8   : > { %v14320_v34 = vpop.f32.mrb[104].mxu1 }
 0x5c9   : > { %v14321_v38 = vpop.f32.mrb[105].mxu1 }
 0x5ca   : > { %v14322_v26 = vadd.f32 %v14321_v38, %v14320_v34  ;;  %v24823_v34 = vld [vmem:[%s26326_s7 + $0x110] sm:$0xff] }
 0x5cb   : > { %29325 = vst [vmem:[#allocation122_spill] sm:$0xff] %v24823_v34 }
 0x5cc   : > { %v9392_v46 = vadd.f32 %v14322_v26, %v9281_v44  ;;  %v14323_v16 = vpop.f32.mrb[106].mxu1 }
 0x5cd   : > { %v14324_v24 = vpop.f32.mrb[107].mxu1 }
 0x5ce   : > { %v9404_v2 = vrot.slane %v9392_v46, 4  ;;  %v14325_v59 = vadd.f32 %v14324_v24, %v14323_v16  ;;  %v24806_v24 = vld [vmem:[%s26326_s7 + $0x190] sm:$0xff]  ;;  %v24812_v46 = vld [vmem:[%s26326_s7 + $0x198] sm:$0xff] }
 0x5cf   : > { %29323 = vst [vmem:[#allocation99_spill] sm:$0xff] %v24806_v24  ;;  %29324 = vst [vmem:[#allocation105_spill] sm:$0xff] %v24812_v46 }
 0x5d0   : > { %v24782_v21 = vsel %vm1725_vm5, 0.0, %v9404_v2  ;;  %v9399_v54 = vadd.f32 %v14325_v59, %v9288_v52 }
 0x5d1   : > { %v24785_v56 = vand.u32 4294901760, %v24782_v21  ;;  %v9411_v57 = vrot.slane %v24782_v21, 1  ;;  %v9425_v25 = vrot.slane %v24782_v21, 3  ;;  %v9418_v62 = vrot.slane %v24782_v21, 2 }
 0x5d2   : > { %v24787_v8 = vrot.slane %v9399_v54, 4 }
 0x5d3   : > { %29321 = vst [vmem:[#allocation87_spill] sm:$0xff] %v24785_v56  ;;  %v24801_v52 = vsub.f32 %v24782_v21, %v24785_v56 }
 0x5d4   : > { %v24791_v33 = vsel %vm1725_vm5, %v9404_v2, %v24787_v8  ;;  %v9414_v26 = vrot.slane %v24787_v8, 1  ;;  %v9428_v60 = vrot.slane %v24787_v8, 3  ;;  %v9421_v38 = vrot.slane %v24787_v8, 2 }
 0x5d5   : > { %v9412_v44 = vrot.slane %v24791_v33, 1  ;;  %v24797_v55 = vand.u32 4294901760, %v24791_v33  ;;  %v9426_v16 = vrot.slane %v24791_v33, 3  ;;  %v9419_v18 = vrot.slane %v24791_v33, 2 }
 0x5d6   : > { %v29338_v37 = vand.u32 4294901760, %v24801_v52 }
 0x5d7   : > { %29322 = vst [vmem:[#allocation70_spill] sm:$0xff] %v24797_v55  ;;  %v9413_v53 = vsel %vm1677_vm1, %v9411_v57, %v9412_v44  ;;  %v9415_v14 = vsel %vm1677_vm1, %v9412_v44, %v9414_v26  ;;  %v24837_v57 = vsel %vm1715_vm2, %v9425_v25, %v9426_v16  ;;  %v24842_v26 = vld [vmem:[%s26326_s7 + $0x1a0] sm:$0xff]  ;;  %v24847_v44 = vld [vmem:[%s26326_s7 + $0x1a8] sm:$0xff]  ;;  %v24852_v36 = vsub.f32 %v24791_v33, %v24797_v55 }
 0x5d8   : > { %v24826_v2 = vand.u32 4294901760, %v9413_v53  ;;  %v24828_v59 = vand.u32 4294901760, %v9415_v14  ;;  %29329 = vst [vmem:[#allocation33_spill] sm:$0xff] %v24837_v57  ;;  %29330 = vst [vmem:[#allocation130_spill] sm:$0xff] %v24842_v26  ;;  %v24856_v25 = vsel %vm1705_vm3, %v9418_v62, %v9419_v18  ;;  %v24867_v54 = vsel %vm1715_vm2, %v9426_v16, %v9428_v60  ;;  %v29337_v60 = vld [vmem:[#allocation90_spill] sm:$0xff]  ;;  %v24898_v16 = vld [vmem:[%s26326_s7 + $0x128] sm:$0xff] }
 0x5d9   : > { %29331 = vst [vmem:[#allocation68_spill] sm:$0xff] %v24847_v44  ;;  %29332 = vst [vmem:[#allocation22_spill] sm:$0xff] %v24856_v25  ;;  %v24874_v63 = vsel %vm1705_vm3, %v9419_v18, %v9421_v38  ;;  %v9624_v43 = vsub.f32 %v24801_v52, %v29338_v37  ;;  %v29339_v25 = vand.u32 4294901760, %v24806_v24  ;;  %v24893_v38 = vld [vmem:[%s26326_s7 + $0x120] sm:$0xff]  ;;  %v24903_v37 = vld [vmem:[%s26326_s7 + $0x1b0] sm:$0xff]  ;;  %v29357_v13 = vand.u32 4294901760, %v24852_v36 }
 0x5da   : > { %29326 = vst [vmem:[#allocation129_spill] sm:$0xff] %v24826_v2  ;;  %29327 = vst [vmem:[#allocation28_spill] sm:$0xff] %v24828_v59  ;;  %9871 = vmatprep.mubr.f32.mxu1 %v24826_v2  ;;  %v24860_v57 = vsub.f32 %v9413_v53, %v24826_v2  ;;  %v24863_v50 = vsub.f32 %v9415_v14, %v24828_v59  ;;  %v29336_v53 = vld [vmem:[#allocation54_spill] sm:$0xff] }
 0x5db   : > { %29334 = vst [vmem:[#allocation13_spill] sm:$0xff] %v24867_v54  ;;  %9873 = vmatmul.mubr.f32.vlgmr.msra.gmra.mrb[108].mxu1 %v24785_v56  ;;  %29335 = vst [vmem:[#allocation31_spill] sm:$0xff] %v24874_v63  ;;  %v24888_v18 = vsub.f32 %v24806_v24, %v29339_v25  ;;  %v29344_v25 = vand.u32 4294901760, %v24812_v46  ;;  %v29345_v54 = vand.u32 4294901760, %v24823_v34  ;;  %v9625_v19 = vand.u32 4294901760, %v9624_v43 }
 0x5dc   : > { %29333 = vst [vmem:[#allocation82_spill] sm:$0xff] %v24863_v50  ;;  %17041 = vmatpush3.bf16.msra.mxu1 %v29336_v53  ;;  %9878 = vmatprep.mubr.f32.mxu1 %v24828_v59  ;;  %v9617_v14 = vand.u32 4294901760, %v24860_v57  ;;  %29341 = vst [vmem:[#allocation14_spill] sm:$0xff] %v24893_v38  ;;  %v24919_v59 = vld [vmem:[%s26326_s7 + $0x1b8] sm:$0xff]  ;;  %v29347_v56 = vand.u32 4294901760, %v24863_v50  ;;  %v9639_v48 = vsub.f32 %v24852_v36, %v29357_v13 }
 0x5dd   : > { %17043 = vmatprep.subr.bf16.mxu1 %v29337_v60  ;;  %29340 = vst [vmem:[#allocation46_spill] sm:$0xff] %v24888_v18  ;;  %29342 = vst [vmem:[#allocation84_spill] sm:$0xff] %v24898_v16  ;;  %v24909_v63 = vsub.f32 %v24812_v46, %v29344_v25  ;;  %v24914_v24 = vsub.f32 %v24823_v34, %v29345_v54  ;;  %v29348_v60 = vand.u32 4294901760, %v24834_v1  ;;  %v29349_v46 = vand.u32 4294901760, %v24842_v26 }
 0x5de   : > { %29343 = vst [vmem:[#allocation103_spill] sm:$0xff] %v24903_v37  ;;  %v9618_v62 = vsub.f32 %v24860_v57, %v9617_v14  ;;  %29346 = vst [vmem:[#allocation19_spill] sm:$0xff] %v24919_v59  ;;  %v9633_v2 = vsub.f32 %v24863_v50, %v29347_v56  ;;  %v29351_v34 = vand.u32 4294901760, %v24847_v44  ;;  %v24948_v56 = vld [vmem:[%s26326_s7 + $0x138] sm:$0xff]  ;;  %v9640_v50 = vand.u32 4294901760, %v9639_v48 }
 0x5df   : > { %9880 = vmatmul.mubr.f32.gmra.mrb[110].mxu1 %v24797_v55  ;;  %v24928_v25 = vsub.f32 %v24834_v1, %v29348_v60  ;;  %v24933_v54 = vsub.f32 %v24842_v26, %v29349_v46  ;;  %v24943_v55 = vld [vmem:[%s26326_s7 + $0x130] sm:$0xff]  ;;  %29354 = vst [vmem:[#allocation18_spill] sm:$0xff] %v24948_v56  ;;  %v29355_v60 = vld [vmem:[#allocation73_spill] sm:$0xff]  ;;  %v9435_v26 = vrot.slane %v24787_v8, 4  ;;  %v29368_v8 = vpack.c.bf16 %v24271_v39, %v24268_v27 }
 0x5e0   : > { %v24938_v12 = vsub.f32 %v24847_v44, %v29351_v34  ;;  %29353 = vst [vmem:[#allocation98_spill] sm:$0xff] %v24943_v55  ;;  %17045 = vmatpush3.bf16.msra.mxu1 %v29355_v60  ;;  %10131 = vmatprep.mubr.f32.mxu1 %v9617_v14  ;;  %v9619_v46 = vand.u32 4294901760, %v9618_v62  ;;  %v29356_v44 = vld [vmem:[#allocation69_spill] sm:$0xff]  ;;  %v9634_v43 = vand.u32 4294901760, %v9633_v2  ;;  %v29360_v62 = vpack.c.bf16 %v24265_v41, %v24262_v5 }
 0x5e1   : > { %29350 = vst [vmem:[#allocation128_spill] sm:$0xff] %v24933_v54  ;;  %17047 = vmatprep.subr.bf16.mxu1 %v29356_v44  ;;  %v24975_v14 = vld [vmem:[%s26326_s7 + $0x1c8] sm:$0xff]  ;;  %v29362_v2 = vand.u32 4294901760, %v24893_v38  ;;  %v29364_v44 = vand.u32 4294901760, %v24898_v16  ;;  %v29366_v34 = vand.u32 4294901760, %v24903_v37  ;;  %v29374_v48 = vand.u32 4294901760, %v24943_v55 }
 0x5e2   : > { %29352 = vst [vmem:[#allocation21_spill] sm:$0xff] %v24938_v12  ;;  %9620 = vmatprep.mubr.f32.mxu0 %v9619_v46  ;;  %v24970_v46 = vld [vmem:[%s26326_s7 + $0x1c0] sm:$0xff]  ;;  %29359 = vst [vmem:[#allocation48_spill] sm:$0xff] %v24975_v14  ;;  %v29388_v39 = vpack.c.bf16 %v24286_v7, %v24280_v42 }
 0x5e3   : > { %9626 = vmatmul.mubr.f32.vlgmr.msra.gmra.mrb[90].mxu0 %v9625_v19  ;;  %29358 = vst [vmem:[#allocation134_spill] sm:$0xff] %v24970_v46  ;;  %v29361_v19 = vld [vmem:[#allocation127_spill] sm:$0xff]  ;;  %v24985_v13 = vsub.f32 %v24893_v38, %v29362_v2  ;;  %v24990_v53 = vsub.f32 %v24898_v16, %v29364_v44  ;;  %v24995_v1 = vsub.f32 %v24903_v37, %v29366_v34  ;;  %v29369_v2 = vand.u32 4294901760, %v24919_v59  ;;  %v25009_v44 = vld [vmem:[%s26326_s7 + $0x140] sm:$0xff] }
 0x5e4   : > { %17009 = vmatpush3.bf16.msra.mxu0 %v29360_v62  ;;  %17049 = vmatpush3.bf16.msra.mxu1 %v29361_v19  ;;  %v9432_v62 = vrot.slane %v24782_v21, 4  ;;  %29371 = vst [vmem:[#allocation24_spill] sm:$0xff] %v25009_v44  ;;  %v25014_v21 = vld [vmem:[%s26326_s7 + $0x148] sm:$0xff]  ;;  %v9433_v34 = vrot.slane %v24791_v33, 4  ;;  %v25033_v33 = vld [vmem:[%s26326_s7 + $0x1d0] sm:$0xff]  ;;  %v29383_v37 = vand.u32 4294901760, %v24914_v24 }
 0x5e5   : > { %29363 = vst [vmem:[#allocation135_spill] sm:$0xff] %v24985_v13  ;;  %29365 = vst [vmem:[#allocation29_spill] sm:$0xff] %v24990_v53  ;;  %9635 = vmatprep.mubr.f32.mxu0 %v9634_v43  ;;  %17011 = vmatprep.subr.bf16.mxu0 %v29368_v8  ;;  %v25004_v38 = vsub.f32 %v24919_v59, %v29369_v2  ;;  %v29373_v43 = vld [vmem:[#allocation80_spill] sm:$0xff]  ;;  %v25021_v8 = vsub.f32 %v24943_v55, %v29374_v48  ;;  %v29376_v2 = vand.u32 4294901760, %v24948_v56  ;;  %v25038_v48 = vld [vmem:[%s26326_s7 + $0x1d8] sm:$0xff] }
 0x5e6   : > { %29367 = vst [vmem:[#allocation136_spill] sm:$0xff] %v24995_v1  ;;  %29372 = vst [vmem:[#allocation131_spill] sm:$0xff] %v25014_v21  ;;  %17051 = vmatprep.subr.bf16.mxu1 %v29373_v43  ;;  %v29380_v55 = vand.u32 4294901760, %v24888_v18  ;;  %v25053_v43 = vsel %vm1725_vm5, %v9432_v62, %v9433_v34  ;;  %v25056_v19 = vsel %vm1725_vm5, %v9433_v34, %v9435_v26  ;;  %v29389_v18 = vld [vmem:[#allocation63_spill] sm:$0xff] }
 0x5e7   : > { %29370 = vst [vmem:[#allocation12_spill] sm:$0xff] %v25004_v38  ;;  %29375 = vst [vmem:[#allocation64_spill] sm:$0xff] %v25021_v8  ;;  %v25026_v59 = vsub.f32 %v24948_v56, %v29376_v2  ;;  %9641 = vmatmul.mubr.f32.gmra.mrb[92].mxu0 %v9640_v50  ;;  %v29381_v2 = vand.u32 4294901760, %v24909_v63  ;;  %v29384_v50 = vand.u32 4294901760, %v24928_v25  ;;  %v29390_v26 = vpack.c.bf16 %v24366_v23, %v24352_v35  ;;  %v25079_v34 = vld [vmem:[%s26326_s7 + $0x158] sm:$0xff] }
 0x5e8   : > { %29378 = vst [vmem:[#allocation75_spill] sm:$0xff] %v25033_v33  ;;  %29379 = vst [vmem:[#allocation116_spill] sm:$0xff] %v25038_v48  ;;  %17013 = vmatpush3.bf16.msra.mxu0 %v29388_v39  ;;  %17053 = vmatpush3.bf16.msra.mxu1 %v29389_v18  ;;  %v25074_v39 = vld [vmem:[%s26326_s7 + $0x150] sm:$0xff] }
 0x5e9   : > { %29377 = vst [vmem:[#allocation65_spill] sm:$0xff] %v25026_v59  ;;  %v25044_v56 = vpack.c.bf16 %v29381_v2, %v29380_v55  ;;  %v25050_v16 = vpack.c.bf16 %v29384_v50, %v29383_v37  ;;  %29386 = vst [vmem:[#allocation115_spill] sm:$0xff] %v25053_v43  ;;  %v27430_v55 = vand.u32 4294901760, %v24985_v13  ;;  %10015 = vmatprep.mubr.f32.mxu0 %v24860_v57  ;;  %17015 = vmatprep.subr.bf16.mxu0 %v29390_v26 }
 0x5ea   : > { %29387 = vst [vmem:[#allocation93_spill] sm:$0xff] %v25056_v19  ;;  %29391 = vst [vmem:[#allocation67_spill] sm:$0xff] %v25074_v39  ;;  %v29393_v50 = vand.u32 4294901760, %v24933_v54  ;;  %v29394_v57 = vand.u32 4294901760, %v24938_v12  ;;  %v29397_v19 = vand.u32 4294901760, %v24990_v53  ;;  %v29401_v26 = vand.u32 4294901760, %v24975_v14 }
 0x5eb   : > { %29382 = vst [vmem:[#allocation117_spill] sm:$0xff] %v25044_v56  ;;  %29385 = vst [vmem:[#allocation133_spill] sm:$0xff] %v25050_v16  ;;  %v29396_v56 = vld [vmem:[#allocation113_spill] sm:$0xff]  ;;  %v29402_v2 = vpack.c.bf16 %v24381_v40, %v24376_v0  ;;  %v29405_v16 = vand.u32 4294901760, %v25014_v21  ;;  %v29437_v13 = vpack.c.bf16 %v24538_v45, %v24536_v6  ;;  %v29449_v45 = vpack.c.bf16 %v24562_v29, %v24554_v61 }
 0x5ec   : > { %29392 = vst [vmem:[#allocation119_spill] sm:$0xff] %v25079_v34  ;;  %v25085_v37 = vpack.c.bf16 %v29394_v57, %v29393_v50  ;;  %17055 = vmatprep.subr.bf16.mxu1 %v29396_v56  ;;  %v25095_v43 = vpack.c.bf16 %v29397_v19, %v27430_v55  ;;  %v29399_v50 = vand.u32 4294901760, %v24970_v46  ;;  %v25107_v62 = vsub.f32 %v24975_v14, %v29401_v26  ;;  %v29403_v19 = vld [vmem:[#allocation79_spill] sm:$0xff] }
 0x5ed   : > { %17017 = vmatpush3.bf16.msra.mxu0 %v29402_v2  ;;  %17057 = vmatpush3.bf16.msra.mxu1 %v29403_v19  ;;  %v29404_v55 = vand.u32 4294901760, %v25009_v44  ;;  %v25128_v2 = vld [vmem:[%s26326_s7 + $0x1e0] sm:$0xff]  ;;  %v29409_v26 = vand.u32 4294901760, %v25004_v38 }
 0x5ee   : > { %29395 = vst [vmem:[#allocation41_spill] sm:$0xff] %v25085_v37  ;;  %29398 = vst [vmem:[#allocation36_spill] sm:$0xff] %v25095_v43  ;;  %v25102_v57 = vsub.f32 %v24970_v46, %v29399_v50  ;;  %v25121_v50 = vsub.f32 %v25014_v21, %v29405_v16  ;;  %v25133_v37 = vld [vmem:[%s26326_s7 + $0x1e8] sm:$0xff]  ;;  %v29408_v43 = vand.u32 4294901760, %v24995_v1  ;;  %v29412_v46 = vand.u32 4294901760, %v25038_v48 }
 0x5ef   : > { %v25116_v12 = vsub.f32 %v25009_v44, %v29404_v55  ;;  %v29406_v55 = vpack.c.bf16 %v24409_v51, %v24394_v3  ;;  %v29407_v16 = vld [vmem:[#allocation49_spill] sm:$0xff]  ;;  %v29411_v44 = vand.u32 4294901760, %v25033_v33  ;;  %v29415_v1 = vand.u32 4294901760, %v25021_v8 }
 0x5f0   : > { %29400 = vst [vmem:[#allocation114_spill] sm:$0xff] %v25102_v57  ;;  %17059 = vmatprep.subr.bf16.mxu1 %v29407_v16  ;;  %v25143_v21 = vpack.c.bf16 %v29409_v26, %v29408_v43  ;;  %v25153_v53 = vsub.f32 %v25038_v48, %v29412_v46  ;;  %v29416_v43 = vand.u32 4294901760, %v25026_v59  ;;  %v25173_v48 = vld [vmem:[%s26326_s7 + $0x168] sm:$0xff]  ;;  %v29418_v8 = vpack.c.bf16 %v24438_v20, %v24419_v49 }
 0x5f1   : > { %17019 = vmatprep.subr.bf16.mxu0 %v29406_v55  ;;  %v25148_v14 = vsub.f32 %v25033_v33, %v29411_v44  ;;  %v25158_v55 = vld [vmem:[%s26326_s7 + $0x160] sm:$0xff]  ;;  %v29419_v59 = vld [vmem:[#allocation121_spill] sm:$0xff]  ;;  %v29420_v44 = vand.u32 4294901760, %v25074_v39  ;;  %v29422_v46 = vand.u32 4294901760, %v25079_v34  ;;  %v29429_v54 = vand.u32 4294901760, %v25116_v12 }
 0x5f2   : > { %29410 = vst [vmem:[#allocation86_spill] sm:$0xff] %v25143_v21  ;;  %29413 = vst [vmem:[#allocation74_spill] sm:$0xff] %v25153_v53  ;;  %v25164_v26 = vpack.c.bf16 %v29416_v43, %v29415_v1  ;;  %17021 = vmatpush3.bf16.msra.mxu0 %v29418_v8  ;;  %17061 = vmatpush3.bf16.msra.mxu1 %v29419_v59  ;;  %v25194_v8 = vld [vmem:[%s26326_s7 + $0x1f0] sm:$0xff]  ;;  %v25199_v1 = vld [vmem:[%s26326_s7 + $0x1f8] sm:$0xff]  ;;  %v29425_v43 = vpack.c.bf16 %v24490_v58, %v24488_v9  ;;  %v29430_v9 = vand.u32 4294901760, %v25121_v50 }
 0x5f3   : > { %29414 = vst [vmem:[#allocation126_spill] sm:$0xff] %v25158_v55  ;;  %v25184_v33 = vsub.f32 %v25074_v39, %v29420_v44  ;;  %v25189_v21 = vsub.f32 %v25079_v34, %v29422_v46  ;;  %29423 = vst [vmem:[#allocation27_spill] sm:$0xff] %v25194_v8  ;;  %17063 = vmatprep.subr.bf16.mxu1 %v24669_v30  ;;  %v29426_v46 = vand.u32 4294901760, %v25102_v57  ;;  %v25236_v39 = vld [vmem:[%s26326_s7 + $0x170] sm:$0xff]  ;;  %v29438_v38 = vand.u32 4294901760, %v25158_v55 }
 0x5f4   : > { %29417 = vst [vmem:[#allocation20_spill] sm:$0xff] %v25164_v26  ;;  %29424 = vst [vmem:[#allocation55_spill] sm:$0xff] %v25199_v1  ;;  %17023 = vmatprep.subr.bf16.mxu0 %v29425_v43  ;;  %v29427_v26 = vand.u32 4294901760, %v25107_v62  ;;  %v25219_v58 = vpack.c.bf16 %v29430_v9, %v29429_v54  ;;  %v29432_v43 = vand.u32 4294901760, %v25128_v2  ;;  %v25241_v54 = vld [vmem:[%s26326_s7 + $0x178] sm:$0xff]  ;;  %v29436_v9 = vpack.c.bf16 %v24515_v17, %v24494_v22 }
 0x5f5   : > { %29421 = vst [vmem:[#allocation89_spill] sm:$0xff] %v25184_v33  ;;  %29434 = vst [vmem:[#allocation102_spill] sm:$0xff] %v25236_v39  ;;  %v29439_v22 = vand.u32 4294901760, %v25148_v14  ;;  %v29440_v17 = vand.u32 4294901760, %v25153_v53  ;;  %v29452_v61 = vand.u32 4294901760, %v25236_v39 }
 0x5f6   : > { %v25210_v34 = vpack.c.bf16 %v29427_v26, %v29426_v46  ;;  %29431 = vst [vmem:[#allocation101_spill] sm:$0xff] %v25219_v58  ;;  %v25224_v44 = vsub.f32 %v25128_v2, %v29432_v43  ;;  %v29433_v26 = vand.u32 4294901760, %v25133_v37  ;;  %29435 = vst [vmem:[#allocation91_spill] sm:$0xff] %v25241_v54  ;;  %17025 = vmatpush3.bf16.msra.mxu0 %v29436_v9  ;;  %17065 = vmatpush3.bf16.msra.mxu1 %v24677_v32 }
 0x5f7   : > { %17027 = vmatprep.subr.bf16.mxu0 %v29437_v13  ;;  %17067 = vmatprep.subr.bf16.mxu1 %v24682_v47  ;;  %v25256_v58 = vsub.f32 %v25158_v55, %v29438_v38  ;;  %v25262_v9 = vpack.c.bf16 %v29440_v17, %v29439_v22  ;;  %v29442_v43 = vand.u32 4294901760, %v25173_v48  ;;  %v29443_v13 = vand.u32 4294901760, %v25184_v33 }
 0x5f8   : > { %29428 = vst [vmem:[#allocation100_spill] sm:$0xff] %v25210_v34  ;;  %v25229_v46 = vsub.f32 %v25133_v37, %v29433_v26  ;;  %v29444_v38 = vand.u32 4294901760, %v25189_v21  ;;  %v27455_v55 = vand.u32 4294901760, %v25224_v44  ;;  %v29446_v17 = vand.u32 4294901760, %v25194_v8 }
 0x5f9   : > { %29441 = vst [vmem:[#allocation59_spill] sm:$0xff] %v25262_v9  ;;  %v25267_v26 = vsub.f32 %v25173_v48, %v29442_v43  ;;  %v29447_v43 = vand.u32 4294901760, %v25199_v1  ;;  %v25308_v29 = vsub.f32 %v25236_v39, %v29452_v61  ;;  %v29467_v39 = vld [vmem:[#allocation11_spill] sm:$0xff] }
 0x5fa   : > { %v25275_v34 = vpack.c.bf16 %v29444_v38, %v29443_v13  ;;  %v27454_v22 = vand.u32 4294901760, %v25229_v46  ;;  %v25282_v9 = vsub.f32 %v25194_v8, %v29446_v17  ;;  %17029 = vmatpush3.bf16.msra.mxu0 %v29449_v45  ;;  %17069 = vmatpush3.bf16.msra.mxu1 %v24688_v11  ;;  %v29450_v13 = vpack.c.bf16 %v24616_v10, %v24606_v15  ;;  %v29472_v8 = vld [vmem:[#allocation90_spill] sm:$0xff] }
 0x5fb   : > { %v25287_v6 = vsub.f32 %v25199_v1, %v29447_v43  ;;  %17103 = vmatprep.subr.bf16.mxu1 %v24334_v4  ;;  %v27460_v17 = vand.u32 4294901760, %v25256_v58  ;;  %29453 = vst [vmem:[#allocation26_spill] sm:$0xff] %v25308_v29  ;;  %v29454_v15 = vand.u32 4294901760, %v25241_v54  ;;  %v29455_v4 = vand.u32 4294901760, %v24801_v52 }
 0x5fc   : > { %29445 = vst [vmem:[#allocation124_spill] sm:$0xff] %v25275_v34  ;;  %17031 = vmatprep.subr.bf16.mxu0 %v29450_v13  ;;  %v25301_v38 = vpack.c.bf16 %v27454_v22, %v27455_v55  ;;  %v29456_v22 = vpack.c.bf16 %v24629_v28, %v24626_v31  ;;  %v29457_v55 = vld [vmem:[#allocation82_spill] sm:$0xff]  ;;  %v29459_v61 = vand.u32 4294901760, %v25267_v26  ;;  %v29465_v13 = vld [vmem:[#allocation85_spill] sm:$0xff]  ;;  %v29468_v31 = vand.u32 4294901760, %v29467_v39  ;;  %v25352_v39 = vld [vmem:[%s26326_s7 + $0x180] sm:$0xff] }
 0x5fd   : > { %29448 = vst [vmem:[#allocation66_spill] sm:$0xff] %v25287_v6  ;;  %v25313_v10 = vsub.f32 %v25241_v54, %v29454_v15  ;;  %10135 = vmatmul.mubr.f32.vlgmr.msra.gmra.mrb[112].mxu1 %v29455_v4  ;;  %v29458_v43 = vand.u32 4294901760, %v29457_v55  ;;  %v29462_v4 = vld [vmem:[#allocation51_spill] sm:$0xff]  ;;  %v29463_v34 = vld [vmem:[#allocation78_spill] sm:$0xff]  ;;  %v29466_v54 = vand.u32 4294901760, %v29465_v13 }
 0x5fe   : > { %29451 = vst [vmem:[#allocation32_spill] sm:$0xff] %v25301_v38  ;;  %17033 = vmatpush3.bf16.msra.mxu0 %v29456_v22  ;;  %v25328_v15 = vpack.c.bf16 %v29459_v61, %v27460_v17  ;;  %v29461_v38 = vld [vmem:[#allocation54_spill] sm:$0xff]  ;;  %v29464_v45 = vpack.c.bf16 %v29462_v4, %v29463_v34  ;;  %v29469_v22 = vand.u32 4294901760, %v25282_v9  ;;  %v27462_v61 = vand.u32 4294901760, %v25308_v29  ;;  %v29477_v4 = vld [vmem:[#allocation129_spill] sm:$0xff] }
 0x5ff   : > { %10142 = vmatprep.mubr.f32.mxu1 %v29458_v43  ;;  %17105 = vmatpush3.bf16.msra.mxu1 %v29461_v38  ;;  %v17070_v28 = vpack.c.bf16 %v29468_v31, %v29466_v54  ;;  %v29470_v43 = vand.u32 4294901760, %v25287_v6  ;;  %v27461_v38 = vand.u32 4294901760, %v25313_v10  ;;  %v29473_v34 = vand.u32 4294901760, %v24852_v36  ;;  %v25357_v54 = vld [vmem:[%s26326_s7 + $0x188] sm:$0xff]  ;;  %v29475_v13 = vld [vmem:[#allocation42_spill] sm:$0xff] }
 0x600   : > { %29460 = vst [vmem:[#allocation15_spill] sm:$0xff] %v25328_v15  ;;  %17035 = vmatprep.subr.bf16.mxu0 %v29464_v45  ;;  %17107 = vmatprep.subr.bf16.mxu1 %v29472_v8  ;;  %v29474_v45 = vld [vmem:[#allocation35_spill] sm:$0xff]  ;;  %v29478_v31 = vand.u32 4294901760, %v24262_v5  ;;  %v29481_v17 = vand.u32 4294901760, %v24268_v27  ;;  %v10486_v5 = vand.u32 4294901760, %v25352_v39  ;;  %v29485_v27 = vand.u32 4294901760, %v24280_v42 }
 0x601   : > { %v25342_v1 = vpack.c.bf16 %v29470_v43, %v29469_v22  ;;  %10146 = vmatmul.mubr.f32.gmra.mrb[114].mxu1 %v29473_v34  ;;  %v29476_v8 = vpack.c.bf16 %v29474_v45, %v29475_v13  ;;  %v29479_v22 = vand.u32 4294901760, %v24265_v41  ;;  %v25371_v34 = vpack.c.bf16 %v27461_v38, %v27462_v61  ;;  %v29482_v45 = vld [vmem:[#allocation72_spill] sm:$0xff]  ;;  %v29527_v15 = vld [vmem:[#allocation65_spill] sm:$0xff] }
 0x602   : > { %10423 = vmatprep.mubr.f32.mxu1 %v29477_v4  ;;  %v29483_v13 = vand.u32 4294901760, %v29482_v45  ;;  %v27469_v41 = vand.u32 4294901760, %v25357_v54  ;;  %v29489_v45 = vand.u32 4294901760, %v24366_v23  ;;  %v29490_v61 = vld [vmem:[#allocation80_spill] sm:$0xff]  ;;  %v25408_v42 = vsub.f32 %v25352_v39, %v10486_v5  ;;  %v29529_v39 = vld [vmem:[#allocation38_spill] sm:$0xff] }
 0x603   : > { %29471 = vst [vmem:[#allocation39_spill] sm:$0xff] %v25342_v1  ;;  %17037 = vmatpush3.bf16.msra.mxu0 %v29476_v8  ;;  %v17072_v43 = vpack.c.bf16 %v29479_v22, %v29478_v31  ;;  %29480 = vst [vmem:[#allocation83_spill] sm:$0xff] %v25371_v34  ;;  %17109 = vmatpush3.bf16.msra.mxu1 %v29355_v60  ;;  %v29484_v1 = vld [vmem:[#allocation69_spill] sm:$0xff]  ;;  %v25384_v31 = vld [vmem:[%s26326_s7 + $0x100] sm:$0xff]  ;;  %v29488_v22 = vand.u32 4294901760, %v24352_v35  ;;  %v29491_v35 = vand.u32 4294901760, %v24376_v0 }
 0x604   : > { %17071 = vmatprep.subr.bf16.mxu0 %v17070_v28  ;;  %v17074_v8 = vpack.c.bf16 %v29483_v13, %v29481_v17  ;;  %17111 = vmatprep.subr.bf16.mxu1 %v29484_v1  ;;  %v25389_v60 = vld [vmem:[%s26326_s7 + $0x108] sm:$0xff]  ;;  %v29486_v1 = vand.u32 4294901760, %v24286_v7  ;;  %v29487_v28 = vld [vmem:[#allocation127_spill] sm:$0xff]  ;;  %v27468_v38 = vand.u32 4294901760, %v25384_v31  ;;  %v25413_v7 = vsub.f32 %v25357_v54, %v27469_v41 }
 0x605   : > { %v17078_v13 = vpack.c.bf16 %v29489_v45, %v29488_v22  ;;  %v29492_v23 = vand.u32 4294901760, %v24381_v40  ;;  %v27466_v40 = vand.u32 4294901760, %v25408_v42  ;;  %v29498_v22 = vld [vmem:[#allocation46_spill] sm:$0xff] }
 0x606   : > { %10018 = vmatmul.mubr.f32.vlgmr.msra.gmra.mrb[94].mxu0 %v24801_v52  ;;  %v17076_v17 = vpack.c.bf16 %v29486_v1, %v29485_v27  ;;  %v27467_v52 = vand.u32 4294901760, %v25389_v60  ;;  %v29499_v45 = vand.u32 4294901760, %v29498_v22 }
 0x607   : > { %10024 = vmatprep.mubr.f32.mxu0 %v29457_v55  ;;  %17073 = vmatpush3.bf16.msra.mxu0 %v17072_v43  ;;  %v17080_v55 = vpack.c.bf16 %v29492_v23, %v29491_v35  ;;  %v29494_v43 = vand.u32 4294901760, %v24409_v51  ;;  %v29496_v51 = vand.u32 4294901760, %v24438_v20  ;;  %v29497_v20 = vld [vmem:[#allocation120_spill] sm:$0xff]  ;;  %v29501_v23 = vld [vmem:[#allocation37_spill] sm:$0xff] }
 0x608   : > { %17113 = vmatpush3.bf16.msra.mxu1 %v29487_v28  ;;  %17075 = vmatprep.subr.bf16.mxu0 %v17074_v8  ;;  %v25434_v0 = vsub.f32 %v25389_v60, %v27467_v52 }
 0x609   : > { %17115 = vmatprep.subr.bf16.mxu1 %v29490_v61  ;;  %v29493_v61 = vand.u32 4294901760, %v24394_v3  ;;  %v29495_v3 = vand.u32 4294901760, %v24419_v49 }
 0x60a   : > { %10027 = vmatmul.mubr.f32.gmra.mrb[96].mxu0 %v24852_v36  ;;  %v25429_v36 = vsub.f32 %v25384_v31, %v27468_v38  ;;  %v27463_v1 = vand.u32 4294901760, %v25434_v0 }
 0x60b   : > { %17077 = vmatpush3.bf16.msra.mxu0 %v17076_v17  ;;  %10312 = vmatprep.mubr.f32.mxu0 %v29477_v4  ;;  %v17082_v8 = vpack.c.bf16 %v29494_v43, %v29493_v61  ;;  %v17084_v4 = vpack.c.bf16 %v29496_v51, %v29495_v3  ;;  %v29503_v43 = vand.u32 4294901760, %v24928_v25 }
 0x60c   : > { %17117 = vmatpush3.bf16.msra.mxu1 %v29389_v18  ;;  %17079 = vmatprep.subr.bf16.mxu0 %v17078_v13  ;;  %v27465_v18 = vand.u32 4294901760, %v25413_v7  ;;  %v27464_v27 = vand.u32 4294901760, %v25429_v36  ;;  %v10694_v13 = vsub.f32 %v29498_v22, %v29499_v45 }
 0x60d   : > { %17119 = vmatprep.subr.bf16.mxu1 %v29396_v56  ;;  %v10680_v56 = vsub.f32 %v25408_v42, %v27466_v40  ;;  %v29514_v40 = vld [vmem:[#allocation29_spill] sm:$0xff] }
 0x60e   : > { %v10687_v49 = vsub.f32 %v25413_v7, %v27465_v18  ;;  %v29515_v52 = vand.u32 4294901760, %v29514_v40 }
 0x60f   : > { %17081 = vmatpush3.bf16.msra.mxu0 %v17080_v55  ;;  %v10681_v17 = vand.u32 4294901760, %v10680_v56  ;;  %v29502_v55 = vand.u32 4294901760, %v24914_v24 }
 0x610   : > { %17121 = vmatpush3.bf16.msra.mxu1 %v29403_v19  ;;  %17083 = vmatprep.subr.bf16.mxu0 %v17082_v8  ;;  %v10568_v19 = vsub.f32 %v25429_v36, %v27464_v27  ;;  %v10688_v28 = vand.u32 4294901760, %v10687_v49  ;;  %v29504_v8 = vld [vmem:[#allocation104_spill] sm:$0xff] }
 0x611   : > { %17123 = vmatprep.subr.bf16.mxu1 %v29407_v16  ;;  %v10575_v16 = vsub.f32 %v25434_v0, %v27463_v1  ;;  %v10582_v61 = vsub.f32 %v24914_v24, %v29502_v55  ;;  %v10695_v55 = vand.u32 4294901760, %v10694_v13 }
 0x612   : > { %v10569_v3 = vand.u32 4294901760, %v10568_v19 }
 0x613   : > { %17085 = vmatpush3.bf16.msra.mxu0 %v17084_v4  ;;  %v10576_v51 = vand.u32 4294901760, %v10575_v16  ;;  %v29505_v4 = vld [vmem:[#allocation128_spill] sm:$0xff]  ;;  %v10583_v19 = vand.u32 4294901760, %v10582_v61 }
 0x614   : > { %17125 = vmatpush3.bf16.msra.mxu1 %v29419_v59  ;;  %17087 = vmatprep.subr.bf16.mxu0 %v29497_v20  ;;  %v29500_v59 = vand.u32 4294901760, %v24909_v63  ;;  %v29506_v56 = vand.u32 4294901760, %v29505_v4  ;;  %v29507_v20 = vld [vmem:[#allocation21_spill] sm:$0xff] }
 0x615   : > { %17127 = vmatprep.subr.bf16.mxu1 %v24669_v30  ;;  %v10589_v30 = vsub.f32 %v24928_v25, %v29503_v43  ;;  %v29508_v45 = vand.u32 4294901760, %v29507_v20  ;;  %v29509_v43 = vld [vmem:[#allocation33_spill] sm:$0xff] }
 0x616   : > { %v10701_v35 = vsub.f32 %v24909_v63, %v29500_v59  ;;  %v10708_v49 = vsub.f32 %v29505_v4, %v29506_v56  ;;  %v25485_v27 = vand.u32 4294901760, %v29509_v43 }
 0x617   : > { %17089 = vmatpush3.bf16.msra.mxu0 %v29501_v23  ;;  %v10715_v59 = vsub.f32 %v29507_v20, %v29508_v45  ;;  %v17166_v23 = vpack.c.bf16 %v10688_v28, %v10681_v17  ;;  %v10590_v16 = vand.u32 4294901760, %v10589_v30  ;;  %v10603_v45 = vsub.f32 %v29514_v40, %v29515_v52 }
 0x618   : > { %17129 = vmatpush3.bf16.msra.mxu1 %v24677_v32  ;;  %17091 = vmatprep.subr.bf16.mxu0 %v29504_v8  ;;  %v10702_v1 = vand.u32 4294901760, %v10701_v35  ;;  %29510 = vst [vmem:[#allocation94_spill] sm:$0xff] %v25485_v27  ;;  %v29511_v32 = vld [vmem:[#allocation40_spill] sm:$0xff]  ;;  %v29512_v8 = vld [vmem:[#allocation135_spill] sm:$0xff]  ;;  %v17168_v17 = vpack.c.bf16 %v10576_v51, %v10569_v3  ;;  %v10709_v28 = vand.u32 4294901760, %v10708_v49  ;;  %v25504_v52 = vsub.f32 %v29509_v43, %v25485_v27 }
 0x619   : > { %17131 = vmatprep.subr.bf16.mxu1 %v24682_v47  ;;  %v29513_v18 = vand.u32 4294901760, %v29512_v8  ;;  %v29516_v47 = vld [vmem:[#allocation81_spill] sm:$0xff]  ;;  %v10716_v13 = vand.u32 4294901760, %v10715_v59  ;;  %v29517_v35 = vld [vmem:[#allocation136_spill] sm:$0xff]  ;;  %v17172_v3 = vpack.c.bf16 %v10590_v16, %v10583_v19  ;;  %v29523_v51 = vand.u32 4294901760, %v25357_v54 }
 0x61a   : > { %v29518_v38 = vand.u32 4294901760, %v29517_v35  ;;  %v17170_v30 = vpack.c.bf16 %v10702_v1, %v10695_v55  ;;  %v10604_v49 = vand.u32 4294901760, %v10603_v45  ;;  %v29524_v59 = vld [vmem:[#allocation28_spill] sm:$0xff]  ;;  %v29530_v16 = vand.u32 4294901760, %v25102_v57 }
 0x61b   : > { %17093 = vmatpush3.bf16.msra.mxu0 %v29511_v32  ;;  %v10596_v56 = vsub.f32 %v29512_v8, %v29513_v18  ;;  %v29519_v32 = vld [vmem:[#allocation12_spill] sm:$0xff]  ;;  %v29531_v45 = vand.u32 4294901760, %v25107_v62 }
 0x61c   : > { %17133 = vmatpush3.bf16.msra.mxu1 %v24688_v11  ;;  %17095 = vmatprep.subr.bf16.mxu0 %v29516_v47  ;;  %v10722_v61 = vsub.f32 %v29517_v35, %v29518_v38  ;;  %v29520_v41 = vand.u32 4294901760, %v29519_v32  ;;  %v29521_v11 = vld [vmem:[#allocation87_spill] sm:$0xff]  ;;  %v29522_v47 = vld [vmem:[#allocation97_spill] sm:$0xff]  ;;  %v25512_v38 = vpack.c.bf16 %v29523_v51, %v10486_v5  ;;  %v29525_v55 = vld [vmem:[#allocation64_spill] sm:$0xff] }
 0x61d   : > { %17167 = vmatprep.subr.bf16.mxu1 %v17166_v23  ;;  %v10597_v1 = vand.u32 4294901760, %v10596_v56  ;;  %v29526_v43 = vand.u32 4294901760, %v29525_v55  ;;  %v10736_v56 = vsub.f32 %v25102_v57, %v29530_v16  ;;  %v29534_v51 = vld [vmem:[#allocation99_spill] sm:$0xff]  ;;  %v29539_v5 = vld [vmem:[#allocation76_spill] sm:$0xff]  ;;  %v29540_v57 = vand.u32 4294901760, %v25116_v12 }
 0x61e   : > { %v10729_v18 = vsub.f32 %v29519_v32, %v29520_v41  ;;  %v17174_v41 = vpack.c.bf16 %v10716_v13, %v10709_v28  ;;  %v10723_v23 = vand.u32 4294901760, %v10722_v61  ;;  %v29532_v28 = vand.u32 4294901760, %v25384_v31 }
 0x61f   : > { %10425 = vmatmul.mubr.f32.vlgmr.msra.gmra.mrb[116].mxu1 %v29521_v11  ;;  %17097 = vmatpush3.bf16.msra.mxu0 %v29522_v47  ;;  %v10610_v34 = vsub.f32 %v29525_v55, %v29526_v43  ;;  %v29528_v47 = vand.u32 4294901760, %v29527_v15  ;;  %v29533_v13 = vand.u32 4294901760, %v25389_v60  ;;  %v29535_v43 = vand.u32 4294901760, %v29534_v51 }
 0x620   : > { %10430 = vmatprep.mubr.f32.mxu1 %v29524_v59  ;;  %17169 = vmatpush3.bf16.msra.mxu1 %v17168_v17  ;;  %v10730_v54 = vand.u32 4294901760, %v10729_v18  ;;  %v10743_v17 = vsub.f32 %v25107_v62, %v29531_v45  ;;  %v17176_v16 = vpack.c.bf16 %v10604_v49, %v10597_v1  ;;  %v10624_v45 = vsub.f32 %v25116_v12, %v29540_v57 }
 0x621   : > { %v10617_v19 = vsub.f32 %v29527_v15, %v29528_v47  ;;  %17099 = vmatprep.subr.bf16.mxu0 %v29529_v39  ;;  %17171 = vmatprep.subr.bf16.mxu1 %v17170_v30  ;;  %v25533_v61 = vpack.c.bf16 %v29533_v13, %v29532_v28  ;;  %v29536_v30 = vld [vmem:[#allocation105_spill] sm:$0xff]  ;;  %v29538_v39 = vld [vmem:[#allocation70_spill] sm:$0xff]  ;;  %v29541_v31 = vand.u32 4294901760, %v25121_v50  ;;  %v10611_v28 = vand.u32 4294901760, %v10610_v34 }
 0x622   : > { %v29537_v18 = vand.u32 4294901760, %v29536_v30  ;;  %v29542_v51 = vand.u32 4294901760, %v25148_v14  ;;  %v17178_v57 = vpack.c.bf16 %v10730_v54, %v10723_v23  ;;  %v29544_v49 = vand.u32 4294901760, %v25504_v52  ;;  %v29545_v34 = vld [vmem:[#allocation122_spill] sm:$0xff] }
 0x623   : > { %10432 = vmatmul.mubr.f32.gmra.mrb[118].mxu1 %v29538_v39  ;;  %17101 = vmatpush3.bf16.msra.mxu0 %v29539_v5  ;;  %v10631_v60 = vsub.f32 %v25121_v50, %v29541_v31  ;;  %v10618_v13 = vand.u32 4294901760, %v10617_v19  ;;  %v29543_v5 = vand.u32 4294901760, %v25153_v53  ;;  %v10737_v30 = vand.u32 4294901760, %v10736_v56  ;;  %v29547_v31 = vld [vmem:[#allocation30_spill] sm:$0xff] }
 0x624   : > { %v25539_v47 = vpack.c.bf16 %v29537_v18, %v29535_v43  ;;  %17173 = vmatpush3.bf16.msra.mxu1 %v17172_v3  ;;  %10789 = vmatprep.mubr.f32.mxu1 %v25485_v27  ;;  %v10750_v43 = vsub.f32 %v25148_v14, %v29542_v51  ;;  %v10536_v3 = vsub.f32 %v25504_v52, %v29544_v49  ;;  %v10744_v18 = vand.u32 4294901760, %v10743_v17  ;;  %v29551_v49 = vld [vmem:[#allocation130_spill] sm:$0xff] }
 0x625   : > { %v10757_v1 = vsub.f32 %v25153_v53, %v29543_v5  ;;  %17135 = vmatprep.subr.bf16.mxu0 %v25512_v38  ;;  %17175 = vmatprep.subr.bf16.mxu1 %v17174_v41  ;;  %v29546_v19 = vand.u32 4294901760, %v29545_v34  ;;  %v29548_v51 = vand.u32 4294901760, %v29547_v31  ;;  %v10625_v41 = vand.u32 4294901760, %v10624_v45 }
 0x626   : > { %10314 = vmatmul.mubr.f32.vlgmr.msra.gmra.mrb[98].mxu0 %v29521_v11  ;;  %v10632_v23 = vand.u32 4294901760, %v10631_v60  ;;  %v29549_v54 = vand.u32 4294901760, %v25184_v33  ;;  %v29550_v56 = vand.u32 4294901760, %v25189_v21  ;;  %v17180_v17 = vpack.c.bf16 %v10618_v13, %v10611_v28  ;;  %v29557_v28 = vld [vmem:[#allocation14_spill] sm:$0xff] }
 0x627   : > { %v25565_v27 = vpack.c.bf16 %v29548_v51, %v29546_v19  ;;  %10319 = vmatprep.mubr.f32.mxu0 %v29524_v59  ;;  %17137 = vmatpush3.bf16.msra.mxu0 %v25533_v61  ;;  %v29552_v34 = vand.u32 4294901760, %v29551_v49  ;;  %v29553_v19 = vld [vmem:[#allocation68_spill] sm:$0xff]  ;;  %v10751_v45 = vand.u32 4294901760, %v10750_v43  ;;  %v10758_v60 = vand.u32 4294901760, %v10757_v1  ;;  %v29561_v1 = vld [vmem:[#allocation103_spill] sm:$0xff] }
 0x628   : > { %v10638_v5 = vsub.f32 %v25184_v33, %v29549_v54  ;;  %v10645_v11 = vsub.f32 %v25189_v21, %v29550_v56  ;;  %17177 = vmatpush3.bf16.msra.mxu1 %v17176_v16  ;;  %17139 = vmatprep.subr.bf16.mxu0 %v25539_v47  ;;  %v29554_v59 = vand.u32 4294901760, %v29553_v19  ;;  %v10537_v51 = vand.u32 4294901760, %v10536_v3  ;;  %v29559_v49 = vld [vmem:[#allocation84_spill] sm:$0xff]  ;;  %v29563_v3 = vld [vmem:[#allocation19_spill] sm:$0xff] }
 0x629   : > { %17179 = vmatprep.subr.bf16.mxu1 %v17178_v57  ;;  %v17182_v53 = vpack.c.bf16 %v10744_v18, %v10737_v30  ;;  %v29555_v54 = vand.u32 4294901760, %v25224_v44  ;;  %v29556_v16 = vand.u32 4294901760, %v25229_v46  ;;  %v29558_v13 = vand.u32 4294901760, %v29557_v28 }
 0x62a   : > { %v25580_v31 = vpack.c.bf16 %v29554_v59, %v29552_v34  ;;  %10321 = vmatmul.mubr.f32.gmra.mrb[100].mxu0 %v29538_v39  ;;  %v29560_v34 = vand.u32 4294901760, %v29559_v49  ;;  %v17184_v43 = vpack.c.bf16 %v10632_v23, %v10625_v41  ;;  %v29562_v57 = vand.u32 4294901760, %v29561_v1 }
 0x62b   : > { %v10764_v33 = vsub.f32 %v25224_v44, %v29555_v54  ;;  %v10771_v56 = vsub.f32 %v25229_v46, %v29556_v16  ;;  %17141 = vmatpush3.bf16.msra.mxu0 %v25565_v27  ;;  %10538 = vmatprep.mubr.f32.mxu0 %v10537_v51  ;;  %v29564_v30 = vand.u32 4294901760, %v29563_v3  ;;  %v10639_v59 = vand.u32 4294901760, %v10638_v5 }
 0x62c   : > { %v25593_v19 = vpack.c.bf16 %v29560_v34, %v29558_v13  ;;  %v10646_v54 = vand.u32 4294901760, %v10645_v11  ;;  %17181 = vmatpush3.bf16.msra.mxu1 %v17180_v17  ;;  %17143 = vmatprep.subr.bf16.mxu0 %v25580_v31  ;;  %v17186_v39 = vpack.c.bf16 %v10758_v60, %v10751_v45  ;;  %v29565_v16 = vand.u32 4294901760, %v25256_v58  ;;  %v29569_v45 = vld [vmem:[#allocation98_spill] sm:$0xff] }
 0x62d   : > { %v25600_v18 = vpack.c.bf16 %v29564_v30, %v29562_v57  ;;  %v29566_v13 = vand.u32 4294901760, %v25267_v26  ;;  %17183 = vmatprep.subr.bf16.mxu1 %v17182_v53  ;;  %v10765_v23 = vand.u32 4294901760, %v10764_v33  ;;  %v10772_v51 = vand.u32 4294901760, %v10771_v56  ;;  %v29571_v34 = vld [vmem:[#allocation18_spill] sm:$0xff]  ;;  %v29575_v56 = vld [vmem:[#allocation48_spill] sm:$0xff] }
 0x62e   : > { %v10652_v28 = vsub.f32 %v25256_v58, %v29565_v16  ;;  %v29567_v49 = vand.u32 4294901760, %v25282_v9  ;;  %v29568_v11 = vand.u32 4294901760, %v25287_v6  ;;  %v29570_v60 = vand.u32 4294901760, %v29569_v45  ;;  %v29573_v53 = vld [vmem:[#allocation134_spill] sm:$0xff] }
 0x62f   : > { %v10659_v41 = vsub.f32 %v25267_v26, %v29566_v13  ;;  %17145 = vmatpush3.bf16.msra.mxu0 %v25593_v19  ;;  %v29572_v1 = vand.u32 4294901760, %v29571_v34  ;;  %v17188_v3 = vpack.c.bf16 %v10646_v54, %v10639_v59  ;;  %v29574_v33 = vand.u32 4294901760, %v29573_v53  ;;  %v29579_v53 = vld [vmem:[#allocation24_spill] sm:$0xff] }
 0x630   : > { %v10778_v5 = vsub.f32 %v25282_v9, %v29567_v49  ;;  %v10785_v17 = vsub.f32 %v25287_v6, %v29568_v11  ;;  %v29576_v30 = vand.u32 4294901760, %v29575_v56  ;;  %17185 = vmatpush3.bf16.msra.mxu1 %v17184_v43  ;;  %17147 = vmatprep.subr.bf16.mxu0 %v25600_v18  ;;  %v10653_v13 = vand.u32 4294901760, %v10652_v28  ;;  %v29585_v6 = vld [vmem:[#allocation116_spill] sm:$0xff] }
 0x631   : > { %v25620_v57 = vpack.c.bf16 %v29572_v1, %v29570_v60  ;;  %v10660_v49 = vand.u32 4294901760, %v10659_v41  ;;  %v29577_v11 = vand.u32 4294901760, %v25308_v29  ;;  %v29578_v34 = vand.u32 4294901760, %v25313_v10  ;;  %17187 = vmatprep.subr.bf16.mxu1 %v17186_v39  ;;  %v29583_v41 = vld [vmem:[#allocation75_spill] sm:$0xff] }
 0x632   : > { %v25626_v16 = vpack.c.bf16 %v29576_v30, %v29574_v33  ;;  %v17190_v59 = vpack.c.bf16 %v10772_v51, %v10765_v23  ;;  %v10779_v54 = vand.u32 4294901760, %v10778_v5  ;;  %v10786_v1 = vand.u32 4294901760, %v10785_v17  ;;  %v29581_v33 = vld [vmem:[#allocation131_spill] sm:$0xff]  ;;  %v29587_v5 = vld [vmem:[#allocation22_spill] sm:$0xff] }
 0x633   : > { %v10666_v45 = vsub.f32 %v25308_v29, %v29577_v11  ;;  %v10673_v60 = vsub.f32 %v25313_v10, %v29578_v34  ;;  %17149 = vmatpush3.bf16.msra.mxu0 %v25620_v57  ;;  %v29580_v43 = vand.u32 4294901760, %v29579_v53  ;;  %v29582_v56 = vand.u32 4294901760, %v29581_v33  ;;  %v29588_v53 = vld [vmem:[#allocation13_spill] sm:$0xff]  ;;  %v29589_v33 = vld [vmem:[#allocation67_spill] sm:$0xff] }
 0x634   : > { %v29584_v30 = vand.u32 4294901760, %v29583_v41  ;;  %v29586_v11 = vand.u32 4294901760, %v29585_v6  ;;  %17189 = vmatpush3.bf16.msra.mxu1 %v17188_v3  ;;  %17151 = vmatprep.subr.bf16.mxu0 %v25626_v16  ;;  %v17192_v39 = vpack.c.bf16 %v10660_v49, %v10653_v13  ;;  %v25650_v17 = vand.u32 4294901760, %v29587_v5 }
 0x635   : > { %v25640_v28 = vpack.c.bf16 %v29582_v56, %v29580_v43  ;;  %v10667_v23 = vand.u32 4294901760, %v10666_v45  ;;  %v10674_v51 = vand.u32 4294901760, %v10673_v60  ;;  %17191 = vmatprep.subr.bf16.mxu1 %v17190_v59  ;;  %v17194_v34 = vpack.c.bf16 %v10786_v1, %v10779_v54  ;;  %v29591_v56 = vld [vmem:[#allocation119_spill] sm:$0xff] }
 0x636   : > { %v25646_v29 = vpack.c.bf16 %v29586_v11, %v29584_v30  ;;  %v25653_v43 = vand.u32 4294901760, %v29588_v53  ;;  %v29590_v6 = vand.u32 4294901760, %v29589_v33  ;;  %v29592_v41 = vand.u32 4294901760, %v29591_v56  ;;  %v29595_v54 = vld [vmem:[#allocation31_spill] sm:$0xff]  ;;  %v29596_v11 = vld [vmem:[#allocation126_spill] sm:$0xff] }
 0x637   : > { %17153 = vmatpush3.bf16.msra.mxu0 %v25640_v28  ;;  %v17196_v13 = vpack.c.bf16 %v10674_v51, %v10667_v23  ;;  %v29593_v49 = vand.u32 4294901760, %v25128_v2  ;;  %v29594_v45 = vand.u32 4294901760, %v25133_v37  ;;  %v25671_v59 = vsub.f32 %v29587_v5, %v25650_v17  ;;  %v29599_v5 = vld [vmem:[#allocation27_spill] sm:$0xff]  ;;  %v29603_v56 = vld [vmem:[#allocation102_spill] sm:$0xff] }
 0x638   : > { %v25660_v3 = vpack.c.bf16 %v29592_v41, %v29590_v6  ;;  %17193 = vmatpush3.bf16.msra.mxu1 %v17192_v39  ;;  %17155 = vmatprep.subr.bf16.mxu0 %v25646_v29  ;;  %v25674_v1 = vand.u32 4294901760, %v29595_v54  ;;  %v25678_v30 = vsub.f32 %v29588_v53, %v25653_v43  ;;  %v29597_v2 = vand.u32 4294901760, %v29596_v11  ;;  %v29601_v53 = vld [vmem:[#allocation55_spill] sm:$0xff] }
 0x639   : > { %v25667_v60 = vpack.c.bf16 %v29594_v45, %v29593_v49  ;;  %17195 = vmatprep.subr.bf16.mxu1 %v17194_v34  ;;  %v29598_v37 = vand.u32 4294901760, %v25173_v48  ;;  %v10541_v23 = vand.u32 4294901760, %v25671_v59  ;;  %v29600_v34 = vand.u32 4294901760, %v29599_v5 }
 0x63a   : > { %v25691_v51 = vsub.f32 %v29595_v54, %v25674_v1  ;;  %v29602_v33 = vand.u32 4294901760, %v29601_v53  ;;  %v10550_v48 = vand.u32 4294901760, %v25678_v30  ;;  %v29604_v41 = vand.u32 4294901760, %v29603_v56 }
 0x63b   : > { %17157 = vmatpush3.bf16.msra.mxu0 %v25660_v3  ;;  %v25685_v39 = vpack.c.bf16 %v29598_v37, %v29597_v2  ;;  %v10542_v54 = vsub.f32 %v25671_v59, %v10541_v23  ;;  %v17198_v2 = vpack.c.bf16 %v25413_v7, %v25408_v42  ;;  %v17200_v5 = vpack.c.bf16 %v25434_v0, %v25429_v36 }
 0x63c   : > { %17197 = vmatpush3.bf16.msra.mxu1 %v17196_v13  ;;  %17159 = vmatprep.subr.bf16.mxu0 %v25667_v60  ;;  %v25698_v6 = vpack.c.bf16 %v29602_v33, %v29600_v34  ;;  %v29605_v13 = vld [vmem:[#allocation91_spill] sm:$0xff]  ;;  %v10556_v11 = vand.u32 4294901760, %v25691_v51  ;;  %v10551_v37 = vsub.f32 %v25678_v30, %v10550_v48  ;;  %v29607_v34 = vand.u32 4294901760, %v25504_v52 }
 0x63d   : > { %17231 = vmatprep.subr.bf16.mxu1 %v25512_v38  ;;  %v29606_v49 = vand.u32 4294901760, %v29605_v13  ;;  %v10543_v53 = vand.u32 4294901760, %v10542_v54  ;;  %v17202_v56 = vpack.c.bf16 %v24909_v63, %v29498_v22  ;;  %v17204_v13 = vpack.c.bf16 %v24928_v25, %v24914_v24  ;;  %v29608_v22 = vld [vmem:[#allocation114_spill] sm:$0xff] }
 0x63e   : > { %v10557_v33 = vsub.f32 %v25691_v51, %v10556_v11  ;;  %v17206_v54 = vpack.c.bf16 %v29507_v20, %v29505_v4  ;;  %v17208_v63 = vpack.c.bf16 %v29514_v40, %v29512_v8  ;;  %v17210_v24 = vpack.c.bf16 %v29519_v32, %v29517_v35  ;;  %v29609_v20 = vld [vmem:[#allocation74_spill] sm:$0xff] }
 0x63f   : > { %10791 = vmatmul.mubr.f32.vlgmr.msra.gmra.mrb[120].mxu1 %v25650_v17  ;;  %17161 = vmatpush3.bf16.msra.mxu0 %v25685_v39  ;;  %v25707_v45 = vpack.c.bf16 %v29606_v49, %v29604_v41  ;;  %v10552_v41 = vand.u32 4294901760, %v10551_v37  ;;  %v17212_v25 = vpack.c.bf16 %v29527_v15, %v29525_v55  ;;  %v17214_v4 = vpack.c.bf16 %v25107_v62, %v29608_v22  ;;  %v29610_v15 = vld [vmem:[#allocation89_spill] sm:$0xff]  ;;  %v29624_v37 = vld [vmem:[#allocation20_spill] sm:$0xff] }
 0x640   : > { %10796 = vmatprep.mubr.f32.mxu1 %v25653_v43  ;;  %17233 = vmatpush3.bf16.msra.mxu1 %v25533_v61  ;;  %v10558_v49 = vand.u32 4294901760, %v10557_v33  ;;  %v17216_v40 = vpack.c.bf16 %v25121_v50, %v25116_v12  ;;  %v17218_v8 = vpack.c.bf16 %v29609_v20, %v25148_v14  ;;  %v17220_v35 = vpack.c.bf16 %v25189_v21, %v29610_v15  ;;  %v29611_v14 = vld [vmem:[#allocation66_spill] sm:$0xff]  ;;  %v25883_v22 = vld [vmem:[%s26326_s7 + $0x240] sm:$0xff] }
 0x641   : > { %17163 = vmatprep.subr.bf16.mxu0 %v25698_v6  ;;  %17235 = vmatprep.subr.bf16.mxu1 %v25539_v47  ;;  %v17222_v62 = vpack.c.bf16 %v25229_v46, %v25224_v44  ;;  %v17224_v12 = vpack.c.bf16 %v25267_v26, %v25256_v58  ;;  %v17226_v21 = vpack.c.bf16 %v29611_v14, %v25282_v9  ;;  %v29612_v50 = vld [vmem:[#allocation26_spill] sm:$0xff]  ;;  %v29613_v58 = vand.u32 4294901760, %v25408_v42  ;;  %v29618_v42 = vld [vmem:[#allocation117_spill] sm:$0xff] }
 0x642   : > { %v17228_v44 = vpack.c.bf16 %v25313_v10, %v29612_v50  ;;  %v29614_v46 = vand.u32 4294901760, %v25413_v7  ;;  %v29615_v9 = vand.u32 4294901760, %v25429_v36  ;;  %v29616_v10 = vand.u32 4294901760, %v25434_v0  ;;  %v9503_v7 = vld [vmem:[%s26326_s7 + $0x200] sm:$0xff]  ;;  %v9504_v36 = vld [vmem:[%s26326_s7 + $0x208] sm:$0xff] }
 0x643   : > { %10798 = vmatmul.mubr.f32.gmra.mrb[122].mxu1 %v25674_v1  ;;  %17165 = vmatpush3.bf16.msra.mxu0 %v25707_v45  ;;  %v29619_v0 = vld [vmem:[#allocation133_spill] sm:$0xff]  ;;  %v11359_v55 = vand.u32 4294901760, %v9504_v36  ;;  %v11380_v14 = vand.u32 4294901760, %v25883_v22  ;;  %v29629_v50 = vld [vmem:[#allocation32_spill] sm:$0xff] }
 0x644   : > { %17237 = vmatpush3.bf16.msra.mxu1 %v25565_v27  ;;  %11049 = vmatprep.mubr.f32.mxu1 %v29607_v34  ;;  %v17262_v26 = vpack.c.bf16 %v29614_v46, %v29613_v58  ;;  %v17264_v32 = vpack.c.bf16 %v29616_v10, %v29615_v9  ;;  %v25926_v46 = vld [vmem:[%s26326_s7 + $0x250] sm:$0xff] }
 0x645   : > { %17199 = vmatprep.subr.bf16.mxu0 %v17198_v2  ;;  %17239 = vmatprep.subr.bf16.mxu1 %v25580_v31 }
 0x646   : > { %10544 = vmatmul.mubr.f32.vlgmr.msra.gmra.mrb[102].mxu0 %v10543_v53 }
 0x647   : > { %10553 = vmatprep.mubr.f32.mxu0 %v10552_v41  ;;  %17201 = vmatpush3.bf16.msra.mxu0 %v17200_v5  ;;  %v29625_v5 = vld [vmem:[#allocation100_spill] sm:$0xff] }
 0x648   : > { %17241 = vmatpush3.bf16.msra.mxu1 %v25593_v19  ;;  %17203 = vmatprep.subr.bf16.mxu0 %v17202_v56 }
 0x649   : > { %17243 = vmatprep.subr.bf16.mxu1 %v25600_v18 }
 0x64a   : > { %10559 = vmatmul.mubr.f32.gmra.mrb[104].mxu0 %v10558_v49 }
 0x64b   : > { %17205 = vmatpush3.bf16.msra.mxu0 %v17204_v13  ;;  %10933 = vmatprep.mubr.f32.mxu0 %v25504_v52  ;;  %v29617_v52 = vld [vmem:[#allocation94_spill] sm:$0xff] }
 0x64c   : > { %17245 = vmatpush3.bf16.msra.mxu1 %v25620_v57  ;;  %17207 = vmatprep.subr.bf16.mxu0 %v17206_v54  ;;  %v29626_v54 = vld [vmem:[#allocation101_spill] sm:$0xff] }
 0x64d   : > { %17247 = vmatprep.subr.bf16.mxu1 %v25626_v16 }
 0x64f   : > { %17209 = vmatpush3.bf16.msra.mxu0 %v17208_v63  ;;  %v29627_v63 = vld [vmem:[#allocation59_spill] sm:$0xff] }
 0x650   : > { %17249 = vmatpush3.bf16.msra.mxu1 %v25640_v28  ;;  %17211 = vmatprep.subr.bf16.mxu0 %v17210_v24 }
 0x651   : > { %17251 = vmatprep.subr.bf16.mxu1 %v25646_v29 }
 0x653   : > { %17213 = vmatpush3.bf16.msra.mxu0 %v17212_v25 }
 0x654   : > { %17253 = vmatpush3.bf16.msra.mxu1 %v25660_v3  ;;  %17215 = vmatprep.subr.bf16.mxu0 %v17214_v4  ;;  %v25888_v4 = vld [vmem:[%s26326_s7 + $0x248] sm:$0xff] }
 0x655   : > { %17255 = vmatprep.subr.bf16.mxu1 %v25667_v60 }
 0x657   : > { %17217 = vmatpush3.bf16.msra.mxu0 %v17216_v40 }
 0x658   : > { %17257 = vmatpush3.bf16.msra.mxu1 %v25685_v39  ;;  %17219 = vmatprep.subr.bf16.mxu0 %v17218_v8 }
 0x659   : > { %17259 = vmatprep.subr.bf16.mxu1 %v25698_v6 }
 0x65b   : > { %17221 = vmatpush3.bf16.msra.mxu0 %v17220_v35 }
 0x65c   : > { %17261 = vmatpush3.bf16.msra.mxu1 %v25707_v45  ;;  %17223 = vmatprep.subr.bf16.mxu0 %v17222_v62 }
 0x65d   : > { %17295 = vmatprep.subr.bf16.mxu1 %v25512_v38  ;;  %v11356_v38 = vand.u32 4294901760, %v9503_v7 }
 0x65f   : > { %11053 = vmatmul.mubr.f32.vlgmr.msra.gmra.mrb[124].mxu1 %v10541_v23  ;;  %17225 = vmatpush3.bf16.msra.mxu0 %v17224_v12  ;;  %v25891_v40 = vpack.c.bf16 %v11359_v55, %v11356_v38  ;;  %v29628_v12 = vld [vmem:[#allocation124_spill] sm:$0xff] }
 0x660   : > { %11060 = vmatprep.mubr.f32.mxu1 %v10550_v48  ;;  %17297 = vmatpush3.bf16.msra.mxu1 %v25533_v61  ;;  %v9505_v61 = vld [vmem:[%s26326_s7 + $0x210] sm:$0xff]  ;;  %v25835_v48 = vsub.f32 %v9504_v36, %v11359_v55  ;;  %v25954_v55 = vsub.f32 %v25883_v22, %v11380_v14 }
 0x661   : > { %17227 = vmatprep.subr.bf16.mxu0 %v17226_v21  ;;  %17299 = vmatprep.subr.bf16.mxu1 %v25539_v47  ;;  %v9506_v47 = vld [vmem:[%s26326_s7 + $0x218] sm:$0xff]  ;;  %v11383_v21 = vand.u32 4294901760, %v25888_v4 }
 0x662   : > { %v11466_v41 = vand.u32 4294901760, %v25835_v48 }
 0x663   : > { %11064 = vmatmul.mubr.f32.gmra.mrb[126].mxu1 %v10556_v11  ;;  %17229 = vmatpush3.bf16.msra.mxu0 %v17228_v44 }
 0x664   : > { %17301 = vmatpush3.bf16.msra.mxu1 %v25565_v27  ;;  %11341 = vmatprep.mubr.f32.mxu1 %v29617_v52  ;;  %v29620_v27 = vld [vmem:[#allocation41_spill] sm:$0xff]  ;;  %v11467_v8 = vsub.f32 %v25835_v48, %v11466_v41 }
 0x665   : > { %17263 = vmatprep.subr.bf16.mxu0 %v17262_v26  ;;  %17303 = vmatprep.subr.bf16.mxu1 %v25580_v31  ;;  %v29621_v31 = vld [vmem:[#allocation36_spill] sm:$0xff]  ;;  %v25931_v26 = vld [vmem:[%s26326_s7 + $0x258] sm:$0xff] }
 0x666   : > { %10936 = vmatmul.mubr.f32.vlgmr.msra.gmra.mrb[106].mxu0 %v25671_v59  ;;  %v11365_v59 = vand.u32 4294901760, %v9506_v47 }
 0x667   : > { %10942 = vmatprep.mubr.f32.mxu0 %v25678_v30  ;;  %17265 = vmatpush3.bf16.msra.mxu0 %v17264_v32  ;;  %v29623_v30 = vld [vmem:[#allocation115_spill] sm:$0xff]  ;;  %v11468_v32 = vand.u32 4294901760, %v11467_v8 }
 0x668   : > { %17305 = vmatpush3.bf16.msra.mxu1 %v25593_v19  ;;  %17267 = vmatprep.subr.bf16.mxu0 %v29618_v42  ;;  %v25820_v19 = vld [vmem:[%s26326_s7 + $0x220] sm:$0xff]  ;;  %v25831_v23 = vand.u32 4294901760, %v29623_v30  ;;  %v25854_v53 = vsub.f32 %v9506_v47, %v11365_v59 }
 0x669   : > { %17307 = vmatprep.subr.bf16.mxu1 %v25600_v18  ;;  %v25825_v18 = vld [vmem:[%s26326_s7 + $0x228] sm:$0xff]  ;;  %v11368_v11 = vand.u32 4294901760, %v25820_v19 }
 0x66a   : > { %10945 = vmatmul.mubr.f32.gmra.mrb[108].mxu0 %v25691_v51  ;;  %v25833_v51 = vsub.f32 %v9503_v7, %v11356_v38  ;;  %v11371_v2 = vand.u32 4294901760, %v25825_v18  ;;  %v25859_v33 = vsub.f32 %v29623_v30, %v25831_v23  ;;  %v11480_v25 = vand.u32 4294901760, %v25854_v53 }
 0x66b   : > { %17269 = vmatpush3.bf16.msra.mxu0 %v29619_v0  ;;  %11230 = vmatprep.mubr.f32.mxu0 %v29617_v52  ;;  %v25868_v49 = vsub.f32 %v25820_v19, %v11368_v11  ;;  %v29630_v0 = vld [vmem:[#allocation15_spill] sm:$0xff]  ;;  %v11389_v38 = vand.u32 4294901760, %v25931_v26 }
 0x66c   : > { %17309 = vmatpush3.bf16.msra.mxu1 %v25620_v57  ;;  %17271 = vmatprep.subr.bf16.mxu0 %v29620_v27  ;;  %v29622_v57 = vld [vmem:[#allocation86_spill] sm:$0xff]  ;;  %v11459_v56 = vand.u32 4294901760, %v25833_v51  ;;  %v11481_v58 = vsub.f32 %v25854_v53, %v11480_v25  ;;  %v11386_v27 = vand.u32 4294901760, %v25926_v46 }
 0x66d   : > { %17311 = vmatprep.subr.bf16.mxu1 %v25626_v16  ;;  %v11362_v16 = vand.u32 4294901760, %v9505_v61  ;;  %v11487_v15 = vand.u32 4294901760, %v25868_v49 }
 0x66e   : > { %v11460_v20 = vsub.f32 %v25833_v51, %v11459_v56  ;;  %v25994_v8 = vsub.f32 %v25926_v46, %v11386_v27 }
 0x66f   : > { %17273 = vmatpush3.bf16.msra.mxu0 %v29621_v31  ;;  %v25852_v34 = vsub.f32 %v9505_v61, %v11362_v16  ;;  %v11488_v52 = vsub.f32 %v25868_v49, %v11487_v15  ;;  %v25959_v61 = vsub.f32 %v25888_v4, %v11383_v21  ;;  %v11482_v31 = vand.u32 4294901760, %v11481_v58 }
 0x670   : > { %17313 = vmatpush3.bf16.msra.mxu1 %v25640_v28  ;;  %17275 = vmatprep.subr.bf16.mxu0 %v29622_v57  ;;  %v25843_v28 = vld [vmem:[%s26326_s7 + $0x230] sm:$0xff]  ;;  %v11461_v10 = vand.u32 4294901760, %v11460_v20  ;;  %v29631_v57 = vld [vmem:[#allocation39_spill] sm:$0xff] }
 0x671   : > { %17315 = vmatprep.subr.bf16.mxu1 %v25646_v29  ;;  %v25848_v29 = vld [vmem:[%s26326_s7 + $0x238] sm:$0xff]  ;;  %v11374_v13 = vand.u32 4294901760, %v25843_v28  ;;  %v11473_v24 = vand.u32 4294901760, %v25852_v34  ;;  %v11522_v20 = vand.u32 4294901760, %v25959_v61 }
 0x672   : > { %v17358_v30 = vpack.c.bf16 %v11468_v32, %v11461_v10  ;;  %v9517_v10 = vld [vmem:[%s26326_s7 + $0x270] sm:$0xff]  ;;  %v9518_v32 = vld [vmem:[%s26326_s7 + $0x278] sm:$0xff] }
 0x673   : > { %17277 = vmatpush3.bf16.msra.mxu0 %v29624_v37  ;;  %v11474_v44 = vsub.f32 %v25852_v34, %v11473_v24  ;;  %v25974_v37 = vld [vmem:[%s26326_s7 + $0x260] sm:$0xff] }
 0x674   : > { %17317 = vmatpush3.bf16.msra.mxu1 %v25660_v3  ;;  %17279 = vmatprep.subr.bf16.mxu0 %v29625_v5  ;;  %v11377_v3 = vand.u32 4294901760, %v25848_v29  ;;  %v25979_v5 = vld [vmem:[%s26326_s7 + $0x268] sm:$0xff] }
 0x675   : > { %17319 = vmatprep.subr.bf16.mxu1 %v25667_v60  ;;  %v25873_v60 = vsub.f32 %v25825_v18, %v11371_v2  ;;  %v11475_v47 = vand.u32 4294901760, %v11474_v44  ;;  %v11392_v44 = vand.u32 4294901760, %v25974_v37  ;;  %v11395_v58 = vand.u32 4294901760, %v25979_v5 }
 0x676   : > { %v25910_v62 = vsub.f32 %v25848_v29, %v11377_v3  ;;  %v11523_v29 = vsub.f32 %v25959_v61, %v11522_v20 }
 0x677   : > { %17281 = vmatpush3.bf16.msra.mxu0 %v29626_v54  ;;  %v11494_v35 = vand.u32 4294901760, %v25873_v60  ;;  %v11489_v54 = vand.u32 4294901760, %v11488_v52 }
 0x678   : > { %17321 = vmatpush3.bf16.msra.mxu1 %v25685_v39  ;;  %17283 = vmatprep.subr.bf16.mxu0 %v29627_v63  ;;  %v11438_v39 = vand.u32 4294901760, %v25859_v33  ;;  %v11508_v36 = vand.u32 4294901760, %v25910_v62 }
 0x679   : > { %17323 = vmatprep.subr.bf16.mxu1 %v25698_v6  ;;  %v25905_v6 = vsub.f32 %v25843_v28, %v11374_v13  ;;  %v11495_v42 = vsub.f32 %v25873_v60, %v11494_v35 }
 0x67a   : > { %v11439_v9 = vsub.f32 %v25859_v33, %v11438_v39  ;;  %v11509_v18 = vsub.f32 %v25910_v62, %v11508_v36 }
 0x67b   : > { %17285 = vmatpush3.bf16.msra.mxu0 %v29628_v12  ;;  %v11501_v7 = vand.u32 4294901760, %v25905_v6  ;;  %v11496_v63 = vand.u32 4294901760, %v11495_v42  ;;  %v25999_v12 = vsub.f32 %v25931_v26, %v11389_v38 }
 0x67c   : > { %17325 = vmatpush3.bf16.msra.mxu1 %v25707_v45  ;;  %17287 = vmatprep.subr.bf16.mxu0 %v29629_v50  ;;  %v25934_v45 = vpack.c.bf16 %v11365_v59, %v11362_v16  ;;  %v11440_v16 = vand.u32 4294901760, %v11439_v9  ;;  %v25969_v59 = vpack.c.bf16 %v11371_v2, %v11368_v11  ;;  %v29632_v11 = vld [vmem:[#allocation83_spill] sm:$0xff]  ;;  %v11515_v2 = vand.u32 4294901760, %v25954_v55 }
 0x67d   : > { %17327 = vmatprep.subr.bf16.mxu1 %v25891_v40  ;;  %v11502_v19 = vsub.f32 %v25905_v6, %v11501_v7  ;;  %v17362_v50 = vpack.c.bf16 %v11482_v31, %v11475_v47  ;;  %v26009_v9 = vpack.c.bf16 %v11377_v3, %v11374_v13  ;;  %v17366_v52 = vpack.c.bf16 %v11496_v63, %v11489_v54  ;;  %v29633_v63 = vld [vmem:[#allocation93_spill] sm:$0xff] }
 0x67e   : > { %v11516_v28 = vsub.f32 %v25954_v55, %v11515_v2  ;;  %v11529_v13 = vand.u32 4294901760, %v25994_v8  ;;  %v11536_v3 = vand.u32 4294901760, %v25999_v12  ;;  %v11401_v47 = vand.u32 4294901760, %v9518_v32 }
 0x67f   : > { %11343 = vmatmul.mubr.f32.vlgmr.msra.gmra.mrb[128].mxu1 %v25650_v17  ;;  %17289 = vmatpush3.bf16.msra.mxu0 %v29630_v0  ;;  %v11503_v42 = vand.u32 4294901760, %v11502_v19  ;;  %v11510_v0 = vand.u32 4294901760, %v11509_v18  ;;  %v26032_v31 = vsub.f32 %v25979_v5, %v11395_v58  ;;  %v26061_v54 = vpack.c.bf16 %v11389_v38, %v11386_v27 }
 0x680   : > { %11348 = vmatprep.mubr.f32.mxu1 %v25653_v43  ;;  %17329 = vmatpush3.bf16.msra.mxu1 %v25891_v40  ;;  %v11530_v5 = vsub.f32 %v25994_v8, %v11529_v13  ;;  %v11537_v22 = vsub.f32 %v25999_v12, %v11536_v3  ;;  %v26064_v19 = vand.u32 4294901760, %v29633_v63  ;;  %v26076_v38 = vpack.c.bf16 %v11395_v58, %v11392_v44 }
 0x681   : > { %17291 = vmatprep.subr.bf16.mxu0 %v29631_v57  ;;  %17331 = vmatprep.subr.bf16.mxu1 %v25934_v45  ;;  %v26039_v57 = vpack.c.bf16 %v11383_v21, %v11380_v14  ;;  %v26054_v21 = vsub.f32 %v9518_v32, %v11401_v47 }
 0x682   : > { %v26080_v32 = vsub.f32 %v29633_v63, %v26064_v19  ;;  %v17394_v63 = vpack.c.bf16 %v25854_v53, %v25852_v34  ;;  %v17470_v34 = vpack.c.bf16 %v11522_v20, %v11515_v2 }
 0x683   : > { %11350 = vmatmul.mubr.f32.gmra.mrb[130].mxu1 %v25674_v1  ;;  %17293 = vmatpush3.bf16.msra.mxu0 %v29632_v11  ;;  %v11531_v11 = vand.u32 4294901760, %v11530_v5  ;;  %v11564_v27 = vand.u32 4294901760, %v26054_v21 }
 0x684   : > { %17333 = vmatpush3.bf16.msra.mxu1 %v25934_v45  ;;  %15036 = vmatprep.mubr.f32.mxu1 %v11440_v16  ;;  %v17370_v16 = vpack.c.bf16 %v11510_v0, %v11503_v42 }
 0x685   : > { %17335 = vmatprep.subr.bf16.mxu1 %v25969_v59  ;;  %17359 = vmatprep.subr.bf16.mxu0 %v17358_v30 }
 0x686   : > { %11232 = vmatmul.mubr.f32.vlgmr.msra.gmra.mrb[110].mxu0 %v25650_v17  ;;  %v11398_v17 = vand.u32 4294901760, %v9517_v10 }
 0x687   : > { %11237 = vmatprep.mubr.f32.mxu0 %v25653_v43  ;;  %17361 = vmatpush3.bf16.msra.mxu0 %v17358_v30  ;;  %v26029_v43 = vsub.f32 %v25974_v37, %v11392_v44  ;;  %v11517_v30 = vand.u32 4294901760, %v11516_v28  ;;  %v11524_v37 = vand.u32 4294901760, %v11523_v29  ;;  %v11565_v44 = vsub.f32 %v26054_v21, %v11564_v27 }
 0x688   : > { %17337 = vmatpush3.bf16.msra.mxu1 %v25969_v59  ;;  %17363 = vmatprep.subr.bf16.mxu0 %v17362_v50  ;;  %v26052_v14 = vsub.f32 %v9517_v10, %v11398_v17  ;;  %v26090_v58 = vpack.c.bf16 %v11401_v47, %v11398_v17  ;;  %v11448_v29 = vand.u32 4294901760, %v26080_v32 }
 0x689   : > { %17339 = vmatprep.subr.bf16.mxu1 %v26009_v9  ;;  %v11543_v4 = vand.u32 4294901760, %v26029_v43  ;;  %v17374_v18 = vpack.c.bf16 %v11524_v37, %v11517_v30  ;;  %v11566_v37 = vand.u32 4294901760, %v11565_v44 }
 0x68a   : > { %11239 = vmatmul.mubr.f32.gmra.mrb[112].mxu0 %v25674_v1  ;;  %v11550_v1 = vand.u32 4294901760, %v26032_v31  ;;  %v11557_v26 = vand.u32 4294901760, %v26052_v14  ;;  %v11449_v5 = vsub.f32 %v26080_v32, %v11448_v29 }
 0x68b   : > { %17365 = vmatpush3.bf16.msra.mxu0 %v17362_v50  ;;  %15071 = vmatprep.mubr.f32.mxu0 %v25831_v23  ;;  %v11538_v50 = vand.u32 4294901760, %v11537_v22  ;;  %v11544_v10 = vsub.f32 %v26029_v43, %v11543_v4  ;;  %v17390_v22 = vpack.c.bf16 %v25835_v48, %v25833_v51  ;;  %v17462_v51 = vpack.c.bf16 %v11494_v35, %v11487_v15 }
 0x68c   : > { %17341 = vmatpush3.bf16.msra.mxu1 %v26009_v9  ;;  %17367 = vmatprep.subr.bf16.mxu0 %v17366_v52  ;;  %v11551_v46 = vsub.f32 %v26032_v31, %v11550_v1  ;;  %v11558_v28 = vsub.f32 %v26052_v14, %v11557_v26  ;;  %v11450_v47 = vand.u32 4294901760, %v11449_v5  ;;  %v17466_v48 = vpack.c.bf16 %v11508_v36, %v11501_v7 }
 0x68d   : > { %17343 = vmatprep.subr.bf16.mxu1 %v26039_v57  ;;  %v11545_v42 = vand.u32 4294901760, %v11544_v10  ;;  %v17478_v15 = vpack.c.bf16 %v11550_v1, %v11543_v4  ;;  %v17482_v7 = vpack.c.bf16 %v11564_v27, %v11557_v26 }
 0x68e   : > { %v11552_v0 = vand.u32 4294901760, %v11551_v46  ;;  %v11559_v30 = vand.u32 4294901760, %v11558_v28 }
 0x68f   : > { %17369 = vmatpush3.bf16.msra.mxu0 %v17366_v52  ;;  %v17378_v52 = vpack.c.bf16 %v11538_v50, %v11531_v11  ;;  %v17402_v11 = vpack.c.bf16 %v25910_v62, %v25905_v6  ;;  %v17406_v50 = vpack.c.bf16 %v25959_v61, %v25954_v55 }
 0x690   : > { %17345 = vmatpush3.bf16.msra.mxu1 %v26039_v57  ;;  %17371 = vmatprep.subr.bf16.mxu0 %v17370_v16  ;;  %v17386_v17 = vpack.c.bf16 %v11566_v37, %v11559_v30 }
 0x691   : > { %17347 = vmatprep.subr.bf16.mxu1 %v26061_v54 }
 0x693   : > { %17373 = vmatpush3.bf16.msra.mxu0 %v17370_v16  ;;  %v17382_v16 = vpack.c.bf16 %v11552_v0, %v11545_v42  ;;  %v17410_v42 = vpack.c.bf16 %v25999_v12, %v25994_v8 }
 0x694   : > { %17349 = vmatpush3.bf16.msra.mxu1 %v26061_v54  ;;  %17375 = vmatprep.subr.bf16.mxu0 %v17374_v18 }
 0x695   : > { %17351 = vmatprep.subr.bf16.mxu1 %v26076_v38 }
 0x697   : > { %17377 = vmatpush3.bf16.msra.mxu0 %v17374_v18  ;;  %v17398_v18 = vpack.c.bf16 %v25873_v60, %v25868_v49  ;;  %v17474_v49 = vpack.c.bf16 %v11536_v3, %v11529_v13 }
 0x698   : > { %17353 = vmatpush3.bf16.msra.mxu1 %v26076_v38  ;;  %17379 = vmatprep.subr.bf16.mxu0 %v17378_v52 }
 0x699   : > { %17355 = vmatprep.subr.bf16.mxu1 %v26090_v58 }
 0x69b   : > { %17381 = vmatpush3.bf16.msra.mxu0 %v17378_v52 }
 0x69c   : > { %17357 = vmatpush3.bf16.msra.mxu1 %v26090_v58  ;;  %17383 = vmatprep.subr.bf16.mxu0 %v17382_v16 }
 0x69f   : > { %15037 = vmatmul.mubr.f32.vlgmr.msra.gmra.mrb[132].mxu1 %v11450_v47  ;;  %17385 = vmatpush3.bf16.msra.mxu0 %v17382_v16  ;;  %v17414_v16 = vpack.c.bf16 %v26032_v31, %v26029_v43 }
 0x6a0   : > { %17387 = vmatprep.subr.bf16.mxu0 %v17386_v17 }
 0x6a3   : > { %17389 = vmatpush3.bf16.msra.mxu0 %v17386_v17  ;;  %v17418_v17 = vpack.c.bf16 %v26054_v21, %v26052_v14 }
 0x6a4   : > { %17391 = vmatprep.subr.bf16.mxu0 %v17390_v22 }
 0x6a6   : > { %15072 = vmatmul.mubr.f32.vlgmr.msra.gmra.mrb[114].mxu0 %v26064_v19 }
 0x6a7   : > { %17393 = vmatpush3.bf16.msra.mxu0 %v17390_v22  ;;  %15106 = vmatprep.mubr.f32.mxu0 %v25859_v33 }
 0x6a8   : > { %17395 = vmatprep.subr.bf16.mxu0 %v17394_v63 }
 0x6ab   : > { %17397 = vmatpush3.bf16.msra.mxu0 %v17394_v63 }
 0x6ac   : > { %17399 = vmatprep.subr.bf16.mxu0 %v17398_v18 }
 0x6ae   : > { %v14396_v10 = vpop.f32.mrb[108].mxu1 }
 0x6af   : > { %17401 = vmatpush3.bf16.msra.mxu0 %v17398_v18  ;;  %v14397_v46 = vpop.f32.mrb[109].mxu1 }
 0x6b0   : > { %17403 = vmatprep.subr.bf16.mxu0 %v17402_v11  ;;  %v14398_v52 = vadd.f32 %v14397_v46, %v14396_v10 }
 0x6b2   : > { %v14399_v0 = vpop.f32.mrb[110].mxu1 }
 0x6b3   : > { %17405 = vmatpush3.bf16.msra.mxu0 %v17402_v11  ;;  %v14400_v28 = vpop.f32.mrb[111].mxu1 }
 0x6b4   : > { %17407 = vmatprep.subr.bf16.mxu0 %v17406_v50  ;;  %v14401_v44 = vadd.f32 %v14400_v28, %v14399_v0 }
 0x6b6   : > { %v14358_v30 = vpop.f32.mrb[90].mxu0 }
 0x6b7   : > { %17409 = vmatpush3.bf16.msra.mxu0 %v17406_v50  ;;  %v14359_v37 = vpop.f32.mrb[91].mxu0 }
 0x6b8   : > { %17411 = vmatprep.subr.bf16.mxu0 %v17410_v42  ;;  %v14360_v5 = vadd.f32 %v14359_v37, %v14358_v30 }
 0x6ba   : > { %v9875_v47 = vadd.f32 %v14398_v52, %v14360_v5  ;;  %v14361_v22 = vpop.f32.mrb[92].mxu0 }
 0x6bb   : > { %17413 = vmatpush3.bf16.msra.mxu0 %v17410_v42  ;;  %v14362_v63 = vpop.f32.mrb[93].mxu0 }
 0x6bc   : > { %17415 = vmatprep.subr.bf16.mxu0 %v17414_v16  ;;  %v14363_v18 = vadd.f32 %v14362_v63, %v14361_v22 }
 0x6be   : > { %v9882_v11 = vadd.f32 %v14401_v44, %v14363_v18 }
 0x6bf   : > { %17417 = vmatpush3.bf16.msra.mxu0 %v17414_v16 }
 0x6c0   : > { %17419 = vmatprep.subr.bf16.mxu0 %v17418_v17 }
 0x6c3   : > { %17421 = vmatpush3.bf16.msra.mxu0 %v17418_v17  ;;  %v17454_v17 = vpack.c.bf16 %v11466_v41, %v11459_v56 }
 0x6c4   : > { %17423 = vmatprep.subr.bf16.mxu0 %v25891_v40 }
 0x6c6   : > { %15107 = vmatmul.mubr.f32.vlgmr.msra.gmra.mrb[114].mxu0 %v26080_v32 }
 0x6c7   : > { %17425 = vmatpush3.bf16.msra.mxu0 %v25891_v40  ;;  %15141 = vmatprep.mubr.f32.mxu0 %v11438_v39 }
 0x6c8   : > { %17427 = vmatprep.subr.bf16.mxu0 %v25934_v45 }
 0x6cb   : > { %17429 = vmatpush3.bf16.msra.mxu0 %v25934_v45 }
 0x6cc   : > { %17431 = vmatprep.subr.bf16.mxu0 %v25969_v59 }
 0x6cf   : > { %17433 = vmatpush3.bf16.msra.mxu0 %v25969_v59 }
 0x6d0   : > { %17435 = vmatprep.subr.bf16.mxu0 %v26009_v9  ;;  %v14472_v50 = vpop.f32.mrb[112].mxu1 }
 0x6d1   : > { %v14473_v10 = vpop.f32.mrb[113].mxu1 }
 0x6d2   : > { %v14474_v46 = vadd.f32 %v14473_v10, %v14472_v50 }
 0x6d3   : > { %17437 = vmatpush3.bf16.msra.mxu0 %v26009_v9 }
 0x6d4   : > { %17439 = vmatprep.subr.bf16.mxu0 %v26039_v57  ;;  %v14475_v52 = vpop.f32.mrb[114].mxu1 }
 0x6d5   : > { %v14476_v33 = vpop.f32.mrb[115].mxu1 }
 0x6d6   : > { %v14477_v39 = vadd.f32 %v14476_v33, %v14475_v52 }
 0x6d7   : > { %17441 = vmatpush3.bf16.msra.mxu0 %v26039_v57 }
 0x6d8   : > { %17443 = vmatprep.subr.bf16.mxu0 %v26061_v54 }
 0x6d9   : > { %v14434_v42 = vpop.f32.mrb[94].mxu0 }
 0x6da   : > { %v14435_v0 = vpop.f32.mrb[95].mxu0 }
 0x6db   : > { %v14436_v28 = vadd.f32 %v14435_v0, %v14434_v42  ;;  %17445 = vmatpush3.bf16.msra.mxu0 %v26061_v54 }
 0x6dc   : > { %17447 = vmatprep.subr.bf16.mxu0 %v26076_v38 }
 0x6dd   : > { %v10020_v44 = vadd.f32 %v14436_v28, %v9875_v47  ;;  %v14437_v16 = vpop.f32.mrb[96].mxu0  ;;  %v17458_v47 = vpack.c.bf16 %v11480_v25, %v11473_v24 }
 0x6de   : > { %v14438_v30 = vpop.f32.mrb[97].mxu0 }
 0x6df   : > { %v14439_v37 = vadd.f32 %v14438_v30, %v14437_v16  ;;  %17449 = vmatpush3.bf16.msra.mxu0 %v26076_v38  ;;  %v10137_v5 = vadd.f32 %v14474_v46, %v10020_v44 }
 0x6e0   : > { %17451 = vmatprep.subr.bf16.mxu0 %v26090_v58 }
 0x6e1   : > { %v10029_v22 = vadd.f32 %v14439_v37, %v9882_v11 }
 0x6e3   : > { %17453 = vmatpush3.bf16.msra.mxu0 %v26090_v58  ;;  %v10148_v63 = vadd.f32 %v14477_v39, %v10029_v22 }
 0x6e4   : > { %17455 = vmatprep.subr.bf16.mxu0 %v17454_v17 }
 0x6e6   : > { %15142 = vmatmul.mubr.f32.vlgmr.msra.gmra.mrb[114].mxu0 %v11448_v29 }
 0x6e7   : > { %17457 = vmatpush3.bf16.msra.mxu0 %v17454_v17  ;;  %15176 = vmatprep.mubr.f32.mxu0 %v25831_v23 }
 0x6e8   : > { %17459 = vmatprep.subr.bf16.mxu0 %v17458_v47 }
 0x6eb   : > { %17461 = vmatpush3.bf16.msra.mxu0 %v17458_v47 }
 0x6ec   : > { %17463 = vmatprep.subr.bf16.mxu0 %v17462_v51 }
 0x6ef   : > { %17465 = vmatpush3.bf16.msra.mxu0 %v17462_v51 }
 0x6f0   : > { %17467 = vmatprep.subr.bf16.mxu0 %v17466_v48 }
 0x6f2   : > { %v14548_v53 = vpop.f32.mrb[116].mxu1 }
 0x6f3   : > { %v14549_v56 = vpop.f32.mrb[117].mxu1  ;;  %17469 = vmatpush3.bf16.msra.mxu0 %v17466_v48 }
 0x6f4   : > { %v14550_v41 = vadd.f32 %v14549_v56, %v14548_v53  ;;  %17471 = vmatprep.subr.bf16.mxu0 %v17470_v34 }
 0x6f6   : > { %v14551_v60 = vpop.f32.mrb[118].mxu1 }
 0x6f7   : > { %v14552_v24 = vpop.f32.mrb[119].mxu1  ;;  %17473 = vmatpush3.bf16.msra.mxu0 %v17470_v34 }
 0x6f8   : > { %v14553_v25 = vadd.f32 %v14552_v24, %v14551_v60  ;;  %17475 = vmatprep.subr.bf16.mxu0 %v17474_v49 }
 0x6f9   : > { %v14510_v35 = vpop.f32.mrb[98].mxu0 }
 0x6fa   : > { %v14511_v6 = vpop.f32.mrb[99].mxu0 }
 0x6fb   : > { %v14512_v62 = vadd.f32 %v14511_v6, %v14510_v35  ;;  %17477 = vmatpush3.bf16.msra.mxu0 %v17474_v49 }
 0x6fc   : > { %17479 = vmatprep.subr.bf16.mxu0 %v17478_v15 }
 0x6fd   : > { %v10316_v36 = vadd.f32 %v14512_v62, %v10137_v5  ;;  %v14513_v55 = vpop.f32.mrb[100].mxu0 }
 0x6fe   : > { %v14514_v61 = vpop.f32.mrb[101].mxu0 }
 0x6ff   : > { %v14515_v2 = vadd.f32 %v14514_v61, %v14513_v55  ;;  %17481 = vmatpush3.bf16.msra.mxu0 %v17478_v15  ;;  %v10427_v20 = vadd.f32 %v14550_v41, %v10316_v36 }
 0x700   : > { %17483 = vmatprep.subr.bf16.mxu0 %v17482_v7 }
 0x701   : > { %v10323_v8 = vadd.f32 %v14515_v2, %v10148_v63 }
 0x703   : > { %17485 = vmatpush3.bf16.msra.mxu0 %v17482_v7  ;;  %v10434_v12 = vadd.f32 %v14553_v25, %v10323_v8 }
 0x704   : > { %17487 = vmatprep.subr.bf16.mxu0 %v25891_v40 }
 0x706   : > { %15177 = vmatmul.mubr.f32.vlgmr.msra.gmra.mrb[114].mxu0 %v26064_v19 }
 0x707   : > { %17489 = vmatpush3.bf16.msra.mxu0 %v25891_v40  ;;  %15211 = vmatprep.mubr.f32.mxu0 %v25831_v23 }
 0x708   : > { %17491 = vmatprep.subr.bf16.mxu0 %v25934_v45 }
 0x70b   : > { %17493 = vmatpush3.bf16.msra.mxu0 %v25934_v45 }
 0x70c   : > { %17495 = vmatprep.subr.bf16.mxu0 %v25969_v59 }
 0x70f   : > { %17497 = vmatpush3.bf16.msra.mxu0 %v25969_v59 }
 0x710   : > { %17499 = vmatprep.subr.bf16.mxu0 %v26009_v9 }
 0x712   : > { %v14624_v13 = vpop.f32.mrb[120].mxu1 }
 0x713   : > { %v14625_v3 = vpop.f32.mrb[121].mxu1  ;;  %17501 = vmatpush3.bf16.msra.mxu0 %v26009_v9 }
 0x714   : > { %v14626_v43 = vadd.f32 %v14625_v3, %v14624_v13  ;;  %17503 = vmatprep.subr.bf16.mxu0 %v26039_v57 }
 0x716   : > { %v14627_v40 = vpop.f32.mrb[122].mxu1 }
 0x717   : > { %v14628_v31 = vpop.f32.mrb[123].mxu1  ;;  %17505 = vmatpush3.bf16.msra.mxu0 %v26039_v57 }
 0x718   : > { %v14629_v23 = vadd.f32 %v14628_v31, %v14627_v40  ;;  %17507 = vmatprep.subr.bf16.mxu0 %v26061_v54  ;;  %v17777_v31 = vmov 4  }
 0x719   : > { %v14586_v45 = vpop.f32.mrb[102].mxu0  ;;  %17641 = vset.pattern.permute.xlu0 %v17777_v31 }
 0x71a   : > { %v14587_v4 = vpop.f32.mrb[103].mxu0 }
 0x71b   : > { %v14588_v1 = vadd.f32 %v14587_v4, %v14586_v45  ;;  %17509 = vmatpush3.bf16.msra.mxu0 %v26061_v54 }
 0x71c   : > { %17511 = vmatprep.subr.bf16.mxu0 %v26076_v38 }
 0x71d   : > { %v10546_v59 = vadd.f32 %v14588_v1, %v10427_v20  ;;  %v14589_v14 = vpop.f32.mrb[104].mxu0 }
 0x71e   : > { %v14590_v9 = vpop.f32.mrb[105].mxu0 }
 0x71f   : > { %v14591_v21 = vadd.f32 %v14590_v9, %v14589_v14  ;;  %17513 = vmatpush3.bf16.msra.mxu0 %v26076_v38  ;;  %v10793_v26 = vadd.f32 %v14626_v43, %v10546_v59  ;;  %v17779_v14 = vmov 7   ;;  %v17780_v9 = vmov 1  }
 0x720   : > { %17515 = vmatprep.subr.bf16.mxu0 %v26090_v58 }
 0x721   : > { %v10561_v57 = vadd.f32 %v14591_v21, %v10434_v12  ;;  %v17781_v21 = vmov 10  }
 0x723   : > { %17517 = vmatpush3.bf16.msra.mxu0 %v26090_v58  ;;  %v10800_v27 = vadd.f32 %v14629_v23, %v10561_v57  ;;  %v17778_v23 = vmov 0   ;;  %v17783_v57 = vmov 13  }
 0x724   : > { %17637 = vset.pattern.permute.xlu1 %v17778_v23 }
 0x726   : > { %15212 = vmatmul.mubr.f32.vlgmr.msra.gmra.mrb[114].mxu0 %v26064_v19 }
 0x732   : > { %v14700_v32 = vpop.f32.mrb[124].mxu1 }
 0x733   : > { %v14701_v29 = vpop.f32.mrb[125].mxu1 }
 0x734   : > { %v14702_v54 = vadd.f32 %v14701_v29, %v14700_v32 }
 0x736   : > { %v14703_v18 = vpop.f32.mrb[126].mxu1 }
 0x737   : > { %v14704_v11 = vpop.f32.mrb[127].mxu1 }
 0x738   : > { %v14705_v50 = vadd.f32 %v14704_v11, %v14703_v18  ;;  %v17786_v18 = vmov 6   ;;  %v17787_v11 = vmov 8  }
 0x739   : > { %v14662_v10 = vpop.f32.mrb[106].mxu0 }
 0x73a   : > { %v14663_v46 = vpop.f32.mrb[107].mxu0 }
 0x73b   : > { %v14664_v52 = vadd.f32 %v14663_v46, %v14662_v10  ;;  %v17789_v10 = vmov 12   ;;  %v17790_v46 = vmov 11  }
 0x73d   : > { %v10938_v33 = vadd.f32 %v14664_v52, %v10793_v26  ;;  %v14665_v38 = vpop.f32.mrb[108].mxu0  ;;  %v17782_v26 = vmov 2   ;;  %v17791_v52 = vmov 15  }
 0x73e   : > { %v14666_v39 = vpop.f32.mrb[109].mxu0 }
 0x73f   : > { %v14667_v42 = vadd.f32 %v14666_v39, %v14665_v38  ;;  %v11055_v0 = vadd.f32 %v14702_v54, %v10938_v33  ;;  %v17785_v54 = vmov 5   ;;  %v17792_v33 = vmov 14  }
 0x741   : > { %v10947_v28 = vadd.f32 %v14667_v42, %v10800_v27  ;;  %v17784_v27 = vmov 3   ;;  %v29634_v42 = vld [vmem:[#allocation106_spill] sm:$0xff] }
 0x743   : > { %v11066_v44 = vadd.f32 %v14705_v50, %v10947_v28  ;;  %v17788_v50 = vmov 9   ;;  %v29635_v28 = vld [vmem:[#allocation108_spill] sm:$0xff] }
 0x752   : > { %v14776_v58 = vpop.f32.mrb[128].mxu1 }
 0x753   : > { %v14777_v16 = vpop.f32.mrb[129].mxu1 }
 0x754   : > { %v14778_v30 = vadd.f32 %v14777_v16, %v14776_v58 }
 0x756   : > { %v14779_v19 = vpop.f32.mrb[130].mxu1 }
 0x757   : > { %v14780_v37 = vpop.f32.mrb[131].mxu1 }
 0x758   : > { %v14781_v5 = vadd.f32 %v14780_v37, %v14779_v19 }
 0x759   : > { %v14738_v17 = vpop.f32.mrb[110].mxu0 }
 0x75a   : > { %v14739_v22 = vpop.f32.mrb[111].mxu0 }
 0x75b   : > { %v14740_v63 = vadd.f32 %v14739_v22, %v14738_v17  ;;  %v29637_v22 = vld [vmem:[#allocation111_spill] sm:$0xff] }
 0x75d   : > { %v11234_v47 = vadd.f32 %v14740_v63, %v11055_v0  ;;  %v14741_v51 = vpop.f32.mrb[112].mxu0 }
 0x75e   : > { %v14742_v48 = vpop.f32.mrb[113].mxu0 }
 0x75f   : > { %v14743_v34 = vadd.f32 %v14742_v48, %v14741_v51  ;;  %v11345_v53 = vadd.f32 %v14778_v30, %v11234_v47  ;;  %v29636_v30 = vld [vmem:[#allocation45_spill] sm:$0xff]  ;;  %v29638_v47 = vld [vmem:[#allocation107_spill] sm:$0xff] }
 0x761   : > { %v11241_v56 = vadd.f32 %v14743_v34, %v11066_v44 }
 0x763   : > { %v11352_v41 = vadd.f32 %v14781_v5, %v11241_v56  ;;  %v29639_v56 = vld [vmem:[#allocation112_spill] sm:$0xff] }
 0x772   : > { %v15038_v49 = vpop.f32.mrb[132].mxu1 }
 0x773   : > { %v11453_v60 = vadd.f32 %v15038_v49, %v11352_v41  ;;  %v11442_v24 = vpop.f32.mrb[133].mxu1 }
 0x774   : > { %v11443_v25 = vadd.f32 %v11442_v24, %v11345_v53 }
 0x7f9   : > { %v15213_v15 = vpop.f32.mrb[114].mxu0 }
 0x7fa   : > { %v17525_v35 = vadd.f32 %v15213_v15, %v11453_v60  ;;  %v12029_v6 = vpop.f32.mrb[115].mxu0 }
 0x7fb   : > { %v17527_v62 = vadd.f32 %v12029_v6, %v11443_v25  ;;  %v29640_v25 = vld [vmem:[#allocation52_spill] sm:$0xff] }
 0x7fc   : > { %v12043_v36 = vsel %vm12039_vm8, %v17525_v35, -inf }
 0x7fd   : > { %v12040_v7 = vsel %vm12039_vm8, %v17527_v62, -inf }
 0x7fe   : > { %12041 = vmax.xlane.f32.xlu0 %v12040_v7 }
 0x802   : > { %12044 = vmax.xlane.f32.xlu0 %v12043_v36 }
 0x88b   : > { %v12042_v55 = vpop.xlane.xlu0 %12041 }
 0x88c   : > { %v12046_v61 = vsub.f32 %v17527_v62, %v12042_v55  ;;  %v29642_v55 = vld [vmem:[#allocation43_spill] sm:$0xff] }
 0x88e   : > { %v12048_v8 = vmul.f32 1.442695, %v12046_v61 }
 0x88f   : > { %v12045_v2 = vpop.xlane.xlu0 %12044 }
 0x890   : > { %v12047_v20 = vsub.f32 %v17525_v35, %v12045_v2  ;;  %v29641_v35 = vld [vmem:[#allocation44_spill] sm:$0xff] }
 0x892   : > { %v12050_v12 = vmul.f32 1.442695, %v12047_v20 }
 0x894   : > { %17669 = vpow2.f32 %v12050_v12  ;;  %v29643_v12 = vld [vmem:[#allocation58_spill] sm:$0xff] }
 0x895   : > { %17671 = vpow2.f32 %v12048_v8 }
 0x89e   : > { %v17670_v13 = vpop.eup %17669 }
 0x89f   : > { %v12055_v3 = vsel %vm12039_vm8, %v17670_v13, 0.0  ;;  %v17672_v43 = vpop.eup %17671 }
 0x8a0   : > { %12056 = vadd.xlane.f32.xlu1 %v12055_v3  ;;  %v12052_v40 = vsel %vm12039_vm8, %v17672_v43, 0.0  ;;  %v29644_v3 = vld [vmem:[#allocation109_spill] sm:$0xff] }
 0x8a4   : > { %12053 = vadd.xlane.f32.xlu1 %v12052_v40 }
 0x92d   : > { %v12057_v45 = vpop.xlane.xlu1 %12056 }
 0x92e   : > { %17673 = vrcp.f32 %v12057_v45  ;;  %v29645_v45 = vld [vmem:[#allocation53_spill] sm:$0xff] }
 0x931   : > { %v12054_v59 = vpop.xlane.xlu1 %12053 }
 0x932   : > { %17675 = vrcp.f32 %v12054_v59 }
 0x938   : > { %v17674_v4 = vpop.eup %17673 }
 0x939   : > { %v26195_v1 = vmul.f32 %v17674_v4, %v17670_v13 }
 0x93b   : > { %12136 = vperm.xlu0 %17641, %v26195_v1   ;;  %12069 = vperm.xlu1 %17637, %v26195_v1  }
 0x93c   : > { %v17676_v32 = vpop.eup %17675 }
 0x93d   : > { %v12059_v29 = vmul.f32 %v17676_v32, %v17672_v43 }
 0x93f   : > { %17644 = vset.pattern.permute.xlu0 %v17779_v14  ;;  %17638 = vset.pattern.permute.xlu1 %v17780_v9 }
 0x940   : > { %12190 = vperm.xlu0 %17644, %v26195_v1   ;;  %12081 = vperm.xlu1 %17638, %v26195_v1  }
 0x944   : > { %17647 = vset.pattern.permute.xlu0 %v17781_v21  ;;  %17639 = vset.pattern.permute.xlu1 %v17782_v26 }
 0x945   : > { %12235 = vperm.xlu0 %17647, %v26195_v1   ;;  %12100 = vperm.xlu1 %17639, %v26195_v1  }
 0x949   : > { %17650 = vset.pattern.permute.xlu0 %v17783_v57  ;;  %17640 = vset.pattern.permute.xlu1 %v17784_v27 }
 0x94a   : > { %12280 = vperm.xlu0 %17650, %v26195_v1   ;;  %12118 = vperm.xlu1 %17640, %v26195_v1  }
 0x94e   : > { %17652 = vset.pattern.permute.xlu0 %v17778_v23  ;;  %17642 = vset.pattern.permute.xlu1 %v17785_v54 }
 0x94f   : > { %12154 = vperm.xlu1 %17642, %v26195_v1   ;;  %12064 = vperm.xlu0 %17652, %v12059_v29  }
 0x953   : > { %17643 = vset.pattern.permute.xlu1 %v17786_v18  ;;  %17658 = vset.pattern.permute.xlu0 %v17786_v18 }
 0x954   : > { %12172 = vperm.xlu1 %17643, %v26195_v1   ;;  %12168 = vperm.xlu0 %17658, %v12059_v29  }
 0x958   : > { %17645 = vset.pattern.permute.xlu1 %v17787_v11  ;;  %17661 = vset.pattern.permute.xlu0 %v17788_v50 }
 0x959   : > { %12208 = vperm.xlu1 %17645, %v26195_v1   ;;  %12216 = vperm.xlu0 %17661, %v12059_v29  }
 0x95d   : > { %17646 = vset.pattern.permute.xlu1 %v17788_v50  ;;  %17664 = vset.pattern.permute.xlu0 %v17789_v10 }
 0x95e   : > { %12220 = vperm.xlu1 %17646, %v26195_v1   ;;  %12261 = vperm.xlu0 %17664, %v12059_v29  }
 0x962   : > { %17648 = vset.pattern.permute.xlu1 %v17790_v46  ;;  %17667 = vset.pattern.permute.xlu0 %v17791_v52 }
 0x963   : > { %12250 = vperm.xlu1 %17648, %v26195_v1   ;;  %12306 = vperm.xlu0 %17667, %v12059_v29  }
 0x967   : > { %17649 = vset.pattern.permute.xlu1 %v17789_v10 }
 0x968   : > { %12265 = vperm.xlu1 %17649, %v26195_v1  }
 0x96c   : > { %17651 = vset.pattern.permute.xlu1 %v17792_v33 }
 0x96d   : > { %12295 = vperm.xlu1 %17651, %v26195_v1  }
 0x971   : > { %17653 = vset.pattern.permute.xlu1 %v17780_v9  ;;  %v29646_v9 = vld [vmem:[#allocation8_spill] sm:$0xff] }
 0x972   : > { %12077 = vperm.xlu1 %17653, %v12059_v29  }
 0x976   : > { %17654 = vset.pattern.permute.xlu1 %v17782_v26  ;;  %v29647_v26 = vld [vmem:[#allocation110_spill] sm:$0xff] }
 0x977   : > { %12096 = vperm.xlu1 %17654, %v12059_v29  }
 0x97b   : > { %17655 = vset.pattern.permute.xlu1 %v17784_v27 }
 0x97c   : > { %12114 = vperm.xlu1 %17655, %v12059_v29  }
 0x980   : > { %17656 = vset.pattern.permute.xlu1 %v17777_v31 }
 0x981   : > { %12132 = vperm.xlu1 %17656, %v12059_v29  }
 0x985   : > { %17657 = vset.pattern.permute.xlu1 %v17785_v54  ;;  %v29648_v54 = vld [vmem:[#allocation9_spill] sm:$0xff] }
 0x986   : > { %12150 = vperm.xlu1 %17657, %v12059_v29  }
 0x98a   : > { %17659 = vset.pattern.permute.xlu1 %v17779_v14 }
 0x98b   : > { %12186 = vperm.xlu1 %17659, %v12059_v29  }
 0x98f   : > { %17660 = vset.pattern.permute.xlu1 %v17787_v11 }
 0x990   : > { %12204 = vperm.xlu1 %17660, %v12059_v29  }
 0x994   : > { %17662 = vset.pattern.permute.xlu1 %v17781_v21 }
 0x995   : > { %12231 = vperm.xlu1 %17662, %v12059_v29  }
 0x999   : > { %17663 = vset.pattern.permute.xlu1 %v17790_v46 }
 0x99a   : > { %12246 = vperm.xlu1 %17663, %v12059_v29  }
 0x99e   : > { %17665 = vset.pattern.permute.xlu1 %v17783_v57 }
 0x99f   : > { %12276 = vperm.xlu1 %17665, %v12059_v29  }
 0x9a3   : > { %17666 = vset.pattern.permute.xlu1 %v17792_v33  ;;  %v29650_v33 = vld [vmem:[#allocation56_spill] sm:$0xff] }
 0x9a4   : > { %12291 = vperm.xlu1 %17666, %v12059_v29  }
 0x9a8   : > { %17668 = vset.pattern.permute.xlu1 %v17791_v52  ;;  %v29649_v52 = vrot.slane %v29634_v42, 1 }
 0x9a9   : > { %12310 = vperm.xlu1 %17668, %v26195_v1  }
 0x9ba   : > { %v12070_v38 = vpop.permute.xlu1 %12069  ;;  %v12137_v5 = vpop.permute.xlu0 %12136 }
 0x9bb   : > { %v12073_v0 = vmul.f32 %v12070_v38, %v29634_v42  ;;  %v12146_v51 = vmul.f32 %v29638_v47, %v12137_v5  ;;  %v12086_v38 = vsel %vm1677_vm1, %v29650_v33, %v29649_v52  ;;  %v29653_v5 = vrot.slane %v29634_v42, 3 }
 0x9bf   : > { %v12082_v39 = vpop.permute.xlu1 %12081  ;;  %v12191_v60 = vpop.permute.xlu0 %12190 }
 0x9c0   : > { %v12092_v44 = vmul.f32 %v29635_v28, %v12082_v39  ;;  %v12200_v6 = vmul.f32 %v29641_v35, %v12191_v60 }
 0x9c2   : > { %v12094_v58 = vadd.f32 %v12092_v44, %v12073_v0  ;;  %v29651_v44 = vrot.slane %v29634_v42, 2 }
 0x9c4   : > { %v12101_v16 = vpop.permute.xlu1 %12100  ;;  %v12236_v20 = vpop.permute.xlu0 %12235 }
 0x9c5   : > { %v12110_v19 = vmul.f32 %v29636_v30, %v12101_v16  ;;  %v12242_v43 = vmul.f32 %v29644_v3, %v12236_v20 }
 0x9c7   : > { %v12112_v37 = vadd.f32 %v12110_v19, %v12094_v58  ;;  %v29652_v58 = vld [vmem:[#allocation62_spill] sm:$0xff] }
 0x9c8   : > { %v12104_v16 = vsel %vm1705_vm3, %v29652_v58, %v29651_v44  ;;  %v29663_v58 = vld [vmem:[#allocation60_spill] sm:$0xff] }
 0x9c9   : > { %v12119_v17 = vpop.permute.xlu1 %12118  ;;  %v12281_v59 = vpop.permute.xlu0 %12280 }
 0x9ca   : > { %v12128_v63 = vmul.f32 %v29637_v22, %v12119_v17  ;;  %v12287_v57 = vmul.f32 %v29647_v26, %v12281_v59  ;;  %v29654_v17 = vld [vmem:[#allocation57_spill] sm:$0xff] }
 0x9cc   : > { %v12130_v48 = vadd.f32 %v12128_v63, %v12112_v37  ;;  %v12122_v63 = vsel %vm1715_vm2, %v29654_v17, %v29653_v5 }
 0x9ce   : > { %v12148_v34 = vadd.f32 %v12146_v51, %v12130_v48  ;;  %v12155_v53 = vpop.permute.xlu1 %12154  ;;  %v12065_v46 = vpop.permute.xlu0 %12064 }
 0x9cf   : > { %v12164_v41 = vmul.f32 %v29639_v56, %v12155_v53  ;;  %v12072_v19 = vmul.f32 0.0, %v12065_v46  ;;  %v29655_v53 = vrot.slane %v29634_v42, 4 }
 0x9d1   : > { %v12166_v49 = vadd.f32 %v12164_v41, %v12148_v34  ;;  %v29656_v41 = vld [vmem:[#allocation34_spill] sm:$0xff] }
 0x9d3   : > { %v12173_v24 = vpop.permute.xlu1 %12172 }
 0x9d4   : > { %v12182_v15 = vmul.f32 %v29640_v25, %v12173_v24 }
 0x9d6   : > { %v12184_v62 = vadd.f32 %v12182_v15, %v12166_v49  ;;  %v12140_v49 = vsel %vm1725_vm5, %v29656_v41, %v29655_v53 }
 0x9d8   : > { %v12202_v7 = vadd.f32 %v12200_v6, %v12184_v62  ;;  %v12209_v36 = vpop.permute.xlu1 %12208  ;;  %v29657_v6 = vrot.slane %v29634_v42, 5  ;;  %v29658_v62 = vld [vmem:[#allocation23_spill] sm:$0xff] }
 0x9d9   : > { %v12212_v61 = vmul.f32 %v12209_v36, %v29642_v55 }
 0x9db   : > { %v12214_v2 = vadd.f32 %v12212_v61, %v12202_v7  ;;  %v12158_v7 = vsel %vm1735_vm4, %v29658_v62, %v29657_v6 }
 0x9dd   : > { %v12221_v8 = vpop.permute.xlu1 %12220 }
 0x9de   : > { %v12227_v13 = vmul.f32 %v29643_v12, %v12221_v8  ;;  %v29659_v8 = vrot.slane %v29634_v42, 6  ;;  %v29660_v12 = vld [vmem:[#allocation10_spill] sm:$0xff] }
 0x9e0   : > { %v12229_v40 = vadd.f32 %v12227_v13, %v12214_v2  ;;  %v12169_v2 = vpop.permute.xlu0 %12168  ;;  %v12176_v13 = vsel %vm1745_vm7, %v29660_v12, %v29659_v8 }
 0x9e1   : > { %v12181_v3 = vmul.f32 %v12176_v13, %v12169_v2 }
 0x9e2   : > { %v12244_v31 = vadd.f32 %v12242_v43, %v12229_v40  ;;  %v12251_v23 = vpop.permute.xlu1 %12250  ;;  %v29661_v40 = vrot.slane %v29634_v42, 7 }
 0x9e3   : > { %v12257_v4 = vmul.f32 %v29645_v45, %v12251_v23 }
 0x9e5   : > { %v12259_v1 = vadd.f32 %v12257_v4, %v12244_v31  ;;  %v29662_v31 = vld [vmem:[#allocation61_spill] sm:$0xff] }
 0x9e6   : > { %v12194_v23 = vsel %vm1755_vm6, %v29662_v31, %v29661_v40 }
 0x9e7   : > { %v12266_v14 = vpop.permute.xlu1 %12265 }
 0x9e8   : > { %v12272_v21 = vmul.f32 %v29646_v9, %v12266_v14 }
 0x9ea   : > { %v12274_v27 = vadd.f32 %v12272_v21, %v12259_v1  ;;  %v12217_v1 = vpop.permute.xlu0 %12216 }
 0x9eb   : > { %v12226_v21 = vmul.f32 %v12217_v1, %v29635_v28 }
 0x9ec   : > { %v12289_v32 = vadd.f32 %v12287_v57, %v12274_v27  ;;  %v12296_v29 = vpop.permute.xlu1 %12295 }
 0x9ed   : > { %v12302_v18 = vmul.f32 %v29648_v54, %v12296_v29 }
 0x9ee   : > { %v12262_v54 = vpop.permute.xlu0 %12261 }
 0x9ef   : > { %v26229_v11 = vadd.f32 %v12302_v18, %v12289_v32 }
 0x9f1   : > { %v12078_v50 = vpop.permute.xlu1 %12077 }
 0x9f2   : > { %v12091_v0 = vmul.f32 %v12086_v38, %v12078_v50  ;;  %v12307_v38 = vpop.permute.xlu0 %12306 }
 0x9f4   : > { %v12093_v51 = vadd.f32 %v12091_v0, %v12072_v19  ;;  %v12316_v0 = vmul.f32 %v12307_v38, %v29641_v35 }
 0x9f6   : > { %v12097_v10 = vpop.permute.xlu1 %12096 }
 0x9f7   : > { %v12109_v37 = vmul.f32 %v12104_v16, %v12097_v10  ;;  %v12271_v10 = vmul.f32 %v12262_v54, %v29638_v47 }
 0x9f9   : > { %v12111_v60 = vadd.f32 %v12109_v37, %v12093_v51 }
 0x9fb   : > { %v12115_v39 = vpop.permute.xlu1 %12114 }
 0x9fc   : > { %v12127_v48 = vmul.f32 %v12122_v63, %v12115_v39 }
 0x9fe   : > { %v12129_v15 = vadd.f32 %v12127_v48, %v12111_v60 }
 0xa00   : > { %v12133_v34 = vpop.permute.xlu1 %12132 }
 0xa01   : > { %v12145_v24 = vmul.f32 %v12140_v49, %v12133_v34 }
 0xa03   : > { %v12147_v55 = vadd.f32 %v12145_v24, %v12129_v15 }
 0xa05   : > { %v12151_v36 = vpop.permute.xlu1 %12150 }
 0xa06   : > { %v12163_v61 = vmul.f32 %v12158_v7, %v12151_v36 }
 0xa08   : > { %v12165_v20 = vadd.f32 %v12163_v61, %v12147_v55 }
 0xa0a   : > { %v12187_v43 = vpop.permute.xlu1 %12186  ;;  %v12183_v45 = vadd.f32 %v12181_v3, %v12165_v20 }
 0xa0b   : > { %v12199_v4 = vmul.f32 %v12194_v23, %v12187_v43 }
 0xa0d   : > { %v12201_v14 = vadd.f32 %v12199_v4, %v12183_v45 }
 0xa0f   : > { %v12205_v59 = vpop.permute.xlu1 %12204 }
 0xa10   : > { %v12211_v9 = vmul.f32 %v12205_v59, %v29634_v42 }
 0xa12   : > { %v12213_v26 = vadd.f32 %v12211_v9, %v12201_v14 }
 0xa14   : > { %v12228_v57 = vadd.f32 %v12226_v21, %v12213_v26  ;;  %v12232_v27 = vpop.permute.xlu1 %12231 }
 0xa15   : > { %v12241_v32 = vmul.f32 %v12232_v27, %v29636_v30 }
 0xa17   : > { %v12243_v29 = vadd.f32 %v12241_v32, %v12228_v57 }
 0xa19   : > { %v12247_v18 = vpop.permute.xlu1 %12246 }
 0xa1a   : > { %v12256_v50 = vmul.f32 %v12247_v18, %v29637_v22 }
 0xa1c   : > { %v12258_v46 = vadd.f32 %v12256_v50, %v12243_v29 }
 0xa1e   : > { %v12273_v52 = vadd.f32 %v12271_v10, %v12258_v46  ;;  %v12277_v33 = vpop.permute.xlu1 %12276 }
 0xa1f   : > { %v12286_v42 = vmul.f32 %v12277_v33, %v29639_v56 }
 0xa21   : > { %v12288_v28 = vadd.f32 %v12286_v42, %v12273_v52 }
 0xa23   : > { %v12292_v39 = vpop.permute.xlu1 %12291 }
 0xa24   : > { %v12301_v30 = vmul.f32 %v12292_v39, %v29640_v25 }
 0xa26   : > { %v12303_v44 = vadd.f32 %v12301_v30, %v12288_v28 }
 0xa28   : > { %v12318_v22 = vadd.f32 %v12316_v0, %v12303_v44  ;;  %v12311_v47 = vpop.permute.xlu1 %12310 }
 0xa29   : > { %v12317_v16 = vmul.f32 %v29663_v58, %v12311_v47 }
 0xa2a   : > { %12320 = vst [vmem:[%s328_s25] sm:$0xff] %v12318_v22 }
 0xa2b   : > { %v12319_v56 = vadd.f32 %v12317_v16, %v26229_v11 }
 0xa2d   : > { %12321 = vst [vmem:[%s328_s25 + $0x8] sm:$0xff] %v12319_v56 }
 0xa2e   : > { %17718 = shalt.err (!%p17715_p7)
}
 0xa2f   : > { %s17719_s19 = scalar_lea.hbm %s26276_s13, 256  ;;  %s17723_s25 = scalar_lea.hbm %s26327_s8, 512 }
 0xa30   : > { %p17720_p8 = scmp.ne.s32.totalorder %s26276_s13, %s17719_s19  ;;  %p17724_p1 = scmp.lt.u32.totalorder %s26276_s13, %s26327_s8 }
 0xa31   : > { %p17725_p0 = scmp.lt.u32.totalorder %s17723_s25, %s17719_s19  ;;  %p17727_p6 = scmp.lt.u32.totalorder %s17719_s19, %s26276_s13 }
 0xa32   : > { %p17721_p11 = pnand %p17720_p8, %p29664_p9 }
 0xa33   : > { %p17726_p5 = por %p17725_p0, %p17724_p1 }
 0xa34   : > { %p17722_p13 = pneg %p17721_p11 }
 0xa35   : > { %p17728_p10 = por %p17727_p6, %p17726_p5 }
 0xa37   : > { %p17729_p12 = pnand %p17728_p10, %p17722_p13 }
 0xa39   : > { %17732 = shalt.err (!%p17729_p12)
}
 0xa3a   : > { %s17794_s21 = smov 128   ;;  %s17795_s22 = smov 8  }
 0xa3b   : > { %17570 = dma.vmem_to_hbm [thread:$0]  (%p29664_p9), %s26270_s10, 256, %s26276_s13, %s26278_s18, %s17794_s21, %s17794_s21, %s17795_s22  }
 0xa3c PF: > { %p17582_p2 = scmp.ge.s32.totalorder %s17771_s30, 2  ;;  %s12351_s9 = sand.u32 1, %s17759_s27  }
 0xa3d   : > { %p29665_p3 = scmp.ne.s32.totalorder %s27478_s16, 0  ;;  %s12352_s20 = scalar_lea.sflag [#allocation4], %s12351_s9 }
 0xa3f   : > { %p17577_p4 = pnand %p17582_p2, %p29665_p3 }
 0xa41   : > { %17754 = dma.done.wait (!%p17577_p4), %s12352_s20, 256  }
 0xa42   : > { %17756 = vsyncadd (!%p17577_p4), %s12352_s20, 4294967040  ;;  %p19_p7 = scmp.ge.s32.totalorder %s17866_s11, 4   ;;  %s29666_s27 = smov %s17763_s28 }
 0xa43   : > { %s29667_s28 = smov %s17767_s29  ;;  %s29668_s29 = smov %s17877_s14 }
 0xa44   : > { %s29669_s30 = smov %s17866_s11  ;;  %21 = sbr.rel (!%p19_p7) target bundleno = 4 (0x4), region = 95 }
 0xa4b   :  { %12357 = vsyncpa [#allocation3], 1 }
 0xa4c   :  { %12359 = vsyncpa [#allocation3 + $0x1], 1 }
 0xa4d   :  { %12360 = vsyncpa [#allocation4], 1 }
 0xa4e   :  { %12362 = vsyncpa [#allocation4 + $0x1], 1 }

</bundles_post_ra>
